<compile_context>
chip_gen: v7x
topology: tpu7x:2x2x1
jax: 0.10.0
libtpu: 0.0.40
codegen_flags: <defaults>
</compile_context>

<pallas_src>
import functools
import numpy as np

import jax
import jax.numpy as jnp
from jax.experimental import pallas as pl
from jax.experimental.pallas import tpu as pltpu

Z_DIM = 10
N_GROUP = 10          # the "N" of the group transform
IMG = 64              # encoder architecture requires 64x64 inputs
BATCH = 2
LANE = 128


def _round_up(x, m):
    return ((x + m - 1) // m) * m


def _choose_m_tiling(M):
    """Single grid step for small/medium M; 2-way split only for the big (M>=2048)
    layers (e1, d6) so both v7x TensorCores get work.  VMEM is never the limiter."""
    if M >= 2048:
        Mp = _round_up(M, 32)
        return Mp, Mp // 2
    Mp = _round_up(M, 16)
    return Mp, Mp


# ---------------------------------------------------------------------------
# Pallas kernels
# ---------------------------------------------------------------------------

def _gemm_bias_act_kernel(a_ref, w_ref, b_ref, o_ref, *, relu):
    acc = jnp.dot(a_ref[...], w_ref[...], preferred_element_type=jnp.float32)
    acc = acc + b_ref[...]
    if relu:
        acc = jnp.maximum(acc, 0.0)
    o_ref[...] = acc.astype(o_ref.dtype)


def gemm_bias_act(a, w, b_row, *, relu, out_dtype=jnp.bfloat16):
    """a:(M,K) any float, w:(K,N) bf16, b_row:(1,N) f32 -> (M,N) out_dtype.
    N must be a multiple of 128 (lane-dense store); K need not be."""
    M, K = a.shape
    N = w.shape[1]
    Mp, tm = _choose_m_tiling(M)
    if Mp != M:
        a = jnp.pad(a, ((0, Mp - M), (0, 0)))
    a = a.astype(jnp.bfloat16)
    out = pl.pallas_call(
        functools.partial(_gemm_bias_act_kernel, relu=relu),
        out_shape=jax.ShapeDtypeStruct((Mp, N), out_dtype),
        grid_spec=pltpu.PrefetchScalarGridSpec(
            num_scalar_prefetch=0,
            grid=(Mp // tm,),
            in_specs=[
                pl.BlockSpec((tm, K), lambda i: (i, 0)),
                pl.BlockSpec((K, N), lambda i: (0, 0)),
                pl.BlockSpec((1, N), lambda i: (0, 0)),
            ],
            out_specs=pl.BlockSpec((tm, N), lambda i: (i, 0)),
        ),
        compiler_params=pltpu.CompilerParams(
            dimension_semantics=("parallel",)),
    )(a, w, b_row)
    return out[:M] if Mp != M else out


def _mlp2_kernel(a_ref, w1_ref, b1_ref, w2_ref, b2_ref, o_ref, *, relu2):
    h = jnp.dot(a_ref[...], w1_ref[...], preferred_element_type=jnp.float32)
    h = jnp.maximum(h + b1_ref[...], 0.0)
    o = jnp.dot(h.astype(w2_ref.dtype), w2_ref[...],
                preferred_element_type=jnp.float32)
    o = o + b2_ref[...]
    if relu2:
        o = jnp.maximum(o, 0.0)
    o_ref[...] = o.astype(o_ref.dtype)


def mlp2(a, w1, b1, w2, b2, *, relu2, out_dtype):
    """Fused  relu(a@w1+b1) @ w2 + b2  for the tiny M=batch layers (e5->e6, d1->d2)."""
    M = a.shape[0]
    N2 = w2.shape[1]
    Mp = _round_up(M, 8)
    if Mp != M:
        a = jnp.pad(a, ((0, Mp - M), (0, 0)))
    out = pl.pallas_call(
        functools.partial(_mlp2_kernel, relu2=relu2),
        out_shape=jax.ShapeDtypeStruct((Mp, N2), out_dtype),
    )(a.astype(jnp.bfloat16), w1, b1, w2, b2)
    return out[:M]


# ---------------------------------------------------------------------------
# Conv / ConvTranspose wrappers (NHWC, bf16 activations, pre-packed weights)
# ---------------------------------------------------------------------------

def _extract_patches(x, kh, kw, stride, pad, c_true):
    """x:(B,H,W,C>=c_true) NHWC -> ((B*Ho*Wo, kh*kw*c_true), Ho, Wo); K ordered (kh,kw,c)."""
    x = x[..., :c_true]
    if pad:
        x = jnp.pad(x, ((0, 0), (pad, pad), (pad, pad), (0, 0)))
    B, H, W, C = x.shape
    Ho = (H - kh) // stride + 1
    Wo = (W - kw) // stride + 1
    parts = []
    for i in range(kh):
        for j in range(kw):
            parts.append(x[:, i:i + stride * (Ho - 1) + 1:stride,
                              j:j + stride * (Wo - 1) + 1:stride, :])
    cols = jnp.concatenate(parts, axis=-1)
    return cols.reshape(B * Ho * Wo, kh * kw * C), Ho, Wo


def conv2d_block(x, wm, b_row, c_in, relu):
    """Conv2d 4x4 stride 2 pad 1 as im2col GEMM.  x NHWC (channels >= c_in).
    wm:(16*c_in, Npad) bf16 pre-packed; output NHWC, Cout padded to 128 (lane-dense)."""
    B = x.shape[0]
    a, Ho, Wo = _extract_patches(x, 4, 4, 2, 1, c_in)
    out = gemm_bias_act(a, wm, b_row, relu=relu)            # (M, Npad) bf16
    return out.reshape(B, Ho, Wo, wm.shape[1])


def conv_transpose2d_s2(x, wp, b_row, c_out_true, relu, gemm=gemm_bias_act):
    """ConvTranspose2d(kernel=4, stride=2, padding=1), 4 sub-pixel phases folded into N.

    x:(B,H,W,Cin) true-channel NHWC.  wp:(4*Cin, 4*c_pad) pre-packed (K=(da,db,c),
    N=(s,t,co)); b_row:(1, 4*c_pad).  Returns (B, 2H, 2W, c_out_true) NHWC.
    y[2u-1+s, 2v-1+t, co] = sum_{da,db,c} xpad[u+da, v+db, c] * w[c,co,2(1-da)+s,2(1-db)+t]
    (rows/cols with 2u-1+s outside [0,2H) are cropped)."""
    B, H, W, Cin = x.shape
    c_pad = wp.shape[1] // 4
    xp = jnp.pad(x, ((0, 0), (1, 1), (1, 1), (0, 0)))
    parts = []
    for da in range(2):
        for db in range(2):
            parts.append(xp[:, da:da + H + 1, db:db + W + 1, :])
    a = jnp.concatenate(parts, axis=-1).reshape(B * (H + 1) * (W + 1), 4 * Cin)
    out = gemm(a, wp, b_row, relu=relu)                      # (M, 4*c_pad)
    out = out.reshape(B, H + 1, W + 1, 2, 2, c_pad)[..., :c_out_true]
    out = out.transpose(0, 1, 3, 2, 4, 5).reshape(B, 2 * H + 2, 2 * W + 2, c_out_true)
    return out[:, 1:2 * H + 1, 1:2 * W + 1, :]


# ---------------------------------------------------------------------------
# Fused tiny-M sub-networks
# ---------------------------------------------------------------------------

def encoder_tail(h, p):
    """Fused e5 (Conv 4x4 s1, 64->256, ReLU) + e6 (Conv 1x1, 256->2z). h:(B,4,4,Cpad)."""
    B = h.shape[0]
    a = h[..., :64].reshape(B, 16 * 64)                      # (kh,kw,c) row-major patch
    out = mlp2(a, p["e5_wm"], p["e5_b"], p["e6_wm"], p["e6_b"],
               relu2=False, out_dtype=jnp.float32)
    return out[:, :2 * Z_DIM]                                # (B, 2z) f32


def decoder_head(cm_z, p):
    """Fused d1 (Conv 1x1, 2z->256, ReLU) + d2 (ConvTranspose 4x4 from 1x1, 256->64, ReLU).
    Returns (B, 4, 4, 64) NHWC bf16."""
    B = cm_z.shape[0]
    out = mlp2(cm_z, p["d1_wm"], p["d1_b"], p["d2_wm"], p["d2_b"],
               relu2=True, out_dtype=jnp.bfloat16)           # (B, 16*64)
    return out.reshape(B, 4, 4, 64)


# ---------------------------------------------------------------------------
# Parameters (normal_init: weight ~ N(0, 0.02), bias = 0) — torch layouts
# ---------------------------------------------------------------------------

def init_params(key, z_dim):
    shapes = {
        # encoder (Conv2d weights: (Cout, Cin, kh, kw))
        "e1_w": (32, 3, 4, 4), "e2_w": (32, 32, 4, 4), "e3_w": (64, 32, 4, 4),
        "e4_w": (64, 64, 4, 4), "e5_w": (256, 64, 4, 4),
        "e6_w": (2 * z_dim, 256, 1, 1),
        # decoder; group=True -> decode_dim = 2*z_dim
        "d1_w": (256, 2 * z_dim, 1, 1),                # Conv2d
        "d2_w": (256, 64, 4, 4),                       # ConvTranspose2d (Cin, Cout, k, k)
        "d3_w": (64, 64, 4, 4), "d4_w": (64, 32, 4, 4),
        "d5_w": (32, 32, 4, 4), "d6_w": (32, 3, 4, 4),
    }
    params = {}
    keys = jax.random.split(key, len(shapes))
    for k_rng, (name, shp) in zip(keys, sorted(shapes.items())):
        params[name] = 0.02 * jax.random.normal(k_rng, shp, dtype=jnp.float32)
    bias_dims = {"e1": 32, "e2": 32, "e3": 64, "e4": 64, "e5": 256, "e6": 2 * z_dim,
                 "d1": 256, "d2": 64, "d3": 64, "d4": 32, "d5": 32, "d6": 3}
    for name, d in bias_dims.items():
        params[name + "_b"] = jnp.zeros((d,), jnp.float32)
    return params


def _pack_convtranspose_w(w_t, c_pad):
    """torch ConvTranspose2d weight (Cin,Cout,4,4) -> (4*Cin, 4*c_pad) with
    K order (da,db,c) and N order (s,t,co); tap (ky,kx) = (2(1-da)+s, 2(1-db)+t)."""
    Cin, Cout = w_t.shape[0], w_t.shape[1]
    w6 = w_t.reshape(Cin, Cout, 2, 2, 2, 2)[:, :, ::-1, :, ::-1, :]   # (c,co,da,s,db,t)
    wp = jnp.transpose(w6, (2, 4, 0, 3, 5, 1))                        # (da,db,c,s,t,co)
    if c_pad != Cout:
        wp = jnp.pad(wp, ((0, 0),) * 5 + ((0, c_pad - Cout),))
    return wp.reshape(4 * Cin, 4 * c_pad)


def _pack_convtranspose_b(b, c_pad):
    Cout = b.shape[0]
    if c_pad != Cout:
        b = jnp.pad(b, (0, c_pad - Cout))
    return jnp.broadcast_to(b, (4, c_pad)).reshape(1, 4 * c_pad).astype(jnp.float32)


def pack_params(params):
    """Run ONCE outside the jitted forward: all transposes / reshapes / phase folds /
    pads / bf16 casts of the weights happen here."""
    bf = lambda a: a.astype(jnp.bfloat16)
    p = {}

    def brow(b, n=None):
        if n is not None and n != b.shape[0]:
            b = jnp.pad(b, (0, n - b.shape[0]))
        return b.astype(jnp.float32).reshape(1, -1)

    # encoder convs e1..e4: (Cout,Cin,4,4) -> (16*Cin, Cout padded to 128)
    for name in ("e1", "e2", "e3", "e4"):
        w = params[name + "_w"]
        Cout, Cin = w.shape[0], w.shape[1]
        wm = jnp.transpose(w, (2, 3, 1, 0)).reshape(16 * Cin, Cout)
        Np = _round_up(Cout, LANE)
        if Np != Cout:
            wm = jnp.pad(wm, ((0, 0), (0, Np - Cout)))
        p[name + "_wm"] = bf(wm)
        p[name + "_b"] = brow(params[name + "_b"], Np)

    # encoder tail: e5 (4x4 s1 conv as matmul) + e6 (1x1 conv)
    p["e5_wm"] = bf(jnp.transpose(params["e5_w"], (2, 3, 1, 0)).reshape(16 * 64, 256))
    p["e5_b"] = brow(params["e5_b"])
    Np6 = _round_up(2 * Z_DIM, LANE)
    p["e6_wm"] = bf(jnp.pad(params["e6_w"].reshape(2 * Z_DIM, 256).T,
                            ((0, 0), (0, Np6 - 2 * Z_DIM))))
    p["e6_b"] = brow(params["e6_b"], Np6)

    # decoder head: d1 (1x1 conv) + d2 (ConvTranspose from 1x1 map -> plain matmul)
    p["d1_wm"] = bf(params["d1_w"].reshape(256, 2 * Z_DIM).T)          # (2z, 256)
    p["d1_b"] = brow(params["d1_b"])
    p["d2_wm"] = bf(jnp.transpose(params["d2_w"], (0, 2, 3, 1)).reshape(256, 16 * 64))
    p["d2_b"] = jnp.broadcast_to(params["d2_b"], (16, 64)).reshape(1, 16 * 64).astype(jnp.float32)

    # decoder ConvTranspose (k=4,s=2,p=1): phases folded into N
    for name in ("d3", "d4", "d5", "d6"):
        w = params[name + "_w"]
        Cout = w.shape[1]
        c_pad = Cout if Cout % 32 == 0 else _round_up(Cout, 32)        # d6: 3 -> 32
        p[name + "_wm"] = bf(_pack_convtranspose_w(w, c_pad))
        p[name + "_b"] = _pack_convtranspose_b(params[name + "_b"], c_pad)
    return p


# ---------------------------------------------------------------------------
# FactorVAE2 forward (group=True, no_dec=False)
# ---------------------------------------------------------------------------

def factor_vae2_forward(packed, x, eps):
    B = x.shape[0]
    # ---- encoder (NHWC, bf16 activations inside) ----
    h = jnp.transpose(x, (0, 2, 3, 1)).astype(jnp.bfloat16)               # (B,64,64,3)
    h = conv2d_block(h, packed["e1_wm"], packed["e1_b"], 3, True)         # (B,32,32,128)
    h = conv2d_block(h, packed["e2_wm"], packed["e2_b"], 32, True)        # (B,16,16,128)
    h = conv2d_block(h, packed["e3_wm"], packed["e3_b"], 32, True)        # (B, 8, 8,128)
    h = conv2d_block(h, packed["e4_wm"], packed["e4_b"], 64, True)        # (B, 4, 4,128)
    stats = encoder_tail(h, packed)                                       # (B, 2z) f32

    mu_flat = stats[:, :Z_DIM]
    logvar_flat = stats[:, Z_DIM:]

    # ---- reparametrize + group transform (tiny (B,z) math; left to XLA) ----
    z = eps * jnp.exp(0.5 * logvar_flat) + mu_flat
    ang = (2.0 * np.pi / N_GROUP) * z
    cm_z = jnp.concatenate([jnp.sin(ang), jnp.cos(ang)], axis=1)          # [real=sin, imag=cos] per spec

    # ---- decoder ----
    d = decoder_head(cm_z, packed)                                        # (B, 4, 4, 64)
    d = conv_transpose2d_s2(d, packed["d3_wm"], packed["d3_b"], 64, True)   # (B, 8, 8, 64)
    d = conv_transpose2d_s2(d, packed["d4_wm"], packed["d4_b"], 32, True)   # (B,16,16, 32)
    d = conv_transpose2d_s2(d, packed["d5_wm"], packed["d5_b"], 32, True)   # (B,32,32, 32)
    d = conv_transpose2d_s2(d, packed["d6_wm"], packed["d6_b"], 3, False)   # (B,64,64,  3)
    x_recon = jnp.transpose(d, (0, 3, 1, 2)).astype(jnp.float32)          # NCHW (B,3,64,64)

    mu = mu_flat.reshape(B, Z_DIM, 1, 1)
    logvar = logvar_flat.reshape(B, Z_DIM, 1, 1)
    return x_recon, mu, logvar, jnp.squeeze(z)


# ---------------------------------------------------------------------------
# f32 self-check of the phase-folded ConvTranspose formulation (no Pallas involved)
# ---------------------------------------------------------------------------

def _jnp_f32_gemm(a, w, b_row, *, relu, out_dtype=jnp.float32):
    o = jnp.dot(a.astype(jnp.float32), w.astype(jnp.float32),
                precision=jax.lax.Precision.HIGHEST) + b_row
    if relu:
        o = jnp.maximum(o, 0.0)
    return o.astype(out_dtype)


def _ref_conv_transpose_s2(x_nhwc, w_t, b):
    """torch ConvTranspose2d(k=4,s=2,p=1) reference: input-dilated conv w/ flipped kernel."""
    k = jnp.transpose(w_t[:, :, ::-1, ::-1], (2, 3, 0, 1))                # (kh,kw,Cin,Cout)
    y = jax.lax.conv_general_dilated(
        x_nhwc, k, window_strides=(1, 1), padding=[(2, 2), (2, 2)],
        lhs_dilation=(2, 2), dimension_numbers=("NHWC", "HWIO", "NHWC"),
        precision=jax.lax.Precision.HIGHEST)
    return y + b


# ---------------------------------------------------------------------------

if __name__ == "__main__":
    key = jax.random.PRNGKey(0)
    k_param, k_x, k_eps, k_chk = jax.random.split(key, 4)

    params = init_params(k_param, Z_DIM)

    # Golden test of the phase-fold packing/glue (f32, pure jnp/lax paths).
    xt = jax.random.normal(k_chk, (2, 4, 4, 64), dtype=jnp.float32)
    got = conv_transpose2d_s2(xt, _pack_convtranspose_w(params["d3_w"], 64),
                              _pack_convtranspose_b(params["d3_b"], 64),
                              64, relu=False, gemm=_jnp_f32_gemm)
    ref = _ref_conv_transpose_s2(xt, params["d3_w"], params["d3_b"])
    np.testing.assert_allclose(np.asarray(got), np.asarray(ref), rtol=1e-3, atol=1e-4)

    packed = pack_params(params)        # one-time weight packing (outside jit)
    x = jax.random.normal(k_x, (BATCH, 3, IMG, IMG), dtype=jnp.float32)
    eps = jax.random.normal(k_eps, (BATCH, Z_DIM), dtype=jnp.float32)

    fwd = jax.jit(factor_vae2_forward)
    x_recon, mu, logvar, z = fwd(packed, x, eps)
    jax.block_until_ready((x_recon, mu, logvar, z))

    assert x_recon.shape == (BATCH, 3, IMG, IMG)
    assert mu.shape == (BATCH, Z_DIM, 1, 1)
    assert logvar.shape == (BATCH, Z_DIM, 1, 1)
    assert z.shape == (BATCH, Z_DIM)
    print("KERNEL_OK")
</pallas_src>

<mosaic_0001>
module attributes {stable_mosaic.version = 11 : i64} {
  func.func @_gemm_bias_act_kernel(%arg0: i32, %arg1: memref<1024x48xbf16, #tpu.memory_space<vmem>>, %arg2: memref<48x128xbf16, #tpu.memory_space<vmem>>, %arg3: memref<1x128xf32, #tpu.memory_space<vmem>>, %arg4: memref<1024x128xbf16, #tpu.memory_space<vmem>>) attributes {dimension_semantics = [#tpu.dimension_semantics<parallel>], iteration_bounds = array<i64: 2>, scalar_prefetch = 0 : i64, scratch_operands = 0 : i64, tpu.core_type = #tpu.core_type<tc>, window_params = [{transform_indices = @transform_0, window_bounds = array<i64: 1024, 48>}, {pipeline_mode = #tpu.pipeline_mode<synchronous>, transform_indices = @transform_1, window_bounds = array<i64: 48, 128>}, {pipeline_mode = #tpu.pipeline_mode<synchronous>, transform_indices = @transform_2, window_bounds = array<i64: 1, 128>}, {transform_indices = @transform_3, window_bounds = array<i64: 1024, 128>}]} {
    %c0 = arith.constant 0 : index
    %c0_0 = arith.constant 0 : index
    %0 = vector.load %arg1[%c0, %c0_0] : memref<1024x48xbf16, #tpu.memory_space<vmem>>, vector<1024x48xbf16>
    %c0_1 = arith.constant 0 : index
    %c0_2 = arith.constant 0 : index
    %1 = vector.load %arg2[%c0_1, %c0_2] : memref<48x128xbf16, #tpu.memory_space<vmem>>, vector<48x128xbf16>
    %cst = arith.constant dense<0.000000e+00> : vector<1024x128xf32>
    %2 = tpu.matmul %0, %1, %cst {dimension_numbers = #tpu.dot_dimension_numbers<[1], [0], [0], [1], [0, 0, 1, 1], [], []>} : vector<1024x48xbf16>, vector<48x128xbf16>, vector<1024x128xf32> -> vector<1024x128xf32>
    %c0_3 = arith.constant 0 : index
    %c0_4 = arith.constant 0 : index
    %3 = vector.load %arg3[%c0_3, %c0_4] : memref<1x128xf32, #tpu.memory_space<vmem>>, vector<1x128xf32>
    %4 = vector.broadcast %3 : vector<1x128xf32> to vector<1024x128xf32>
    %5 = arith.addf %2, %4 : vector<1024x128xf32>
    %cst_5 = arith.constant 0.000000e+00 : f32
    %6 = vector.broadcast %cst_5 : f32 to vector<1024x128xf32>
    %7 = arith.maximumf %5, %6 : vector<1024x128xf32>
    %8 = arith.truncf %7 : vector<1024x128xf32> to vector<1024x128xbf16>
    %c0_6 = arith.constant 0 : index
    %c0_7 = arith.constant 0 : index
    %9 = vector.load %arg4[%c0_6, %c0_7] : memref<1024x128xbf16, #tpu.memory_space<vmem>>, vector<1024x128xbf16>
    tpu.vector_store %arg4[%c0_6, %c0_7], %8 {strides = array<i32>} : memref<1024x128xbf16, #tpu.memory_space<vmem>>, vector<1024x128xbf16>,
    return
  }
  func.func @transform_0(%arg0: i32) -> (i32, i32) {
    %c0_i32 = arith.constant 0 : i32
    %c0_i32_0 = arith.constant 0 : i32
    return %arg0, %c0_i32 : i32, i32
  }
  func.func @transform_1(%arg0: i32) -> (i32, i32) {
    %c0_i32 = arith.constant 0 : i32
    %c0_i32_0 = arith.constant 0 : i32
    %c0_i32_1 = arith.constant 0 : i32
    return %c0_i32, %c0_i32_0 : i32, i32
  }
  func.func @transform_2(%arg0: i32) -> (i32, i32) {
    %c0_i32 = arith.constant 0 : i32
    %c0_i32_0 = arith.constant 0 : i32
    %c0_i32_1 = arith.constant 0 : i32
    return %c0_i32, %c0_i32_0 : i32, i32
  }
  func.func @transform_3(%arg0: i32) -> (i32, i32) {
    %c0_i32 = arith.constant 0 : i32
    %c0_i32_0 = arith.constant 0 : i32
    return %arg0, %c0_i32 : i32, i32
  }
}

module attributes {stable_mosaic.version = 11 : i64} {
  func.func @_gemm_bias_act_kernel(%arg0: i32, %arg1: memref<512x512xbf16, #tpu.memory_space<vmem>>, %arg2: memref<512x128xbf16, #tpu.memory_space<vmem>>, %arg3: memref<1x128xf32, #tpu.memory_space<vmem>>, %arg4: memref<512x128xbf16, #tpu.memory_space<vmem>>) attributes {dimension_semantics = [#tpu.dimension_semantics<parallel>], iteration_bounds = array<i64: 1>, scalar_prefetch = 0 : i64, scratch_operands = 0 : i64, tpu.core_type = #tpu.core_type<tc>, window_params = [{transform_indices = @transform_0, window_bounds = array<i64: 512, 512>}, {pipeline_mode = #tpu.pipeline_mode<synchronous>, transform_indices = @transform_1, window_bounds = array<i64: 512, 128>}, {pipeline_mode = #tpu.pipeline_mode<synchronous>, transform_indices = @transform_2, window_bounds = array<i64: 1, 128>}, {transform_indices = @transform_3, window_bounds = array<i64: 512, 128>}]} {
    %c0 = arith.constant 0 : index
    %c0_0 = arith.constant 0 : index
    %0 = vector.load %arg1[%c0, %c0_0] : memref<512x512xbf16, #tpu.memory_space<vmem>>, vector<512x512xbf16>
    %c0_1 = arith.constant 0 : index
    %c0_2 = arith.constant 0 : index
    %1 = vector.load %arg2[%c0_1, %c0_2] : memref<512x128xbf16, #tpu.memory_space<vmem>>, vector<512x128xbf16>
    %cst = arith.constant dense<0.000000e+00> : vector<512x128xf32>
    %2 = tpu.matmul %0, %1, %cst {dimension_numbers = #tpu.dot_dimension_numbers<[1], [0], [0], [1], [0, 0, 1, 1], [], []>} : vector<512x512xbf16>, vector<512x128xbf16>, vector<512x128xf32> -> vector<512x128xf32>
    %c0_3 = arith.constant 0 : index
    %c0_4 = arith.constant 0 : index
    %3 = vector.load %arg3[%c0_3, %c0_4] : memref<1x128xf32, #tpu.memory_space<vmem>>, vector<1x128xf32>
    %4 = vector.broadcast %3 : vector<1x128xf32> to vector<512x128xf32>
    %5 = arith.addf %2, %4 : vector<512x128xf32>
    %cst_5 = arith.constant 0.000000e+00 : f32
    %6 = vector.broadcast %cst_5 : f32 to vector<512x128xf32>
    %7 = arith.maximumf %5, %6 : vector<512x128xf32>
    %8 = arith.truncf %7 : vector<512x128xf32> to vector<512x128xbf16>
    %c0_6 = arith.constant 0 : index
    %c0_7 = arith.constant 0 : index
    %9 = vector.load %arg4[%c0_6, %c0_7] : memref<512x128xbf16, #tpu.memory_space<vmem>>, vector<512x128xbf16>
    tpu.vector_store %arg4[%c0_6, %c0_7], %8 {strides = array<i32>} : memref<512x128xbf16, #tpu.memory_space<vmem>>, vector<512x128xbf16>,
    return
  }
  func.func @transform_0(%arg0: i32) -> (i32, i32) {
    %c0_i32 = arith.constant 0 : i32
    %c0_i32_0 = arith.constant 0 : i32
    return %arg0, %c0_i32 : i32, i32
  }
  func.func @transform_1(%arg0: i32) -> (i32, i32) {
    %c0_i32 = arith.constant 0 : i32
    %c0_i32_0 = arith.constant 0 : i32
    %c0_i32_1 = arith.constant 0 : i32
    return %c0_i32, %c0_i32_0 : i32, i32
  }
  func.func @transform_2(%arg0: i32) -> (i32, i32) {
    %c0_i32 = arith.constant 0 : i32
    %c0_i32_0 = arith.constant 0 : i32
    %c0_i32_1 = arith.constant 0 : i32
    return %c0_i32, %c0_i32_0 : i32, i32
  }
  func.func @transform_3(%arg0: i32) -> (i32, i32) {
    %c0_i32 = arith.constant 0 : i32
    %c0_i32_0 = arith.constant 0 : i32
    return %arg0, %c0_i32 : i32, i32
  }
}

module attributes {stable_mosaic.version = 11 : i64} {
  func.func @_gemm_bias_act_kernel(%arg0: i32, %arg1: memref<128x512xbf16, #tpu.memory_space<vmem>>, %arg2: memref<512x128xbf16, #tpu.memory_space<vmem>>, %arg3: memref<1x128xf32, #tpu.memory_space<vmem>>, %arg4: memref<128x128xbf16, #tpu.memory_space<vmem>>) attributes {dimension_semantics = [#tpu.dimension_semantics<parallel>], iteration_bounds = array<i64: 1>, scalar_prefetch = 0 : i64, scratch_operands = 0 : i64, tpu.core_type = #tpu.core_type<tc>, window_params = [{transform_indices = @transform_0, window_bounds = array<i64: 128, 512>}, {pipeline_mode = #tpu.pipeline_mode<synchronous>, transform_indices = @transform_1, window_bounds = array<i64: 512, 128>}, {pipeline_mode = #tpu.pipeline_mode<synchronous>, transform_indices = @transform_2, window_bounds = array<i64: 1, 128>}, {transform_indices = @transform_3, window_bounds = array<i64: 128, 128>}]} {
    %c0 = arith.constant 0 : index
    %c0_0 = arith.constant 0 : index
    %0 = vector.load %arg1[%c0, %c0_0] : memref<128x512xbf16, #tpu.memory_space<vmem>>, vector<128x512xbf16>
    %c0_1 = arith.constant 0 : index
    %c0_2 = arith.constant 0 : index
    %1 = vector.load %arg2[%c0_1, %c0_2] : memref<512x128xbf16, #tpu.memory_space<vmem>>, vector<512x128xbf16>
    %cst = arith.constant dense<0.000000e+00> : vector<128x128xf32>
    %2 = tpu.matmul %0, %1, %cst {dimension_numbers = #tpu.dot_dimension_numbers<[1], [0], [0], [1], [0, 0, 1, 1], [], []>} : vector<128x512xbf16>, vector<512x128xbf16>, vector<128x128xf32> -> vector<128x128xf32>
    %c0_3 = arith.constant 0 : index
    %c0_4 = arith.constant 0 : index
    %3 = vector.load %arg3[%c0_3, %c0_4] : memref<1x128xf32, #tpu.memory_space<vmem>>, vector<1x128xf32>
    %4 = vector.broadcast %3 : vector<1x128xf32> to vector<128x128xf32>
    %5 = arith.addf %2, %4 : vector<128x128xf32>
    %cst_5 = arith.constant 0.000000e+00 : f32
    %6 = vector.broadcast %cst_5 : f32 to vector<128x128xf32>
    %7 = arith.maximumf %5, %6 : vector<128x128xf32>
    %8 = arith.truncf %7 : vector<128x128xf32> to vector<128x128xbf16>
    %c0_6 = arith.constant 0 : index
    %c0_7 = arith.constant 0 : index
    %9 = vector.load %arg4[%c0_6, %c0_7] : memref<128x128xbf16, #tpu.memory_space<vmem>>, vector<128x128xbf16>
    tpu.vector_store %arg4[%c0_6, %c0_7], %8 {strides = array<i32>} : memref<128x128xbf16, #tpu.memory_space<vmem>>, vector<128x128xbf16>,
    return
  }
  func.func @transform_0(%arg0: i32) -> (i32, i32) {
    %c0_i32 = arith.constant 0 : i32
    %c0_i32_0 = arith.constant 0 : i32
    return %arg0, %c0_i32 : i32, i32
  }
  func.func @transform_1(%arg0: i32) -> (i32, i32) {
    %c0_i32 = arith.constant 0 : i32
    %c0_i32_0 = arith.constant 0 : i32
    %c0_i32_1 = arith.constant 0 : i32
    return %c0_i32, %c0_i32_0 : i32, i32
  }
  func.func @transform_2(%arg0: i32) -> (i32, i32) {
    %c0_i32 = arith.constant 0 : i32
    %c0_i32_0 = arith.constant 0 : i32
    %c0_i32_1 = arith.constant 0 : i32
    return %c0_i32, %c0_i32_0 : i32, i32
  }
  func.func @transform_3(%arg0: i32) -> (i32, i32) {
    %c0_i32 = arith.constant 0 : i32
    %c0_i32_0 = arith.constant 0 : i32
    return %arg0, %c0_i32 : i32, i32
  }
}

module attributes {stable_mosaic.version = 11 : i64} {
  func.func @_gemm_bias_act_kernel(%arg0: i32, %arg1: memref<32x1024xbf16, #tpu.memory_space<vmem>>, %arg2: memref<1024x128xbf16, #tpu.memory_space<vmem>>, %arg3: memref<1x128xf32, #tpu.memory_space<vmem>>, %arg4: memref<32x128xbf16, #tpu.memory_space<vmem>>) attributes {dimension_semantics = [#tpu.dimension_semantics<parallel>], iteration_bounds = array<i64: 1>, scalar_prefetch = 0 : i64, scratch_operands = 0 : i64, tpu.core_type = #tpu.core_type<tc>, window_params = [{transform_indices = @transform_0, window_bounds = array<i64: 32, 1024>}, {pipeline_mode = #tpu.pipeline_mode<synchronous>, transform_indices = @transform_1, window_bounds = array<i64: 1024, 128>}, {pipeline_mode = #tpu.pipeline_mode<synchronous>, transform_indices = @transform_2, window_bounds = array<i64: 1, 128>}, {transform_indices = @transform_3, window_bounds = array<i64: 32, 128>}]} {
    %c0 = arith.constant 0 : index
    %c0_0 = arith.constant 0 : index
    %0 = vector.load %arg1[%c0, %c0_0] : memref<32x1024xbf16, #tpu.memory_space<vmem>>, vector<32x1024xbf16>
    %c0_1 = arith.constant 0 : index
    %c0_2 = arith.constant 0 : index
    %1 = vector.load %arg2[%c0_1, %c0_2] : memref<1024x128xbf16, #tpu.memory_space<vmem>>, vector<1024x128xbf16>
    %cst = arith.constant dense<0.000000e+00> : vector<32x128xf32>
    %2 = tpu.matmul %0, %1, %cst {dimension_numbers = #tpu.dot_dimension_numbers<[1], [0], [0], [1], [0, 0, 1, 1], [], []>} : vector<32x1024xbf16>, vector<1024x128xbf16>, vector<32x128xf32> -> vector<32x128xf32>
    %c0_3 = arith.constant 0 : index
    %c0_4 = arith.constant 0 : index
    %3 = vector.load %arg3[%c0_3, %c0_4] : memref<1x128xf32, #tpu.memory_space<vmem>>, vector<1x128xf32>
    %4 = vector.broadcast %3 : vector<1x128xf32> to vector<32x128xf32>
    %5 = arith.addf %2, %4 : vector<32x128xf32>
    %cst_5 = arith.constant 0.000000e+00 : f32
    %6 = vector.broadcast %cst_5 : f32 to vector<32x128xf32>
    %7 = arith.maximumf %5, %6 : vector<32x128xf32>
    %8 = arith.truncf %7 : vector<32x128xf32> to vector<32x128xbf16>
    %c0_6 = arith.constant 0 : index
    %c0_7 = arith.constant 0 : index
    %9 = vector.load %arg4[%c0_6, %c0_7] : memref<32x128xbf16, #tpu.memory_space<vmem>>, vector<32x128xbf16>
    tpu.vector_store %arg4[%c0_6, %c0_7], %8 {strides = array<i32>} : memref<32x128xbf16, #tpu.memory_space<vmem>>, vector<32x128xbf16>,
    return
  }
  func.func @transform_0(%arg0: i32) -> (i32, i32) {
    %c0_i32 = arith.constant 0 : i32
    %c0_i32_0 = arith.constant 0 : i32
    return %arg0, %c0_i32 : i32, i32
  }
  func.func @transform_1(%arg0: i32) -> (i32, i32) {
    %c0_i32 = arith.constant 0 : i32
    %c0_i32_0 = arith.constant 0 : i32
    %c0_i32_1 = arith.constant 0 : i32
    return %c0_i32, %c0_i32_0 : i32, i32
  }
  func.func @transform_2(%arg0: i32) -> (i32, i32) {
    %c0_i32 = arith.constant 0 : i32
    %c0_i32_0 = arith.constant 0 : i32
    %c0_i32_1 = arith.constant 0 : i32
    return %c0_i32, %c0_i32_0 : i32, i32
  }
  func.func @transform_3(%arg0: i32) -> (i32, i32) {
    %c0_i32 = arith.constant 0 : i32
    %c0_i32_0 = arith.constant 0 : i32
    return %arg0, %c0_i32 : i32, i32
  }
}

module attributes {stable_mosaic.version = 11 : i64} {
  func.func @_mlp2_kernel(%arg0: memref<8x1024xbf16, #tpu.memory_space<vmem>>, %arg1: memref<1024x256xbf16, #tpu.memory_space<vmem>>, %arg2: memref<1x256xf32, #tpu.memory_space<vmem>>, %arg3: memref<256x128xbf16, #tpu.memory_space<vmem>>, %arg4: memref<1x128xf32, #tpu.memory_space<vmem>>, %arg5: memref<8x128xf32, #tpu.memory_space<vmem>>) attributes {dimension_semantics = [], scalar_prefetch = 0 : i64, scratch_operands = 0 : i64, tpu.core_type = #tpu.core_type<tc>} {
    %c0 = arith.constant 0 : index
    %c0_0 = arith.constant 0 : index
    %0 = vector.load %arg0[%c0, %c0_0] : memref<8x1024xbf16, #tpu.memory_space<vmem>>, vector<8x1024xbf16>
    %c0_1 = arith.constant 0 : index
    %c0_2 = arith.constant 0 : index
    %1 = vector.load %arg1[%c0_1, %c0_2] : memref<1024x256xbf16, #tpu.memory_space<vmem>>, vector<1024x256xbf16>
    %cst = arith.constant dense<0.000000e+00> : vector<8x256xf32>
    %2 = tpu.matmul %0, %1, %cst {dimension_numbers = #tpu.dot_dimension_numbers<[1], [0], [0], [1], [0, 0, 1, 1], [], []>} : vector<8x1024xbf16>, vector<1024x256xbf16>, vector<8x256xf32> -> vector<8x256xf32>
    %c0_3 = arith.constant 0 : index
    %c0_4 = arith.constant 0 : index
    %3 = vector.load %arg2[%c0_3, %c0_4] : memref<1x256xf32, #tpu.memory_space<vmem>>, vector<1x256xf32>
    %4 = vector.broadcast %3 : vector<1x256xf32> to vector<8x256xf32>
    %5 = arith.addf %2, %4 : vector<8x256xf32>
    %cst_5 = arith.constant 0.000000e+00 : f32
    %6 = vector.broadcast %cst_5 : f32 to vector<8x256xf32>
    %7 = arith.maximumf %5, %6 : vector<8x256xf32>
    %8 = arith.truncf %7 : vector<8x256xf32> to vector<8x256xbf16>
    %c0_6 = arith.constant 0 : index
    %c0_7 = arith.constant 0 : index
    %9 = vector.load %arg3[%c0_6, %c0_7] : memref<256x128xbf16, #tpu.memory_space<vmem>>, vector<256x128xbf16>
    %cst_8 = arith.constant dense<0.000000e+00> : vector<8x128xf32>
    %10 = tpu.matmul %8, %9, %cst_8 {dimension_numbers = #tpu.dot_dimension_numbers<[1], [0], [0], [1], [0, 0, 1, 1], [], []>} : vector<8x256xbf16>, vector<256x128xbf16>, vector<8x128xf32> -> vector<8x128xf32>
    %c0_9 = arith.constant 0 : index
    %c0_10 = arith.constant 0 : index
    %11 = vector.load %arg4[%c0_9, %c0_10] : memref<1x128xf32, #tpu.memory_space<vmem>>, vector<1x128xf32>
    %12 = vector.broadcast %11 : vector<1x128xf32> to vector<8x128xf32>
    %13 = arith.addf %10, %12 : vector<8x128xf32>
    %c0_11 = arith.constant 0 : index
    %c0_12 = arith.constant 0 : index
    %14 = vector.load %arg5[%c0_11, %c0_12] : memref<8x128xf32, #tpu.memory_space<vmem>>, vector<8x128xf32>
    tpu.vector_store %arg5[%c0_11, %c0_12], %13 {strides = array<i32>} : memref<8x128xf32, #tpu.memory_space<vmem>>, vector<8x128xf32>,
    return
  }
}

module attributes {stable_mosaic.version = 11 : i64} {
  func.func @_mlp2_kernel(%arg0: memref<8x20xbf16, #tpu.memory_space<vmem>>, %arg1: memref<20x256xbf16, #tpu.memory_space<vmem>>, %arg2: memref<1x256xf32, #tpu.memory_space<vmem>>, %arg3: memref<256x1024xbf16, #tpu.memory_space<vmem>>, %arg4: memref<1x1024xf32, #tpu.memory_space<vmem>>, %arg5: memref<8x1024xbf16, #tpu.memory_space<vmem>>) attributes {dimension_semantics = [], scalar_prefetch = 0 : i64, scratch_operands = 0 : i64, tpu.core_type = #tpu.core_type<tc>} {
    %c0 = arith.constant 0 : index
    %c0_0 = arith.constant 0 : index
    %0 = vector.load %arg0[%c0, %c0_0] : memref<8x20xbf16, #tpu.memory_space<vmem>>, vector<8x20xbf16>
    %c0_1 = arith.constant 0 : index
    %c0_2 = arith.constant 0 : index
    %1 = vector.load %arg1[%c0_1, %c0_2] : memref<20x256xbf16, #tpu.memory_space<vmem>>, vector<20x256xbf16>
    %cst = arith.constant dense<0.000000e+00> : vector<8x256xf32>
    %2 = tpu.matmul %0, %1, %cst {dimension_numbers = #tpu.dot_dimension_numbers<[1], [0], [0], [1], [0, 0, 1, 1], [], []>} : vector<8x20xbf16>, vector<20x256xbf16>, vector<8x256xf32> -> vector<8x256xf32>
    %c0_3 = arith.constant 0 : index
    %c0_4 = arith.constant 0 : index
    %3 = vector.load %arg2[%c0_3, %c0_4] : memref<1x256xf32, #tpu.memory_space<vmem>>, vector<1x256xf32>
    %4 = vector.broadcast %3 : vector<1x256xf32> to vector<8x256xf32>
    %5 = arith.addf %2, %4 : vector<8x256xf32>
    %cst_5 = arith.constant 0.000000e+00 : f32
    %6 = vector.broadcast %cst_5 : f32 to vector<8x256xf32>
    %7 = arith.maximumf %5, %6 : vector<8x256xf32>
    %8 = arith.truncf %7 : vector<8x256xf32> to vector<8x256xbf16>
    %c0_6 = arith.constant 0 : index
    %c0_7 = arith.constant 0 : index
    %9 = vector.load %arg3[%c0_6, %c0_7] : memref<256x1024xbf16, #tpu.memory_space<vmem>>, vector<256x1024xbf16>
    %cst_8 = arith.constant dense<0.000000e+00> : vector<8x1024xf32>
    %10 = tpu.matmul %8, %9, %cst_8 {dimension_numbers = #tpu.dot_dimension_numbers<[1], [0], [0], [1], [0, 0, 1, 1], [], []>} : vector<8x256xbf16>, vector<256x1024xbf16>, vector<8x1024xf32> -> vector<8x1024xf32>
    %c0_9 = arith.constant 0 : index
    %c0_10 = arith.constant 0 : index
    %11 = vector.load %arg4[%c0_9, %c0_10] : memref<1x1024xf32, #tpu.memory_space<vmem>>, vector<1x1024xf32>
    %12 = vector.broadcast %11 : vector<1x1024xf32> to vector<8x1024xf32>
    %13 = arith.addf %10, %12 : vector<8x1024xf32>
    %cst_11 = arith.constant 0.000000e+00 : f32
    %14 = vector.broadcast %cst_11 : f32 to vector<8x1024xf32>
    %15 = arith.maximumf %13, %14 : vector<8x1024xf32>
    %16 = arith.truncf %15 : vector<8x1024xf32> to vector<8x1024xbf16>
    %c0_12 = arith.constant 0 : index
    %c0_13 = arith.constant 0 : index
    %17 = vector.load %arg5[%c0_12, %c0_13] : memref<8x1024xbf16, #tpu.memory_space<vmem>>, vector<8x1024xbf16>
    tpu.vector_store %arg5[%c0_12, %c0_13], %16 {strides = array<i32>} : memref<8x1024xbf16, #tpu.memory_space<vmem>>, vector<8x1024xbf16>,
    return
  }
}

module attributes {stable_mosaic.version = 11 : i64} {
  func.func @_gemm_bias_act_kernel(%arg0: i32, %arg1: memref<64x256xbf16, #tpu.memory_space<vmem>>, %arg2: memref<256x256xbf16, #tpu.memory_space<vmem>>, %arg3: memref<1x256xf32, #tpu.memory_space<vmem>>, %arg4: memref<64x256xbf16, #tpu.memory_space<vmem>>) attributes {dimension_semantics = [#tpu.dimension_semantics<parallel>], iteration_bounds = array<i64: 1>, scalar_prefetch = 0 : i64, scratch_operands = 0 : i64, tpu.core_type = #tpu.core_type<tc>, window_params = [{transform_indices = @transform_0, window_bounds = array<i64: 64, 256>}, {pipeline_mode = #tpu.pipeline_mode<synchronous>, transform_indices = @transform_1, window_bounds = array<i64: 256, 256>}, {pipeline_mode = #tpu.pipeline_mode<synchronous>, transform_indices = @transform_2, window_bounds = array<i64: 1, 256>}, {transform_indices = @transform_3, window_bounds = array<i64: 64, 256>}]} {
    %c0 = arith.constant 0 : index
    %c0_0 = arith.constant 0 : index
    %0 = vector.load %arg1[%c0, %c0_0] : memref<64x256xbf16, #tpu.memory_space<vmem>>, vector<64x256xbf16>
    %c0_1 = arith.constant 0 : index
    %c0_2 = arith.constant 0 : index
    %1 = vector.load %arg2[%c0_1, %c0_2] : memref<256x256xbf16, #tpu.memory_space<vmem>>, vector<256x256xbf16>
    %cst = arith.constant dense<0.000000e+00> : vector<64x256xf32>
    %2 = tpu.matmul %0, %1, %cst {dimension_numbers = #tpu.dot_dimension_numbers<[1], [0], [0], [1], [0, 0, 1, 1], [], []>} : vector<64x256xbf16>, vector<256x256xbf16>, vector<64x256xf32> -> vector<64x256xf32>
    %c0_3 = arith.constant 0 : index
    %c0_4 = arith.constant 0 : index
    %3 = vector.load %arg3[%c0_3, %c0_4] : memref<1x256xf32, #tpu.memory_space<vmem>>, vector<1x256xf32>
    %4 = vector.broadcast %3 : vector<1x256xf32> to vector<64x256xf32>
    %5 = arith.addf %2, %4 : vector<64x256xf32>
    %cst_5 = arith.constant 0.000000e+00 : f32
    %6 = vector.broadcast %cst_5 : f32 to vector<64x256xf32>
    %7 = arith.maximumf %5, %6 : vector<64x256xf32>
    %8 = arith.truncf %7 : vector<64x256xf32> to vector<64x256xbf16>
    %c0_6 = arith.constant 0 : index
    %c0_7 = arith.constant 0 : index
    %9 = vector.load %arg4[%c0_6, %c0_7] : memref<64x256xbf16, #tpu.memory_space<vmem>>, vector<64x256xbf16>
    tpu.vector_store %arg4[%c0_6, %c0_7], %8 {strides = array<i32>} : memref<64x256xbf16, #tpu.memory_space<vmem>>, vector<64x256xbf16>,
    return
  }
  func.func @transform_0(%arg0: i32) -> (i32, i32) {
    %c0_i32 = arith.constant 0 : i32
    %c0_i32_0 = arith.constant 0 : i32
    return %arg0, %c0_i32 : i32, i32
  }
  func.func @transform_1(%arg0: i32) -> (i32, i32) {
    %c0_i32 = arith.constant 0 : i32
    %c0_i32_0 = arith.constant 0 : i32
    %c0_i32_1 = arith.constant 0 : i32
    return %c0_i32, %c0_i32_0 : i32, i32
  }
  func.func @transform_2(%arg0: i32) -> (i32, i32) {
    %c0_i32 = arith.constant 0 : i32
    %c0_i32_0 = arith.constant 0 : i32
    %c0_i32_1 = arith.constant 0 : i32
    return %c0_i32, %c0_i32_0 : i32, i32
  }
  func.func @transform_3(%arg0: i32) -> (i32, i32) {
    %c0_i32 = arith.constant 0 : i32
    %c0_i32_0 = arith.constant 0 : i32
    return %arg0, %c0_i32 : i32, i32
  }
}

module attributes {stable_mosaic.version = 11 : i64} {
  func.func @_gemm_bias_act_kernel(%arg0: i32, %arg1: memref<176x256xbf16, #tpu.memory_space<vmem>>, %arg2: memref<256x128xbf16, #tpu.memory_space<vmem>>, %arg3: memref<1x128xf32, #tpu.memory_space<vmem>>, %arg4: memref<176x128xbf16, #tpu.memory_space<vmem>>) attributes {dimension_semantics = [#tpu.dimension_semantics<parallel>], iteration_bounds = array<i64: 1>, scalar_prefetch = 0 : i64, scratch_operands = 0 : i64, tpu.core_type = #tpu.core_type<tc>, window_params = [{transform_indices = @transform_0, window_bounds = array<i64: 176, 256>}, {pipeline_mode = #tpu.pipeline_mode<synchronous>, transform_indices = @transform_1, window_bounds = array<i64: 256, 128>}, {pipeline_mode = #tpu.pipeline_mode<synchronous>, transform_indices = @transform_2, window_bounds = array<i64: 1, 128>}, {transform_indices = @transform_3, window_bounds = array<i64: 176, 128>}]} {
    %c0 = arith.constant 0 : index
    %c0_0 = arith.constant 0 : index
    %0 = vector.load %arg1[%c0, %c0_0] : memref<176x256xbf16, #tpu.memory_space<vmem>>, vector<176x256xbf16>
    %c0_1 = arith.constant 0 : index
    %c0_2 = arith.constant 0 : index
    %1 = vector.load %arg2[%c0_1, %c0_2] : memref<256x128xbf16, #tpu.memory_space<vmem>>, vector<256x128xbf16>
    %cst = arith.constant dense<0.000000e+00> : vector<176x128xf32>
    %2 = tpu.matmul %0, %1, %cst {dimension_numbers = #tpu.dot_dimension_numbers<[1], [0], [0], [1], [0, 0, 1, 1], [], []>} : vector<176x256xbf16>, vector<256x128xbf16>, vector<176x128xf32> -> vector<176x128xf32>
    %c0_3 = arith.constant 0 : index
    %c0_4 = arith.constant 0 : index
    %3 = vector.load %arg3[%c0_3, %c0_4] : memref<1x128xf32, #tpu.memory_space<vmem>>, vector<1x128xf32>
    %4 = vector.broadcast %3 : vector<1x128xf32> to vector<176x128xf32>
    %5 = arith.addf %2, %4 : vector<176x128xf32>
    %cst_5 = arith.constant 0.000000e+00 : f32
    %6 = vector.broadcast %cst_5 : f32 to vector<176x128xf32>
    %7 = arith.maximumf %5, %6 : vector<176x128xf32>
    %8 = arith.truncf %7 : vector<176x128xf32> to vector<176x128xbf16>
    %c0_6 = arith.constant 0 : index
    %c0_7 = arith.constant 0 : index
    %9 = vector.load %arg4[%c0_6, %c0_7] : memref<176x128xbf16, #tpu.memory_space<vmem>>, vector<176x128xbf16>
    tpu.vector_store %arg4[%c0_6, %c0_7], %8 {strides = array<i32>} : memref<176x128xbf16, #tpu.memory_space<vmem>>, vector<176x128xbf16>,
    return
  }
  func.func @transform_0(%arg0: i32) -> (i32, i32) {
    %c0_i32 = arith.constant 0 : i32
    %c0_i32_0 = arith.constant 0 : i32
    return %arg0, %c0_i32 : i32, i32
  }
  func.func @transform_1(%arg0: i32) -> (i32, i32) {
    %c0_i32 = arith.constant 0 : i32
    %c0_i32_0 = arith.constant 0 : i32
    %c0_i32_1 = arith.constant 0 : i32
    return %c0_i32, %c0_i32_0 : i32, i32
  }
  func.func @transform_2(%arg0: i32) -> (i32, i32) {
    %c0_i32 = arith.constant 0 : i32
    %c0_i32_0 = arith.constant 0 : i32
    %c0_i32_1 = arith.constant 0 : i32
    return %c0_i32, %c0_i32_0 : i32, i32
  }
  func.func @transform_3(%arg0: i32) -> (i32, i32) {
    %c0_i32 = arith.constant 0 : i32
    %c0_i32_0 = arith.constant 0 : i32
    return %arg0, %c0_i32 : i32, i32
  }
}

module attributes {stable_mosaic.version = 11 : i64} {
  func.func @_gemm_bias_act_kernel(%arg0: i32, %arg1: memref<592x128xbf16, #tpu.memory_space<vmem>>, %arg2: memref<128x128xbf16, #tpu.memory_space<vmem>>, %arg3: memref<1x128xf32, #tpu.memory_space<vmem>>, %arg4: memref<592x128xbf16, #tpu.memory_space<vmem>>) attributes {dimension_semantics = [#tpu.dimension_semantics<parallel>], iteration_bounds = array<i64: 1>, scalar_prefetch = 0 : i64, scratch_operands = 0 : i64, tpu.core_type = #tpu.core_type<tc>, window_params = [{transform_indices = @transform_0, window_bounds = array<i64: 592, 128>}, {pipeline_mode = #tpu.pipeline_mode<synchronous>, transform_indices = @transform_1, window_bounds = array<i64: 128, 128>}, {pipeline_mode = #tpu.pipeline_mode<synchronous>, transform_indices = @transform_2, window_bounds = array<i64: 1, 128>}, {transform_indices = @transform_3, window_bounds = array<i64: 592, 128>}]} {
    %c0 = arith.constant 0 : index
    %c0_0 = arith.constant 0 : index
    %0 = vector.load %arg1[%c0, %c0_0] : memref<592x128xbf16, #tpu.memory_space<vmem>>, vector<592x128xbf16>
    %c0_1 = arith.constant 0 : index
    %c0_2 = arith.constant 0 : index
    %1 = vector.load %arg2[%c0_1, %c0_2] : memref<128x128xbf16, #tpu.memory_space<vmem>>, vector<128x128xbf16>
    %cst = arith.constant dense<0.000000e+00> : vector<592x128xf32>
    %2 = tpu.matmul %0, %1, %cst {dimension_numbers = #tpu.dot_dimension_numbers<[1], [0], [0], [1], [0, 0, 1, 1], [], []>} : vector<592x128xbf16>, vector<128x128xbf16>, vector<592x128xf32> -> vector<592x128xf32>
    %c0_3 = arith.constant 0 : index
    %c0_4 = arith.constant 0 : index
    %3 = vector.load %arg3[%c0_3, %c0_4] : memref<1x128xf32, #tpu.memory_space<vmem>>, vector<1x128xf32>
    %4 = vector.broadcast %3 : vector<1x128xf32> to vector<592x128xf32>
    %5 = arith.addf %2, %4 : vector<592x128xf32>
    %cst_5 = arith.constant 0.000000e+00 : f32
    %6 = vector.broadcast %cst_5 : f32 to vector<592x128xf32>
    %7 = arith.maximumf %5, %6 : vector<592x128xf32>
    %8 = arith.truncf %7 : vector<592x128xf32> to vector<592x128xbf16>
    %c0_6 = arith.constant 0 : index
    %c0_7 = arith.constant 0 : index
    %9 = vector.load %arg4[%c0_6, %c0_7] : memref<592x128xbf16, #tpu.memory_space<vmem>>, vector<592x128xbf16>
    tpu.vector_store %arg4[%c0_6, %c0_7], %8 {strides = array<i32>} : memref<592x128xbf16, #tpu.memory_space<vmem>>, vector<592x128xbf16>,
    return
  }
  func.func @transform_0(%arg0: i32) -> (i32, i32) {
    %c0_i32 = arith.constant 0 : i32
    %c0_i32_0 = arith.constant 0 : i32
    return %arg0, %c0_i32 : i32, i32
  }
  func.func @transform_1(%arg0: i32) -> (i32, i32) {
    %c0_i32 = arith.constant 0 : i32
    %c0_i32_0 = arith.constant 0 : i32
    %c0_i32_1 = arith.constant 0 : i32
    return %c0_i32, %c0_i32_0 : i32, i32
  }
  func.func @transform_2(%arg0: i32) -> (i32, i32) {
    %c0_i32 = arith.constant 0 : i32
    %c0_i32_0 = arith.constant 0 : i32
    %c0_i32_1 = arith.constant 0 : i32
    return %c0_i32, %c0_i32_0 : i32, i32
  }
  func.func @transform_3(%arg0: i32) -> (i32, i32) {
    %c0_i32 = arith.constant 0 : i32
    %c0_i32_0 = arith.constant 0 : i32
    return %arg0, %c0_i32 : i32, i32
  }
}

module attributes {stable_mosaic.version = 11 : i64} {
  func.func @_gemm_bias_act_kernel(%arg0: i32, %arg1: memref<1104x128xbf16, #tpu.memory_space<vmem>>, %arg2: memref<128x128xbf16, #tpu.memory_space<vmem>>, %arg3: memref<1x128xf32, #tpu.memory_space<vmem>>, %arg4: memref<1104x128xbf16, #tpu.memory_space<vmem>>) attributes {dimension_semantics = [#tpu.dimension_semantics<parallel>], iteration_bounds = array<i64: 2>, scalar_prefetch = 0 : i64, scratch_operands = 0 : i64, tpu.core_type = #tpu.core_type<tc>, window_params = [{transform_indices = @transform_0, window_bounds = array<i64: 1104, 128>}, {pipeline_mode = #tpu.pipeline_mode<synchronous>, transform_indices = @transform_1, window_bounds = array<i64: 128, 128>}, {pipeline_mode = #tpu.pipeline_mode<synchronous>, transform_indices = @transform_2, window_bounds = array<i64: 1, 128>}, {transform_indices = @transform_3, window_bounds = array<i64: 1104, 128>}]} {
    %c0 = arith.constant 0 : index
    %c0_0 = arith.constant 0 : index
    %0 = vector.load %arg1[%c0, %c0_0] : memref<1104x128xbf16, #tpu.memory_space<vmem>>, vector<1104x128xbf16>
    %c0_1 = arith.constant 0 : index
    %c0_2 = arith.constant 0 : index
    %1 = vector.load %arg2[%c0_1, %c0_2] : memref<128x128xbf16, #tpu.memory_space<vmem>>, vector<128x128xbf16>
    %cst = arith.constant dense<0.000000e+00> : vector<1104x128xf32>
    %2 = tpu.matmul %0, %1, %cst {dimension_numbers = #tpu.dot_dimension_numbers<[1], [0], [0], [1], [0, 0, 1, 1], [], []>} : vector<1104x128xbf16>, vector<128x128xbf16>, vector<1104x128xf32> -> vector<1104x128xf32>
    %c0_3 = arith.constant 0 : index
    %c0_4 = arith.constant 0 : index
    %3 = vector.load %arg3[%c0_3, %c0_4] : memref<1x128xf32, #tpu.memory_space<vmem>>, vector<1x128xf32>
    %4 = vector.broadcast %3 : vector<1x128xf32> to vector<1104x128xf32>
    %5 = arith.addf %2, %4 : vector<1104x128xf32>
    %6 = arith.truncf %5 : vector<1104x128xf32> to vector<1104x128xbf16>
    %c0_5 = arith.constant 0 : index
    %c0_6 = arith.constant 0 : index
    %7 = vector.load %arg4[%c0_5, %c0_6] : memref<1104x128xbf16, #tpu.memory_space<vmem>>, vector<1104x128xbf16>
    tpu.vector_store %arg4[%c0_5, %c0_6], %6 {strides = array<i32>} : memref<1104x128xbf16, #tpu.memory_space<vmem>>, vector<1104x128xbf16>,
    return
  }
  func.func @transform_0(%arg0: i32) -> (i32, i32) {
    %c0_i32 = arith.constant 0 : i32
    %c0_i32_0 = arith.constant 0 : i32
    return %arg0, %c0_i32 : i32, i32
  }
  func.func @transform_1(%arg0: i32) -> (i32, i32) {
    %c0_i32 = arith.constant 0 : i32
    %c0_i32_0 = arith.constant 0 : i32
    %c0_i32_1 = arith.constant 0 : i32
    return %c0_i32, %c0_i32_0 : i32, i32
  }
  func.func @transform_2(%arg0: i32) -> (i32, i32) {
    %c0_i32 = arith.constant 0 : i32
    %c0_i32_0 = arith.constant 0 : i32
    %c0_i32_1 = arith.constant 0 : i32
    return %c0_i32, %c0_i32_0 : i32, i32
  }
  func.func @transform_3(%arg0: i32) -> (i32, i32) {
    %c0_i32 = arith.constant 0 : i32
    %c0_i32_0 = arith.constant 0 : i32
    return %arg0, %c0_i32 : i32, i32
  }
}

</mosaic_0001>

<bundles_post_ra>
// kernel: factor_vae2_forward.10
= control target key start
LH: loop header
LB: loop body
LE: loop exit
PB: predicated region body
PF: predicated region fallthrough
CT: control target
= control target key end

     0   :  { %s3308_s12 = smov 0   ;;  %s3670_s0 = inlined_call_operand.vmem [shape: bf16[2048,48], index: 0, kind: input, shape index: {}]   ;;  %s3671_s1 = inlined_call_operand.vmem [shape: bf16[48,128], index: 1, kind: input, shape index: {}]   ;;  %s3672_s2 = inlined_call_operand.vmem [shape: f32[1,128], index: 2, kind: input, shape index: {}]   ;;  %s3673_s3 = inlined_call_operand.vmem [shape: bf16[2048,128], index: 3, kind: output, shape index: {}]  }
   0x1 LB: > { %s2216_s13 = sadd.s32 4294967295, %s3286_s12   ;;  %p2220_p0 = scmp.ge.s32.totalorder %s3286_s12, 1  ;;  %s3286_s12 = sphi %s3308_s12, %s13_s12  }
   0x2   : > { %p138_p1 = scmp.lt.s32.totalorder %s3286_s12, 3 }
   0x4   : > { %p139_p2 = pnand %p2220_p0, %p138_p1 }
   0x5   : > { %v3213_v0 = vld [vmem:[%s3671_s1] sm:$0xff] (!%p139_p2)   ;;  %s2221_s16 = sshll.u32 (!%p139_p2), %s2216_s13, 7  ;;  %v3214_v1 = vld [vmem:[%s3671_s1 + $0x8] sm:$0xff] (!%p139_p2)   ;;  %v3215_v2 = vld [vmem:[%s3671_s1 + $0x10] sm:$0xff] (!%p139_p2)   ;;  %vm654_vm0 = vcmask (!%p139_p2), 392192  }
   0x6   : > { %142 = sbr.rel (%p139_p2) target bundleno = 361 (0x169), region = 32  ;;  %p163_p3 = scmp.lt.s32.totalorder (!%p139_p2), %s2221_s16, 255  ;;  %3065 = vmatprep.subr.bf16.mxu0 (!%p139_p2), %v3213_v0  ;;  %3199 = vmatprep.subr.bf16.mxu1 (!%p139_p2), %v3213_v0 }
   0x7   : > { %3066 = vmatpush3.bf16.msra.mxu0 (!%p139_p2), %v3213_v0  ;;  %3202 = vmatpush3.bf16.msra.mxu1 (!%p139_p2), %v3213_v0 }
   0x8   : > { %3067 = vmatprep.subr.bf16.mxu0 (!%p139_p2), %v3214_v1  ;;  %3200 = vmatprep.subr.bf16.mxu1 (!%p139_p2), %v3214_v1 }
   0xb   : > { %3068 = vmatpush3.bf16.msra.mxu0 (!%p139_p2), %v3214_v1  ;;  %3203 = vmatpush3.bf16.msra.mxu1 (!%p139_p2), %v3214_v1 }
   0xc   : > { %3069 = vmatprep.subr.bf16.mxu0 (!%p139_p2), %v3215_v2  ;;  %3201 = vmatprep.subr.bf16.mxu1 (!%p139_p2), %v3215_v2 }
   0xd   : > { %s3675_s16 = smov (!%p163_p3, %s2221_s16), 255 }
   0xe   : > { %s2222_s21 = sshll.u32 %s3675_s16, 2 }
   0xf   : > { %s3333_s24 = scalar_lea.vmem %s3670_s0, %s2222_s21  ;;  %3070 = vmatpush3.bf16.msra.mxu0 %v3215_v2  ;;  %3204 = vmatpush3.bf16.msra.mxu1 %v3215_v2  ;;  %s3481_s29 = scalar_lea.vmem %s3673_s3, %s2222_s21 }
  0x10   : > { %v3216_v3 = vld [vmem:[%s3333_s24] sm:$0xff]   ;;  %v3218_v5 = vld [vmem:[%s3333_s24 + $0x8] sm:$0xff]   ;;  %v3220_v7 = vld [vmem:[%s3333_s24 + $0x10] sm:$0xff]  }
  0x11   : > { %v3217_v4 = vld [vmem:[%s3333_s24 + $0x100] sm:$0xff]   ;;  %3071 = vmatprep.mubr.msk.bf16.mxu0 %vm654_vm0, %v3216_v3  ;;  %v3219_v6 = vld [vmem:[%s3333_s24 + $0x108] sm:$0xff]   ;;  %v3221_v8 = vld [vmem:[%s3333_s24 + $0x110] sm:$0xff]  }
  0x12   : > { %3135 = vmatprep.mubr.msk.bf16.mxu1 %vm654_vm0, %v3217_v4  ;;  %3072 = vmatmul.mubr.msk.bf16.vlgmr.msra.gmra.mrb[0].mxu0 %vm654_vm0, %v3218_v5  ;;  %v3222_v9 = vld [vmem:[%s3333_s24 + $0x18] sm:$0xff]   ;;  %v3224_v11 = vld [vmem:[%s3333_s24 + $0x20] sm:$0xff]   ;;  %v3226_v13 = vld [vmem:[%s3333_s24 + $0x28] sm:$0xff]  }
  0x13   : > { %3136 = vmatmul.mubr.msk.bf16.vlgmr.msra.gmra.mrb[0].mxu1 %vm654_vm0, %v3219_v6  ;;  %3075 = vmatprep.mubr.msk.bf16.mxu0 %vm654_vm0, %v3220_v7  ;;  %v3223_v10 = vld [vmem:[%s3333_s24 + $0x118] sm:$0xff]   ;;  %v3225_v12 = vld [vmem:[%s3333_s24 + $0x120] sm:$0xff]   ;;  %v3227_v14 = vld [vmem:[%s3333_s24 + $0x128] sm:$0xff]  }
  0x14   : > { %3139 = vmatprep.mubr.msk.bf16.mxu1 %vm654_vm0, %v3221_v8  ;;  %v3228_v15 = vld [vmem:[%s3333_s24 + $0x30] sm:$0xff]   ;;  %v3230_v17 = vld [vmem:[%s3333_s24 + $0x38] sm:$0xff]   ;;  %v3232_v19 = vld [vmem:[%s3333_s24 + $0x40] sm:$0xff]  }
  0x15   : > { %v3229_v16 = vld [vmem:[%s3333_s24 + $0x130] sm:$0xff]   ;;  %v3231_v18 = vld [vmem:[%s3333_s24 + $0x138] sm:$0xff]   ;;  %v3233_v20 = vld [vmem:[%s3333_s24 + $0x140] sm:$0xff]  }
  0x16   : > { %v3234_v21 = vld [vmem:[%s3333_s24 + $0x48] sm:$0xff]   ;;  %v3236_v23 = vld [vmem:[%s3333_s24 + $0x50] sm:$0xff]   ;;  %v3238_v25 = vld [vmem:[%s3333_s24 + $0x58] sm:$0xff]  }
  0x17   : > { %v3235_v22 = vld [vmem:[%s3333_s24 + $0x148] sm:$0xff]   ;;  %v3237_v24 = vld [vmem:[%s3333_s24 + $0x150] sm:$0xff]   ;;  %v3239_v26 = vld [vmem:[%s3333_s24 + $0x158] sm:$0xff]  }
  0x18   : > { %v3240_v27 = vld [vmem:[%s3333_s24 + $0x60] sm:$0xff]   ;;  %v3242_v29 = vld [vmem:[%s3333_s24 + $0x68] sm:$0xff]   ;;  %v3244_v31 = vld [vmem:[%s3333_s24 + $0x70] sm:$0xff]  }
  0x19   : > { %v3241_v28 = vld [vmem:[%s3333_s24 + $0x160] sm:$0xff]   ;;  %v3243_v30 = vld [vmem:[%s3333_s24 + $0x168] sm:$0xff]   ;;  %v3245_v32 = vld [vmem:[%s3333_s24 + $0x170] sm:$0xff]  }
  0x1a   : > { %3076 = vmatmul.mubr.msk.bf16.gmra.mrb[4].mxu0 %vm654_vm0, %v3222_v9  ;;  %v3246_v33 = vld [vmem:[%s3333_s24 + $0x78] sm:$0xff]   ;;  %v3248_v35 = vld [vmem:[%s3333_s24 + $0x80] sm:$0xff]   ;;  %v3250_v37 = vld [vmem:[%s3333_s24 + $0x88] sm:$0xff]  }
  0x1b   : > { %3140 = vmatmul.mubr.msk.bf16.gmra.mrb[4].mxu1 %vm654_vm0, %v3223_v10  ;;  %3079 = vmatprep.mubr.msk.bf16.mxu0 %vm654_vm0, %v3224_v11  ;;  %v3247_v34 = vld [vmem:[%s3333_s24 + $0x178] sm:$0xff]   ;;  %v3249_v36 = vld [vmem:[%s3333_s24 + $0x180] sm:$0xff]   ;;  %v3251_v38 = vld [vmem:[%s3333_s24 + $0x188] sm:$0xff]  }
  0x1c   : > { %3143 = vmatprep.mubr.msk.bf16.mxu1 %vm654_vm0, %v3225_v12  ;;  %v3252_v39 = vld [vmem:[%s3333_s24 + $0x90] sm:$0xff]   ;;  %v3254_v41 = vld [vmem:[%s3333_s24 + $0x98] sm:$0xff]   ;;  %v3256_v43 = vld [vmem:[%s3333_s24 + $0xa0] sm:$0xff]  }
  0x1d   : > { %v3253_v40 = vld [vmem:[%s3333_s24 + $0x190] sm:$0xff]   ;;  %v3255_v42 = vld [vmem:[%s3333_s24 + $0x198] sm:$0xff]   ;;  %v3257_v44 = vld [vmem:[%s3333_s24 + $0x1a0] sm:$0xff]  }
  0x1e   : > { %v3258_v45 = vld [vmem:[%s3333_s24 + $0xa8] sm:$0xff]   ;;  %v3260_v47 = vld [vmem:[%s3333_s24 + $0xb0] sm:$0xff]   ;;  %v3262_v49 = vld [vmem:[%s3333_s24 + $0xb8] sm:$0xff]  }
  0x1f   : > { %v3259_v46 = vld [vmem:[%s3333_s24 + $0x1a8] sm:$0xff]   ;;  %v3261_v48 = vld [vmem:[%s3333_s24 + $0x1b0] sm:$0xff]   ;;  %v3263_v50 = vld [vmem:[%s3333_s24 + $0x1b8] sm:$0xff]  }
  0x20   : > { %v3264_v51 = vld [vmem:[%s3333_s24 + $0xc0] sm:$0xff]   ;;  %v3266_v53 = vld [vmem:[%s3333_s24 + $0xc8] sm:$0xff]   ;;  %v3268_v55 = vld [vmem:[%s3333_s24 + $0xd0] sm:$0xff]  }
  0x21   : > { %v3265_v52 = vld [vmem:[%s3333_s24 + $0x1c0] sm:$0xff]   ;;  %v3267_v54 = vld [vmem:[%s3333_s24 + $0x1c8] sm:$0xff]   ;;  %v3269_v56 = vld [vmem:[%s3333_s24 + $0x1d0] sm:$0xff]  }
  0x22   : > { %3080 = vmatmul.mubr.msk.bf16.gmra.mrb[8].mxu0 %vm654_vm0, %v3226_v13  ;;  %v3270_v57 = vld [vmem:[%s3333_s24 + $0xd8] sm:$0xff]   ;;  %v3272_v59 = vld [vmem:[%s3333_s24 + $0xe0] sm:$0xff]   ;;  %v3274_v61 = vld [vmem:[%s3333_s24 + $0xe8] sm:$0xff]  }
  0x23   : > { %3144 = vmatmul.mubr.msk.bf16.gmra.mrb[8].mxu1 %vm654_vm0, %v3227_v14  ;;  %3083 = vmatprep.mubr.msk.bf16.mxu0 %vm654_vm0, %v3228_v15  ;;  %v3271_v58 = vld [vmem:[%s3333_s24 + $0x1d8] sm:$0xff]   ;;  %v3273_v60 = vld [vmem:[%s3333_s24 + $0x1e0] sm:$0xff]   ;;  %v3275_v62 = vld [vmem:[%s3333_s24 + $0x1e8] sm:$0xff]  }
  0x24   : > { %3147 = vmatprep.mubr.msk.bf16.mxu1 %vm654_vm0, %v3229_v16  ;;  %v3276_v63 = vld [vmem:[%s3333_s24 + $0xf0] sm:$0xff]   ;;  %v3278_v1 = vld [vmem:[%s3333_s24 + $0xf8] sm:$0xff]   ;;  %v3466_v3 = vld [vmem:[%s3672_s2] ss:$0 sm:$0xff] }
  0x25   : > { %v3277_v0 = vld [vmem:[%s3333_s24 + $0x1f0] sm:$0xff]   ;;  %v3279_v2 = vld [vmem:[%s3333_s24 + $0x1f8] sm:$0xff]  }
  0x2a   : > { %3084 = vmatmul.mubr.msk.bf16.gmra.mrb[12].mxu0 %vm654_vm0, %v3230_v17 }
  0x2b   : > { %3148 = vmatmul.mubr.msk.bf16.gmra.mrb[12].mxu1 %vm654_vm0, %v3231_v18  ;;  %3087 = vmatprep.mubr.msk.bf16.mxu0 %vm654_vm0, %v3232_v19 }
  0x2c   : > { %3151 = vmatprep.mubr.msk.bf16.mxu1 %vm654_vm0, %v3233_v20 }
  0x32   : > { %3088 = vmatmul.mubr.msk.bf16.gmra.mrb[16].mxu0 %vm654_vm0, %v3234_v21 }
  0x33   : > { %3152 = vmatmul.mubr.msk.bf16.gmra.mrb[16].mxu1 %vm654_vm0, %v3235_v22  ;;  %3091 = vmatprep.mubr.msk.bf16.mxu0 %vm654_vm0, %v3236_v23 }
  0x34   : > { %3155 = vmatprep.mubr.msk.bf16.mxu1 %vm654_vm0, %v3237_v24 }
  0x3a   : > { %3092 = vmatmul.mubr.msk.bf16.gmra.mrb[20].mxu0 %vm654_vm0, %v3238_v25 }
  0x3b   : > { %3156 = vmatmul.mubr.msk.bf16.gmra.mrb[20].mxu1 %vm654_vm0, %v3239_v26  ;;  %3095 = vmatprep.mubr.msk.bf16.mxu0 %vm654_vm0, %v3240_v27 }
  0x3c   : > { %3159 = vmatprep.mubr.msk.bf16.mxu1 %vm654_vm0, %v3241_v28 }
  0x42   : > { %3096 = vmatmul.mubr.msk.bf16.gmra.mrb[24].mxu0 %vm654_vm0, %v3242_v29 }
  0x43   : > { %3160 = vmatmul.mubr.msk.bf16.gmra.mrb[24].mxu1 %vm654_vm0, %v3243_v30  ;;  %3099 = vmatprep.mubr.msk.bf16.mxu0 %vm654_vm0, %v3244_v31 }
  0x44   : > { %3163 = vmatprep.mubr.msk.bf16.mxu1 %vm654_vm0, %v3245_v32 }
  0x4a   : > { %3100 = vmatmul.mubr.msk.bf16.gmra.mrb[28].mxu0 %vm654_vm0, %v3246_v33 }
  0x4b   : > { %3164 = vmatmul.mubr.msk.bf16.gmra.mrb[28].mxu1 %vm654_vm0, %v3247_v34  ;;  %3103 = vmatprep.mubr.msk.bf16.mxu0 %vm654_vm0, %v3248_v35 }
  0x4c   : > { %3167 = vmatprep.mubr.msk.bf16.mxu1 %vm654_vm0, %v3249_v36 }
  0x52   : > { %3104 = vmatmul.mubr.msk.bf16.gmra.mrb[32].mxu0 %vm654_vm0, %v3250_v37 }
  0x53   : > { %3168 = vmatmul.mubr.msk.bf16.gmra.mrb[32].mxu1 %vm654_vm0, %v3251_v38  ;;  %3107 = vmatprep.mubr.msk.bf16.mxu0 %vm654_vm0, %v3252_v39 }
  0x54   : > { %3171 = vmatprep.mubr.msk.bf16.mxu1 %vm654_vm0, %v3253_v40 }
  0x5a   : > { %3108 = vmatmul.mubr.msk.bf16.gmra.mrb[36].mxu0 %vm654_vm0, %v3254_v41 }
  0x5b   : > { %3172 = vmatmul.mubr.msk.bf16.gmra.mrb[36].mxu1 %vm654_vm0, %v3255_v42  ;;  %3111 = vmatprep.mubr.msk.bf16.mxu0 %vm654_vm0, %v3256_v43 }
  0x5c   : > { %3175 = vmatprep.mubr.msk.bf16.mxu1 %vm654_vm0, %v3257_v44 }
  0x62   : > { %3112 = vmatmul.mubr.msk.bf16.gmra.mrb[40].mxu0 %vm654_vm0, %v3258_v45 }
  0x63   : > { %3176 = vmatmul.mubr.msk.bf16.gmra.mrb[40].mxu1 %vm654_vm0, %v3259_v46  ;;  %3115 = vmatprep.mubr.msk.bf16.mxu0 %vm654_vm0, %v3260_v47 }
  0x64   : > { %3179 = vmatprep.mubr.msk.bf16.mxu1 %vm654_vm0, %v3261_v48 }
  0x6a   : > { %3116 = vmatmul.mubr.msk.bf16.gmra.mrb[44].mxu0 %vm654_vm0, %v3262_v49 }
  0x6b   : > { %3180 = vmatmul.mubr.msk.bf16.gmra.mrb[44].mxu1 %vm654_vm0, %v3263_v50  ;;  %3119 = vmatprep.mubr.msk.bf16.mxu0 %vm654_vm0, %v3264_v51 }
  0x6c   : > { %3183 = vmatprep.mubr.msk.bf16.mxu1 %vm654_vm0, %v3265_v52 }
  0x72   : > { %3120 = vmatmul.mubr.msk.bf16.gmra.mrb[48].mxu0 %vm654_vm0, %v3266_v53 }
  0x73   : > { %3184 = vmatmul.mubr.msk.bf16.gmra.mrb[48].mxu1 %vm654_vm0, %v3267_v54  ;;  %3123 = vmatprep.mubr.msk.bf16.mxu0 %vm654_vm0, %v3268_v55 }
  0x74   : > { %3187 = vmatprep.mubr.msk.bf16.mxu1 %vm654_vm0, %v3269_v56 }
  0x7a   : > { %3124 = vmatmul.mubr.msk.bf16.gmra.mrb[52].mxu0 %vm654_vm0, %v3270_v57 }
  0x7b   : > { %3188 = vmatmul.mubr.msk.bf16.gmra.mrb[52].mxu1 %vm654_vm0, %v3271_v58  ;;  %3127 = vmatprep.mubr.msk.bf16.mxu0 %vm654_vm0, %v3272_v59 }
  0x7c   : > { %3191 = vmatprep.mubr.msk.bf16.mxu1 %vm654_vm0, %v3273_v60 }
  0x82   : > { %3128 = vmatmul.mubr.msk.bf16.gmra.mrb[56].mxu0 %vm654_vm0, %v3274_v61 }
  0x83   : > { %3192 = vmatmul.mubr.msk.bf16.gmra.mrb[56].mxu1 %vm654_vm0, %v3275_v62  ;;  %3131 = vmatprep.mubr.msk.bf16.mxu0 %vm654_vm0, %v3276_v63 }
  0x84   : > { %3195 = vmatprep.mubr.msk.bf16.mxu1 %vm654_vm0, %v3277_v0 }
  0x8a   : > { %3132 = vmatmul.mubr.msk.bf16.gmra.mrb[60].mxu0 %vm654_vm0, %v3278_v1 }
  0x8b   : > { %3196 = vmatmul.mubr.msk.bf16.gmra.mrb[60].mxu1 %vm654_vm0, %v3279_v2 }
  0xe5   : > { %v3073_v4 = vpop.f32.mrb[0].mxu0 }
  0xe6   : > { %v3137_v5 = vpop.f32.mrb[0].mxu1  ;;  %v890_v6 = vadd.f32 %v3073_v4, %v3466_v3  ;;  %v881_v8 = vpop.f32.mrb[1].mxu0 }
  0xe7   : > { %v1146_v7 = vadd.f32 %v3137_v5, %v3466_v3  ;;  %v1137_v9 = vpop.f32.mrb[1].mxu1  ;;  %v882_v10 = vadd.f32 %v3466_v3, %v881_v8  ;;  %v3074_v12 = vpop.f32.mrb[2].mxu0 }
  0xe8   : > { %v1138_v11 = vadd.f32 %v3466_v3, %v1137_v9  ;;  %v3138_v13 = vpop.f32.mrb[2].mxu1  ;;  %v893_v14 = vadd.f32 %v3074_v12, %v3466_v3  ;;  %v884_v16 = vpop.f32.mrb[3].mxu0  ;;  %v1394_v20 = vmax.f32 %v890_v6, 0.0 }
  0xe9   : > { %v1149_v15 = vadd.f32 %v3138_v13, %v3466_v3  ;;  %v1140_v17 = vpop.f32.mrb[3].mxu1  ;;  %v885_v18 = vadd.f32 %v3466_v3, %v884_v16  ;;  %v1458_v21 = vmax.f32 %v1146_v7, 0.0  ;;  %v1392_v24 = vmax.f32 %v882_v10, 0.0 }
  0xea   : > { %v1141_v19 = vadd.f32 %v3466_v3, %v1140_v17  ;;  %v1395_v22 = vmax.f32 %v893_v14, 0.0  ;;  %v1456_v25 = vmax.f32 %v1138_v11, 0.0 }
  0xeb   : > { %v1459_v23 = vmax.f32 %v1149_v15, 0.0  ;;  %v1393_v26 = vmax.f32 %v885_v18, 0.0 }
  0xec   : > { %v1457_v27 = vmax.f32 %v1141_v19, 0.0  ;;  %v2623_v28 = vpack.c.bf16 %v1395_v22, %v1394_v20 }
  0xed   : > { %v2783_v29 = vpack.c.bf16 %v1459_v23, %v1458_v21  ;;  %v2618_v30 = vpack.c.bf16 %v1393_v26, %v1392_v24  ;;  %v3077_v32 = vpop.f32.mrb[4].mxu0 }
  0xee   : > { %v2778_v31 = vpack.c.bf16 %v1457_v27, %v1456_v25  ;;  %v3141_v33 = vpop.f32.mrb[4].mxu1  ;;  %2935 = vst [vmem:[%s3481_s29 + $0x8] sm:$0xff] %v2623_v28   ;;  %v906_v34 = vadd.f32 %v3077_v32, %v3466_v3  ;;  %v897_v36 = vpop.f32.mrb[5].mxu0 }
  0xef   : > { %2967 = vst [vmem:[%s3481_s29 + $0x108] sm:$0xff] %v2783_v29   ;;  %v1162_v35 = vadd.f32 %v3141_v33, %v3466_v3  ;;  %v1153_v37 = vpop.f32.mrb[5].mxu1  ;;  %2619 = vst [vmem:[%s3481_s29] sm:$0xff] %v2618_v30   ;;  %v898_v38 = vadd.f32 %v3466_v3, %v897_v36  ;;  %v3078_v40 = vpop.f32.mrb[6].mxu0 }
  0xf0   : > { %2966 = vst [vmem:[%s3481_s29 + $0x100] sm:$0xff] %v2778_v31   ;;  %v1154_v39 = vadd.f32 %v3466_v3, %v1153_v37  ;;  %v3142_v41 = vpop.f32.mrb[6].mxu1  ;;  %v909_v42 = vadd.f32 %v3078_v40, %v3466_v3  ;;  %v900_v44 = vpop.f32.mrb[7].mxu0  ;;  %v1398_v48 = vmax.f32 %v906_v34, 0.0 }
  0xf1   : > { %v1165_v43 = vadd.f32 %v3142_v41, %v3466_v3  ;;  %v1156_v45 = vpop.f32.mrb[7].mxu1  ;;  %v901_v46 = vadd.f32 %v3466_v3, %v900_v44  ;;  %v1462_v49 = vmax.f32 %v1162_v35, 0.0  ;;  %v1396_v52 = vmax.f32 %v898_v38, 0.0 }
  0xf2   : > { %v1157_v47 = vadd.f32 %v3466_v3, %v1156_v45  ;;  %v1399_v50 = vmax.f32 %v909_v42, 0.0  ;;  %v1460_v53 = vmax.f32 %v1154_v39, 0.0 }
  0xf3   : > { %v1463_v51 = vmax.f32 %v1165_v43, 0.0  ;;  %v1397_v54 = vmax.f32 %v901_v46, 0.0 }
  0xf4   : > { %v1461_v55 = vmax.f32 %v1157_v47, 0.0  ;;  %v2633_v56 = vpack.c.bf16 %v1399_v50, %v1398_v48 }
  0xf5   : > { %v2793_v57 = vpack.c.bf16 %v1463_v51, %v1462_v49  ;;  %v2628_v58 = vpack.c.bf16 %v1397_v54, %v1396_v52  ;;  %v3081_v60 = vpop.f32.mrb[8].mxu0 }
  0xf6   : > { %v2788_v59 = vpack.c.bf16 %v1461_v55, %v1460_v53  ;;  %v3145_v61 = vpop.f32.mrb[8].mxu1  ;;  %2937 = vst [vmem:[%s3481_s29 + $0x18] sm:$0xff] %v2633_v56   ;;  %v922_v62 = vadd.f32 %v3081_v60, %v3466_v3  ;;  %v913_v0 = vpop.f32.mrb[9].mxu0 }
  0xf7   : > { %2969 = vst [vmem:[%s3481_s29 + $0x118] sm:$0xff] %v2793_v57   ;;  %v1178_v63 = vadd.f32 %v3145_v61, %v3466_v3  ;;  %v1169_v1 = vpop.f32.mrb[9].mxu1  ;;  %2936 = vst [vmem:[%s3481_s29 + $0x10] sm:$0xff] %v2628_v58   ;;  %v914_v2 = vadd.f32 %v3466_v3, %v913_v0  ;;  %v3082_v5 = vpop.f32.mrb[10].mxu0 }
  0xf8   : > { %2968 = vst [vmem:[%s3481_s29 + $0x110] sm:$0xff] %v2788_v59   ;;  %v1170_v4 = vadd.f32 %v3466_v3, %v1169_v1  ;;  %v3146_v6 = vpop.f32.mrb[10].mxu1  ;;  %v925_v7 = vadd.f32 %v3082_v5, %v3466_v3  ;;  %v916_v9 = vpop.f32.mrb[11].mxu0  ;;  %v1402_v13 = vmax.f32 %v922_v62, 0.0 }
  0xf9   : > { %v1181_v8 = vadd.f32 %v3146_v6, %v3466_v3  ;;  %v1172_v10 = vpop.f32.mrb[11].mxu1  ;;  %v917_v11 = vadd.f32 %v3466_v3, %v916_v9  ;;  %v1466_v14 = vmax.f32 %v1178_v63, 0.0  ;;  %v1400_v17 = vmax.f32 %v914_v2, 0.0 }
  0xfa   : > { %v1173_v12 = vadd.f32 %v3466_v3, %v1172_v10  ;;  %v1403_v15 = vmax.f32 %v925_v7, 0.0  ;;  %v1464_v18 = vmax.f32 %v1170_v4, 0.0 }
  0xfb   : > { %v1467_v16 = vmax.f32 %v1181_v8, 0.0  ;;  %v1401_v19 = vmax.f32 %v917_v11, 0.0 }
  0xfc   : > { %v1465_v20 = vmax.f32 %v1173_v12, 0.0  ;;  %v2643_v21 = vpack.c.bf16 %v1403_v15, %v1402_v13 }
  0xfd   : > { %v2803_v22 = vpack.c.bf16 %v1467_v16, %v1466_v14  ;;  %v2638_v23 = vpack.c.bf16 %v1401_v19, %v1400_v17  ;;  %v3085_v25 = vpop.f32.mrb[12].mxu0 }
  0xfe   : > { %v2798_v24 = vpack.c.bf16 %v1465_v20, %v1464_v18  ;;  %v3149_v26 = vpop.f32.mrb[12].mxu1  ;;  %2939 = vst [vmem:[%s3481_s29 + $0x28] sm:$0xff] %v2643_v21   ;;  %v938_v27 = vadd.f32 %v3085_v25, %v3466_v3  ;;  %v929_v29 = vpop.f32.mrb[13].mxu0 }
  0xff   : > { %2971 = vst [vmem:[%s3481_s29 + $0x128] sm:$0xff] %v2803_v22   ;;  %v1194_v28 = vadd.f32 %v3149_v26, %v3466_v3  ;;  %v1185_v30 = vpop.f32.mrb[13].mxu1  ;;  %2938 = vst [vmem:[%s3481_s29 + $0x20] sm:$0xff] %v2638_v23   ;;  %v930_v31 = vadd.f32 %v3466_v3, %v929_v29  ;;  %v3086_v33 = vpop.f32.mrb[14].mxu0 }
 0x100   : > { %2970 = vst [vmem:[%s3481_s29 + $0x120] sm:$0xff] %v2798_v24   ;;  %v1186_v32 = vadd.f32 %v3466_v3, %v1185_v30  ;;  %v3150_v34 = vpop.f32.mrb[14].mxu1  ;;  %v941_v35 = vadd.f32 %v3086_v33, %v3466_v3  ;;  %v932_v37 = vpop.f32.mrb[15].mxu0  ;;  %v1406_v41 = vmax.f32 %v938_v27, 0.0 }
 0x101   : > { %v1197_v36 = vadd.f32 %v3150_v34, %v3466_v3  ;;  %v1188_v38 = vpop.f32.mrb[15].mxu1  ;;  %v933_v39 = vadd.f32 %v3466_v3, %v932_v37  ;;  %v1470_v42 = vmax.f32 %v1194_v28, 0.0  ;;  %v1404_v45 = vmax.f32 %v930_v31, 0.0 }
 0x102   : > { %v1189_v40 = vadd.f32 %v3466_v3, %v1188_v38  ;;  %v1407_v43 = vmax.f32 %v941_v35, 0.0  ;;  %v1468_v46 = vmax.f32 %v1186_v32, 0.0 }
 0x103   : > { %v1471_v44 = vmax.f32 %v1197_v36, 0.0  ;;  %v1405_v47 = vmax.f32 %v933_v39, 0.0 }
 0x104   : > { %v1469_v48 = vmax.f32 %v1189_v40, 0.0  ;;  %v2653_v49 = vpack.c.bf16 %v1407_v43, %v1406_v41 }
 0x105   : > { %v2813_v50 = vpack.c.bf16 %v1471_v44, %v1470_v42  ;;  %v2648_v51 = vpack.c.bf16 %v1405_v47, %v1404_v45  ;;  %v3089_v53 = vpop.f32.mrb[16].mxu0 }
 0x106   : > { %v2808_v52 = vpack.c.bf16 %v1469_v48, %v1468_v46  ;;  %v3153_v54 = vpop.f32.mrb[16].mxu1  ;;  %2941 = vst [vmem:[%s3481_s29 + $0x38] sm:$0xff] %v2653_v49   ;;  %v954_v55 = vadd.f32 %v3089_v53, %v3466_v3  ;;  %v945_v57 = vpop.f32.mrb[17].mxu0 }
 0x107   : > { %2973 = vst [vmem:[%s3481_s29 + $0x138] sm:$0xff] %v2813_v50   ;;  %v1210_v56 = vadd.f32 %v3153_v54, %v3466_v3  ;;  %v1201_v58 = vpop.f32.mrb[17].mxu1  ;;  %2940 = vst [vmem:[%s3481_s29 + $0x30] sm:$0xff] %v2648_v51   ;;  %v946_v59 = vadd.f32 %v3466_v3, %v945_v57  ;;  %v3090_v61 = vpop.f32.mrb[18].mxu0 }
 0x108   : > { %2972 = vst [vmem:[%s3481_s29 + $0x130] sm:$0xff] %v2808_v52   ;;  %v1202_v60 = vadd.f32 %v3466_v3, %v1201_v58  ;;  %v3154_v62 = vpop.f32.mrb[18].mxu1  ;;  %v957_v63 = vadd.f32 %v3090_v61, %v3466_v3  ;;  %v948_v1 = vpop.f32.mrb[19].mxu0  ;;  %v1410_v6 = vmax.f32 %v954_v55, 0.0 }
 0x109   : > { %v1213_v0 = vadd.f32 %v3154_v62, %v3466_v3  ;;  %v1204_v2 = vpop.f32.mrb[19].mxu1  ;;  %v949_v4 = vadd.f32 %v3466_v3, %v948_v1  ;;  %v1474_v7 = vmax.f32 %v1210_v56, 0.0  ;;  %v1408_v10 = vmax.f32 %v946_v59, 0.0 }
 0x10a   : > { %v1205_v5 = vadd.f32 %v3466_v3, %v1204_v2  ;;  %v1411_v8 = vmax.f32 %v957_v63, 0.0  ;;  %v1472_v11 = vmax.f32 %v1202_v60, 0.0 }
 0x10b   : > { %v1475_v9 = vmax.f32 %v1213_v0, 0.0  ;;  %v1409_v12 = vmax.f32 %v949_v4, 0.0 }
 0x10c   : > { %v1473_v13 = vmax.f32 %v1205_v5, 0.0  ;;  %v2663_v14 = vpack.c.bf16 %v1411_v8, %v1410_v6 }
 0x10d   : > { %v2823_v15 = vpack.c.bf16 %v1475_v9, %v1474_v7  ;;  %v2658_v16 = vpack.c.bf16 %v1409_v12, %v1408_v10  ;;  %v3093_v18 = vpop.f32.mrb[20].mxu0 }
 0x10e   : > { %v2818_v17 = vpack.c.bf16 %v1473_v13, %v1472_v11  ;;  %v3157_v19 = vpop.f32.mrb[20].mxu1  ;;  %2943 = vst [vmem:[%s3481_s29 + $0x48] sm:$0xff] %v2663_v14   ;;  %v970_v20 = vadd.f32 %v3093_v18, %v3466_v3  ;;  %v961_v22 = vpop.f32.mrb[21].mxu0 }
 0x10f   : > { %2975 = vst [vmem:[%s3481_s29 + $0x148] sm:$0xff] %v2823_v15   ;;  %v1226_v21 = vadd.f32 %v3157_v19, %v3466_v3  ;;  %v1217_v23 = vpop.f32.mrb[21].mxu1  ;;  %2942 = vst [vmem:[%s3481_s29 + $0x40] sm:$0xff] %v2658_v16   ;;  %v962_v24 = vadd.f32 %v3466_v3, %v961_v22  ;;  %v3094_v26 = vpop.f32.mrb[22].mxu0 }
 0x110   : > { %2974 = vst [vmem:[%s3481_s29 + $0x140] sm:$0xff] %v2818_v17   ;;  %v1218_v25 = vadd.f32 %v3466_v3, %v1217_v23  ;;  %v3158_v27 = vpop.f32.mrb[22].mxu1  ;;  %v973_v28 = vadd.f32 %v3094_v26, %v3466_v3  ;;  %v964_v30 = vpop.f32.mrb[23].mxu0  ;;  %v1414_v34 = vmax.f32 %v970_v20, 0.0 }
 0x111   : > { %v1229_v29 = vadd.f32 %v3158_v27, %v3466_v3  ;;  %v1220_v31 = vpop.f32.mrb[23].mxu1  ;;  %v965_v32 = vadd.f32 %v3466_v3, %v964_v30  ;;  %v1478_v35 = vmax.f32 %v1226_v21, 0.0  ;;  %v1412_v38 = vmax.f32 %v962_v24, 0.0 }
 0x112   : > { %v1221_v33 = vadd.f32 %v3466_v3, %v1220_v31  ;;  %v1415_v36 = vmax.f32 %v973_v28, 0.0  ;;  %v1476_v39 = vmax.f32 %v1218_v25, 0.0 }
 0x113   : > { %v1479_v37 = vmax.f32 %v1229_v29, 0.0  ;;  %v1413_v40 = vmax.f32 %v965_v32, 0.0 }
 0x114   : > { %v1477_v41 = vmax.f32 %v1221_v33, 0.0  ;;  %v2673_v42 = vpack.c.bf16 %v1415_v36, %v1414_v34 }
 0x115   : > { %v2833_v43 = vpack.c.bf16 %v1479_v37, %v1478_v35  ;;  %v2668_v44 = vpack.c.bf16 %v1413_v40, %v1412_v38  ;;  %v3097_v46 = vpop.f32.mrb[24].mxu0 }
 0x116   : > { %v2828_v45 = vpack.c.bf16 %v1477_v41, %v1476_v39  ;;  %v3161_v47 = vpop.f32.mrb[24].mxu1  ;;  %2945 = vst [vmem:[%s3481_s29 + $0x58] sm:$0xff] %v2673_v42   ;;  %v986_v48 = vadd.f32 %v3097_v46, %v3466_v3  ;;  %v977_v50 = vpop.f32.mrb[25].mxu0 }
 0x117   : > { %2977 = vst [vmem:[%s3481_s29 + $0x158] sm:$0xff] %v2833_v43   ;;  %v1242_v49 = vadd.f32 %v3161_v47, %v3466_v3  ;;  %v1233_v51 = vpop.f32.mrb[25].mxu1  ;;  %2944 = vst [vmem:[%s3481_s29 + $0x50] sm:$0xff] %v2668_v44   ;;  %v978_v52 = vadd.f32 %v3466_v3, %v977_v50  ;;  %v3098_v54 = vpop.f32.mrb[26].mxu0 }
 0x118   : > { %2976 = vst [vmem:[%s3481_s29 + $0x150] sm:$0xff] %v2828_v45   ;;  %v1234_v53 = vadd.f32 %v3466_v3, %v1233_v51  ;;  %v3162_v55 = vpop.f32.mrb[26].mxu1  ;;  %v989_v56 = vadd.f32 %v3098_v54, %v3466_v3  ;;  %v980_v58 = vpop.f32.mrb[27].mxu0  ;;  %v1418_v62 = vmax.f32 %v986_v48, 0.0 }
 0x119   : > { %v1245_v57 = vadd.f32 %v3162_v55, %v3466_v3  ;;  %v1236_v59 = vpop.f32.mrb[27].mxu1  ;;  %v981_v60 = vadd.f32 %v3466_v3, %v980_v58  ;;  %v1482_v63 = vmax.f32 %v1242_v49, 0.0  ;;  %v1416_v2 = vmax.f32 %v978_v52, 0.0 }
 0x11a   : > { %v1237_v61 = vadd.f32 %v3466_v3, %v1236_v59  ;;  %v1419_v0 = vmax.f32 %v989_v56, 0.0  ;;  %v1480_v4 = vmax.f32 %v1234_v53, 0.0 }
 0x11b   : > { %v1483_v1 = vmax.f32 %v1245_v57, 0.0  ;;  %v1417_v5 = vmax.f32 %v981_v60, 0.0 }
 0x11c   : > { %v1481_v6 = vmax.f32 %v1237_v61, 0.0  ;;  %v2683_v7 = vpack.c.bf16 %v1419_v0, %v1418_v62 }
 0x11d   : > { %v2843_v8 = vpack.c.bf16 %v1483_v1, %v1482_v63  ;;  %v2678_v9 = vpack.c.bf16 %v1417_v5, %v1416_v2  ;;  %v3101_v11 = vpop.f32.mrb[28].mxu0 }
 0x11e   : > { %v2838_v10 = vpack.c.bf16 %v1481_v6, %v1480_v4  ;;  %v3165_v12 = vpop.f32.mrb[28].mxu1  ;;  %2947 = vst [vmem:[%s3481_s29 + $0x68] sm:$0xff] %v2683_v7   ;;  %v1002_v13 = vadd.f32 %v3101_v11, %v3466_v3  ;;  %v993_v15 = vpop.f32.mrb[29].mxu0 }
 0x11f   : > { %2979 = vst [vmem:[%s3481_s29 + $0x168] sm:$0xff] %v2843_v8   ;;  %v1258_v14 = vadd.f32 %v3165_v12, %v3466_v3  ;;  %v1249_v16 = vpop.f32.mrb[29].mxu1  ;;  %2946 = vst [vmem:[%s3481_s29 + $0x60] sm:$0xff] %v2678_v9   ;;  %v994_v17 = vadd.f32 %v3466_v3, %v993_v15  ;;  %v3102_v19 = vpop.f32.mrb[30].mxu0 }
 0x120   : > { %2978 = vst [vmem:[%s3481_s29 + $0x160] sm:$0xff] %v2838_v10   ;;  %v1250_v18 = vadd.f32 %v3466_v3, %v1249_v16  ;;  %v3166_v20 = vpop.f32.mrb[30].mxu1  ;;  %v1005_v21 = vadd.f32 %v3102_v19, %v3466_v3  ;;  %v996_v23 = vpop.f32.mrb[31].mxu0  ;;  %v1422_v27 = vmax.f32 %v1002_v13, 0.0 }
 0x121   : > { %v1261_v22 = vadd.f32 %v3166_v20, %v3466_v3  ;;  %v1252_v24 = vpop.f32.mrb[31].mxu1  ;;  %v997_v25 = vadd.f32 %v3466_v3, %v996_v23  ;;  %v1486_v28 = vmax.f32 %v1258_v14, 0.0  ;;  %v1420_v31 = vmax.f32 %v994_v17, 0.0 }
 0x122   : > { %v1253_v26 = vadd.f32 %v3466_v3, %v1252_v24  ;;  %v1423_v29 = vmax.f32 %v1005_v21, 0.0  ;;  %v1484_v32 = vmax.f32 %v1250_v18, 0.0 }
 0x123   : > { %v1487_v30 = vmax.f32 %v1261_v22, 0.0  ;;  %v1421_v33 = vmax.f32 %v997_v25, 0.0 }
 0x124   : > { %v1485_v34 = vmax.f32 %v1253_v26, 0.0  ;;  %v2693_v35 = vpack.c.bf16 %v1423_v29, %v1422_v27 }
 0x125   : > { %v2853_v36 = vpack.c.bf16 %v1487_v30, %v1486_v28  ;;  %v2688_v37 = vpack.c.bf16 %v1421_v33, %v1420_v31  ;;  %v3105_v39 = vpop.f32.mrb[32].mxu0 }
 0x126   : > { %v2848_v38 = vpack.c.bf16 %v1485_v34, %v1484_v32  ;;  %v3169_v40 = vpop.f32.mrb[32].mxu1  ;;  %2949 = vst [vmem:[%s3481_s29 + $0x78] sm:$0xff] %v2693_v35   ;;  %v1018_v41 = vadd.f32 %v3105_v39, %v3466_v3  ;;  %v1009_v43 = vpop.f32.mrb[33].mxu0 }
 0x127   : > { %2981 = vst [vmem:[%s3481_s29 + $0x178] sm:$0xff] %v2853_v36   ;;  %v1274_v42 = vadd.f32 %v3169_v40, %v3466_v3  ;;  %v1265_v44 = vpop.f32.mrb[33].mxu1  ;;  %2948 = vst [vmem:[%s3481_s29 + $0x70] sm:$0xff] %v2688_v37   ;;  %v1010_v45 = vadd.f32 %v3466_v3, %v1009_v43  ;;  %v3106_v47 = vpop.f32.mrb[34].mxu0 }
 0x128   : > { %2980 = vst [vmem:[%s3481_s29 + $0x170] sm:$0xff] %v2848_v38   ;;  %v1266_v46 = vadd.f32 %v3466_v3, %v1265_v44  ;;  %v3170_v48 = vpop.f32.mrb[34].mxu1  ;;  %v1021_v49 = vadd.f32 %v3106_v47, %v3466_v3  ;;  %v1012_v51 = vpop.f32.mrb[35].mxu0  ;;  %v1426_v55 = vmax.f32 %v1018_v41, 0.0 }
 0x129   : > { %v1277_v50 = vadd.f32 %v3170_v48, %v3466_v3  ;;  %v1268_v52 = vpop.f32.mrb[35].mxu1  ;;  %v1013_v53 = vadd.f32 %v3466_v3, %v1012_v51  ;;  %v1490_v56 = vmax.f32 %v1274_v42, 0.0  ;;  %v1424_v59 = vmax.f32 %v1010_v45, 0.0 }
 0x12a   : > { %v1269_v54 = vadd.f32 %v3466_v3, %v1268_v52  ;;  %v1427_v57 = vmax.f32 %v1021_v49, 0.0  ;;  %v1488_v60 = vmax.f32 %v1266_v46, 0.0 }
 0x12b   : > { %v1491_v58 = vmax.f32 %v1277_v50, 0.0  ;;  %v1425_v61 = vmax.f32 %v1013_v53, 0.0 }
 0x12c   : > { %v1489_v62 = vmax.f32 %v1269_v54, 0.0  ;;  %v2703_v63 = vpack.c.bf16 %v1427_v57, %v1426_v55 }
 0x12d   : > { %v2863_v0 = vpack.c.bf16 %v1491_v58, %v1490_v56  ;;  %v2698_v1 = vpack.c.bf16 %v1425_v61, %v1424_v59  ;;  %v3109_v4 = vpop.f32.mrb[36].mxu0 }
 0x12e   : > { %v2858_v2 = vpack.c.bf16 %v1489_v62, %v1488_v60  ;;  %v3173_v5 = vpop.f32.mrb[36].mxu1  ;;  %2951 = vst [vmem:[%s3481_s29 + $0x88] sm:$0xff] %v2703_v63   ;;  %v1034_v6 = vadd.f32 %v3109_v4, %v3466_v3  ;;  %v1025_v8 = vpop.f32.mrb[37].mxu0 }
 0x12f   : > { %2983 = vst [vmem:[%s3481_s29 + $0x188] sm:$0xff] %v2863_v0   ;;  %v1290_v7 = vadd.f32 %v3173_v5, %v3466_v3  ;;  %v1281_v9 = vpop.f32.mrb[37].mxu1  ;;  %2950 = vst [vmem:[%s3481_s29 + $0x80] sm:$0xff] %v2698_v1   ;;  %v1026_v10 = vadd.f32 %v3466_v3, %v1025_v8  ;;  %v3110_v12 = vpop.f32.mrb[38].mxu0 }
 0x130   : > { %2982 = vst [vmem:[%s3481_s29 + $0x180] sm:$0xff] %v2858_v2   ;;  %v1282_v11 = vadd.f32 %v3466_v3, %v1281_v9  ;;  %v3174_v13 = vpop.f32.mrb[38].mxu1  ;;  %v1037_v14 = vadd.f32 %v3110_v12, %v3466_v3  ;;  %v1028_v16 = vpop.f32.mrb[39].mxu0  ;;  %v1430_v20 = vmax.f32 %v1034_v6, 0.0 }
 0x131   : > { %v1293_v15 = vadd.f32 %v3174_v13, %v3466_v3  ;;  %v1284_v17 = vpop.f32.mrb[39].mxu1  ;;  %v1029_v18 = vadd.f32 %v3466_v3, %v1028_v16  ;;  %v1494_v21 = vmax.f32 %v1290_v7, 0.0  ;;  %v1428_v24 = vmax.f32 %v1026_v10, 0.0 }
 0x132   : > { %v1285_v19 = vadd.f32 %v3466_v3, %v1284_v17  ;;  %v1431_v22 = vmax.f32 %v1037_v14, 0.0  ;;  %v1492_v25 = vmax.f32 %v1282_v11, 0.0 }
 0x133   : > { %v1495_v23 = vmax.f32 %v1293_v15, 0.0  ;;  %v1429_v26 = vmax.f32 %v1029_v18, 0.0 }
 0x134   : > { %v1493_v27 = vmax.f32 %v1285_v19, 0.0  ;;  %v2713_v28 = vpack.c.bf16 %v1431_v22, %v1430_v20 }
 0x135   : > { %v2873_v29 = vpack.c.bf16 %v1495_v23, %v1494_v21  ;;  %v2708_v30 = vpack.c.bf16 %v1429_v26, %v1428_v24  ;;  %v3113_v32 = vpop.f32.mrb[40].mxu0 }
 0x136   : > { %v2868_v31 = vpack.c.bf16 %v1493_v27, %v1492_v25  ;;  %v3177_v33 = vpop.f32.mrb[40].mxu1  ;;  %2953 = vst [vmem:[%s3481_s29 + $0x98] sm:$0xff] %v2713_v28   ;;  %v1050_v34 = vadd.f32 %v3113_v32, %v3466_v3  ;;  %v1041_v36 = vpop.f32.mrb[41].mxu0 }
 0x137   : > { %2985 = vst [vmem:[%s3481_s29 + $0x198] sm:$0xff] %v2873_v29   ;;  %v1306_v35 = vadd.f32 %v3177_v33, %v3466_v3  ;;  %v1297_v37 = vpop.f32.mrb[41].mxu1  ;;  %2952 = vst [vmem:[%s3481_s29 + $0x90] sm:$0xff] %v2708_v30   ;;  %v1042_v38 = vadd.f32 %v3466_v3, %v1041_v36  ;;  %v3114_v40 = vpop.f32.mrb[42].mxu0 }
 0x138   : > { %2984 = vst [vmem:[%s3481_s29 + $0x190] sm:$0xff] %v2868_v31   ;;  %v1298_v39 = vadd.f32 %v3466_v3, %v1297_v37  ;;  %v3178_v41 = vpop.f32.mrb[42].mxu1  ;;  %v1053_v42 = vadd.f32 %v3114_v40, %v3466_v3  ;;  %v1044_v44 = vpop.f32.mrb[43].mxu0  ;;  %v1434_v48 = vmax.f32 %v1050_v34, 0.0 }
 0x139   : > { %v1309_v43 = vadd.f32 %v3178_v41, %v3466_v3  ;;  %v1300_v45 = vpop.f32.mrb[43].mxu1  ;;  %v1045_v46 = vadd.f32 %v3466_v3, %v1044_v44  ;;  %v1498_v49 = vmax.f32 %v1306_v35, 0.0  ;;  %v1432_v52 = vmax.f32 %v1042_v38, 0.0 }
 0x13a   : > { %v1301_v47 = vadd.f32 %v3466_v3, %v1300_v45  ;;  %v1435_v50 = vmax.f32 %v1053_v42, 0.0  ;;  %v1496_v53 = vmax.f32 %v1298_v39, 0.0 }
 0x13b   : > { %v1499_v51 = vmax.f32 %v1309_v43, 0.0  ;;  %v1433_v54 = vmax.f32 %v1045_v46, 0.0 }
 0x13c   : > { %v1497_v55 = vmax.f32 %v1301_v47, 0.0  ;;  %v2723_v56 = vpack.c.bf16 %v1435_v50, %v1434_v48 }
 0x13d   : > { %v2883_v57 = vpack.c.bf16 %v1499_v51, %v1498_v49  ;;  %v2718_v58 = vpack.c.bf16 %v1433_v54, %v1432_v52  ;;  %v3117_v60 = vpop.f32.mrb[44].mxu0 }
 0x13e   : > { %v2878_v59 = vpack.c.bf16 %v1497_v55, %v1496_v53  ;;  %v3181_v61 = vpop.f32.mrb[44].mxu1  ;;  %2955 = vst [vmem:[%s3481_s29 + $0xa8] sm:$0xff] %v2723_v56   ;;  %v1066_v62 = vadd.f32 %v3117_v60, %v3466_v3  ;;  %v1057_v0 = vpop.f32.mrb[45].mxu0 }
 0x13f   : > { %2987 = vst [vmem:[%s3481_s29 + $0x1a8] sm:$0xff] %v2883_v57   ;;  %v1322_v63 = vadd.f32 %v3181_v61, %v3466_v3  ;;  %v1313_v1 = vpop.f32.mrb[45].mxu1  ;;  %2954 = vst [vmem:[%s3481_s29 + $0xa0] sm:$0xff] %v2718_v58   ;;  %v1058_v2 = vadd.f32 %v3466_v3, %v1057_v0  ;;  %v3118_v5 = vpop.f32.mrb[46].mxu0 }
 0x140   : > { %2986 = vst [vmem:[%s3481_s29 + $0x1a0] sm:$0xff] %v2878_v59   ;;  %v1314_v4 = vadd.f32 %v3466_v3, %v1313_v1  ;;  %v3182_v6 = vpop.f32.mrb[46].mxu1  ;;  %v1069_v7 = vadd.f32 %v3118_v5, %v3466_v3  ;;  %v1060_v9 = vpop.f32.mrb[47].mxu0  ;;  %v1438_v13 = vmax.f32 %v1066_v62, 0.0 }
 0x141   : > { %v1325_v8 = vadd.f32 %v3182_v6, %v3466_v3  ;;  %v1316_v10 = vpop.f32.mrb[47].mxu1  ;;  %v1061_v11 = vadd.f32 %v3466_v3, %v1060_v9  ;;  %v1502_v14 = vmax.f32 %v1322_v63, 0.0  ;;  %v1436_v17 = vmax.f32 %v1058_v2, 0.0 }
 0x142   : > { %v1317_v12 = vadd.f32 %v3466_v3, %v1316_v10  ;;  %v1439_v15 = vmax.f32 %v1069_v7, 0.0  ;;  %v1500_v18 = vmax.f32 %v1314_v4, 0.0 }
 0x143   : > { %v1503_v16 = vmax.f32 %v1325_v8, 0.0  ;;  %v1437_v19 = vmax.f32 %v1061_v11, 0.0 }
 0x144   : > { %v1501_v20 = vmax.f32 %v1317_v12, 0.0  ;;  %v2733_v21 = vpack.c.bf16 %v1439_v15, %v1438_v13 }
 0x145   : > { %v2893_v22 = vpack.c.bf16 %v1503_v16, %v1502_v14  ;;  %v2728_v23 = vpack.c.bf16 %v1437_v19, %v1436_v17  ;;  %v3121_v25 = vpop.f32.mrb[48].mxu0 }
 0x146   : > { %v2888_v24 = vpack.c.bf16 %v1501_v20, %v1500_v18  ;;  %v3185_v26 = vpop.f32.mrb[48].mxu1  ;;  %2957 = vst [vmem:[%s3481_s29 + $0xb8] sm:$0xff] %v2733_v21   ;;  %v1082_v27 = vadd.f32 %v3121_v25, %v3466_v3  ;;  %v1073_v29 = vpop.f32.mrb[49].mxu0 }
 0x147   : > { %2989 = vst [vmem:[%s3481_s29 + $0x1b8] sm:$0xff] %v2893_v22   ;;  %v1338_v28 = vadd.f32 %v3185_v26, %v3466_v3  ;;  %v1329_v30 = vpop.f32.mrb[49].mxu1  ;;  %2956 = vst [vmem:[%s3481_s29 + $0xb0] sm:$0xff] %v2728_v23   ;;  %v1074_v31 = vadd.f32 %v3466_v3, %v1073_v29  ;;  %v3122_v33 = vpop.f32.mrb[50].mxu0 }
 0x148   : > { %2988 = vst [vmem:[%s3481_s29 + $0x1b0] sm:$0xff] %v2888_v24   ;;  %v1330_v32 = vadd.f32 %v3466_v3, %v1329_v30  ;;  %v3186_v34 = vpop.f32.mrb[50].mxu1  ;;  %v1085_v35 = vadd.f32 %v3122_v33, %v3466_v3  ;;  %v1076_v37 = vpop.f32.mrb[51].mxu0  ;;  %v1442_v41 = vmax.f32 %v1082_v27, 0.0 }
 0x149   : > { %v1341_v36 = vadd.f32 %v3186_v34, %v3466_v3  ;;  %v1332_v38 = vpop.f32.mrb[51].mxu1  ;;  %v1077_v39 = vadd.f32 %v3466_v3, %v1076_v37  ;;  %v1506_v42 = vmax.f32 %v1338_v28, 0.0  ;;  %v1440_v45 = vmax.f32 %v1074_v31, 0.0 }
 0x14a   : > { %v1333_v40 = vadd.f32 %v3466_v3, %v1332_v38  ;;  %v1443_v43 = vmax.f32 %v1085_v35, 0.0  ;;  %v1504_v46 = vmax.f32 %v1330_v32, 0.0 }
 0x14b   : > { %v1507_v44 = vmax.f32 %v1341_v36, 0.0  ;;  %v1441_v47 = vmax.f32 %v1077_v39, 0.0 }
 0x14c   : > { %v1505_v48 = vmax.f32 %v1333_v40, 0.0  ;;  %v2743_v49 = vpack.c.bf16 %v1443_v43, %v1442_v41 }
 0x14d   : > { %v2903_v50 = vpack.c.bf16 %v1507_v44, %v1506_v42  ;;  %v2738_v51 = vpack.c.bf16 %v1441_v47, %v1440_v45  ;;  %v3125_v53 = vpop.f32.mrb[52].mxu0 }
 0x14e   : > { %v2898_v52 = vpack.c.bf16 %v1505_v48, %v1504_v46  ;;  %v3189_v54 = vpop.f32.mrb[52].mxu1  ;;  %2959 = vst [vmem:[%s3481_s29 + $0xc8] sm:$0xff] %v2743_v49   ;;  %v1098_v55 = vadd.f32 %v3125_v53, %v3466_v3  ;;  %v1089_v57 = vpop.f32.mrb[53].mxu0 }
 0x14f   : > { %2991 = vst [vmem:[%s3481_s29 + $0x1c8] sm:$0xff] %v2903_v50   ;;  %v1354_v56 = vadd.f32 %v3189_v54, %v3466_v3  ;;  %v1345_v58 = vpop.f32.mrb[53].mxu1  ;;  %2958 = vst [vmem:[%s3481_s29 + $0xc0] sm:$0xff] %v2738_v51   ;;  %v1090_v59 = vadd.f32 %v3466_v3, %v1089_v57  ;;  %v3126_v61 = vpop.f32.mrb[54].mxu0 }
 0x150   : > { %2990 = vst [vmem:[%s3481_s29 + $0x1c0] sm:$0xff] %v2898_v52   ;;  %v1346_v60 = vadd.f32 %v3466_v3, %v1345_v58  ;;  %v3190_v62 = vpop.f32.mrb[54].mxu1  ;;  %v1101_v63 = vadd.f32 %v3126_v61, %v3466_v3  ;;  %v1092_v1 = vpop.f32.mrb[55].mxu0  ;;  %v1446_v6 = vmax.f32 %v1098_v55, 0.0 }
 0x151   : > { %v1357_v0 = vadd.f32 %v3190_v62, %v3466_v3  ;;  %v1348_v2 = vpop.f32.mrb[55].mxu1  ;;  %v1093_v4 = vadd.f32 %v3466_v3, %v1092_v1  ;;  %v1510_v7 = vmax.f32 %v1354_v56, 0.0  ;;  %v1444_v10 = vmax.f32 %v1090_v59, 0.0 }
 0x152   : > { %v1349_v5 = vadd.f32 %v3466_v3, %v1348_v2  ;;  %v1447_v8 = vmax.f32 %v1101_v63, 0.0  ;;  %v1508_v11 = vmax.f32 %v1346_v60, 0.0 }
 0x153   : > { %v1511_v9 = vmax.f32 %v1357_v0, 0.0  ;;  %v1445_v12 = vmax.f32 %v1093_v4, 0.0 }
 0x154   : > { %v1509_v13 = vmax.f32 %v1349_v5, 0.0  ;;  %v2753_v14 = vpack.c.bf16 %v1447_v8, %v1446_v6 }
 0x155   : > { %v2913_v15 = vpack.c.bf16 %v1511_v9, %v1510_v7  ;;  %v2748_v16 = vpack.c.bf16 %v1445_v12, %v1444_v10  ;;  %v3129_v18 = vpop.f32.mrb[56].mxu0 }
 0x156   : > { %v2908_v17 = vpack.c.bf16 %v1509_v13, %v1508_v11  ;;  %v3193_v19 = vpop.f32.mrb[56].mxu1  ;;  %2961 = vst [vmem:[%s3481_s29 + $0xd8] sm:$0xff] %v2753_v14   ;;  %v1114_v20 = vadd.f32 %v3129_v18, %v3466_v3  ;;  %v1105_v22 = vpop.f32.mrb[57].mxu0 }
 0x157   : > { %2993 = vst [vmem:[%s3481_s29 + $0x1d8] sm:$0xff] %v2913_v15   ;;  %v1370_v21 = vadd.f32 %v3193_v19, %v3466_v3  ;;  %v1361_v23 = vpop.f32.mrb[57].mxu1  ;;  %2960 = vst [vmem:[%s3481_s29 + $0xd0] sm:$0xff] %v2748_v16   ;;  %v1106_v24 = vadd.f32 %v3466_v3, %v1105_v22  ;;  %v3130_v26 = vpop.f32.mrb[58].mxu0 }
 0x158   : > { %2992 = vst [vmem:[%s3481_s29 + $0x1d0] sm:$0xff] %v2908_v17   ;;  %v1362_v25 = vadd.f32 %v3466_v3, %v1361_v23  ;;  %v3194_v27 = vpop.f32.mrb[58].mxu1  ;;  %v1117_v28 = vadd.f32 %v3130_v26, %v3466_v3  ;;  %v1108_v30 = vpop.f32.mrb[59].mxu0  ;;  %v1450_v34 = vmax.f32 %v1114_v20, 0.0 }
 0x159   : > { %v1373_v29 = vadd.f32 %v3194_v27, %v3466_v3  ;;  %v1364_v31 = vpop.f32.mrb[59].mxu1  ;;  %v1109_v32 = vadd.f32 %v3466_v3, %v1108_v30  ;;  %v1514_v35 = vmax.f32 %v1370_v21, 0.0  ;;  %v1448_v38 = vmax.f32 %v1106_v24, 0.0 }
 0x15a   : > { %v1365_v33 = vadd.f32 %v3466_v3, %v1364_v31  ;;  %v1451_v36 = vmax.f32 %v1117_v28, 0.0  ;;  %v1512_v39 = vmax.f32 %v1362_v25, 0.0 }
 0x15b   : > { %v1515_v37 = vmax.f32 %v1373_v29, 0.0  ;;  %v1449_v40 = vmax.f32 %v1109_v32, 0.0 }
 0x15c   : > { %v1513_v41 = vmax.f32 %v1365_v33, 0.0  ;;  %v2763_v42 = vpack.c.bf16 %v1451_v36, %v1450_v34 }
 0x15d   : > { %v2923_v43 = vpack.c.bf16 %v1515_v37, %v1514_v35  ;;  %v2758_v44 = vpack.c.bf16 %v1449_v40, %v1448_v38  ;;  %v3133_v46 = vpop.f32.mrb[60].mxu0 }
 0x15e   : > { %v2918_v45 = vpack.c.bf16 %v1513_v41, %v1512_v39  ;;  %v3197_v47 = vpop.f32.mrb[60].mxu1  ;;  %2963 = vst [vmem:[%s3481_s29 + $0xe8] sm:$0xff] %v2763_v42   ;;  %v1130_v48 = vadd.f32 %v3133_v46, %v3466_v3  ;;  %v1121_v50 = vpop.f32.mrb[61].mxu0 }
 0x15f   : > { %2995 = vst [vmem:[%s3481_s29 + $0x1e8] sm:$0xff] %v2923_v43   ;;  %v1386_v49 = vadd.f32 %v3197_v47, %v3466_v3  ;;  %v1377_v51 = vpop.f32.mrb[61].mxu1  ;;  %2962 = vst [vmem:[%s3481_s29 + $0xe0] sm:$0xff] %v2758_v44   ;;  %v1122_v52 = vadd.f32 %v3466_v3, %v1121_v50  ;;  %v3134_v54 = vpop.f32.mrb[62].mxu0 }
 0x160   : > { %2994 = vst [vmem:[%s3481_s29 + $0x1e0] sm:$0xff] %v2918_v45   ;;  %v1378_v53 = vadd.f32 %v3466_v3, %v1377_v51  ;;  %v3198_v55 = vpop.f32.mrb[62].mxu1  ;;  %v1133_v56 = vadd.f32 %v3134_v54, %v3466_v3  ;;  %v1124_v58 = vpop.f32.mrb[63].mxu0  ;;  %v1454_v62 = vmax.f32 %v1130_v48, 0.0 }
 0x161   : > { %v1389_v57 = vadd.f32 %v3198_v55, %v3466_v3  ;;  %v1380_v59 = vpop.f32.mrb[63].mxu1  ;;  %v1125_v60 = vadd.f32 %v3466_v3, %v1124_v58  ;;  %v1518_v63 = vmax.f32 %v1386_v49, 0.0  ;;  %v1452_v2 = vmax.f32 %v1122_v52, 0.0 }
 0x162   : > { %v1381_v61 = vadd.f32 %v3466_v3, %v1380_v59  ;;  %v1455_v0 = vmax.f32 %v1133_v56, 0.0  ;;  %v1516_v4 = vmax.f32 %v1378_v53, 0.0 }
 0x163   : > { %v1519_v1 = vmax.f32 %v1389_v57, 0.0  ;;  %v1453_v5 = vmax.f32 %v1125_v60, 0.0 }
 0x164   : > { %v1517_v6 = vmax.f32 %v1381_v61, 0.0  ;;  %v2773_v7 = vpack.c.bf16 %v1455_v0, %v1454_v62 }
 0x165   : > { %v2933_v8 = vpack.c.bf16 %v1519_v1, %v1518_v63  ;;  %v2768_v9 = vpack.c.bf16 %v1453_v5, %v1452_v2 }
 0x166   : > { %v2928_v10 = vpack.c.bf16 %v1517_v6, %v1516_v4  ;;  %2965 = vst [vmem:[%s3481_s29 + $0xf8] sm:$0xff] %v2773_v7  }
 0x167   : > { %2997 = vst [vmem:[%s3481_s29 + $0x1f8] sm:$0xff] %v2933_v8   ;;  %2964 = vst [vmem:[%s3481_s29 + $0xf0] sm:$0xff] %v2768_v9  }
 0x168   : > { %2996 = vst [vmem:[%s3481_s29 + $0x1f0] sm:$0xff] %v2928_v10  }
 0x169 PF: > { %s13_s12 = sadd.s32 1, %s3286_s12  }
 0x16a   : > { %p10_p4 = scmp.ge.s32.totalorder %s13_s12, 4  }
 0x16c   :  { %12 = sbr.rel (!%p10_p4) target bundleno = 1 (0x1), region = 62 }

// kernel: factor_vae2_forward.11
= control target key start
LH: loop header
LB: loop body
LE: loop exit
PB: predicated region body
PF: predicated region fallthrough
CT: control target
= control target key end

     0   :  { %v2846_v0 = vmov 0   ;;  %s3543_s1 = inlined_call_operand.vmem [shape: bf16[512,128], index: 1, kind: input, shape index: {}]   ;;  %s3544_s0 = inlined_call_operand.vmem [shape: bf16[512,512], index: 0, kind: input, shape index: {}]   ;;  %s3545_s2 = inlined_call_operand.vmem [shape: f32[1,128], index: 2, kind: input, shape index: {}]   ;;  %s3546_s3 = inlined_call_operand.vmem [shape: bf16[512,128], index: 3, kind: output, shape index: {}]  }
   0x1   :  { %1046 = vmatprep.subr.bf16.mxu1 %v2846_v0  ;;  %1335 = vmatprep.subr.bf16.mxu0 %v2846_v0  ;;  %v2621_v1 = vld [vmem:[%s3543_s1] sm:$0xff]   ;;  %v2623_v3 = vld [vmem:[%s3543_s1 + $0x8] sm:$0xff]   ;;  %v2625_v5 = vld [vmem:[%s3543_s1 + $0x10] sm:$0xff]  }
   0x2   :  { %v2622_v2 = vld [vmem:[%s3543_s1 + $0x80] sm:$0xff]   ;;  %1047 = vmatpush1.bf16.msra.mxu1 %v2621_v1  ;;  %v2624_v4 = vld [vmem:[%s3543_s1 + $0x88] sm:$0xff]   ;;  %v2626_v6 = vld [vmem:[%s3543_s1 + $0x90] sm:$0xff]  }
   0x3   :  { %1336 = vmatpush1.bf16.msra.mxu0 %v2622_v2  ;;  %1048 = vmatprep.subr.bf16.mxu1 %v2846_v0  ;;  %v2627_v7 = vld [vmem:[%s3543_s1 + $0x18] sm:$0xff]   ;;  %v2629_v9 = vld [vmem:[%s3543_s1 + $0x20] sm:$0xff]   ;;  %v2631_v11 = vld [vmem:[%s3543_s1 + $0x28] sm:$0xff]  }
   0x4   :  { %1337 = vmatprep.subr.bf16.mxu0 %v2846_v0  ;;  %v2628_v8 = vld [vmem:[%s3543_s1 + $0x98] sm:$0xff]   ;;  %v2630_v10 = vld [vmem:[%s3543_s1 + $0xa0] sm:$0xff]   ;;  %v2632_v12 = vld [vmem:[%s3543_s1 + $0xa8] sm:$0xff]  }
   0x5   :  { %v2633_v13 = vld [vmem:[%s3543_s1 + $0x30] sm:$0xff]   ;;  %v2635_v15 = vld [vmem:[%s3543_s1 + $0x38] sm:$0xff]   ;;  %v2637_v17 = vld [vmem:[%s3543_s1 + $0x40] sm:$0xff]  }
   0x6   :  { %1049 = vmatpush1.bf16.msra.mxu1 %v2623_v3  ;;  %v2634_v14 = vld [vmem:[%s3543_s1 + $0xb0] sm:$0xff]   ;;  %v2636_v16 = vld [vmem:[%s3543_s1 + $0xb8] sm:$0xff]   ;;  %v2638_v18 = vld [vmem:[%s3543_s1 + $0xc0] sm:$0xff]  }
   0x7   :  { %1338 = vmatpush1.bf16.msra.mxu0 %v2624_v4  ;;  %1050 = vmatprep.subr.bf16.mxu1 %v2846_v0  ;;  %v2655_v19 = vld [vmem:[%s3544_s0 + $0x4] ss:$16 sps:$4 sm:$0xff]   ;;  %v2639_v20 = vld [vmem:[%s3543_s1 + $0x48] sm:$0xff]   ;;  %v2643_v25 = vld [vmem:[%s3543_s1 + $0x58] sm:$0xff]  }
   0x8   :  { %1339 = vmatprep.subr.bf16.mxu0 %v2846_v0  ;;  %v2658_v21 = vld [vmem:[%s3544_s0 + $0xc] ss:$16 sps:$4 sm:$0xff]   ;;  %1078 = vmatprep.mubr.bf16.mxu1 %v2655_v19  ;;  %v2641_v23 = vld [vmem:[%s3543_s1 + $0x50] sm:$0xff]   ;;  %v2645_v27 = vld [vmem:[%s3543_s1 + $0x60] sm:$0xff]  }
   0x9   :  { %v2640_v22 = vld [vmem:[%s3543_s1 + $0xc8] sm:$0xff]   ;;  %1367 = vmatprep.mubr.bf16.mxu0 %v2658_v21  ;;  %v2642_v24 = vld [vmem:[%s3543_s1 + $0xd0] sm:$0xff]   ;;  %v2644_v26 = vld [vmem:[%s3543_s1 + $0xd8] sm:$0xff]  }
   0xa   :  { %1051 = vmatpush1.bf16.msra.mxu1 %v2625_v5  ;;  %v2646_v28 = vld [vmem:[%s3543_s1 + $0xe0] sm:$0xff]   ;;  %v2647_v29 = vld [vmem:[%s3543_s1 + $0x68] sm:$0xff]   ;;  %v2649_v31 = vld [vmem:[%s3543_s1 + $0x70] sm:$0xff]  }
   0xb   :  { %1340 = vmatpush1.bf16.msra.mxu0 %v2626_v6  ;;  %1052 = vmatprep.subr.bf16.mxu1 %v2846_v0  ;;  %v2648_v30 = vld [vmem:[%s3543_s1 + $0xe8] sm:$0xff]   ;;  %v2650_v32 = vld [vmem:[%s3543_s1 + $0xf0] sm:$0xff]   ;;  %v2651_v33 = vld [vmem:[%s3543_s1 + $0x78] sm:$0xff]  }
   0xc   :  { %1341 = vmatprep.subr.bf16.mxu0 %v2846_v0  ;;  %v2652_v34 = vld [vmem:[%s3543_s1 + $0xf8] sm:$0xff]   ;;  %v2653_v35 = vld [vmem:[%s3544_s0] ss:$16 sps:$4 sm:$0xff]   ;;  %v2659_v37 = vld [vmem:[%s3544_s0 + $0x24] ss:$16 sps:$4 sm:$0xff]  }
   0xd   :  { %v2656_v36 = vld [vmem:[%s3544_s0 + $0x8] ss:$16 sps:$4 sm:$0xff]   ;;  %v2661_v38 = vld [vmem:[%s3544_s0 + $0x2c] ss:$16 sps:$4 sm:$0xff]   ;;  %v2663_v39 = vld [vmem:[%s3544_s0 + $0x20] ss:$16 sps:$4 sm:$0xff]  }
   0xe   :  { %1053 = vmatpush1.bf16.msra.mxu1 %v2627_v7  ;;  %v2664_v40 = vld [vmem:[%s3544_s0 + $0x28] ss:$16 sps:$4 sm:$0xff]   ;;  %v2665_v41 = vld [vmem:[%s3544_s0 + $0x44] ss:$16 sps:$4 sm:$0xff]   ;;  %v2667_v42 = vld [vmem:[%s3544_s0 + $0x4c] ss:$16 sps:$4 sm:$0xff]  }
   0xf   :  { %1342 = vmatpush1.bf16.msra.mxu0 %v2628_v8  ;;  %1054 = vmatprep.subr.bf16.mxu1 %v2846_v0  ;;  %v2669_v43 = vld [vmem:[%s3544_s0 + $0x40] ss:$16 sps:$4 sm:$0xff]   ;;  %v2670_v44 = vld [vmem:[%s3544_s0 + $0x48] ss:$16 sps:$4 sm:$0xff]   ;;  %v2671_v45 = vld [vmem:[%s3544_s0 + $0x64] ss:$16 sps:$4 sm:$0xff]  }
  0x10   :  { %1343 = vmatprep.subr.bf16.mxu0 %v2846_v0  ;;  %v2673_v46 = vld [vmem:[%s3544_s0 + $0x6c] ss:$16 sps:$4 sm:$0xff]   ;;  %v2675_v47 = vld [vmem:[%s3544_s0 + $0x60] ss:$16 sps:$4 sm:$0xff]   ;;  %v2676_v48 = vld [vmem:[%s3544_s0 + $0x68] ss:$16 sps:$4 sm:$0xff]  }
  0x11   :  { %v2677_v49 = vld [vmem:[%s3544_s0 + $0x84] ss:$16 sps:$4 sm:$0xff]   ;;  %v2679_v50 = vld [vmem:[%s3544_s0 + $0x8c] ss:$16 sps:$4 sm:$0xff]   ;;  %v2681_v51 = vld [vmem:[%s3544_s0 + $0x80] ss:$16 sps:$4 sm:$0xff]  }
  0x12   :  { %1055 = vmatpush1.bf16.msra.mxu1 %v2629_v9  ;;  %v2682_v52 = vld [vmem:[%s3544_s0 + $0x88] ss:$16 sps:$4 sm:$0xff]   ;;  %v2683_v53 = vld [vmem:[%s3544_s0 + $0xa4] ss:$16 sps:$4 sm:$0xff]   ;;  %v2685_v54 = vld [vmem:[%s3544_s0 + $0xac] ss:$16 sps:$4 sm:$0xff]  }
  0x13   :  { %1344 = vmatpush1.bf16.msra.mxu0 %v2630_v10  ;;  %1056 = vmatprep.subr.bf16.mxu1 %v2846_v0  ;;  %v2687_v55 = vld [vmem:[%s3544_s0 + $0xa0] ss:$16 sps:$4 sm:$0xff]   ;;  %v2688_v56 = vld [vmem:[%s3544_s0 + $0xa8] ss:$16 sps:$4 sm:$0xff]   ;;  %v2689_v57 = vld [vmem:[%s3544_s0 + $0xc4] ss:$16 sps:$4 sm:$0xff]  }
  0x14   :  { %1345 = vmatprep.subr.bf16.mxu0 %v2846_v0  ;;  %v2691_v58 = vld [vmem:[%s3544_s0 + $0xcc] ss:$16 sps:$4 sm:$0xff]   ;;  %v2693_v59 = vld [vmem:[%s3544_s0 + $0xc0] ss:$16 sps:$4 sm:$0xff]   ;;  %v2694_v60 = vld [vmem:[%s3544_s0 + $0xc8] ss:$16 sps:$4 sm:$0xff]  }
  0x15   :  { %v2695_v61 = vld [vmem:[%s3544_s0 + $0xe4] ss:$16 sps:$4 sm:$0xff]   ;;  %v2697_v62 = vld [vmem:[%s3544_s0 + $0xec] ss:$16 sps:$4 sm:$0xff]   ;;  %v2699_v63 = vld [vmem:[%s3544_s0 + $0xe0] ss:$16 sps:$4 sm:$0xff]  }
  0x16   :  { %1057 = vmatpush1.bf16.msra.mxu1 %v2631_v11  ;;  %v2701_v1 = vld [vmem:[%s3544_s0 + $0x104] ss:$16 sps:$4 sm:$0xff]   ;;  %v2703_v2 = vld [vmem:[%s3544_s0 + $0x10c] ss:$16 sps:$4 sm:$0xff]   ;;  %v2705_v3 = vld [vmem:[%s3544_s0 + $0x100] ss:$16 sps:$4 sm:$0xff]  }
  0x17   :  { %1346 = vmatpush1.bf16.msra.mxu0 %v2632_v12  ;;  %1058 = vmatprep.subr.bf16.mxu1 %v2846_v0  ;;  %v2706_v4 = vld [vmem:[%s3544_s0 + $0x108] ss:$16 sps:$4 sm:$0xff]   ;;  %v2707_v5 = vld [vmem:[%s3544_s0 + $0x124] ss:$16 sps:$4 sm:$0xff]   ;;  %v2709_v6 = vld [vmem:[%s3544_s0 + $0x12c] ss:$16 sps:$4 sm:$0xff]  }
  0x18   :  { %1347 = vmatprep.subr.bf16.mxu0 %v2846_v0  ;;  %v2711_v7 = vld [vmem:[%s3544_s0 + $0x120] ss:$16 sps:$4 sm:$0xff]   ;;  %v2712_v8 = vld [vmem:[%s3544_s0 + $0x128] ss:$16 sps:$4 sm:$0xff]   ;;  %v2713_v9 = vld [vmem:[%s3544_s0 + $0x144] ss:$16 sps:$4 sm:$0xff]  }
  0x19   :  { %v2715_v10 = vld [vmem:[%s3544_s0 + $0x14c] ss:$16 sps:$4 sm:$0xff]   ;;  %v2717_v11 = vld [vmem:[%s3544_s0 + $0x140] ss:$16 sps:$4 sm:$0xff]   ;;  %v2718_v12 = vld [vmem:[%s3544_s0 + $0x148] ss:$16 sps:$4 sm:$0xff]  }
  0x1a   :  { %1059 = vmatpush1.bf16.msra.mxu1 %v2633_v13  ;;  %v2719_v13 = vld [vmem:[%s3544_s0 + $0x164] ss:$16 sps:$4 sm:$0xff]   ;;  %v2729_v19 = vld [vmem:[%s3544_s0 + $0x180] ss:$16 sps:$4 sm:$0xff]  }
  0x1b   :  { %1348 = vmatpush1.bf16.msra.mxu0 %v2634_v14  ;;  %1060 = vmatprep.subr.bf16.mxu1 %v2846_v0  ;;  %v2721_v14 = vld [vmem:[%s3544_s0 + $0x16c] ss:$16 sps:$4 sm:$0xff]   ;;  %v2731_v21 = vld [vmem:[%s3544_s0 + $0x1a4] ss:$16 sps:$4 sm:$0xff]  }
  0x1c   :  { %1349 = vmatprep.subr.bf16.mxu0 %v2846_v0 }
  0x1e   :  { %1061 = vmatpush1.bf16.msra.mxu1 %v2635_v15  ;;  %v2723_v15 = vld [vmem:[%s3544_s0 + $0x160] ss:$16 sps:$4 sm:$0xff]  }
  0x1f   :  { %1350 = vmatpush1.bf16.msra.mxu0 %v2636_v16  ;;  %1062 = vmatprep.subr.bf16.mxu1 %v2846_v0  ;;  %v2724_v16 = vld [vmem:[%s3544_s0 + $0x168] ss:$16 sps:$4 sm:$0xff]  }
  0x20   :  { %1351 = vmatprep.subr.bf16.mxu0 %v2846_v0 }
  0x22   :  { %1063 = vmatpush1.bf16.msra.mxu1 %v2637_v17  ;;  %v2725_v17 = vld [vmem:[%s3544_s0 + $0x184] ss:$16 sps:$4 sm:$0xff]  }
  0x23   :  { %1352 = vmatpush1.bf16.msra.mxu0 %v2638_v18  ;;  %1064 = vmatprep.subr.bf16.mxu1 %v2846_v0  ;;  %v2727_v18 = vld [vmem:[%s3544_s0 + $0x18c] ss:$16 sps:$4 sm:$0xff]  }
  0x24   :  { %1353 = vmatprep.subr.bf16.mxu0 %v2846_v0 }
  0x26   :  { %1065 = vmatpush1.bf16.msra.mxu1 %v2639_v20  ;;  %v2730_v20 = vld [vmem:[%s3544_s0 + $0x188] ss:$16 sps:$4 sm:$0xff]  }
  0x27   :  { %1354 = vmatpush1.bf16.msra.mxu0 %v2640_v22  ;;  %1066 = vmatprep.subr.bf16.mxu1 %v2846_v0  ;;  %v2733_v22 = vld [vmem:[%s3544_s0 + $0x1ac] ss:$16 sps:$4 sm:$0xff]  }
  0x28   :  { %1355 = vmatprep.subr.bf16.mxu0 %v2846_v0 }
  0x2a   :  { %1067 = vmatpush1.bf16.msra.mxu1 %v2641_v23  ;;  %v2735_v23 = vld [vmem:[%s3544_s0 + $0x1a0] ss:$16 sps:$4 sm:$0xff]  }
  0x2b   :  { %1356 = vmatpush1.bf16.msra.mxu0 %v2642_v24  ;;  %1068 = vmatprep.subr.bf16.mxu1 %v2846_v0  ;;  %v2736_v24 = vld [vmem:[%s3544_s0 + $0x1a8] ss:$16 sps:$4 sm:$0xff]  }
  0x2c   :  { %1357 = vmatprep.subr.bf16.mxu0 %v2846_v0 }
  0x2e   :  { %1069 = vmatpush1.bf16.msra.mxu1 %v2643_v25  ;;  %v2737_v25 = vld [vmem:[%s3544_s0 + $0x1c4] ss:$16 sps:$4 sm:$0xff]  }
  0x2f   :  { %1358 = vmatpush1.bf16.msra.mxu0 %v2644_v26  ;;  %1070 = vmatprep.subr.bf16.mxu1 %v2846_v0  ;;  %v2739_v26 = vld [vmem:[%s3544_s0 + $0x1cc] ss:$16 sps:$4 sm:$0xff]  }
  0x30   :  { %1359 = vmatprep.subr.bf16.mxu0 %v2846_v0 }
  0x32   :  { %1071 = vmatpush1.bf16.msra.mxu1 %v2645_v27  ;;  %v2741_v27 = vld [vmem:[%s3544_s0 + $0x1c0] ss:$16 sps:$4 sm:$0xff]  }
  0x33   :  { %1360 = vmatpush1.bf16.msra.mxu0 %v2646_v28  ;;  %1072 = vmatprep.subr.bf16.mxu1 %v2846_v0  ;;  %v2742_v28 = vld [vmem:[%s3544_s0 + $0x1c8] ss:$16 sps:$4 sm:$0xff]  }
  0x34   :  { %1361 = vmatprep.subr.bf16.mxu0 %v2846_v0 }
  0x36   :  { %1073 = vmatpush1.bf16.msra.mxu1 %v2647_v29  ;;  %v2743_v29 = vld [vmem:[%s3544_s0 + $0x1e4] ss:$16 sps:$4 sm:$0xff]  }
  0x37   :  { %1362 = vmatpush1.bf16.msra.mxu0 %v2648_v30  ;;  %1074 = vmatprep.subr.bf16.mxu1 %v2846_v0  ;;  %v2745_v30 = vld [vmem:[%s3544_s0 + $0x1ec] ss:$16 sps:$4 sm:$0xff]  }
  0x38   :  { %1363 = vmatprep.subr.bf16.mxu0 %v2846_v0 }
  0x3a   :  { %1075 = vmatpush1.bf16.msra.mxu1 %v2649_v31  ;;  %v2747_v31 = vld [vmem:[%s3544_s0 + $0x1e0] ss:$16 sps:$4 sm:$0xff]  }
  0x3b   :  { %1364 = vmatpush1.bf16.msra.mxu0 %v2650_v32  ;;  %1076 = vmatprep.subr.bf16.mxu1 %v2846_v0  ;;  %v2748_v32 = vld [vmem:[%s3544_s0 + $0x1e8] ss:$16 sps:$4 sm:$0xff]  }
  0x3c   :  { %1365 = vmatprep.subr.bf16.mxu0 %v2846_v0  ;;  %v2700_v0 = vld [vmem:[%s3544_s0 + $0xe8] ss:$16 sps:$4 sm:$0xff]  }
  0x3e   :  { %1077 = vmatpush1.bf16.msra.mxu1 %v2651_v33  ;;  %v2749_v33 = vld [vmem:[%s3544_s0 + $0x204] ss:$16 sps:$4 sm:$0xff]  }
  0x3f   :  { %1366 = vmatpush1.bf16.msra.mxu0 %v2652_v34  ;;  %v2751_v34 = vld [vmem:[%s3544_s0 + $0x20c] ss:$16 sps:$4 sm:$0xff]  }
  0x41   :  { %1079 = vmatmul.mubr.bf16.vlgmr.msra.gmra.mrb[0].mxu1 %v2653_v35  ;;  %v2753_v35 = vld [vmem:[%s3544_s0 + $0x200] ss:$16 sps:$4 sm:$0xff]  }
  0x42   :  { %1368 = vmatmul.mubr.bf16.vlgmr.msra.gmra.mrb[0].mxu0 %v2656_v36  ;;  %1086 = vmatprep.mubr.bf16.mxu1 %v2659_v37  ;;  %v2754_v36 = vld [vmem:[%s3544_s0 + $0x208] ss:$16 sps:$4 sm:$0xff]   ;;  %v2755_v37 = vld [vmem:[%s3544_s0 + $0x224] ss:$16 sps:$4 sm:$0xff]  }
  0x43   :  { %1375 = vmatprep.mubr.bf16.mxu0 %v2661_v38  ;;  %v2757_v38 = vld [vmem:[%s3544_s0 + $0x22c] ss:$16 sps:$4 sm:$0xff]  }
  0x49   :  { %1087 = vmatmul.mubr.bf16.gmra.mrb[4].mxu1 %v2663_v39  ;;  %v2759_v39 = vld [vmem:[%s3544_s0 + $0x220] ss:$16 sps:$4 sm:$0xff]  }
  0x4a   :  { %1376 = vmatmul.mubr.bf16.gmra.mrb[4].mxu0 %v2664_v40  ;;  %1094 = vmatprep.mubr.bf16.mxu1 %v2665_v41  ;;  %v2760_v40 = vld [vmem:[%s3544_s0 + $0x228] ss:$16 sps:$4 sm:$0xff]   ;;  %v2761_v41 = vld [vmem:[%s3544_s0 + $0x244] ss:$16 sps:$4 sm:$0xff]  }
  0x4b   :  { %1383 = vmatprep.mubr.bf16.mxu0 %v2667_v42  ;;  %v2763_v42 = vld [vmem:[%s3544_s0 + $0x24c] ss:$16 sps:$4 sm:$0xff]  }
  0x51   :  { %1095 = vmatmul.mubr.bf16.gmra.mrb[8].mxu1 %v2669_v43  ;;  %v2765_v43 = vld [vmem:[%s3544_s0 + $0x240] ss:$16 sps:$4 sm:$0xff]  }
  0x52   :  { %1384 = vmatmul.mubr.bf16.gmra.mrb[8].mxu0 %v2670_v44  ;;  %1102 = vmatprep.mubr.bf16.mxu1 %v2671_v45  ;;  %v2766_v44 = vld [vmem:[%s3544_s0 + $0x248] ss:$16 sps:$4 sm:$0xff]   ;;  %v2767_v45 = vld [vmem:[%s3544_s0 + $0x264] ss:$16 sps:$4 sm:$0xff]  }
  0x53   :  { %1391 = vmatprep.mubr.bf16.mxu0 %v2673_v46  ;;  %v2769_v46 = vld [vmem:[%s3544_s0 + $0x26c] ss:$16 sps:$4 sm:$0xff]  }
  0x59   :  { %1103 = vmatmul.mubr.bf16.gmra.mrb[12].mxu1 %v2675_v47  ;;  %v2771_v47 = vld [vmem:[%s3544_s0 + $0x260] ss:$16 sps:$4 sm:$0xff]  }
  0x5a   :  { %1392 = vmatmul.mubr.bf16.gmra.mrb[12].mxu0 %v2676_v48  ;;  %1110 = vmatprep.mubr.bf16.mxu1 %v2677_v49  ;;  %v2772_v48 = vld [vmem:[%s3544_s0 + $0x268] ss:$16 sps:$4 sm:$0xff]   ;;  %v2773_v49 = vld [vmem:[%s3544_s0 + $0x284] ss:$16 sps:$4 sm:$0xff]  }
  0x5b   :  { %1399 = vmatprep.mubr.bf16.mxu0 %v2679_v50  ;;  %v2775_v50 = vld [vmem:[%s3544_s0 + $0x28c] ss:$16 sps:$4 sm:$0xff]  }
  0x61   :  { %1111 = vmatmul.mubr.bf16.gmra.mrb[16].mxu1 %v2681_v51  ;;  %v2777_v51 = vld [vmem:[%s3544_s0 + $0x280] ss:$16 sps:$4 sm:$0xff]  }
  0x62   :  { %1400 = vmatmul.mubr.bf16.gmra.mrb[16].mxu0 %v2682_v52  ;;  %1118 = vmatprep.mubr.bf16.mxu1 %v2683_v53  ;;  %v2778_v52 = vld [vmem:[%s3544_s0 + $0x288] ss:$16 sps:$4 sm:$0xff]   ;;  %v2779_v53 = vld [vmem:[%s3544_s0 + $0x2a4] ss:$16 sps:$4 sm:$0xff]  }
  0x63   :  { %1407 = vmatprep.mubr.bf16.mxu0 %v2685_v54  ;;  %v2781_v54 = vld [vmem:[%s3544_s0 + $0x2ac] ss:$16 sps:$4 sm:$0xff]  }
  0x69   :  { %1119 = vmatmul.mubr.bf16.gmra.mrb[20].mxu1 %v2687_v55  ;;  %v2783_v55 = vld [vmem:[%s3544_s0 + $0x2a0] ss:$16 sps:$4 sm:$0xff]  }
  0x6a   :  { %1408 = vmatmul.mubr.bf16.gmra.mrb[20].mxu0 %v2688_v56  ;;  %1126 = vmatprep.mubr.bf16.mxu1 %v2689_v57  ;;  %v2784_v56 = vld [vmem:[%s3544_s0 + $0x2a8] ss:$16 sps:$4 sm:$0xff]   ;;  %v2785_v57 = vld [vmem:[%s3544_s0 + $0x2c4] ss:$16 sps:$4 sm:$0xff]  }
  0x6b   :  { %1415 = vmatprep.mubr.bf16.mxu0 %v2691_v58  ;;  %v2787_v58 = vld [vmem:[%s3544_s0 + $0x2cc] ss:$16 sps:$4 sm:$0xff]  }
  0x71   :  { %1127 = vmatmul.mubr.bf16.gmra.mrb[24].mxu1 %v2693_v59  ;;  %v2789_v59 = vld [vmem:[%s3544_s0 + $0x2c0] ss:$16 sps:$4 sm:$0xff]  }
  0x72   :  { %1416 = vmatmul.mubr.bf16.gmra.mrb[24].mxu0 %v2694_v60  ;;  %1134 = vmatprep.mubr.bf16.mxu1 %v2695_v61  ;;  %v2790_v60 = vld [vmem:[%s3544_s0 + $0x2c8] ss:$16 sps:$4 sm:$0xff]   ;;  %v2791_v61 = vld [vmem:[%s3544_s0 + $0x2e4] ss:$16 sps:$4 sm:$0xff]  }
  0x73   :  { %1423 = vmatprep.mubr.bf16.mxu0 %v2697_v62  ;;  %v2793_v62 = vld [vmem:[%s3544_s0 + $0x2ec] ss:$16 sps:$4 sm:$0xff]  }
  0x79   :  { %1135 = vmatmul.mubr.bf16.gmra.mrb[28].mxu1 %v2699_v63  ;;  %v2795_v63 = vld [vmem:[%s3544_s0 + $0x2e0] ss:$16 sps:$4 sm:$0xff]  }
  0x7a   :  { %1424 = vmatmul.mubr.bf16.gmra.mrb[28].mxu0 %v2700_v0  ;;  %1142 = vmatprep.mubr.bf16.mxu1 %v2701_v1  ;;  %v2796_v0 = vld [vmem:[%s3544_s0 + $0x2e8] ss:$16 sps:$4 sm:$0xff]   ;;  %v2797_v1 = vld [vmem:[%s3544_s0 + $0x304] ss:$16 sps:$4 sm:$0xff]  }
  0x7b   :  { %1431 = vmatprep.mubr.bf16.mxu0 %v2703_v2  ;;  %v2799_v2 = vld [vmem:[%s3544_s0 + $0x30c] ss:$16 sps:$4 sm:$0xff]  }
  0x81   :  { %1143 = vmatmul.mubr.bf16.gmra.mrb[32].mxu1 %v2705_v3  ;;  %v2801_v3 = vld [vmem:[%s3544_s0 + $0x300] ss:$16 sps:$4 sm:$0xff]  }
  0x82   :  { %1432 = vmatmul.mubr.bf16.gmra.mrb[32].mxu0 %v2706_v4  ;;  %1150 = vmatprep.mubr.bf16.mxu1 %v2707_v5  ;;  %v2802_v4 = vld [vmem:[%s3544_s0 + $0x308] ss:$16 sps:$4 sm:$0xff]   ;;  %v2803_v5 = vld [vmem:[%s3544_s0 + $0x324] ss:$16 sps:$4 sm:$0xff]  }
  0x83   :  { %1439 = vmatprep.mubr.bf16.mxu0 %v2709_v6  ;;  %v2805_v6 = vld [vmem:[%s3544_s0 + $0x32c] ss:$16 sps:$4 sm:$0xff]  }
  0x89   :  { %1151 = vmatmul.mubr.bf16.gmra.mrb[36].mxu1 %v2711_v7  ;;  %v2807_v7 = vld [vmem:[%s3544_s0 + $0x320] ss:$16 sps:$4 sm:$0xff]  }
  0x8a   :  { %1440 = vmatmul.mubr.bf16.gmra.mrb[36].mxu0 %v2712_v8  ;;  %1158 = vmatprep.mubr.bf16.mxu1 %v2713_v9  ;;  %v2808_v8 = vld [vmem:[%s3544_s0 + $0x328] ss:$16 sps:$4 sm:$0xff]   ;;  %v2809_v9 = vld [vmem:[%s3544_s0 + $0x344] ss:$16 sps:$4 sm:$0xff]  }
  0x8b   :  { %1447 = vmatprep.mubr.bf16.mxu0 %v2715_v10  ;;  %v2811_v10 = vld [vmem:[%s3544_s0 + $0x34c] ss:$16 sps:$4 sm:$0xff]  }
  0x91   :  { %1159 = vmatmul.mubr.bf16.gmra.mrb[40].mxu1 %v2717_v11  ;;  %v2813_v11 = vld [vmem:[%s3544_s0 + $0x340] ss:$16 sps:$4 sm:$0xff]  }
  0x92   :  { %1448 = vmatmul.mubr.bf16.gmra.mrb[40].mxu0 %v2718_v12  ;;  %1166 = vmatprep.mubr.bf16.mxu1 %v2719_v13  ;;  %v2814_v12 = vld [vmem:[%s3544_s0 + $0x348] ss:$16 sps:$4 sm:$0xff]   ;;  %v2815_v13 = vld [vmem:[%s3544_s0 + $0x364] ss:$16 sps:$4 sm:$0xff]  }
  0x93   :  { %1455 = vmatprep.mubr.bf16.mxu0 %v2721_v14  ;;  %v2817_v14 = vld [vmem:[%s3544_s0 + $0x36c] ss:$16 sps:$4 sm:$0xff]  }
  0x99   :  { %1167 = vmatmul.mubr.bf16.gmra.mrb[44].mxu1 %v2723_v15  ;;  %v3328_v15 = vld [vmem:[%s3545_s2] ss:$0 sm:$0xff] }
  0x9a   :  { %1456 = vmatmul.mubr.bf16.gmra.mrb[44].mxu0 %v2724_v16  ;;  %1174 = vmatprep.mubr.bf16.mxu1 %v2725_v17 }
  0x9b   :  { %1463 = vmatprep.mubr.bf16.mxu0 %v2727_v18 }
  0xa1   :  { %1175 = vmatmul.mubr.bf16.gmra.mrb[48].mxu1 %v2729_v19 }
  0xa2   :  { %1464 = vmatmul.mubr.bf16.gmra.mrb[48].mxu0 %v2730_v20  ;;  %1182 = vmatprep.mubr.bf16.mxu1 %v2731_v21  ;;  %v2819_v20 = vld [vmem:[%s3544_s0 + $0x360] ss:$16 sps:$4 sm:$0xff]  }
  0xa3   :  { %1471 = vmatprep.mubr.bf16.mxu0 %v2733_v22 }
  0xa9   :  { %1183 = vmatmul.mubr.bf16.gmra.mrb[52].mxu1 %v2735_v23  ;;  %v2820_v23 = vld [vmem:[%s3544_s0 + $0x368] ss:$16 sps:$4 sm:$0xff]  }
  0xaa   :  { %1472 = vmatmul.mubr.bf16.gmra.mrb[52].mxu0 %v2736_v24  ;;  %1190 = vmatprep.mubr.bf16.mxu1 %v2737_v25  ;;  %v2821_v24 = vld [vmem:[%s3544_s0 + $0x384] ss:$16 sps:$4 sm:$0xff]  }
  0xab   :  { %1479 = vmatprep.mubr.bf16.mxu0 %v2739_v26 }
  0xb1   :  { %1191 = vmatmul.mubr.bf16.gmra.mrb[56].mxu1 %v2741_v27 }
  0xb2   :  { %1480 = vmatmul.mubr.bf16.gmra.mrb[56].mxu0 %v2742_v28  ;;  %1198 = vmatprep.mubr.bf16.mxu1 %v2743_v29  ;;  %v2823_v29 = vld [vmem:[%s3544_s0 + $0x38c] ss:$16 sps:$4 sm:$0xff]  }
  0xb3   :  { %1487 = vmatprep.mubr.bf16.mxu0 %v2745_v30 }
  0xb9   :  { %1199 = vmatmul.mubr.bf16.gmra.mrb[60].mxu1 %v2747_v31 }
  0xba   :  { %1488 = vmatmul.mubr.bf16.gmra.mrb[60].mxu0 %v2748_v32  ;;  %1206 = vmatprep.mubr.bf16.mxu1 %v2749_v33 }
  0xbb   :  { %1495 = vmatprep.mubr.bf16.mxu0 %v2751_v34 }
  0xc1   :  { %1207 = vmatmul.mubr.bf16.gmra.mrb[64].mxu1 %v2753_v35 }
  0xc2   :  { %1496 = vmatmul.mubr.bf16.gmra.mrb[64].mxu0 %v2754_v36  ;;  %1214 = vmatprep.mubr.bf16.mxu1 %v2755_v37 }
  0xc3   :  { %1503 = vmatprep.mubr.bf16.mxu0 %v2757_v38 }
  0xc9   :  { %1215 = vmatmul.mubr.bf16.gmra.mrb[68].mxu1 %v2759_v39  ;;  %v2825_v39 = vld [vmem:[%s3544_s0 + $0x380] ss:$16 sps:$4 sm:$0xff]  }
  0xca   :  { %1504 = vmatmul.mubr.bf16.gmra.mrb[68].mxu0 %v2760_v40  ;;  %1222 = vmatprep.mubr.bf16.mxu1 %v2761_v41 }
  0xcb   :  { %1511 = vmatprep.mubr.bf16.mxu0 %v2763_v42  ;;  %v2826_v42 = vld [vmem:[%s3544_s0 + $0x388] ss:$16 sps:$4 sm:$0xff]  }
  0xd1   :  { %1223 = vmatmul.mubr.bf16.gmra.mrb[72].mxu1 %v2765_v43  ;;  %v2827_v43 = vld [vmem:[%s3544_s0 + $0x3a4] ss:$16 sps:$4 sm:$0xff]  }
  0xd2   :  { %1512 = vmatmul.mubr.bf16.gmra.mrb[72].mxu0 %v2766_v44  ;;  %1230 = vmatprep.mubr.bf16.mxu1 %v2767_v45 }
  0xd3   :  { %1519 = vmatprep.mubr.bf16.mxu0 %v2769_v46 }
  0xd9   :  { %1231 = vmatmul.mubr.bf16.gmra.mrb[76].mxu1 %v2771_v47 }
  0xda   :  { %1520 = vmatmul.mubr.bf16.gmra.mrb[76].mxu0 %v2772_v48  ;;  %1238 = vmatprep.mubr.bf16.mxu1 %v2773_v49  ;;  %v2829_v48 = vld [vmem:[%s3544_s0 + $0x3ac] ss:$16 sps:$4 sm:$0xff]  }
  0xdb   :  { %1527 = vmatprep.mubr.bf16.mxu0 %v2775_v50 }
  0xe1   :  { %1239 = vmatmul.mubr.bf16.gmra.mrb[80].mxu1 %v2777_v51 }
  0xe2   :  { %1528 = vmatmul.mubr.bf16.gmra.mrb[80].mxu0 %v2778_v52  ;;  %1246 = vmatprep.mubr.bf16.mxu1 %v2779_v53 }
  0xe3   :  { %1535 = vmatprep.mubr.bf16.mxu0 %v2781_v54 }
  0xe9   :  { %1247 = vmatmul.mubr.bf16.gmra.mrb[84].mxu1 %v2783_v55 }
  0xea   :  { %1536 = vmatmul.mubr.bf16.gmra.mrb[84].mxu0 %v2784_v56  ;;  %1254 = vmatprep.mubr.bf16.mxu1 %v2785_v57 }
  0xeb   :  { %1543 = vmatprep.mubr.bf16.mxu0 %v2787_v58  ;;  %v2831_v58 = vld [vmem:[%s3544_s0 + $0x3a0] ss:$16 sps:$4 sm:$0xff]  }
  0xf1   :  { %1255 = vmatmul.mubr.bf16.gmra.mrb[88].mxu1 %v2789_v59 }
  0xf2   :  { %1544 = vmatmul.mubr.bf16.gmra.mrb[88].mxu0 %v2790_v60  ;;  %1262 = vmatprep.mubr.bf16.mxu1 %v2791_v61  ;;  %v2832_v61 = vld [vmem:[%s3544_s0 + $0x3a8] ss:$16 sps:$4 sm:$0xff]  }
  0xf3   :  { %1551 = vmatprep.mubr.bf16.mxu0 %v2793_v62  ;;  %v2833_v62 = vld [vmem:[%s3544_s0 + $0x3c4] ss:$16 sps:$4 sm:$0xff]  }
  0xf9   :  { %1263 = vmatmul.mubr.bf16.gmra.mrb[92].mxu1 %v2795_v63 }
  0xfa   :  { %1552 = vmatmul.mubr.bf16.gmra.mrb[92].mxu0 %v2796_v0  ;;  %1270 = vmatprep.mubr.bf16.mxu1 %v2797_v1 }
  0xfb   :  { %1559 = vmatprep.mubr.bf16.mxu0 %v2799_v2 }
 0x101   :  { %1271 = vmatmul.mubr.bf16.gmra.mrb[96].mxu1 %v2801_v3  ;;  %v2835_v3 = vld [vmem:[%s3544_s0 + $0x3cc] ss:$16 sps:$4 sm:$0xff]  }
 0x102   :  { %1560 = vmatmul.mubr.bf16.gmra.mrb[96].mxu0 %v2802_v4  ;;  %1278 = vmatprep.mubr.bf16.mxu1 %v2803_v5 }
 0x103   :  { %1567 = vmatprep.mubr.bf16.mxu0 %v2805_v6 }
 0x109   :  { %1279 = vmatmul.mubr.bf16.gmra.mrb[100].mxu1 %v2807_v7 }
 0x10a   :  { %1568 = vmatmul.mubr.bf16.gmra.mrb[100].mxu0 %v2808_v8  ;;  %1286 = vmatprep.mubr.bf16.mxu1 %v2809_v9 }
 0x10b   :  { %1575 = vmatprep.mubr.bf16.mxu0 %v2811_v10 }
 0x111   :  { %1287 = vmatmul.mubr.bf16.gmra.mrb[104].mxu1 %v2813_v11 }
 0x112   :  { %1576 = vmatmul.mubr.bf16.gmra.mrb[104].mxu0 %v2814_v12  ;;  %1294 = vmatprep.mubr.bf16.mxu1 %v2815_v13  ;;  %v2837_v13 = vld [vmem:[%s3544_s0 + $0x3c0] ss:$16 sps:$4 sm:$0xff]  }
 0x113   :  { %1583 = vmatprep.mubr.bf16.mxu0 %v2817_v14 }
 0x114   :  { %v1080_v16 = vpop.f32.mrb[0].mxu1 }
 0x115   :  { %v1081_v17 = vadd.f32 %v3328_v15, %v1080_v16  ;;  %v1369_v18 = vpop.f32.mrb[0].mxu0  ;;  %v1082_v19 = vpop.f32.mrb[1].mxu1 }
 0x116   :  { %v1371_v21 = vpop.f32.mrb[1].mxu0  ;;  %v1083_v22 = vpop.f32.mrb[2].mxu1 }
 0x117   :  { %v1370_v25 = vadd.f32 %v1369_v18, %v1081_v17  ;;  %v1084_v26 = vadd.f32 %v3328_v15, %v1083_v22  ;;  %v1372_v27 = vpop.f32.mrb[2].mxu0  ;;  %v1085_v28 = vpop.f32.mrb[3].mxu1  ;;  %v2838_v17 = vld [vmem:[%s3544_s0 + $0x3c8] ss:$16 sps:$4 sm:$0xff]   ;;  %v2839_v18 = vld [vmem:[%s3544_s0 + $0x3e4] ss:$16 sps:$4 sm:$0xff]  }
 0x118   :  { %v1374_v30 = vpop.f32.mrb[3].mxu0 }
 0x119   :  { %v1373_v31 = vadd.f32 %v1372_v27, %v1084_v26  ;;  %1295 = vmatmul.mubr.bf16.gmra.mrb[108].mxu1 %v2819_v20  ;;  %v1624_v32 = vmax.f32 %v1370_v25, 0.0 }
 0x11a   :  { %1584 = vmatmul.mubr.bf16.gmra.mrb[108].mxu0 %v2820_v23  ;;  %1302 = vmatprep.mubr.bf16.mxu1 %v2821_v24  ;;  %v2841_v23 = vld [vmem:[%s3544_s0 + $0x3ec] ss:$16 sps:$4 sm:$0xff]  }
 0x11b   :  { %v1625_v33 = vmax.f32 %v1373_v31, 0.0  ;;  %1591 = vmatprep.mubr.bf16.mxu0 %v2823_v29 }
 0x11c   :  { %v1088_v34 = vpop.f32.mrb[4].mxu1 }
 0x11d   :  { %v2304_v35 = vpack.c.bf16 %v1625_v33, %v1624_v32  ;;  %v1089_v36 = vadd.f32 %v3328_v15, %v1088_v34  ;;  %v1377_v37 = vpop.f32.mrb[4].mxu0  ;;  %v1090_v38 = vpop.f32.mrb[5].mxu1  ;;  %v2843_v33 = vld [vmem:[%s3544_s0 + $0x3e0] ss:$16 sps:$4 sm:$0xff]  }
 0x11e   :  { %v1379_v40 = vpop.f32.mrb[5].mxu0  ;;  %v1091_v41 = vpop.f32.mrb[6].mxu1 }
 0x11f   :  { %2305 = vst [vmem:[%s3546_s3] sm:$0xff] %v2304_v35   ;;  %v1378_v44 = vadd.f32 %v1377_v37, %v1089_v36  ;;  %v1092_v45 = vadd.f32 %v3328_v15, %v1091_v41  ;;  %v1380_v46 = vpop.f32.mrb[6].mxu0  ;;  %v1093_v47 = vpop.f32.mrb[7].mxu1  ;;  %v2844_v36 = vld [vmem:[%s3544_s0 + $0x3e8] ss:$16 sps:$4 sm:$0xff]  }
 0x120   :  { %v1382_v49 = vpop.f32.mrb[7].mxu0 }
 0x121   :  { %v1381_v50 = vadd.f32 %v1380_v46, %v1092_v45  ;;  %1303 = vmatmul.mubr.bf16.gmra.mrb[112].mxu1 %v2825_v39  ;;  %v1626_v51 = vmax.f32 %v1378_v44, 0.0 }
 0x122   :  { %1592 = vmatmul.mubr.bf16.gmra.mrb[112].mxu0 %v2826_v42  ;;  %1310 = vmatprep.mubr.bf16.mxu1 %v2827_v43 }
 0x123   :  { %v1627_v52 = vmax.f32 %v1381_v50, 0.0  ;;  %1599 = vmatprep.mubr.bf16.mxu0 %v2829_v48 }
 0x124   :  { %v1096_v53 = vpop.f32.mrb[8].mxu1 }
 0x125   :  { %v2309_v54 = vpack.c.bf16 %v1627_v52, %v1626_v51  ;;  %v1097_v55 = vadd.f32 %v3328_v15, %v1096_v53  ;;  %v1385_v56 = vpop.f32.mrb[8].mxu0  ;;  %v1098_v57 = vpop.f32.mrb[9].mxu1 }
 0x126   :  { %v1387_v59 = vpop.f32.mrb[9].mxu0  ;;  %v1099_v60 = vpop.f32.mrb[10].mxu1 }
 0x127   :  { %2461 = vst [vmem:[%s3546_s3 + $0x8] sm:$0xff] %v2309_v54   ;;  %v1386_v63 = vadd.f32 %v1385_v56, %v1097_v55  ;;  %v1100_v0 = vadd.f32 %v3328_v15, %v1099_v60  ;;  %v1388_v1 = vpop.f32.mrb[10].mxu0  ;;  %v1101_v2 = vpop.f32.mrb[11].mxu1 }
 0x128   :  { %v1390_v4 = vpop.f32.mrb[11].mxu0 }
 0x129   :  { %v1389_v5 = vadd.f32 %v1388_v1, %v1100_v0  ;;  %1311 = vmatmul.mubr.bf16.gmra.mrb[116].mxu1 %v2831_v58  ;;  %v1628_v6 = vmax.f32 %v1386_v63, 0.0 }
 0x12a   :  { %1600 = vmatmul.mubr.bf16.gmra.mrb[116].mxu0 %v2832_v61  ;;  %1318 = vmatprep.mubr.bf16.mxu1 %v2833_v62 }
 0x12b   :  { %v1629_v7 = vmax.f32 %v1389_v5, 0.0  ;;  %1607 = vmatprep.mubr.bf16.mxu0 %v2835_v3 }
 0x12c   :  { %v1104_v8 = vpop.f32.mrb[12].mxu1 }
 0x12d   :  { %v2314_v9 = vpack.c.bf16 %v1629_v7, %v1628_v6  ;;  %v1105_v10 = vadd.f32 %v3328_v15, %v1104_v8  ;;  %v1393_v11 = vpop.f32.mrb[12].mxu0  ;;  %v1106_v12 = vpop.f32.mrb[13].mxu1 }
 0x12e   :  { %v1395_v14 = vpop.f32.mrb[13].mxu0  ;;  %v1107_v16 = vpop.f32.mrb[14].mxu1 }
 0x12f   :  { %2462 = vst [vmem:[%s3546_s3 + $0x10] sm:$0xff] %v2314_v9   ;;  %v1394_v19 = vadd.f32 %v1393_v11, %v1105_v10  ;;  %v1108_v20 = vadd.f32 %v3328_v15, %v1107_v16  ;;  %v1396_v21 = vpop.f32.mrb[14].mxu0  ;;  %v1109_v22 = vpop.f32.mrb[15].mxu1 }
 0x130   :  { %v1398_v24 = vpop.f32.mrb[15].mxu0 }
 0x131   :  { %v1397_v25 = vadd.f32 %v1396_v21, %v1108_v20  ;;  %1319 = vmatmul.mubr.bf16.gmra.mrb[120].mxu1 %v2837_v13  ;;  %v1630_v26 = vmax.f32 %v1394_v19, 0.0 }
 0x132   :  { %1608 = vmatmul.mubr.bf16.gmra.mrb[120].mxu0 %v2838_v17  ;;  %1326 = vmatprep.mubr.bf16.mxu1 %v2839_v18 }
 0x133   :  { %v1631_v27 = vmax.f32 %v1397_v25, 0.0  ;;  %1615 = vmatprep.mubr.bf16.mxu0 %v2841_v23 }
 0x134   :  { %v1112_v28 = vpop.f32.mrb[16].mxu1 }
 0x135   :  { %v2319_v29 = vpack.c.bf16 %v1631_v27, %v1630_v26  ;;  %v1113_v30 = vadd.f32 %v3328_v15, %v1112_v28  ;;  %v1401_v31 = vpop.f32.mrb[16].mxu0  ;;  %v1114_v32 = vpop.f32.mrb[17].mxu1 }
 0x136   :  { %v1403_v34 = vpop.f32.mrb[17].mxu0  ;;  %v1115_v35 = vpop.f32.mrb[18].mxu1 }
 0x137   :  { %2463 = vst [vmem:[%s3546_s3 + $0x18] sm:$0xff] %v2319_v29   ;;  %v1402_v37 = vadd.f32 %v1401_v31, %v1113_v30  ;;  %v1116_v38 = vadd.f32 %v3328_v15, %v1115_v35  ;;  %v1404_v39 = vpop.f32.mrb[18].mxu0  ;;  %v1117_v40 = vpop.f32.mrb[19].mxu1 }
 0x138   :  { %v1406_v41 = vpop.f32.mrb[19].mxu0 }
 0x139   :  { %v1405_v42 = vadd.f32 %v1404_v39, %v1116_v38  ;;  %1327 = vmatmul.mubr.bf16.gmra.mrb[124].mxu1 %v2843_v33  ;;  %v1632_v43 = vmax.f32 %v1402_v37, 0.0 }
 0x13a   :  { %1616 = vmatmul.mubr.bf16.gmra.mrb[124].mxu0 %v2844_v36 }
 0x13b   :  { %v1633_v44 = vmax.f32 %v1405_v42, 0.0 }
 0x13c   :  { %v1120_v45 = vpop.f32.mrb[20].mxu1 }
 0x13d   :  { %v2324_v46 = vpack.c.bf16 %v1633_v44, %v1632_v43  ;;  %v1121_v47 = vadd.f32 %v3328_v15, %v1120_v45  ;;  %v1409_v48 = vpop.f32.mrb[20].mxu0  ;;  %v1122_v49 = vpop.f32.mrb[21].mxu1 }
 0x13e   :  { %v1411_v50 = vpop.f32.mrb[21].mxu0  ;;  %v1123_v51 = vpop.f32.mrb[22].mxu1 }
 0x13f   :  { %2464 = vst [vmem:[%s3546_s3 + $0x20] sm:$0xff] %v2324_v46   ;;  %v1410_v52 = vadd.f32 %v1409_v48, %v1121_v47  ;;  %v1124_v53 = vadd.f32 %v3328_v15, %v1123_v51  ;;  %v1412_v54 = vpop.f32.mrb[22].mxu0  ;;  %v1125_v55 = vpop.f32.mrb[23].mxu1 }
 0x140   :  { %v1414_v56 = vpop.f32.mrb[23].mxu0 }
 0x141   :  { %v1413_v57 = vadd.f32 %v1412_v54, %v1124_v53  ;;  %v1634_v58 = vmax.f32 %v1410_v52, 0.0 }
 0x143   :  { %v1635_v59 = vmax.f32 %v1413_v57, 0.0 }
 0x144   :  { %v1128_v60 = vpop.f32.mrb[24].mxu1 }
 0x145   :  { %v2329_v61 = vpack.c.bf16 %v1635_v59, %v1634_v58  ;;  %v1129_v62 = vadd.f32 %v3328_v15, %v1128_v60  ;;  %v1417_v63 = vpop.f32.mrb[24].mxu0  ;;  %v1130_v0 = vpop.f32.mrb[25].mxu1 }
 0x146   :  { %v1419_v1 = vpop.f32.mrb[25].mxu0  ;;  %v1131_v2 = vpop.f32.mrb[26].mxu1 }
 0x147   :  { %2465 = vst [vmem:[%s3546_s3 + $0x28] sm:$0xff] %v2329_v61   ;;  %v1418_v3 = vadd.f32 %v1417_v63, %v1129_v62  ;;  %v1132_v4 = vadd.f32 %v3328_v15, %v1131_v2  ;;  %v1420_v5 = vpop.f32.mrb[26].mxu0  ;;  %v1133_v6 = vpop.f32.mrb[27].mxu1 }
 0x148   :  { %v1422_v7 = vpop.f32.mrb[27].mxu0 }
 0x149   :  { %v1421_v8 = vadd.f32 %v1420_v5, %v1132_v4  ;;  %v1636_v9 = vmax.f32 %v1418_v3, 0.0 }
 0x14b   :  { %v1637_v10 = vmax.f32 %v1421_v8, 0.0 }
 0x14c   :  { %v1136_v11 = vpop.f32.mrb[28].mxu1 }
 0x14d   :  { %v2334_v12 = vpack.c.bf16 %v1637_v10, %v1636_v9  ;;  %v1137_v13 = vadd.f32 %v3328_v15, %v1136_v11  ;;  %v1425_v14 = vpop.f32.mrb[28].mxu0  ;;  %v1138_v16 = vpop.f32.mrb[29].mxu1 }
 0x14e   :  { %v1427_v17 = vpop.f32.mrb[29].mxu0  ;;  %v1139_v18 = vpop.f32.mrb[30].mxu1 }
 0x14f   :  { %2466 = vst [vmem:[%s3546_s3 + $0x30] sm:$0xff] %v2334_v12   ;;  %v1426_v19 = vadd.f32 %v1425_v14, %v1137_v13  ;;  %v1140_v20 = vadd.f32 %v3328_v15, %v1139_v18  ;;  %v1428_v21 = vpop.f32.mrb[30].mxu0  ;;  %v1141_v22 = vpop.f32.mrb[31].mxu1 }
 0x150   :  { %v1430_v23 = vpop.f32.mrb[31].mxu0 }
 0x151   :  { %v1429_v24 = vadd.f32 %v1428_v21, %v1140_v20  ;;  %v1638_v25 = vmax.f32 %v1426_v19, 0.0 }
 0x153   :  { %v1639_v26 = vmax.f32 %v1429_v24, 0.0 }
 0x154   :  { %v1144_v27 = vpop.f32.mrb[32].mxu1 }
 0x155   :  { %v2339_v28 = vpack.c.bf16 %v1639_v26, %v1638_v25  ;;  %v1145_v29 = vadd.f32 %v3328_v15, %v1144_v27  ;;  %v1433_v30 = vpop.f32.mrb[32].mxu0  ;;  %v1146_v31 = vpop.f32.mrb[33].mxu1 }
 0x156   :  { %v1435_v32 = vpop.f32.mrb[33].mxu0  ;;  %v1147_v33 = vpop.f32.mrb[34].mxu1 }
 0x157   :  { %2467 = vst [vmem:[%s3546_s3 + $0x38] sm:$0xff] %v2339_v28   ;;  %v1434_v34 = vadd.f32 %v1433_v30, %v1145_v29  ;;  %v1148_v35 = vadd.f32 %v3328_v15, %v1147_v33  ;;  %v1436_v36 = vpop.f32.mrb[34].mxu0  ;;  %v1149_v37 = vpop.f32.mrb[35].mxu1 }
 0x158   :  { %v1438_v38 = vpop.f32.mrb[35].mxu0 }
 0x159   :  { %v1437_v39 = vadd.f32 %v1436_v36, %v1148_v35  ;;  %v1640_v40 = vmax.f32 %v1434_v34, 0.0 }
 0x15b   :  { %v1641_v41 = vmax.f32 %v1437_v39, 0.0 }
 0x15c   :  { %v1152_v42 = vpop.f32.mrb[36].mxu1 }
 0x15d   :  { %v2344_v43 = vpack.c.bf16 %v1641_v41, %v1640_v40  ;;  %v1153_v44 = vadd.f32 %v3328_v15, %v1152_v42  ;;  %v1441_v45 = vpop.f32.mrb[36].mxu0  ;;  %v1154_v46 = vpop.f32.mrb[37].mxu1 }
 0x15e   :  { %v1443_v47 = vpop.f32.mrb[37].mxu0  ;;  %v1155_v48 = vpop.f32.mrb[38].mxu1 }
 0x15f   :  { %2468 = vst [vmem:[%s3546_s3 + $0x40] sm:$0xff] %v2344_v43   ;;  %v1442_v49 = vadd.f32 %v1441_v45, %v1153_v44  ;;  %v1156_v50 = vadd.f32 %v3328_v15, %v1155_v48  ;;  %v1444_v51 = vpop.f32.mrb[38].mxu0  ;;  %v1157_v52 = vpop.f32.mrb[39].mxu1 }
 0x160   :  { %v1446_v53 = vpop.f32.mrb[39].mxu0 }
 0x161   :  { %v1445_v54 = vadd.f32 %v1444_v51, %v1156_v50  ;;  %v1642_v55 = vmax.f32 %v1442_v49, 0.0 }
 0x163   :  { %v1643_v56 = vmax.f32 %v1445_v54, 0.0 }
 0x164   :  { %v1160_v57 = vpop.f32.mrb[40].mxu1 }
 0x165   :  { %v2349_v58 = vpack.c.bf16 %v1643_v56, %v1642_v55  ;;  %v1161_v59 = vadd.f32 %v3328_v15, %v1160_v57  ;;  %v1449_v60 = vpop.f32.mrb[40].mxu0  ;;  %v1162_v61 = vpop.f32.mrb[41].mxu1 }
 0x166   :  { %v1451_v62 = vpop.f32.mrb[41].mxu0  ;;  %v1163_v63 = vpop.f32.mrb[42].mxu1 }
 0x167   :  { %2469 = vst [vmem:[%s3546_s3 + $0x48] sm:$0xff] %v2349_v58   ;;  %v1450_v0 = vadd.f32 %v1449_v60, %v1161_v59  ;;  %v1164_v1 = vadd.f32 %v3328_v15, %v1163_v63  ;;  %v1452_v2 = vpop.f32.mrb[42].mxu0  ;;  %v1165_v3 = vpop.f32.mrb[43].mxu1 }
 0x168   :  { %v1454_v4 = vpop.f32.mrb[43].mxu0 }
 0x169   :  { %v1453_v5 = vadd.f32 %v1452_v2, %v1164_v1  ;;  %v1644_v6 = vmax.f32 %v1450_v0, 0.0 }
 0x16b   :  { %v1645_v7 = vmax.f32 %v1453_v5, 0.0 }
 0x16c   :  { %v1168_v8 = vpop.f32.mrb[44].mxu1 }
 0x16d   :  { %v2354_v9 = vpack.c.bf16 %v1645_v7, %v1644_v6  ;;  %v1169_v10 = vadd.f32 %v3328_v15, %v1168_v8  ;;  %v1457_v11 = vpop.f32.mrb[44].mxu0  ;;  %v1170_v12 = vpop.f32.mrb[45].mxu1 }
 0x16e   :  { %v1459_v13 = vpop.f32.mrb[45].mxu0  ;;  %v1171_v14 = vpop.f32.mrb[46].mxu1 }
 0x16f   :  { %2470 = vst [vmem:[%s3546_s3 + $0x50] sm:$0xff] %v2354_v9   ;;  %v1458_v16 = vadd.f32 %v1457_v11, %v1169_v10  ;;  %v1172_v17 = vadd.f32 %v3328_v15, %v1171_v14  ;;  %v1460_v18 = vpop.f32.mrb[46].mxu0  ;;  %v1173_v19 = vpop.f32.mrb[47].mxu1 }
 0x170   :  { %v1462_v20 = vpop.f32.mrb[47].mxu0 }
 0x171   :  { %v1461_v21 = vadd.f32 %v1460_v18, %v1172_v17  ;;  %v1646_v22 = vmax.f32 %v1458_v16, 0.0 }
 0x173   :  { %v1647_v23 = vmax.f32 %v1461_v21, 0.0 }
 0x174   :  { %v1176_v24 = vpop.f32.mrb[48].mxu1 }
 0x175   :  { %v2359_v25 = vpack.c.bf16 %v1647_v23, %v1646_v22  ;;  %v1177_v26 = vadd.f32 %v3328_v15, %v1176_v24  ;;  %v1465_v27 = vpop.f32.mrb[48].mxu0  ;;  %v1178_v28 = vpop.f32.mrb[49].mxu1 }
 0x176   :  { %v1467_v29 = vpop.f32.mrb[49].mxu0  ;;  %v1179_v30 = vpop.f32.mrb[50].mxu1 }
 0x177   :  { %2471 = vst [vmem:[%s3546_s3 + $0x58] sm:$0xff] %v2359_v25   ;;  %v1466_v31 = vadd.f32 %v1465_v27, %v1177_v26  ;;  %v1180_v32 = vadd.f32 %v3328_v15, %v1179_v30  ;;  %v1468_v33 = vpop.f32.mrb[50].mxu0  ;;  %v1181_v34 = vpop.f32.mrb[51].mxu1 }
 0x178   :  { %v1470_v35 = vpop.f32.mrb[51].mxu0 }
 0x179   :  { %v1469_v36 = vadd.f32 %v1468_v33, %v1180_v32  ;;  %v1648_v37 = vmax.f32 %v1466_v31, 0.0 }
 0x17b   :  { %v1649_v38 = vmax.f32 %v1469_v36, 0.0 }
 0x17c   :  { %v1184_v39 = vpop.f32.mrb[52].mxu1 }
 0x17d   :  { %v2364_v40 = vpack.c.bf16 %v1649_v38, %v1648_v37  ;;  %v1185_v41 = vadd.f32 %v3328_v15, %v1184_v39  ;;  %v1473_v42 = vpop.f32.mrb[52].mxu0  ;;  %v1186_v43 = vpop.f32.mrb[53].mxu1 }
 0x17e   :  { %v1475_v44 = vpop.f32.mrb[53].mxu0  ;;  %v1187_v45 = vpop.f32.mrb[54].mxu1 }
 0x17f   :  { %2472 = vst [vmem:[%s3546_s3 + $0x60] sm:$0xff] %v2364_v40   ;;  %v1474_v46 = vadd.f32 %v1473_v42, %v1185_v41  ;;  %v1188_v47 = vadd.f32 %v3328_v15, %v1187_v45  ;;  %v1476_v48 = vpop.f32.mrb[54].mxu0  ;;  %v1189_v49 = vpop.f32.mrb[55].mxu1 }
 0x180   :  { %v1478_v50 = vpop.f32.mrb[55].mxu0 }
 0x181   :  { %v1477_v51 = vadd.f32 %v1476_v48, %v1188_v47  ;;  %v1650_v52 = vmax.f32 %v1474_v46, 0.0 }
 0x183   :  { %v1651_v53 = vmax.f32 %v1477_v51, 0.0 }
 0x184   :  { %v1192_v54 = vpop.f32.mrb[56].mxu1 }
 0x185   :  { %v2369_v55 = vpack.c.bf16 %v1651_v53, %v1650_v52  ;;  %v1193_v56 = vadd.f32 %v3328_v15, %v1192_v54  ;;  %v1481_v57 = vpop.f32.mrb[56].mxu0  ;;  %v1194_v58 = vpop.f32.mrb[57].mxu1 }
 0x186   :  { %v1483_v59 = vpop.f32.mrb[57].mxu0  ;;  %v1195_v60 = vpop.f32.mrb[58].mxu1 }
 0x187   :  { %2473 = vst [vmem:[%s3546_s3 + $0x68] sm:$0xff] %v2369_v55   ;;  %v1482_v61 = vadd.f32 %v1481_v57, %v1193_v56  ;;  %v1196_v62 = vadd.f32 %v3328_v15, %v1195_v60  ;;  %v1484_v63 = vpop.f32.mrb[58].mxu0  ;;  %v1197_v0 = vpop.f32.mrb[59].mxu1 }
 0x188   :  { %v1486_v1 = vpop.f32.mrb[59].mxu0 }
 0x189   :  { %v1485_v2 = vadd.f32 %v1484_v63, %v1196_v62  ;;  %v1652_v3 = vmax.f32 %v1482_v61, 0.0 }
 0x18b   :  { %v1653_v4 = vmax.f32 %v1485_v2, 0.0 }
 0x18c   :  { %v1200_v5 = vpop.f32.mrb[60].mxu1 }
 0x18d   :  { %v2374_v6 = vpack.c.bf16 %v1653_v4, %v1652_v3  ;;  %v1201_v7 = vadd.f32 %v3328_v15, %v1200_v5  ;;  %v1489_v8 = vpop.f32.mrb[60].mxu0  ;;  %v1202_v9 = vpop.f32.mrb[61].mxu1 }
 0x18e   :  { %v1491_v10 = vpop.f32.mrb[61].mxu0  ;;  %v1203_v11 = vpop.f32.mrb[62].mxu1 }
 0x18f   :  { %2474 = vst [vmem:[%s3546_s3 + $0x70] sm:$0xff] %v2374_v6   ;;  %v1490_v12 = vadd.f32 %v1489_v8, %v1201_v7  ;;  %v1204_v13 = vadd.f32 %v3328_v15, %v1203_v11  ;;  %v1492_v14 = vpop.f32.mrb[62].mxu0  ;;  %v1205_v16 = vpop.f32.mrb[63].mxu1 }
 0x190   :  { %v1494_v17 = vpop.f32.mrb[63].mxu0 }
 0x191   :  { %v1493_v18 = vadd.f32 %v1492_v14, %v1204_v13  ;;  %v1654_v19 = vmax.f32 %v1490_v12, 0.0 }
 0x193   :  { %v1655_v20 = vmax.f32 %v1493_v18, 0.0 }
 0x194   :  { %v1208_v21 = vpop.f32.mrb[64].mxu1 }
 0x195   :  { %v2379_v22 = vpack.c.bf16 %v1655_v20, %v1654_v19  ;;  %v1209_v23 = vadd.f32 %v3328_v15, %v1208_v21  ;;  %v1497_v24 = vpop.f32.mrb[64].mxu0  ;;  %v1210_v25 = vpop.f32.mrb[65].mxu1 }
 0x196   :  { %v1499_v26 = vpop.f32.mrb[65].mxu0  ;;  %v1211_v27 = vpop.f32.mrb[66].mxu1 }
 0x197   :  { %2475 = vst [vmem:[%s3546_s3 + $0x78] sm:$0xff] %v2379_v22   ;;  %v1498_v28 = vadd.f32 %v1497_v24, %v1209_v23  ;;  %v1212_v29 = vadd.f32 %v3328_v15, %v1211_v27  ;;  %v1500_v30 = vpop.f32.mrb[66].mxu0  ;;  %v1213_v31 = vpop.f32.mrb[67].mxu1 }
 0x198   :  { %v1502_v32 = vpop.f32.mrb[67].mxu0 }
 0x199   :  { %v1501_v33 = vadd.f32 %v1500_v30, %v1212_v29  ;;  %v1656_v34 = vmax.f32 %v1498_v28, 0.0 }
 0x19b   :  { %v1657_v35 = vmax.f32 %v1501_v33, 0.0 }
 0x19c   :  { %v1216_v36 = vpop.f32.mrb[68].mxu1 }
 0x19d   :  { %v2384_v37 = vpack.c.bf16 %v1657_v35, %v1656_v34  ;;  %v1217_v38 = vadd.f32 %v3328_v15, %v1216_v36  ;;  %v1505_v39 = vpop.f32.mrb[68].mxu0  ;;  %v1218_v40 = vpop.f32.mrb[69].mxu1 }
 0x19e   :  { %v1507_v41 = vpop.f32.mrb[69].mxu0  ;;  %v1219_v42 = vpop.f32.mrb[70].mxu1 }
 0x19f   :  { %2476 = vst [vmem:[%s3546_s3 + $0x80] sm:$0xff] %v2384_v37   ;;  %v1506_v43 = vadd.f32 %v1505_v39, %v1217_v38  ;;  %v1220_v44 = vadd.f32 %v3328_v15, %v1219_v42  ;;  %v1508_v45 = vpop.f32.mrb[70].mxu0  ;;  %v1221_v46 = vpop.f32.mrb[71].mxu1 }
 0x1a0   :  { %v1510_v47 = vpop.f32.mrb[71].mxu0 }
 0x1a1   :  { %v1509_v48 = vadd.f32 %v1508_v45, %v1220_v44  ;;  %v1658_v49 = vmax.f32 %v1506_v43, 0.0 }
 0x1a3   :  { %v1659_v50 = vmax.f32 %v1509_v48, 0.0 }
 0x1a4   :  { %v1224_v51 = vpop.f32.mrb[72].mxu1 }
 0x1a5   :  { %v2389_v52 = vpack.c.bf16 %v1659_v50, %v1658_v49  ;;  %v1225_v53 = vadd.f32 %v3328_v15, %v1224_v51  ;;  %v1513_v54 = vpop.f32.mrb[72].mxu0  ;;  %v1226_v55 = vpop.f32.mrb[73].mxu1 }
 0x1a6   :  { %v1515_v56 = vpop.f32.mrb[73].mxu0  ;;  %v1227_v57 = vpop.f32.mrb[74].mxu1 }
 0x1a7   :  { %2477 = vst [vmem:[%s3546_s3 + $0x88] sm:$0xff] %v2389_v52   ;;  %v1514_v58 = vadd.f32 %v1513_v54, %v1225_v53  ;;  %v1228_v59 = vadd.f32 %v3328_v15, %v1227_v57  ;;  %v1516_v60 = vpop.f32.mrb[74].mxu0  ;;  %v1229_v61 = vpop.f32.mrb[75].mxu1 }
 0x1a8   :  { %v1518_v62 = vpop.f32.mrb[75].mxu0 }
 0x1a9   :  { %v1517_v63 = vadd.f32 %v1516_v60, %v1228_v59  ;;  %v1660_v0 = vmax.f32 %v1514_v58, 0.0 }
 0x1ab   :  { %v1661_v1 = vmax.f32 %v1517_v63, 0.0 }
 0x1ac   :  { %v1232_v2 = vpop.f32.mrb[76].mxu1 }
 0x1ad   :  { %v2394_v3 = vpack.c.bf16 %v1661_v1, %v1660_v0  ;;  %v1233_v4 = vadd.f32 %v3328_v15, %v1232_v2  ;;  %v1521_v5 = vpop.f32.mrb[76].mxu0  ;;  %v1234_v6 = vpop.f32.mrb[77].mxu1 }
 0x1ae   :  { %v1523_v7 = vpop.f32.mrb[77].mxu0  ;;  %v1235_v8 = vpop.f32.mrb[78].mxu1 }
 0x1af   :  { %2478 = vst [vmem:[%s3546_s3 + $0x90] sm:$0xff] %v2394_v3   ;;  %v1522_v9 = vadd.f32 %v1521_v5, %v1233_v4  ;;  %v1236_v10 = vadd.f32 %v3328_v15, %v1235_v8  ;;  %v1524_v11 = vpop.f32.mrb[78].mxu0  ;;  %v1237_v12 = vpop.f32.mrb[79].mxu1 }
 0x1b0   :  { %v1526_v13 = vpop.f32.mrb[79].mxu0 }
 0x1b1   :  { %v1525_v14 = vadd.f32 %v1524_v11, %v1236_v10  ;;  %v1662_v16 = vmax.f32 %v1522_v9, 0.0 }
 0x1b3   :  { %v1663_v17 = vmax.f32 %v1525_v14, 0.0 }
 0x1b4   :  { %v1240_v18 = vpop.f32.mrb[80].mxu1 }
 0x1b5   :  { %v2399_v19 = vpack.c.bf16 %v1663_v17, %v1662_v16  ;;  %v1241_v20 = vadd.f32 %v3328_v15, %v1240_v18  ;;  %v1529_v21 = vpop.f32.mrb[80].mxu0  ;;  %v1242_v22 = vpop.f32.mrb[81].mxu1 }
 0x1b6   :  { %v1531_v23 = vpop.f32.mrb[81].mxu0  ;;  %v1243_v24 = vpop.f32.mrb[82].mxu1 }
 0x1b7   :  { %2479 = vst [vmem:[%s3546_s3 + $0x98] sm:$0xff] %v2399_v19   ;;  %v1530_v25 = vadd.f32 %v1529_v21, %v1241_v20  ;;  %v1244_v26 = vadd.f32 %v3328_v15, %v1243_v24  ;;  %v1532_v27 = vpop.f32.mrb[82].mxu0  ;;  %v1245_v28 = vpop.f32.mrb[83].mxu1 }
 0x1b8   :  { %v1534_v29 = vpop.f32.mrb[83].mxu0 }
 0x1b9   :  { %v1533_v30 = vadd.f32 %v1532_v27, %v1244_v26  ;;  %v1664_v31 = vmax.f32 %v1530_v25, 0.0 }
 0x1bb   :  { %v1665_v32 = vmax.f32 %v1533_v30, 0.0 }
 0x1bc   :  { %v1248_v33 = vpop.f32.mrb[84].mxu1 }
 0x1bd   :  { %v2404_v34 = vpack.c.bf16 %v1665_v32, %v1664_v31  ;;  %v1249_v35 = vadd.f32 %v3328_v15, %v1248_v33  ;;  %v1537_v36 = vpop.f32.mrb[84].mxu0  ;;  %v1250_v37 = vpop.f32.mrb[85].mxu1 }
 0x1be   :  { %v1539_v38 = vpop.f32.mrb[85].mxu0  ;;  %v1251_v39 = vpop.f32.mrb[86].mxu1 }
 0x1bf   :  { %2480 = vst [vmem:[%s3546_s3 + $0xa0] sm:$0xff] %v2404_v34   ;;  %v1538_v40 = vadd.f32 %v1537_v36, %v1249_v35  ;;  %v1252_v41 = vadd.f32 %v3328_v15, %v1251_v39  ;;  %v1540_v42 = vpop.f32.mrb[86].mxu0  ;;  %v1253_v43 = vpop.f32.mrb[87].mxu1 }
 0x1c0   :  { %v1542_v44 = vpop.f32.mrb[87].mxu0 }
 0x1c1   :  { %v1541_v45 = vadd.f32 %v1540_v42, %v1252_v41  ;;  %v1666_v46 = vmax.f32 %v1538_v40, 0.0 }
 0x1c3   :  { %v1667_v47 = vmax.f32 %v1541_v45, 0.0 }
 0x1c4   :  { %v1256_v48 = vpop.f32.mrb[88].mxu1 }
 0x1c5   :  { %v2409_v49 = vpack.c.bf16 %v1667_v47, %v1666_v46  ;;  %v1257_v50 = vadd.f32 %v3328_v15, %v1256_v48  ;;  %v1545_v51 = vpop.f32.mrb[88].mxu0  ;;  %v1258_v52 = vpop.f32.mrb[89].mxu1 }
 0x1c6   :  { %v1547_v53 = vpop.f32.mrb[89].mxu0  ;;  %v1259_v54 = vpop.f32.mrb[90].mxu1 }
 0x1c7   :  { %2481 = vst [vmem:[%s3546_s3 + $0xa8] sm:$0xff] %v2409_v49   ;;  %v1546_v55 = vadd.f32 %v1545_v51, %v1257_v50  ;;  %v1260_v56 = vadd.f32 %v3328_v15, %v1259_v54  ;;  %v1548_v57 = vpop.f32.mrb[90].mxu0  ;;  %v1261_v58 = vpop.f32.mrb[91].mxu1 }
 0x1c8   :  { %v1550_v59 = vpop.f32.mrb[91].mxu0 }
 0x1c9   :  { %v1549_v60 = vadd.f32 %v1548_v57, %v1260_v56  ;;  %v1668_v61 = vmax.f32 %v1546_v55, 0.0 }
 0x1cb   :  { %v1669_v62 = vmax.f32 %v1549_v60, 0.0 }
 0x1cc   :  { %v1264_v63 = vpop.f32.mrb[92].mxu1 }
 0x1cd   :  { %v2414_v0 = vpack.c.bf16 %v1669_v62, %v1668_v61  ;;  %v1265_v1 = vadd.f32 %v3328_v15, %v1264_v63  ;;  %v1553_v2 = vpop.f32.mrb[92].mxu0  ;;  %v1266_v3 = vpop.f32.mrb[93].mxu1 }
 0x1ce   :  { %v1555_v4 = vpop.f32.mrb[93].mxu0  ;;  %v1267_v5 = vpop.f32.mrb[94].mxu1 }
 0x1cf   :  { %2482 = vst [vmem:[%s3546_s3 + $0xb0] sm:$0xff] %v2414_v0   ;;  %v1554_v6 = vadd.f32 %v1553_v2, %v1265_v1  ;;  %v1268_v7 = vadd.f32 %v3328_v15, %v1267_v5  ;;  %v1556_v8 = vpop.f32.mrb[94].mxu0  ;;  %v1269_v9 = vpop.f32.mrb[95].mxu1 }
 0x1d0   :  { %v1558_v10 = vpop.f32.mrb[95].mxu0 }
 0x1d1   :  { %v1557_v11 = vadd.f32 %v1556_v8, %v1268_v7  ;;  %v1670_v12 = vmax.f32 %v1554_v6, 0.0 }
 0x1d3   :  { %v1671_v13 = vmax.f32 %v1557_v11, 0.0 }
 0x1d4   :  { %v1272_v14 = vpop.f32.mrb[96].mxu1 }
 0x1d5   :  { %v2419_v16 = vpack.c.bf16 %v1671_v13, %v1670_v12  ;;  %v1273_v17 = vadd.f32 %v3328_v15, %v1272_v14  ;;  %v1561_v18 = vpop.f32.mrb[96].mxu0  ;;  %v1274_v19 = vpop.f32.mrb[97].mxu1 }
 0x1d6   :  { %v1563_v20 = vpop.f32.mrb[97].mxu0  ;;  %v1275_v21 = vpop.f32.mrb[98].mxu1 }
 0x1d7   :  { %2483 = vst [vmem:[%s3546_s3 + $0xb8] sm:$0xff] %v2419_v16   ;;  %v1562_v22 = vadd.f32 %v1561_v18, %v1273_v17  ;;  %v1276_v23 = vadd.f32 %v3328_v15, %v1275_v21  ;;  %v1564_v24 = vpop.f32.mrb[98].mxu0  ;;  %v1277_v25 = vpop.f32.mrb[99].mxu1 }
 0x1d8   :  { %v1566_v26 = vpop.f32.mrb[99].mxu0 }
 0x1d9   :  { %v1565_v27 = vadd.f32 %v1564_v24, %v1276_v23  ;;  %v1672_v28 = vmax.f32 %v1562_v22, 0.0 }
 0x1db   :  { %v1673_v29 = vmax.f32 %v1565_v27, 0.0 }
 0x1dc   :  { %v1280_v30 = vpop.f32.mrb[100].mxu1 }
 0x1dd   :  { %v2424_v31 = vpack.c.bf16 %v1673_v29, %v1672_v28  ;;  %v1281_v32 = vadd.f32 %v3328_v15, %v1280_v30  ;;  %v1569_v33 = vpop.f32.mrb[100].mxu0  ;;  %v1282_v34 = vpop.f32.mrb[101].mxu1 }
 0x1de   :  { %v1571_v35 = vpop.f32.mrb[101].mxu0  ;;  %v1283_v36 = vpop.f32.mrb[102].mxu1 }
 0x1df   :  { %2484 = vst [vmem:[%s3546_s3 + $0xc0] sm:$0xff] %v2424_v31   ;;  %v1570_v37 = vadd.f32 %v1569_v33, %v1281_v32  ;;  %v1284_v38 = vadd.f32 %v3328_v15, %v1283_v36  ;;  %v1572_v39 = vpop.f32.mrb[102].mxu0  ;;  %v1285_v40 = vpop.f32.mrb[103].mxu1 }
 0x1e0   :  { %v1574_v41 = vpop.f32.mrb[103].mxu0 }
 0x1e1   :  { %v1573_v42 = vadd.f32 %v1572_v39, %v1284_v38  ;;  %v1674_v43 = vmax.f32 %v1570_v37, 0.0 }
 0x1e3   :  { %v1675_v44 = vmax.f32 %v1573_v42, 0.0 }
 0x1e4   :  { %v1288_v45 = vpop.f32.mrb[104].mxu1 }
 0x1e5   :  { %v2429_v46 = vpack.c.bf16 %v1675_v44, %v1674_v43  ;;  %v1289_v47 = vadd.f32 %v3328_v15, %v1288_v45  ;;  %v1577_v48 = vpop.f32.mrb[104].mxu0  ;;  %v1290_v49 = vpop.f32.mrb[105].mxu1  ;;  %v2845_v44 = vld [vmem:[%s3545_s2] ss:$0 sm:$0xff] }
 0x1e6   :  { %v1579_v50 = vpop.f32.mrb[105].mxu0  ;;  %v1291_v51 = vpop.f32.mrb[106].mxu1 }
 0x1e7   :  { %2485 = vst [vmem:[%s3546_s3 + $0xc8] sm:$0xff] %v2429_v46   ;;  %v1578_v52 = vadd.f32 %v1577_v48, %v1289_v47  ;;  %v1292_v53 = vadd.f32 %v3328_v15, %v1291_v51  ;;  %v1580_v54 = vpop.f32.mrb[106].mxu0  ;;  %v1293_v55 = vpop.f32.mrb[107].mxu1 }
 0x1e8   :  { %v1582_v56 = vpop.f32.mrb[107].mxu0 }
 0x1e9   :  { %v1581_v57 = vadd.f32 %v1580_v54, %v1292_v53  ;;  %v1676_v58 = vmax.f32 %v1578_v52, 0.0 }
 0x1eb   :  { %v1677_v59 = vmax.f32 %v1581_v57, 0.0 }
 0x1ec   :  { %v1296_v60 = vpop.f32.mrb[108].mxu1 }
 0x1ed   :  { %v2434_v61 = vpack.c.bf16 %v1677_v59, %v1676_v58  ;;  %v1297_v62 = vadd.f32 %v3328_v15, %v1296_v60  ;;  %v1585_v63 = vpop.f32.mrb[108].mxu0  ;;  %v1298_v0 = vpop.f32.mrb[109].mxu1 }
 0x1ee   :  { %v1587_v1 = vpop.f32.mrb[109].mxu0  ;;  %v1299_v2 = vpop.f32.mrb[110].mxu1 }
 0x1ef   :  { %2486 = vst [vmem:[%s3546_s3 + $0xd0] sm:$0xff] %v2434_v61   ;;  %v1586_v3 = vadd.f32 %v1585_v63, %v1297_v62  ;;  %v1300_v4 = vadd.f32 %v3328_v15, %v1299_v2  ;;  %v1588_v5 = vpop.f32.mrb[110].mxu0  ;;  %v1301_v6 = vpop.f32.mrb[111].mxu1 }
 0x1f0   :  { %v1590_v7 = vpop.f32.mrb[111].mxu0 }
 0x1f1   :  { %v1589_v8 = vadd.f32 %v1588_v5, %v1300_v4  ;;  %v1678_v9 = vmax.f32 %v1586_v3, 0.0 }
 0x1f3   :  { %v1679_v10 = vmax.f32 %v1589_v8, 0.0 }
 0x1f4   :  { %v1304_v11 = vpop.f32.mrb[112].mxu1 }
 0x1f5   :  { %v2439_v12 = vpack.c.bf16 %v1679_v10, %v1678_v9  ;;  %v1305_v13 = vadd.f32 %v3328_v15, %v1304_v11  ;;  %v1593_v14 = vpop.f32.mrb[112].mxu0  ;;  %v1306_v16 = vpop.f32.mrb[113].mxu1 }
 0x1f6   :  { %v1595_v17 = vpop.f32.mrb[113].mxu0  ;;  %v1307_v18 = vpop.f32.mrb[114].mxu1 }
 0x1f7   :  { %2487 = vst [vmem:[%s3546_s3 + $0xd8] sm:$0xff] %v2439_v12   ;;  %v1594_v19 = vadd.f32 %v1593_v14, %v1305_v13  ;;  %v1308_v20 = vadd.f32 %v3328_v15, %v1307_v18  ;;  %v1596_v21 = vpop.f32.mrb[114].mxu0  ;;  %v1309_v22 = vpop.f32.mrb[115].mxu1 }
 0x1f8   :  { %v1598_v23 = vpop.f32.mrb[115].mxu0 }
 0x1f9   :  { %v1597_v24 = vadd.f32 %v1596_v21, %v1308_v20  ;;  %v1680_v25 = vmax.f32 %v1594_v19, 0.0 }
 0x1fb   :  { %v1681_v26 = vmax.f32 %v1597_v24, 0.0 }
 0x1fc   :  { %v1312_v27 = vpop.f32.mrb[116].mxu1 }
 0x1fd   :  { %v2444_v28 = vpack.c.bf16 %v1681_v26, %v1680_v25  ;;  %v1313_v29 = vadd.f32 %v3328_v15, %v1312_v27  ;;  %v1601_v30 = vpop.f32.mrb[116].mxu0  ;;  %v1314_v31 = vpop.f32.mrb[117].mxu1 }
 0x1fe   :  { %v1603_v32 = vpop.f32.mrb[117].mxu0  ;;  %v1315_v33 = vpop.f32.mrb[118].mxu1 }
 0x1ff   :  { %2488 = vst [vmem:[%s3546_s3 + $0xe0] sm:$0xff] %v2444_v28   ;;  %v1602_v34 = vadd.f32 %v1601_v30, %v1313_v29  ;;  %v1316_v35 = vadd.f32 %v3328_v15, %v1315_v33  ;;  %v1604_v36 = vpop.f32.mrb[118].mxu0  ;;  %v1317_v37 = vpop.f32.mrb[119].mxu1 }
 0x200   :  { %v1606_v38 = vpop.f32.mrb[119].mxu0 }
 0x201   :  { %v1605_v39 = vadd.f32 %v1604_v36, %v1316_v35  ;;  %v1682_v40 = vmax.f32 %v1602_v34, 0.0 }
 0x203   :  { %v1683_v41 = vmax.f32 %v1605_v39, 0.0 }
 0x204   :  { %v1320_v42 = vpop.f32.mrb[120].mxu1 }
 0x205   :  { %v2449_v43 = vpack.c.bf16 %v1683_v41, %v1682_v40  ;;  %v1321_v45 = vadd.f32 %v2845_v44, %v1320_v42  ;;  %v1609_v46 = vpop.f32.mrb[120].mxu0  ;;  %v1322_v47 = vpop.f32.mrb[121].mxu1 }
 0x206   :  { %v1611_v48 = vpop.f32.mrb[121].mxu0  ;;  %v1323_v49 = vpop.f32.mrb[122].mxu1 }
 0x207   :  { %2489 = vst [vmem:[%s3546_s3 + $0xe8] sm:$0xff] %v2449_v43   ;;  %v1610_v15 = vadd.f32 %v1609_v46, %v1321_v45  ;;  %v1324_v50 = vadd.f32 %v2845_v44, %v1323_v49  ;;  %v1612_v51 = vpop.f32.mrb[122].mxu0  ;;  %v1325_v52 = vpop.f32.mrb[123].mxu1 }
 0x208   :  { %v1614_v53 = vpop.f32.mrb[123].mxu0 }
 0x209   :  { %v1613_v54 = vadd.f32 %v1612_v51, %v1324_v50  ;;  %v1684_v55 = vmax.f32 %v1610_v15, 0.0 }
 0x20b   :  { %v1685_v56 = vmax.f32 %v1613_v54, 0.0 }
 0x20c   :  { %v1328_v57 = vpop.f32.mrb[124].mxu1 }
 0x20d   :  { %v2454_v58 = vpack.c.bf16 %v1685_v56, %v1684_v55  ;;  %v1329_v59 = vadd.f32 %v2845_v44, %v1328_v57  ;;  %v1617_v60 = vpop.f32.mrb[124].mxu0  ;;  %v1330_v61 = vpop.f32.mrb[125].mxu1 }
 0x20e   :  { %v1619_v62 = vpop.f32.mrb[125].mxu0  ;;  %v1331_v63 = vpop.f32.mrb[126].mxu1 }
 0x20f   :  { %2490 = vst [vmem:[%s3546_s3 + $0xf0] sm:$0xff] %v2454_v58   ;;  %v1618_v0 = vadd.f32 %v1617_v60, %v1329_v59  ;;  %v1332_v1 = vadd.f32 %v2845_v44, %v1331_v63  ;;  %v1620_v2 = vpop.f32.mrb[126].mxu0  ;;  %v1333_v3 = vpop.f32.mrb[127].mxu1 }
 0x210   :  { %v1622_v4 = vpop.f32.mrb[127].mxu0 }
 0x211   :  { %v1621_v5 = vadd.f32 %v1620_v2, %v1332_v1  ;;  %v1686_v6 = vmax.f32 %v1618_v0, 0.0 }
 0x213   :  { %v1687_v7 = vmax.f32 %v1621_v5, 0.0 }
 0x215   :  { %v2459_v8 = vpack.c.bf16 %v1687_v7, %v1686_v6 }
 0x217   :  { %2491 = vst [vmem:[%s3546_s3 + $0xf8] sm:$0xff] %v2459_v8  }

// kernel: factor_vae2_forward.12
= control target key start
LH: loop header
LB: loop body
LE: loop exit
PB: predicated region body
PF: predicated region fallthrough
CT: control target
= control target key end

     0   :  { %s1373_s1 = inlined_call_operand.vmem [shape: bf16[512,128], index: 1, kind: input, shape index: {}]   ;;  %s1374_s0 = inlined_call_operand.vmem [shape: bf16[128,512], index: 0, kind: input, shape index: {}]   ;;  %s1375_s2 = inlined_call_operand.vmem [shape: f32[1,128], index: 2, kind: input, shape index: {}]   ;;  %s1376_s3 = inlined_call_operand.vmem [shape: bf16[128,128], index: 3, kind: output, shape index: {}]  }
   0x1   :  { %v1036_v0 = vld [vmem:[%s1373_s1 + $0x40] sm:$0xff]   ;;  %v1040_v4 = vld [vmem:[%s1373_s1 + $0x48] sm:$0xff]   ;;  %v1044_v8 = vld [vmem:[%s1373_s1 + $0x50] sm:$0xff]  }
   0x2   :  { %v1037_v1 = vld [vmem:[%s1373_s1 + $0xc0] sm:$0xff]   ;;  %908 = vmatprep.subr.bf16.mxu0 %v1036_v0  ;;  %v1041_v5 = vld [vmem:[%s1373_s1 + $0xc8] sm:$0xff]   ;;  %v1045_v9 = vld [vmem:[%s1373_s1 + $0xd0] sm:$0xff]  }
   0x3   :  { %v1038_v2 = vld [vmem:[%s1373_s1] sm:$0xff]   ;;  %972 = vmatprep.subr.bf16.mxu1 %v1037_v1  ;;  %v1042_v6 = vld [vmem:[%s1373_s1 + $0x8] sm:$0xff]   ;;  %v1046_v10 = vld [vmem:[%s1373_s1 + $0x10] sm:$0xff]  }
   0x4   :  { %v1039_v3 = vld [vmem:[%s1373_s1 + $0x80] sm:$0xff]   ;;  %909 = vmatpush3.bf16.msra.mxu0 %v1038_v2  ;;  %v1043_v7 = vld [vmem:[%s1373_s1 + $0x88] sm:$0xff]   ;;  %v1047_v11 = vld [vmem:[%s1373_s1 + $0x90] sm:$0xff]  }
   0x5   :  { %973 = vmatpush3.bf16.msra.mxu1 %v1039_v3  ;;  %910 = vmatprep.subr.bf16.mxu0 %v1040_v4  ;;  %v1048_v12 = vld [vmem:[%s1373_s1 + $0x58] sm:$0xff]   ;;  %v1052_v16 = vld [vmem:[%s1373_s1 + $0x60] sm:$0xff]   ;;  %v1056_v20 = vld [vmem:[%s1373_s1 + $0x68] sm:$0xff]  }
   0x6   :  { %974 = vmatprep.subr.bf16.mxu1 %v1041_v5  ;;  %v1049_v13 = vld [vmem:[%s1373_s1 + $0xd8] sm:$0xff]   ;;  %v1053_v17 = vld [vmem:[%s1373_s1 + $0xe0] sm:$0xff]   ;;  %v1057_v21 = vld [vmem:[%s1373_s1 + $0xe8] sm:$0xff]  }
   0x7   :  { %v1050_v14 = vld [vmem:[%s1373_s1 + $0x18] sm:$0xff]   ;;  %v1054_v18 = vld [vmem:[%s1373_s1 + $0x20] sm:$0xff]   ;;  %v1058_v22 = vld [vmem:[%s1373_s1 + $0x28] sm:$0xff]  }
   0x8   :  { %911 = vmatpush3.bf16.msra.mxu0 %v1042_v6  ;;  %v1051_v15 = vld [vmem:[%s1373_s1 + $0x98] sm:$0xff]   ;;  %v1055_v19 = vld [vmem:[%s1373_s1 + $0xa0] sm:$0xff]   ;;  %v1059_v23 = vld [vmem:[%s1373_s1 + $0xa8] sm:$0xff]  }
   0x9   :  { %975 = vmatpush3.bf16.msra.mxu1 %v1043_v7  ;;  %912 = vmatprep.subr.bf16.mxu0 %v1044_v8  ;;  %v1060_v24 = vld [vmem:[%s1373_s1 + $0x70] sm:$0xff]   ;;  %v1064_v28 = vld [vmem:[%s1373_s1 + $0x78] sm:$0xff]   ;;  %v1331_v2 = vld [vmem:[%s1375_s2] ss:$0 sm:$0xff] }
   0xa   :  { %976 = vmatprep.subr.bf16.mxu1 %v1045_v9  ;;  %v1061_v25 = vld [vmem:[%s1373_s1 + $0xf0] sm:$0xff]   ;;  %v1065_v29 = vld [vmem:[%s1373_s1 + $0xf8] sm:$0xff]  }
   0xb   :  { %v1062_v26 = vld [vmem:[%s1373_s1 + $0x30] sm:$0xff]   ;;  %v1066_v30 = vld [vmem:[%s1373_s1 + $0x38] sm:$0xff]  }
   0xc   :  { %913 = vmatpush3.bf16.msra.mxu0 %v1046_v10  ;;  %v1063_v27 = vld [vmem:[%s1373_s1 + $0xb0] sm:$0xff]   ;;  %v1067_v31 = vld [vmem:[%s1373_s1 + $0xb8] sm:$0xff]  }
   0xd   :  { %977 = vmatpush3.bf16.msra.mxu1 %v1047_v11  ;;  %914 = vmatprep.subr.bf16.mxu0 %v1048_v12  ;;  %v1068_v32 = vld [vmem:[%s1374_s0] ss:$16 sps:$4 sm:$0xff]   ;;  %v1070_v33 = vld [vmem:[%s1374_s0 + $0x4] ss:$16 sps:$4 sm:$0xff]   ;;  %v1071_v34 = vld [vmem:[%s1374_s0 + $0x8] ss:$16 sps:$4 sm:$0xff]  }
   0xe   :  { %978 = vmatprep.subr.bf16.mxu1 %v1049_v13  ;;  %v1073_v35 = vld [vmem:[%s1374_s0 + $0xc] ss:$16 sps:$4 sm:$0xff]   ;;  %502 = vmatprep.mubr.bf16.mxu0 %v1070_v33  ;;  %v1074_v36 = vld [vmem:[%s1374_s0 + $0x24] ss:$16 sps:$4 sm:$0xff]   ;;  %v1078_v38 = vld [vmem:[%s1374_s0 + $0x20] ss:$16 sps:$4 sm:$0xff]  }
   0xf   :  { %599 = vmatprep.mubr.bf16.mxu1 %v1073_v35  ;;  %v1076_v37 = vld [vmem:[%s1374_s0 + $0x2c] ss:$16 sps:$4 sm:$0xff]   ;;  %v1079_v39 = vld [vmem:[%s1374_s0 + $0x28] ss:$16 sps:$4 sm:$0xff]   ;;  %v1080_v40 = vld [vmem:[%s1374_s0 + $0x44] ss:$16 sps:$4 sm:$0xff]  }
  0x10   :  { %915 = vmatpush3.bf16.msra.mxu0 %v1050_v14  ;;  %v1082_v41 = vld [vmem:[%s1374_s0 + $0x4c] ss:$16 sps:$4 sm:$0xff]   ;;  %v1084_v42 = vld [vmem:[%s1374_s0 + $0x40] ss:$16 sps:$4 sm:$0xff]   ;;  %v1085_v43 = vld [vmem:[%s1374_s0 + $0x48] ss:$16 sps:$4 sm:$0xff]  }
  0x11   :  { %979 = vmatpush3.bf16.msra.mxu1 %v1051_v15  ;;  %916 = vmatprep.subr.bf16.mxu0 %v1052_v16  ;;  %v1086_v44 = vld [vmem:[%s1374_s0 + $0x64] ss:$16 sps:$4 sm:$0xff]   ;;  %v1088_v45 = vld [vmem:[%s1374_s0 + $0x6c] ss:$16 sps:$4 sm:$0xff]   ;;  %v1090_v46 = vld [vmem:[%s1374_s0 + $0x60] ss:$16 sps:$4 sm:$0xff]  }
  0x12   :  { %980 = vmatprep.subr.bf16.mxu1 %v1053_v17  ;;  %v1091_v47 = vld [vmem:[%s1374_s0 + $0x68] ss:$16 sps:$4 sm:$0xff]   ;;  %v1092_v48 = vld [vmem:[%s1374_s0 + $0x84] ss:$16 sps:$4 sm:$0xff]   ;;  %v1094_v49 = vld [vmem:[%s1374_s0 + $0x8c] ss:$16 sps:$4 sm:$0xff]  }
  0x13   :  { %v1096_v50 = vld [vmem:[%s1374_s0 + $0x80] ss:$16 sps:$4 sm:$0xff]   ;;  %v1097_v51 = vld [vmem:[%s1374_s0 + $0x88] ss:$16 sps:$4 sm:$0xff]   ;;  %v1098_v52 = vld [vmem:[%s1374_s0 + $0xa4] ss:$16 sps:$4 sm:$0xff]  }
  0x14   :  { %917 = vmatpush3.bf16.msra.mxu0 %v1054_v18  ;;  %v1100_v53 = vld [vmem:[%s1374_s0 + $0xac] ss:$16 sps:$4 sm:$0xff]   ;;  %v1102_v54 = vld [vmem:[%s1374_s0 + $0xa0] ss:$16 sps:$4 sm:$0xff]   ;;  %v1103_v55 = vld [vmem:[%s1374_s0 + $0xa8] ss:$16 sps:$4 sm:$0xff]  }
  0x15   :  { %981 = vmatpush3.bf16.msra.mxu1 %v1055_v19  ;;  %918 = vmatprep.subr.bf16.mxu0 %v1056_v20  ;;  %v1104_v56 = vld [vmem:[%s1374_s0 + $0xc4] ss:$16 sps:$4 sm:$0xff]   ;;  %v1106_v57 = vld [vmem:[%s1374_s0 + $0xcc] ss:$16 sps:$4 sm:$0xff]   ;;  %v1108_v58 = vld [vmem:[%s1374_s0 + $0xc0] ss:$16 sps:$4 sm:$0xff]  }
  0x16   :  { %982 = vmatprep.subr.bf16.mxu1 %v1057_v21  ;;  %v1109_v59 = vld [vmem:[%s1374_s0 + $0xc8] ss:$16 sps:$4 sm:$0xff]   ;;  %v1110_v60 = vld [vmem:[%s1374_s0 + $0xe4] ss:$16 sps:$4 sm:$0xff]   ;;  %v1112_v61 = vld [vmem:[%s1374_s0 + $0xec] ss:$16 sps:$4 sm:$0xff]  }
  0x17   :  { %v1114_v62 = vld [vmem:[%s1374_s0 + $0xe0] ss:$16 sps:$4 sm:$0xff]   ;;  %v1115_v63 = vld [vmem:[%s1374_s0 + $0xe8] ss:$16 sps:$4 sm:$0xff]  }
  0x18   :  { %919 = vmatpush3.bf16.msra.mxu0 %v1058_v22 }
  0x19   :  { %983 = vmatpush3.bf16.msra.mxu1 %v1059_v23  ;;  %920 = vmatprep.subr.bf16.mxu0 %v1060_v24 }
  0x1a   :  { %984 = vmatprep.subr.bf16.mxu1 %v1061_v25 }
  0x1c   :  { %921 = vmatpush3.bf16.msra.mxu0 %v1062_v26 }
  0x1d   :  { %985 = vmatpush3.bf16.msra.mxu1 %v1063_v27  ;;  %922 = vmatprep.subr.bf16.mxu0 %v1064_v28 }
  0x1e   :  { %986 = vmatprep.subr.bf16.mxu1 %v1065_v29 }
  0x20   :  { %923 = vmatpush3.bf16.msra.mxu0 %v1066_v30 }
  0x21   :  { %987 = vmatpush3.bf16.msra.mxu1 %v1067_v31 }
  0x23   :  { %503 = vmatmul.mubr.bf16.vlgmr.msra.gmra.mrb[0].mxu0 %v1068_v32 }
  0x24   :  { %600 = vmatmul.mubr.bf16.vlgmr.msra.gmra.mrb[0].mxu1 %v1071_v34  ;;  %510 = vmatprep.mubr.bf16.mxu0 %v1074_v36 }
  0x25   :  { %607 = vmatprep.mubr.bf16.mxu1 %v1076_v37 }
  0x2b   :  { %511 = vmatmul.mubr.bf16.gmra.mrb[4].mxu0 %v1078_v38 }
  0x2c   :  { %608 = vmatmul.mubr.bf16.gmra.mrb[4].mxu1 %v1079_v39  ;;  %518 = vmatprep.mubr.bf16.mxu0 %v1080_v40 }
  0x2d   :  { %615 = vmatprep.mubr.bf16.mxu1 %v1082_v41 }
  0x33   :  { %519 = vmatmul.mubr.bf16.gmra.mrb[8].mxu0 %v1084_v42 }
  0x34   :  { %616 = vmatmul.mubr.bf16.gmra.mrb[8].mxu1 %v1085_v43  ;;  %526 = vmatprep.mubr.bf16.mxu0 %v1086_v44 }
  0x35   :  { %623 = vmatprep.mubr.bf16.mxu1 %v1088_v45 }
  0x3b   :  { %527 = vmatmul.mubr.bf16.gmra.mrb[12].mxu0 %v1090_v46 }
  0x3c   :  { %624 = vmatmul.mubr.bf16.gmra.mrb[12].mxu1 %v1091_v47  ;;  %534 = vmatprep.mubr.bf16.mxu0 %v1092_v48 }
  0x3d   :  { %631 = vmatprep.mubr.bf16.mxu1 %v1094_v49 }
  0x43   :  { %535 = vmatmul.mubr.bf16.gmra.mrb[16].mxu0 %v1096_v50 }
  0x44   :  { %632 = vmatmul.mubr.bf16.gmra.mrb[16].mxu1 %v1097_v51  ;;  %542 = vmatprep.mubr.bf16.mxu0 %v1098_v52 }
  0x45   :  { %639 = vmatprep.mubr.bf16.mxu1 %v1100_v53 }
  0x4b   :  { %543 = vmatmul.mubr.bf16.gmra.mrb[20].mxu0 %v1102_v54 }
  0x4c   :  { %640 = vmatmul.mubr.bf16.gmra.mrb[20].mxu1 %v1103_v55  ;;  %550 = vmatprep.mubr.bf16.mxu0 %v1104_v56 }
  0x4d   :  { %647 = vmatprep.mubr.bf16.mxu1 %v1106_v57 }
  0x53   :  { %551 = vmatmul.mubr.bf16.gmra.mrb[24].mxu0 %v1108_v58 }
  0x54   :  { %648 = vmatmul.mubr.bf16.gmra.mrb[24].mxu1 %v1109_v59  ;;  %558 = vmatprep.mubr.bf16.mxu0 %v1110_v60 }
  0x55   :  { %655 = vmatprep.mubr.bf16.mxu1 %v1112_v61 }
  0x5b   :  { %559 = vmatmul.mubr.bf16.gmra.mrb[28].mxu0 %v1114_v62 }
  0x5c   :  { %656 = vmatmul.mubr.bf16.gmra.mrb[28].mxu1 %v1115_v63 }
  0xf6   :  { %v924_v0 = vpop.f32.mrb[0].mxu0 }
  0xf7   :  { %v988_v1 = vpop.f32.mrb[0].mxu1  ;;  %v925_v3 = vpop.f32.mrb[1].mxu0 }
  0xf8   :  { %v926_v4 = vadd.f32 %v925_v3, %v924_v0  ;;  %v989_v5 = vpop.f32.mrb[1].mxu1  ;;  %v927_v6 = vpop.f32.mrb[2].mxu0 }
  0xf9   :  { %v990_v7 = vadd.f32 %v989_v5, %v988_v1  ;;  %v991_v8 = vpop.f32.mrb[2].mxu1  ;;  %v928_v9 = vpop.f32.mrb[3].mxu0 }
  0xfa   :  { %v505_v10 = vadd.f32 %v926_v4, %v1331_v2  ;;  %v929_v11 = vadd.f32 %v928_v9, %v927_v6  ;;  %v992_v12 = vpop.f32.mrb[3].mxu1 }
  0xfb   :  { %v993_v13 = vadd.f32 %v992_v12, %v991_v8 }
  0xfc   :  { %v602_v14 = vadd.f32 %v990_v7, %v505_v10  ;;  %v508_v15 = vadd.f32 %v929_v11, %v1331_v2 }
  0xfe   :  { %v605_v16 = vadd.f32 %v993_v13, %v508_v15  ;;  %v930_v17 = vpop.f32.mrb[4].mxu0  ;;  %v664_v20 = vmax.f32 %v602_v14, 0.0 }
  0xff   :  { %v994_v18 = vpop.f32.mrb[4].mxu1  ;;  %v931_v19 = vpop.f32.mrb[5].mxu0 }
 0x100   :  { %v665_v21 = vmax.f32 %v605_v16, 0.0  ;;  %v932_v22 = vadd.f32 %v931_v19, %v930_v17  ;;  %v995_v23 = vpop.f32.mrb[5].mxu1  ;;  %v933_v24 = vpop.f32.mrb[6].mxu0 }
 0x101   :  { %v996_v25 = vadd.f32 %v995_v23, %v994_v18  ;;  %v997_v26 = vpop.f32.mrb[6].mxu1  ;;  %v934_v27 = vpop.f32.mrb[7].mxu0 }
 0x102   :  { %v864_v28 = vpack.c.bf16 %v665_v21, %v664_v20  ;;  %v513_v29 = vadd.f32 %v932_v22, %v1331_v2  ;;  %v935_v30 = vadd.f32 %v934_v27, %v933_v24  ;;  %v998_v31 = vpop.f32.mrb[7].mxu1 }
 0x103   :  { %v999_v32 = vadd.f32 %v998_v31, %v997_v26 }
 0x104   :  { %865 = vst [vmem:[%s1376_s3] sm:$0xff] %v864_v28   ;;  %v610_v33 = vadd.f32 %v996_v25, %v513_v29  ;;  %v516_v34 = vadd.f32 %v935_v30, %v1331_v2 }
 0x106   :  { %v613_v35 = vadd.f32 %v999_v32, %v516_v34  ;;  %v936_v36 = vpop.f32.mrb[8].mxu0  ;;  %v666_v39 = vmax.f32 %v610_v33, 0.0 }
 0x107   :  { %v1000_v37 = vpop.f32.mrb[8].mxu1  ;;  %v937_v38 = vpop.f32.mrb[9].mxu0 }
 0x108   :  { %v667_v40 = vmax.f32 %v613_v35, 0.0  ;;  %v938_v41 = vadd.f32 %v937_v38, %v936_v36  ;;  %v1001_v42 = vpop.f32.mrb[9].mxu1  ;;  %v939_v43 = vpop.f32.mrb[10].mxu0 }
 0x109   :  { %v1002_v44 = vadd.f32 %v1001_v42, %v1000_v37  ;;  %v1003_v45 = vpop.f32.mrb[10].mxu1  ;;  %v940_v46 = vpop.f32.mrb[11].mxu0 }
 0x10a   :  { %v869_v47 = vpack.c.bf16 %v667_v40, %v666_v39  ;;  %v521_v48 = vadd.f32 %v938_v41, %v1331_v2  ;;  %v941_v49 = vadd.f32 %v940_v46, %v939_v43  ;;  %v1004_v50 = vpop.f32.mrb[11].mxu1 }
 0x10b   :  { %v1005_v51 = vadd.f32 %v1004_v50, %v1003_v45 }
 0x10c   :  { %901 = vst [vmem:[%s1376_s3 + $0x8] sm:$0xff] %v869_v47   ;;  %v618_v52 = vadd.f32 %v1002_v44, %v521_v48  ;;  %v524_v53 = vadd.f32 %v941_v49, %v1331_v2 }
 0x10e   :  { %v621_v54 = vadd.f32 %v1005_v51, %v524_v53  ;;  %v942_v55 = vpop.f32.mrb[12].mxu0  ;;  %v668_v58 = vmax.f32 %v618_v52, 0.0 }
 0x10f   :  { %v1006_v56 = vpop.f32.mrb[12].mxu1  ;;  %v943_v57 = vpop.f32.mrb[13].mxu0 }
 0x110   :  { %v669_v59 = vmax.f32 %v621_v54, 0.0  ;;  %v944_v60 = vadd.f32 %v943_v57, %v942_v55  ;;  %v1007_v61 = vpop.f32.mrb[13].mxu1  ;;  %v945_v62 = vpop.f32.mrb[14].mxu0 }
 0x111   :  { %v1008_v63 = vadd.f32 %v1007_v61, %v1006_v56  ;;  %v1009_v0 = vpop.f32.mrb[14].mxu1  ;;  %v946_v1 = vpop.f32.mrb[15].mxu0 }
 0x112   :  { %v874_v3 = vpack.c.bf16 %v669_v59, %v668_v58  ;;  %v529_v4 = vadd.f32 %v944_v60, %v1331_v2  ;;  %v947_v5 = vadd.f32 %v946_v1, %v945_v62  ;;  %v1010_v6 = vpop.f32.mrb[15].mxu1 }
 0x113   :  { %v1011_v7 = vadd.f32 %v1010_v6, %v1009_v0 }
 0x114   :  { %902 = vst [vmem:[%s1376_s3 + $0x10] sm:$0xff] %v874_v3   ;;  %v626_v8 = vadd.f32 %v1008_v63, %v529_v4  ;;  %v532_v9 = vadd.f32 %v947_v5, %v1331_v2 }
 0x116   :  { %v629_v10 = vadd.f32 %v1011_v7, %v532_v9  ;;  %v948_v11 = vpop.f32.mrb[16].mxu0  ;;  %v670_v14 = vmax.f32 %v626_v8, 0.0 }
 0x117   :  { %v1012_v12 = vpop.f32.mrb[16].mxu1  ;;  %v949_v13 = vpop.f32.mrb[17].mxu0 }
 0x118   :  { %v671_v15 = vmax.f32 %v629_v10, 0.0  ;;  %v950_v16 = vadd.f32 %v949_v13, %v948_v11  ;;  %v1013_v17 = vpop.f32.mrb[17].mxu1  ;;  %v951_v18 = vpop.f32.mrb[18].mxu0 }
 0x119   :  { %v1014_v19 = vadd.f32 %v1013_v17, %v1012_v12  ;;  %v1015_v20 = vpop.f32.mrb[18].mxu1  ;;  %v952_v21 = vpop.f32.mrb[19].mxu0 }
 0x11a   :  { %v879_v22 = vpack.c.bf16 %v671_v15, %v670_v14  ;;  %v537_v23 = vadd.f32 %v950_v16, %v1331_v2  ;;  %v953_v24 = vadd.f32 %v952_v21, %v951_v18  ;;  %v1016_v25 = vpop.f32.mrb[19].mxu1 }
 0x11b   :  { %v1017_v26 = vadd.f32 %v1016_v25, %v1015_v20 }
 0x11c   :  { %903 = vst [vmem:[%s1376_s3 + $0x18] sm:$0xff] %v879_v22   ;;  %v634_v27 = vadd.f32 %v1014_v19, %v537_v23  ;;  %v540_v28 = vadd.f32 %v953_v24, %v1331_v2 }
 0x11e   :  { %v637_v29 = vadd.f32 %v1017_v26, %v540_v28  ;;  %v954_v30 = vpop.f32.mrb[20].mxu0  ;;  %v672_v33 = vmax.f32 %v634_v27, 0.0 }
 0x11f   :  { %v1018_v31 = vpop.f32.mrb[20].mxu1  ;;  %v955_v32 = vpop.f32.mrb[21].mxu0 }
 0x120   :  { %v673_v34 = vmax.f32 %v637_v29, 0.0  ;;  %v956_v35 = vadd.f32 %v955_v32, %v954_v30  ;;  %v1019_v36 = vpop.f32.mrb[21].mxu1  ;;  %v957_v37 = vpop.f32.mrb[22].mxu0 }
 0x121   :  { %v1020_v38 = vadd.f32 %v1019_v36, %v1018_v31  ;;  %v1021_v39 = vpop.f32.mrb[22].mxu1  ;;  %v958_v40 = vpop.f32.mrb[23].mxu0 }
 0x122   :  { %v884_v41 = vpack.c.bf16 %v673_v34, %v672_v33  ;;  %v545_v42 = vadd.f32 %v956_v35, %v1331_v2  ;;  %v959_v43 = vadd.f32 %v958_v40, %v957_v37  ;;  %v1022_v44 = vpop.f32.mrb[23].mxu1 }
 0x123   :  { %v1023_v45 = vadd.f32 %v1022_v44, %v1021_v39 }
 0x124   :  { %904 = vst [vmem:[%s1376_s3 + $0x20] sm:$0xff] %v884_v41   ;;  %v642_v46 = vadd.f32 %v1020_v38, %v545_v42  ;;  %v548_v47 = vadd.f32 %v959_v43, %v1331_v2 }
 0x126   :  { %v645_v48 = vadd.f32 %v1023_v45, %v548_v47  ;;  %v960_v49 = vpop.f32.mrb[24].mxu0  ;;  %v674_v52 = vmax.f32 %v642_v46, 0.0 }
 0x127   :  { %v1024_v50 = vpop.f32.mrb[24].mxu1  ;;  %v961_v51 = vpop.f32.mrb[25].mxu0 }
 0x128   :  { %v675_v53 = vmax.f32 %v645_v48, 0.0  ;;  %v962_v54 = vadd.f32 %v961_v51, %v960_v49  ;;  %v1025_v55 = vpop.f32.mrb[25].mxu1  ;;  %v963_v56 = vpop.f32.mrb[26].mxu0 }
 0x129   :  { %v1026_v57 = vadd.f32 %v1025_v55, %v1024_v50  ;;  %v1027_v58 = vpop.f32.mrb[26].mxu1  ;;  %v964_v59 = vpop.f32.mrb[27].mxu0 }
 0x12a   :  { %v889_v60 = vpack.c.bf16 %v675_v53, %v674_v52  ;;  %v553_v61 = vadd.f32 %v962_v54, %v1331_v2  ;;  %v965_v62 = vadd.f32 %v964_v59, %v963_v56  ;;  %v1028_v63 = vpop.f32.mrb[27].mxu1 }
 0x12b   :  { %v1029_v0 = vadd.f32 %v1028_v63, %v1027_v58 }
 0x12c   :  { %905 = vst [vmem:[%s1376_s3 + $0x28] sm:$0xff] %v889_v60   ;;  %v650_v1 = vadd.f32 %v1026_v57, %v553_v61  ;;  %v556_v3 = vadd.f32 %v965_v62, %v1331_v2 }
 0x12e   :  { %v653_v4 = vadd.f32 %v1029_v0, %v556_v3  ;;  %v966_v5 = vpop.f32.mrb[28].mxu0  ;;  %v676_v8 = vmax.f32 %v650_v1, 0.0 }
 0x12f   :  { %v1030_v6 = vpop.f32.mrb[28].mxu1  ;;  %v967_v7 = vpop.f32.mrb[29].mxu0 }
 0x130   :  { %v677_v9 = vmax.f32 %v653_v4, 0.0  ;;  %v968_v10 = vadd.f32 %v967_v7, %v966_v5  ;;  %v1031_v11 = vpop.f32.mrb[29].mxu1  ;;  %v969_v12 = vpop.f32.mrb[30].mxu0 }
 0x131   :  { %v1032_v13 = vadd.f32 %v1031_v11, %v1030_v6  ;;  %v1033_v14 = vpop.f32.mrb[30].mxu1  ;;  %v970_v15 = vpop.f32.mrb[31].mxu0 }
 0x132   :  { %v894_v16 = vpack.c.bf16 %v677_v9, %v676_v8  ;;  %v561_v17 = vadd.f32 %v968_v10, %v1331_v2  ;;  %v971_v18 = vadd.f32 %v970_v15, %v969_v12  ;;  %v1034_v19 = vpop.f32.mrb[31].mxu1 }
 0x133   :  { %v1035_v20 = vadd.f32 %v1034_v19, %v1033_v14 }
 0x134   :  { %906 = vst [vmem:[%s1376_s3 + $0x30] sm:$0xff] %v894_v16   ;;  %v658_v21 = vadd.f32 %v1032_v13, %v561_v17  ;;  %v564_v22 = vadd.f32 %v971_v18, %v1331_v2 }
 0x136   :  { %v661_v23 = vadd.f32 %v1035_v20, %v564_v22  ;;  %v678_v24 = vmax.f32 %v658_v21, 0.0 }
 0x138   :  { %v679_v25 = vmax.f32 %v661_v23, 0.0 }
 0x13a   :  { %v899_v26 = vpack.c.bf16 %v679_v25, %v678_v24 }
 0x13c   :  { %907 = vst [vmem:[%s1376_s3 + $0x38] sm:$0xff] %v899_v26  }

// kernel: factor_vae2_forward.13
= control target key start
LH: loop header
LB: loop body
LE: loop exit
PB: predicated region body
PF: predicated region fallthrough
CT: control target
= control target key end

     0   :  { %s1399_s1 = inlined_call_operand.vmem [shape: bf16[1024,128], index: 1, kind: input, shape index: {}]   ;;  %s1400_s0 = inlined_call_operand.vmem [shape: bf16[32,1024], index: 0, kind: input, shape index: {}]   ;;  %s1401_s2 = inlined_call_operand.vmem [shape: f32[1,128], index: 2, kind: input, shape index: {}]   ;;  %s1402_s3 = inlined_call_operand.vmem [shape: bf16[32,128], index: 3, kind: output, shape index: {}]  }
   0x1   :  { %v1066_v0 = vld [vmem:[%s1399_s1 + $0x40] sm:$0xff]   ;;  %v1070_v4 = vld [vmem:[%s1399_s1 + $0x48] sm:$0xff]   ;;  %v1074_v8 = vld [vmem:[%s1399_s1 + $0x50] sm:$0xff]  }
   0x2   :  { %v1067_v1 = vld [vmem:[%s1399_s1 + $0xc0] sm:$0xff]   ;;  %954 = vmatprep.subr.bf16.mxu0 %v1066_v0  ;;  %v1071_v5 = vld [vmem:[%s1399_s1 + $0xc8] sm:$0xff]   ;;  %v1075_v9 = vld [vmem:[%s1399_s1 + $0xd0] sm:$0xff]  }
   0x3   :  { %v1068_v2 = vld [vmem:[%s1399_s1] sm:$0xff]   ;;  %982 = vmatprep.subr.bf16.mxu1 %v1067_v1  ;;  %v1072_v6 = vld [vmem:[%s1399_s1 + $0x8] sm:$0xff]   ;;  %v1076_v10 = vld [vmem:[%s1399_s1 + $0x10] sm:$0xff]  }
   0x4   :  { %v1069_v3 = vld [vmem:[%s1399_s1 + $0x80] sm:$0xff]   ;;  %955 = vmatpush3.bf16.msra.mxu0 %v1068_v2  ;;  %v1073_v7 = vld [vmem:[%s1399_s1 + $0x88] sm:$0xff]   ;;  %v1077_v11 = vld [vmem:[%s1399_s1 + $0x90] sm:$0xff]  }
   0x5   :  { %983 = vmatpush3.bf16.msra.mxu1 %v1069_v3  ;;  %956 = vmatprep.subr.bf16.mxu0 %v1070_v4  ;;  %v1078_v12 = vld [vmem:[%s1399_s1 + $0x58] sm:$0xff]   ;;  %v1082_v16 = vld [vmem:[%s1399_s1 + $0x60] sm:$0xff]   ;;  %v1086_v20 = vld [vmem:[%s1399_s1 + $0x68] sm:$0xff]  }
   0x6   :  { %984 = vmatprep.subr.bf16.mxu1 %v1071_v5  ;;  %v1079_v13 = vld [vmem:[%s1399_s1 + $0xd8] sm:$0xff]   ;;  %v1083_v17 = vld [vmem:[%s1399_s1 + $0xe0] sm:$0xff]   ;;  %v1087_v21 = vld [vmem:[%s1399_s1 + $0xe8] sm:$0xff]  }
   0x7   :  { %v1080_v14 = vld [vmem:[%s1399_s1 + $0x18] sm:$0xff]   ;;  %v1084_v18 = vld [vmem:[%s1399_s1 + $0x20] sm:$0xff]   ;;  %v1088_v22 = vld [vmem:[%s1399_s1 + $0x28] sm:$0xff]  }
   0x8   :  { %957 = vmatpush3.bf16.msra.mxu0 %v1072_v6  ;;  %v1081_v15 = vld [vmem:[%s1399_s1 + $0x98] sm:$0xff]   ;;  %v1085_v19 = vld [vmem:[%s1399_s1 + $0xa0] sm:$0xff]   ;;  %v1089_v23 = vld [vmem:[%s1399_s1 + $0xa8] sm:$0xff]  }
   0x9   :  { %985 = vmatpush3.bf16.msra.mxu1 %v1073_v7  ;;  %958 = vmatprep.subr.bf16.mxu0 %v1074_v8  ;;  %v1090_v24 = vld [vmem:[%s1399_s1 + $0x70] sm:$0xff]   ;;  %v1094_v28 = vld [vmem:[%s1399_s1 + $0x78] sm:$0xff]   ;;  %v15_v32 = vld [vmem:[%s1400_s0] sm:$0xff] }
   0xa   :  { %986 = vmatprep.subr.bf16.mxu1 %v1075_v9  ;;  %v1091_v25 = vld [vmem:[%s1399_s1 + $0xf0] sm:$0xff]   ;;  %v1095_v29 = vld [vmem:[%s1399_s1 + $0xf8] sm:$0xff]   ;;  %v19_v33 = vld [vmem:[%s1400_s0 + $0x20] sm:$0xff] }
   0xb   :  { %v1092_v26 = vld [vmem:[%s1399_s1 + $0x30] sm:$0xff]   ;;  %v1096_v30 = vld [vmem:[%s1399_s1 + $0x38] sm:$0xff]   ;;  %v16_v34 = vld [vmem:[%s1400_s0 + $0x8] sm:$0xff]  ;;  %v855_v35 = vcombine.low %v15_v32, %v19_v33  ;;  %v856_v36 = vcombine.high %v15_v32, %v19_v33 }
   0xc   :  { %959 = vmatpush3.bf16.msra.mxu0 %v1076_v10  ;;  %v1093_v27 = vld [vmem:[%s1399_s1 + $0xb0] sm:$0xff]   ;;  %v1097_v31 = vld [vmem:[%s1399_s1 + $0xb8] sm:$0xff]   ;;  %v20_v37 = vld [vmem:[%s1400_s0 + $0x28] sm:$0xff] }
   0xd   :  { %987 = vmatpush3.bf16.msra.mxu1 %v1077_v11  ;;  %960 = vmatprep.subr.bf16.mxu0 %v1078_v12  ;;  %v857_v38 = vcombine.low %v16_v34, %v20_v37  ;;  %v858_v39 = vcombine.high %v16_v34, %v20_v37  ;;  %v1098_v40 = vld [vmem:[%s1399_s1 + $0x140] sm:$0xff]   ;;  %v1102_v44 = vld [vmem:[%s1399_s1 + $0x148] sm:$0xff]   ;;  %v1106_v48 = vld [vmem:[%s1399_s1 + $0x150] sm:$0xff]  }
   0xe   :  { %988 = vmatprep.subr.bf16.mxu1 %v1079_v13  ;;  %662 = vmatprep.mubr.bf16.mxu0 %v856_v36  ;;  %v1099_v41 = vld [vmem:[%s1399_s1 + $0x1c0] sm:$0xff]   ;;  %v1103_v45 = vld [vmem:[%s1399_s1 + $0x1c8] sm:$0xff]   ;;  %v1107_v49 = vld [vmem:[%s1399_s1 + $0x1d0] sm:$0xff]  }
   0xf   :  { %711 = vmatprep.mubr.bf16.mxu1 %v858_v39  ;;  %v1100_v42 = vld [vmem:[%s1399_s1 + $0x100] sm:$0xff]   ;;  %v1104_v46 = vld [vmem:[%s1399_s1 + $0x108] sm:$0xff]   ;;  %v1108_v50 = vld [vmem:[%s1399_s1 + $0x110] sm:$0xff]  }
  0x10   :  { %961 = vmatpush3.bf16.msra.mxu0 %v1080_v14  ;;  %v1101_v43 = vld [vmem:[%s1399_s1 + $0x180] sm:$0xff]   ;;  %v1105_v47 = vld [vmem:[%s1399_s1 + $0x188] sm:$0xff]   ;;  %v1109_v51 = vld [vmem:[%s1399_s1 + $0x190] sm:$0xff]  }
  0x11   :  { %989 = vmatpush3.bf16.msra.mxu1 %v1081_v15  ;;  %962 = vmatprep.subr.bf16.mxu0 %v1082_v16  ;;  %v1110_v52 = vld [vmem:[%s1399_s1 + $0x158] sm:$0xff]   ;;  %v1114_v56 = vld [vmem:[%s1399_s1 + $0x160] sm:$0xff]   ;;  %v1118_v63 = vld [vmem:[%s1399_s1 + $0x168] sm:$0xff]  }
  0x12   :  { %990 = vmatprep.subr.bf16.mxu1 %v1083_v17  ;;  %v1111_v53 = vld [vmem:[%s1399_s1 + $0x1d8] sm:$0xff]   ;;  %v1115_v57 = vld [vmem:[%s1399_s1 + $0x1e0] sm:$0xff]   ;;  %v1119_v1 = vld [vmem:[%s1399_s1 + $0x1e8] sm:$0xff]  }
  0x13   :  { %v1112_v54 = vld [vmem:[%s1399_s1 + $0x118] sm:$0xff]   ;;  %v1116_v58 = vld [vmem:[%s1399_s1 + $0x120] sm:$0xff]   ;;  %v1120_v2 = vld [vmem:[%s1399_s1 + $0x128] sm:$0xff]  }
  0x14   :  { %963 = vmatpush3.bf16.msra.mxu0 %v1084_v18  ;;  %v1113_v55 = vld [vmem:[%s1399_s1 + $0x198] sm:$0xff]   ;;  %v1117_v59 = vld [vmem:[%s1399_s1 + $0x1a0] sm:$0xff]   ;;  %v1121_v3 = vld [vmem:[%s1399_s1 + $0x1a8] sm:$0xff]  }
  0x15   :  { %991 = vmatpush3.bf16.msra.mxu1 %v1085_v19  ;;  %964 = vmatprep.subr.bf16.mxu0 %v1086_v20  ;;  %v23_v60 = vld [vmem:[%s1400_s0 + $0x40] sm:$0xff]  ;;  %v24_v4 = vld [vmem:[%s1400_s0 + $0x48] sm:$0xff]  ;;  %v1122_v8 = vld [vmem:[%s1399_s1 + $0x170] sm:$0xff]  }
  0x16   :  { %992 = vmatprep.subr.bf16.mxu1 %v1087_v21  ;;  %v27_v61 = vld [vmem:[%s1400_s0 + $0x60] sm:$0xff]  ;;  %v28_v5 = vld [vmem:[%s1400_s0 + $0x68] sm:$0xff]  ;;  %v1123_v9 = vld [vmem:[%s1399_s1 + $0x1f0] sm:$0xff]  }
  0x17   :  { %v864_v62 = vcombine.high %v23_v60, %v27_v61  ;;  %v863_v0 = vcombine.low %v23_v60, %v27_v61  ;;  %v866_v6 = vcombine.high %v24_v4, %v28_v5  ;;  %v865_v7 = vcombine.low %v24_v4, %v28_v5  ;;  %v1124_v10 = vld [vmem:[%s1399_s1 + $0x130] sm:$0xff]   ;;  %v1126_v12 = vld [vmem:[%s1399_s1 + $0x178] sm:$0xff]   ;;  %v854_v34 = vld [vmem:[%s1401_s2] ss:$0 sm:$0xff] }
  0x18   :  { %965 = vmatpush3.bf16.msra.mxu0 %v1088_v22  ;;  %v1125_v11 = vld [vmem:[%s1399_s1 + $0x1b0] sm:$0xff]   ;;  %v1127_v13 = vld [vmem:[%s1399_s1 + $0x1f8] sm:$0xff]  }
  0x19   :  { %993 = vmatpush3.bf16.msra.mxu1 %v1089_v23  ;;  %966 = vmatprep.subr.bf16.mxu0 %v1090_v24  ;;  %v1128_v14 = vld [vmem:[%s1399_s1 + $0x138] sm:$0xff]   ;;  %v17_v16 = vld [vmem:[%s1400_s0 + $0x10] sm:$0xff] }
  0x1a   :  { %994 = vmatprep.subr.bf16.mxu1 %v1091_v25  ;;  %v1129_v15 = vld [vmem:[%s1399_s1 + $0x1b8] sm:$0xff]   ;;  %v21_v17 = vld [vmem:[%s1400_s0 + $0x30] sm:$0xff] }
  0x1b   :  { %v18_v18 = vld [vmem:[%s1400_s0 + $0x18] sm:$0xff]  ;;  %v859_v20 = vcombine.low %v17_v16, %v21_v17  ;;  %v860_v21 = vcombine.high %v17_v16, %v21_v17  ;;  %v25_v24 = vld [vmem:[%s1400_s0 + $0x50] sm:$0xff] }
  0x1c   :  { %967 = vmatpush3.bf16.msra.mxu0 %v1092_v26  ;;  %v22_v19 = vld [vmem:[%s1400_s0 + $0x38] sm:$0xff]  ;;  %v29_v25 = vld [vmem:[%s1400_s0 + $0x70] sm:$0xff] }
  0x1d   :  { %995 = vmatpush3.bf16.msra.mxu1 %v1093_v27  ;;  %968 = vmatprep.subr.bf16.mxu0 %v1094_v28  ;;  %v861_v22 = vcombine.low %v18_v18, %v22_v19  ;;  %v862_v23 = vcombine.high %v18_v18, %v22_v19  ;;  %v26_v26 = vld [vmem:[%s1400_s0 + $0x58] sm:$0xff]  ;;  %v868_v27 = vcombine.high %v25_v24, %v29_v25 }
  0x1e   :  { %996 = vmatprep.subr.bf16.mxu1 %v1095_v29  ;;  %v30_v28 = vld [vmem:[%s1400_s0 + $0x78] sm:$0xff] }
  0x1f   :  { %v870_v29 = vcombine.high %v26_v26, %v30_v28 }
  0x20   :  { %969 = vmatpush3.bf16.msra.mxu0 %v1096_v30  ;;  %v867_v30 = vcombine.low %v25_v24, %v29_v25 }
  0x21   :  { %997 = vmatpush3.bf16.msra.mxu1 %v1097_v31  ;;  %1010 = vmatprep.subr.bf16.mxu0 %v1098_v40  ;;  %v869_v31 = vcombine.low %v26_v26, %v30_v28 }
  0x22   :  { %1038 = vmatprep.subr.bf16.mxu1 %v1099_v41 }
  0x23   :  { %663 = vmatmul.mubr.bf16.vlgmr.msra.gmra.mrb[0].mxu0 %v855_v35 }
  0x24   :  { %712 = vmatmul.mubr.bf16.vlgmr.msra.gmra.mrb[0].mxu1 %v857_v38  ;;  %1011 = vmatpush3.bf16.msra.mxu0 %v1100_v42 }
  0x25   :  { %1039 = vmatpush3.bf16.msra.mxu1 %v1101_v43  ;;  %1012 = vmatprep.subr.bf16.mxu0 %v1102_v44 }
  0x26   :  { %1040 = vmatprep.subr.bf16.mxu1 %v1103_v45  ;;  %670 = vmatprep.mubr.bf16.mxu0 %v864_v62 }
  0x27   :  { %719 = vmatprep.mubr.bf16.mxu1 %v866_v6 }
  0x28   :  { %1013 = vmatpush3.bf16.msra.mxu0 %v1104_v46 }
  0x29   :  { %1041 = vmatpush3.bf16.msra.mxu1 %v1105_v47  ;;  %1014 = vmatprep.subr.bf16.mxu0 %v1106_v48 }
  0x2a   :  { %1042 = vmatprep.subr.bf16.mxu1 %v1107_v49 }
  0x2b   :  { %671 = vmatmul.mubr.bf16.gmra.mrb[4].mxu0 %v863_v0 }
  0x2c   :  { %1015 = vmatpush3.bf16.msra.mxu0 %v1108_v50  ;;  %720 = vmatmul.mubr.bf16.gmra.mrb[4].mxu1 %v865_v7 }
  0x2d   :  { %1043 = vmatpush3.bf16.msra.mxu1 %v1109_v51  ;;  %1016 = vmatprep.subr.bf16.mxu0 %v1110_v52 }
  0x2e   :  { %1044 = vmatprep.subr.bf16.mxu1 %v1111_v53  ;;  %760 = vmatprep.mubr.bf16.mxu0 %v860_v21 }
  0x2f   :  { %809 = vmatprep.mubr.bf16.mxu1 %v862_v23 }
  0x30   :  { %1017 = vmatpush3.bf16.msra.mxu0 %v1112_v54 }
  0x31   :  { %1045 = vmatpush3.bf16.msra.mxu1 %v1113_v55  ;;  %1018 = vmatprep.subr.bf16.mxu0 %v1114_v56 }
  0x32   :  { %1046 = vmatprep.subr.bf16.mxu1 %v1115_v57 }
  0x34   :  { %1019 = vmatpush3.bf16.msra.mxu0 %v1116_v58 }
  0x35   :  { %1047 = vmatpush3.bf16.msra.mxu1 %v1117_v59  ;;  %1020 = vmatprep.subr.bf16.mxu0 %v1118_v63 }
  0x36   :  { %1048 = vmatprep.subr.bf16.mxu1 %v1119_v1 }
  0x38   :  { %1021 = vmatpush3.bf16.msra.mxu0 %v1120_v2 }
  0x39   :  { %1049 = vmatpush3.bf16.msra.mxu1 %v1121_v3  ;;  %1022 = vmatprep.subr.bf16.mxu0 %v1122_v8 }
  0x3a   :  { %1050 = vmatprep.subr.bf16.mxu1 %v1123_v9 }
  0x3c   :  { %1023 = vmatpush3.bf16.msra.mxu0 %v1124_v10 }
  0x3d   :  { %1051 = vmatpush3.bf16.msra.mxu1 %v1125_v11  ;;  %1024 = vmatprep.subr.bf16.mxu0 %v1126_v12 }
  0x3e   :  { %1052 = vmatprep.subr.bf16.mxu1 %v1127_v13 }
  0x40   :  { %1025 = vmatpush3.bf16.msra.mxu0 %v1128_v14 }
  0x41   :  { %1053 = vmatpush3.bf16.msra.mxu1 %v1129_v15 }
  0x43   :  { %761 = vmatmul.mubr.bf16.vlgmr.msra.gmra.mrb[8].mxu0 %v859_v20 }
  0x44   :  { %810 = vmatmul.mubr.bf16.vlgmr.msra.gmra.mrb[8].mxu1 %v861_v22  ;;  %768 = vmatprep.mubr.bf16.mxu0 %v868_v27 }
  0x45   :  { %817 = vmatprep.mubr.bf16.mxu1 %v870_v29 }
  0x4b   :  { %769 = vmatmul.mubr.bf16.gmra.mrb[12].mxu0 %v867_v30 }
  0x4c   :  { %818 = vmatmul.mubr.bf16.gmra.mrb[12].mxu1 %v869_v31 }
  0xf6   :  { %v970_v32 = vpop.f32.mrb[0].mxu0 }
  0xf7   :  { %v998_v33 = vpop.f32.mrb[0].mxu1  ;;  %v971_v35 = vpop.f32.mrb[1].mxu0 }
  0xf8   :  { %v972_v36 = vadd.f32 %v971_v35, %v970_v32  ;;  %v999_v37 = vpop.f32.mrb[1].mxu1  ;;  %v973_v38 = vpop.f32.mrb[2].mxu0 }
  0xf9   :  { %v1000_v39 = vadd.f32 %v999_v37, %v998_v33  ;;  %v1001_v40 = vpop.f32.mrb[2].mxu1  ;;  %v974_v41 = vpop.f32.mrb[3].mxu0 }
  0xfa   :  { %v665_v42 = vadd.f32 %v972_v36, %v854_v34  ;;  %v975_v43 = vadd.f32 %v974_v41, %v973_v38  ;;  %v1002_v44 = vpop.f32.mrb[3].mxu1 }
  0xfb   :  { %v1003_v45 = vadd.f32 %v1002_v44, %v1001_v40 }
  0xfc   :  { %v714_v46 = vadd.f32 %v1000_v39, %v665_v42  ;;  %v668_v47 = vadd.f32 %v975_v43, %v854_v34 }
  0xfe   :  { %v717_v48 = vadd.f32 %v1003_v45, %v668_v47  ;;  %v976_v49 = vpop.f32.mrb[4].mxu0 }
  0xff   :  { %v977_v50 = vpop.f32.mrb[5].mxu0  ;;  %v1004_v56 = vpop.f32.mrb[4].mxu1 }
 0x100   :  { %v978_v51 = vadd.f32 %v977_v50, %v976_v49  ;;  %v979_v52 = vpop.f32.mrb[6].mxu0  ;;  %v1005_v57 = vpop.f32.mrb[5].mxu1 }
 0x101   :  { %v980_v53 = vpop.f32.mrb[7].mxu0  ;;  %v1006_v59 = vadd.f32 %v1005_v57, %v1004_v56  ;;  %v1007_v60 = vpop.f32.mrb[6].mxu1 }
 0x102   :  { %v981_v54 = vadd.f32 %v980_v53, %v979_v52  ;;  %v673_v55 = vadd.f32 %v978_v51, %v854_v34  ;;  %v1008_v61 = vpop.f32.mrb[7].mxu1 }
 0x103   :  { %v1009_v63 = vadd.f32 %v1008_v61, %v1007_v60 }
 0x104   :  { %v676_v58 = vadd.f32 %v981_v54, %v854_v34  ;;  %v722_v62 = vadd.f32 %v1006_v59, %v673_v55 }
 0x106   :  { %v725_v0 = vadd.f32 %v1009_v63, %v676_v58 }
 0x116   :  { %v1026_v1 = vpop.f32.mrb[8].mxu0 }
 0x117   :  { %v1054_v2 = vpop.f32.mrb[8].mxu1  ;;  %v1027_v3 = vpop.f32.mrb[9].mxu0 }
 0x118   :  { %v1055_v4 = vpop.f32.mrb[9].mxu1  ;;  %v1028_v5 = vadd.f32 %v1027_v3, %v1026_v1  ;;  %v1029_v7 = vpop.f32.mrb[10].mxu0 }
 0x119   :  { %v1056_v6 = vadd.f32 %v1055_v4, %v1054_v2  ;;  %v1057_v8 = vpop.f32.mrb[10].mxu1  ;;  %v1030_v9 = vpop.f32.mrb[11].mxu0 }
 0x11a   :  { %v1058_v10 = vpop.f32.mrb[11].mxu1  ;;  %v763_v11 = vadd.f32 %v1028_v5, %v714_v46  ;;  %v1031_v12 = vadd.f32 %v1030_v9, %v1029_v7 }
 0x11b   :  { %v1059_v13 = vadd.f32 %v1058_v10, %v1057_v8 }
 0x11c   :  { %v812_v14 = vadd.f32 %v1056_v6, %v763_v11  ;;  %v766_v15 = vadd.f32 %v1031_v12, %v717_v48 }
 0x11e   :  { %v815_v16 = vadd.f32 %v1059_v13, %v766_v15  ;;  %v1032_v17 = vpop.f32.mrb[12].mxu0  ;;  %v826_v21 = vmax.f32 %v812_v14, 0.0 }
 0x11f   :  { %v1060_v18 = vpop.f32.mrb[12].mxu1  ;;  %v1033_v19 = vpop.f32.mrb[13].mxu0 }
 0x120   :  { %v1061_v20 = vpop.f32.mrb[13].mxu1  ;;  %v827_v22 = vmax.f32 %v815_v16, 0.0  ;;  %v1034_v23 = vadd.f32 %v1033_v19, %v1032_v17  ;;  %v1035_v25 = vpop.f32.mrb[14].mxu0 }
 0x121   :  { %v1062_v24 = vadd.f32 %v1061_v20, %v1060_v18  ;;  %v1063_v26 = vpop.f32.mrb[14].mxu1  ;;  %v1036_v27 = vpop.f32.mrb[15].mxu0 }
 0x122   :  { %v1064_v28 = vpop.f32.mrb[15].mxu1  ;;  %v946_v29 = vpack.c.bf16 %v827_v22, %v826_v21  ;;  %v771_v30 = vadd.f32 %v1034_v23, %v722_v62  ;;  %v1037_v31 = vadd.f32 %v1036_v27, %v1035_v25 }
 0x123   :  { %v1065_v32 = vadd.f32 %v1064_v28, %v1063_v26 }
 0x124   :  { %947 = vst [vmem:[%s1402_s3] sm:$0xff] %v946_v29   ;;  %v820_v33 = vadd.f32 %v1062_v24, %v771_v30  ;;  %v774_v34 = vadd.f32 %v1037_v31, %v725_v0 }
 0x126   :  { %v823_v35 = vadd.f32 %v1065_v32, %v774_v34  ;;  %v828_v36 = vmax.f32 %v820_v33, 0.0 }
 0x128   :  { %v829_v37 = vmax.f32 %v823_v35, 0.0 }
 0x12a   :  { %v951_v38 = vpack.c.bf16 %v829_v37, %v828_v36 }
 0x12c   :  { %953 = vst [vmem:[%s1402_s3 + $0x8] sm:$0xff] %v951_v38  }

// kernel: factor_vae2_forward.14
= control target key start
LH: loop header
LB: loop body
LE: loop exit
PB: predicated region body
PF: predicated region fallthrough
CT: control target
= control target key end

     0   :  { %s2079_s1 = inlined_call_operand.vmem [shape: bf16[1024,256], index: 1, kind: input, shape index: {}]   ;;  %s2080_s0 = inlined_call_operand.vmem [shape: bf16[8,1024], index: 0, kind: input, shape index: {}]   ;;  %s2081_s3 = inlined_call_operand.vmem [shape: bf16[256,128], index: 3, kind: input, shape index: {}]   ;;  %s2082_s2 = inlined_call_operand.vmem [shape: f32[1,256], index: 2, kind: input, shape index: {}]   ;;  %s2083_s4 = inlined_call_operand.vmem [shape: f32[1,128], index: 4, kind: input, shape index: {}]   ;;  %s2084_s5 = inlined_call_operand.vmem [shape: f32[8,128], index: 5, kind: output, shape index: {}]  }
   0x1   :  { %v1368_v0 = vld [vmem:[%s2079_s1 + $0x4] ss:$8 sps:$4 sm:$0xff]   ;;  %v1372_v2 = vld [vmem:[%s2079_s1] ss:$8 sps:$4 sm:$0xff]   ;;  %v1374_v4 = vld [vmem:[%s2079_s1 + $0x14] ss:$8 sps:$4 sm:$0xff]  }
   0x2   :  { %v1370_v1 = vld [vmem:[%s2079_s1 + $0x204] ss:$8 sps:$4 sm:$0xff]   ;;  %833 = vmatprep.subr.bf16.mxu1 %v1368_v0  ;;  %v1373_v3 = vld [vmem:[%s2079_s1 + $0x200] ss:$8 sps:$4 sm:$0xff]   ;;  %v1376_v5 = vld [vmem:[%s2079_s1 + $0x214] ss:$8 sps:$4 sm:$0xff]  }
   0x3   :  { %915 = vmatprep.subr.bf16.mxu0 %v1370_v1  ;;  %834 = vmatpush1.bf16.msra.mxu1 %v1372_v2  ;;  %v1378_v6 = vld [vmem:[%s2079_s1 + $0x10] ss:$8 sps:$4 sm:$0xff]   ;;  %v1380_v8 = vld [vmem:[%s2079_s1 + $0x24] ss:$8 sps:$4 sm:$0xff]   ;;  %v1384_v10 = vld [vmem:[%s2079_s1 + $0x20] ss:$8 sps:$4 sm:$0xff]  }
   0x4   :  { %916 = vmatpush1.bf16.msra.mxu0 %v1373_v3  ;;  %835 = vmatprep.subr.bf16.mxu1 %v1374_v4  ;;  %v1379_v7 = vld [vmem:[%s2079_s1 + $0x210] ss:$8 sps:$4 sm:$0xff]   ;;  %v1382_v9 = vld [vmem:[%s2079_s1 + $0x224] ss:$8 sps:$4 sm:$0xff]   ;;  %v1385_v11 = vld [vmem:[%s2079_s1 + $0x220] ss:$8 sps:$4 sm:$0xff]  }
   0x5   :  { %917 = vmatprep.subr.bf16.mxu0 %v1376_v5  ;;  %v1386_v12 = vld [vmem:[%s2079_s1 + $0x34] ss:$8 sps:$4 sm:$0xff]   ;;  %v1390_v14 = vld [vmem:[%s2079_s1 + $0x30] ss:$8 sps:$4 sm:$0xff]   ;;  %v1392_v16 = vld [vmem:[%s2079_s1 + $0x44] ss:$8 sps:$4 sm:$0xff]  }
   0x6   :  { %v1388_v13 = vld [vmem:[%s2079_s1 + $0x234] ss:$8 sps:$4 sm:$0xff]   ;;  %v1391_v15 = vld [vmem:[%s2079_s1 + $0x230] ss:$8 sps:$4 sm:$0xff]   ;;  %v1394_v17 = vld [vmem:[%s2079_s1 + $0x244] ss:$8 sps:$4 sm:$0xff]  }
   0x7   :  { %836 = vmatpush1.bf16.msra.mxu1 %v1378_v6  ;;  %v1396_v18 = vld [vmem:[%s2079_s1 + $0x40] ss:$8 sps:$4 sm:$0xff]   ;;  %v1398_v20 = vld [vmem:[%s2079_s1 + $0x54] ss:$8 sps:$4 sm:$0xff]   ;;  %v1402_v22 = vld [vmem:[%s2079_s1 + $0x50] ss:$8 sps:$4 sm:$0xff]  }
   0x8   :  { %918 = vmatpush1.bf16.msra.mxu0 %v1379_v7  ;;  %837 = vmatprep.subr.bf16.mxu1 %v1380_v8  ;;  %v1397_v19 = vld [vmem:[%s2079_s1 + $0x240] ss:$8 sps:$4 sm:$0xff]   ;;  %v1400_v21 = vld [vmem:[%s2079_s1 + $0x254] ss:$8 sps:$4 sm:$0xff]   ;;  %v1403_v23 = vld [vmem:[%s2079_s1 + $0x250] ss:$8 sps:$4 sm:$0xff]  }
   0x9   :  { %919 = vmatprep.subr.bf16.mxu0 %v1382_v9  ;;  %v1404_v24 = vld [vmem:[%s2079_s1 + $0x64] ss:$8 sps:$4 sm:$0xff]   ;;  %v1408_v26 = vld [vmem:[%s2079_s1 + $0x60] ss:$8 sps:$4 sm:$0xff]   ;;  %v1410_v28 = vld [vmem:[%s2079_s1 + $0x74] ss:$8 sps:$4 sm:$0xff]  }
   0xa   :  { %v1406_v25 = vld [vmem:[%s2079_s1 + $0x264] ss:$8 sps:$4 sm:$0xff]   ;;  %v1409_v27 = vld [vmem:[%s2079_s1 + $0x260] ss:$8 sps:$4 sm:$0xff]   ;;  %v1412_v29 = vld [vmem:[%s2079_s1 + $0x274] ss:$8 sps:$4 sm:$0xff]  }
   0xb   :  { %838 = vmatpush1.bf16.msra.mxu1 %v1384_v10  ;;  %v1414_v30 = vld [vmem:[%s2079_s1 + $0x70] ss:$8 sps:$4 sm:$0xff]   ;;  %v1416_v32 = vld [vmem:[%s2079_s1 + $0x84] ss:$8 sps:$4 sm:$0xff]   ;;  %v1420_v34 = vld [vmem:[%s2079_s1 + $0x80] ss:$8 sps:$4 sm:$0xff]  }
   0xc   :  { %920 = vmatpush1.bf16.msra.mxu0 %v1385_v11  ;;  %839 = vmatprep.subr.bf16.mxu1 %v1386_v12  ;;  %v1415_v31 = vld [vmem:[%s2079_s1 + $0x270] ss:$8 sps:$4 sm:$0xff]   ;;  %v1418_v33 = vld [vmem:[%s2079_s1 + $0x284] ss:$8 sps:$4 sm:$0xff]   ;;  %v1421_v35 = vld [vmem:[%s2079_s1 + $0x280] ss:$8 sps:$4 sm:$0xff]  }
   0xd   :  { %921 = vmatprep.subr.bf16.mxu0 %v1388_v13  ;;  %v1422_v36 = vld [vmem:[%s2079_s1 + $0x94] ss:$8 sps:$4 sm:$0xff]   ;;  %v1426_v38 = vld [vmem:[%s2079_s1 + $0x90] ss:$8 sps:$4 sm:$0xff]   ;;  %v1428_v40 = vld [vmem:[%s2079_s1 + $0xa4] ss:$8 sps:$4 sm:$0xff]  }
   0xe   :  { %v1424_v37 = vld [vmem:[%s2079_s1 + $0x294] ss:$8 sps:$4 sm:$0xff]   ;;  %v1427_v39 = vld [vmem:[%s2079_s1 + $0x290] ss:$8 sps:$4 sm:$0xff]   ;;  %v1430_v41 = vld [vmem:[%s2079_s1 + $0x2a4] ss:$8 sps:$4 sm:$0xff]  }
   0xf   :  { %840 = vmatpush1.bf16.msra.mxu1 %v1390_v14  ;;  %v1432_v42 = vld [vmem:[%s2079_s1 + $0xa0] ss:$8 sps:$4 sm:$0xff]   ;;  %v1434_v44 = vld [vmem:[%s2079_s1 + $0xb4] ss:$8 sps:$4 sm:$0xff]   ;;  %v1438_v47 = vld [vmem:[%s2079_s1 + $0xb0] ss:$8 sps:$4 sm:$0xff]  }
  0x10   :  { %922 = vmatpush1.bf16.msra.mxu0 %v1391_v15  ;;  %841 = vmatprep.subr.bf16.mxu1 %v1392_v16  ;;  %v1433_v43 = vld [vmem:[%s2079_s1 + $0x2a0] ss:$8 sps:$4 sm:$0xff]   ;;  %v1436_v45 = vld [vmem:[%s2079_s1 + $0x2b4] ss:$8 sps:$4 sm:$0xff]   ;;  %v1439_v49 = vld [vmem:[%s2079_s1 + $0x2b0] ss:$8 sps:$4 sm:$0xff]  }
  0x11   :  { %923 = vmatprep.subr.bf16.mxu0 %v1394_v17  ;;  %v21_v46 = vld [vmem:[%s2080_s0] sm:$0xff]  ;;  %v23_v50 = vld [vmem:[%s2080_s0 + $0x10] sm:$0xff] }
  0x12   :  { %v1182_v48 = vcombine.high %v21_v46, %v21_v46  ;;  %v1440_v51 = vld [vmem:[%s2079_s1 + $0xc4] ss:$8 sps:$4 sm:$0xff]   ;;  %v1186_v53 = vcombine.high %v23_v50, %v23_v50  ;;  %v1444_v54 = vld [vmem:[%s2079_s1 + $0xc0] ss:$8 sps:$4 sm:$0xff]   ;;  %v1446_v56 = vld [vmem:[%s2079_s1 + $0xd4] ss:$8 sps:$4 sm:$0xff]   ;;  %v1181_v6 = vcombine.low %v21_v46, %v21_v46  ;;  %v1185_v7 = vcombine.low %v23_v50, %v23_v50 }
  0x13   :  { %842 = vmatpush1.bf16.msra.mxu1 %v1396_v18  ;;  %v1442_v52 = vld [vmem:[%s2079_s1 + $0x2c4] ss:$8 sps:$4 sm:$0xff]   ;;  %v1445_v55 = vld [vmem:[%s2079_s1 + $0x2c0] ss:$8 sps:$4 sm:$0xff]   ;;  %v1448_v57 = vld [vmem:[%s2079_s1 + $0x2d4] ss:$8 sps:$4 sm:$0xff]  }
  0x14   :  { %924 = vmatpush1.bf16.msra.mxu0 %v1397_v19  ;;  %843 = vmatprep.subr.bf16.mxu1 %v1398_v20  ;;  %v1450_v58 = vld [vmem:[%s2079_s1 + $0xd0] ss:$8 sps:$4 sm:$0xff]   ;;  %v1452_v60 = vld [vmem:[%s2079_s1 + $0xe4] ss:$8 sps:$4 sm:$0xff]   ;;  %v1456_v62 = vld [vmem:[%s2079_s1 + $0xe0] ss:$8 sps:$4 sm:$0xff]  }
  0x15   :  { %925 = vmatprep.subr.bf16.mxu0 %v1400_v21  ;;  %865 = vmatprep.mubr.bf16.mxu1 %v1182_v48  ;;  %v1451_v59 = vld [vmem:[%s2079_s1 + $0x2d0] ss:$8 sps:$4 sm:$0xff]   ;;  %v1454_v61 = vld [vmem:[%s2079_s1 + $0x2e4] ss:$8 sps:$4 sm:$0xff]   ;;  %v1457_v63 = vld [vmem:[%s2079_s1 + $0x2e0] ss:$8 sps:$4 sm:$0xff]  }
  0x16   :  { %947 = vmatprep.mubr.bf16.mxu0 %v1186_v53  ;;  %v1458_v0 = vld [vmem:[%s2079_s1 + $0xf4] ss:$8 sps:$4 sm:$0xff]   ;;  %v1462_v2 = vld [vmem:[%s2079_s1 + $0xf0] ss:$8 sps:$4 sm:$0xff]   ;;  %v1468_v4 = vld [vmem:[%s2079_s1 + $0x104] ss:$8 sps:$4 sm:$0xff]  }
  0x17   :  { %844 = vmatpush1.bf16.msra.mxu1 %v1402_v22  ;;  %v1460_v1 = vld [vmem:[%s2079_s1 + $0x2f4] ss:$8 sps:$4 sm:$0xff]   ;;  %v1463_v3 = vld [vmem:[%s2079_s1 + $0x2f0] ss:$8 sps:$4 sm:$0xff]   ;;  %v1473_v5 = vld [vmem:[%s2079_s1 + $0x304] ss:$8 sps:$4 sm:$0xff]  }
  0x18   :  { %926 = vmatpush1.bf16.msra.mxu0 %v1403_v23  ;;  %845 = vmatprep.subr.bf16.mxu1 %v1404_v24  ;;  %v1466_v8 = vld [vmem:[%s2079_s1 + $0x100] ss:$8 sps:$4 sm:$0xff]   ;;  %v1476_v10 = vld [vmem:[%s2079_s1 + $0x114] ss:$8 sps:$4 sm:$0xff]   ;;  %v1474_v12 = vld [vmem:[%s2079_s1 + $0x110] ss:$8 sps:$4 sm:$0xff]  }
  0x19   :  { %927 = vmatprep.subr.bf16.mxu0 %v1406_v25  ;;  %v1471_v9 = vld [vmem:[%s2079_s1 + $0x300] ss:$8 sps:$4 sm:$0xff]   ;;  %v1479_v11 = vld [vmem:[%s2079_s1 + $0x314] ss:$8 sps:$4 sm:$0xff]   ;;  %v1477_v13 = vld [vmem:[%s2079_s1 + $0x310] ss:$8 sps:$4 sm:$0xff]  }
  0x1a   :  { %v1482_v14 = vld [vmem:[%s2079_s1 + $0x124] ss:$8 sps:$4 sm:$0xff]   ;;  %v1480_v16 = vld [vmem:[%s2079_s1 + $0x120] ss:$8 sps:$4 sm:$0xff]   ;;  %v1488_v18 = vld [vmem:[%s2079_s1 + $0x134] ss:$8 sps:$4 sm:$0xff]  }
  0x1b   :  { %846 = vmatpush1.bf16.msra.mxu1 %v1408_v26  ;;  %v1485_v15 = vld [vmem:[%s2079_s1 + $0x324] ss:$8 sps:$4 sm:$0xff]   ;;  %v1483_v17 = vld [vmem:[%s2079_s1 + $0x320] ss:$8 sps:$4 sm:$0xff]   ;;  %v1491_v19 = vld [vmem:[%s2079_s1 + $0x334] ss:$8 sps:$4 sm:$0xff]  }
  0x1c   :  { %928 = vmatpush1.bf16.msra.mxu0 %v1409_v27  ;;  %847 = vmatprep.subr.bf16.mxu1 %v1410_v28  ;;  %v1486_v20 = vld [vmem:[%s2079_s1 + $0x130] ss:$8 sps:$4 sm:$0xff]   ;;  %v1494_v22 = vld [vmem:[%s2079_s1 + $0x144] ss:$8 sps:$4 sm:$0xff]   ;;  %v1492_v24 = vld [vmem:[%s2079_s1 + $0x140] ss:$8 sps:$4 sm:$0xff]  }
  0x1d   :  { %929 = vmatprep.subr.bf16.mxu0 %v1412_v29  ;;  %v1489_v21 = vld [vmem:[%s2079_s1 + $0x330] ss:$8 sps:$4 sm:$0xff]   ;;  %v1497_v23 = vld [vmem:[%s2079_s1 + $0x344] ss:$8 sps:$4 sm:$0xff]   ;;  %v1495_v25 = vld [vmem:[%s2079_s1 + $0x340] ss:$8 sps:$4 sm:$0xff]  }
  0x1e   :  { %v1500_v26 = vld [vmem:[%s2079_s1 + $0x154] ss:$8 sps:$4 sm:$0xff]   ;;  %v1498_v28 = vld [vmem:[%s2079_s1 + $0x150] ss:$8 sps:$4 sm:$0xff]   ;;  %v1530_v50 = vld [vmem:[%s2079_s1 + $0x1a4] ss:$8 sps:$4 sm:$0xff]  }
  0x1f   :  { %848 = vmatpush1.bf16.msra.mxu1 %v1414_v30  ;;  %v1503_v27 = vld [vmem:[%s2079_s1 + $0x354] ss:$8 sps:$4 sm:$0xff]   ;;  %v1501_v29 = vld [vmem:[%s2079_s1 + $0x350] ss:$8 sps:$4 sm:$0xff]   ;;  %v1506_v30 = vld [vmem:[%s2079_s1 + $0x164] ss:$8 sps:$4 sm:$0xff]  }
  0x20   :  { %930 = vmatpush1.bf16.msra.mxu0 %v1415_v31  ;;  %849 = vmatprep.subr.bf16.mxu1 %v1416_v32  ;;  %v1509_v31 = vld [vmem:[%s2079_s1 + $0x364] ss:$8 sps:$4 sm:$0xff]   ;;  %v1504_v32 = vld [vmem:[%s2079_s1 + $0x160] ss:$8 sps:$4 sm:$0xff]   ;;  %v1524_v46 = vld [vmem:[%s2079_s1 + $0x194] ss:$8 sps:$4 sm:$0xff]  }
  0x21   :  { %931 = vmatprep.subr.bf16.mxu0 %v1418_v33  ;;  %v1896_v33 = vld [vmem:[%s2080_s0 + $0x8] sm:$0xff]  ;;  %v1522_v48 = vld [vmem:[%s2079_s1 + $0x190] ss:$8 sps:$4 sm:$0xff]  }
  0x22   :  { %v1531_v53 = vld [vmem:[%s2079_s1 + $0x3a0] ss:$8 sps:$4 sm:$0xff]  }
  0x23   :  { %850 = vmatpush1.bf16.msra.mxu1 %v1420_v34  ;;  %v1901_v34 = vld [vmem:[%s2080_s0 + $0x18] sm:$0xff] }
  0x24   :  { %932 = vmatpush1.bf16.msra.mxu0 %v1421_v35  ;;  %851 = vmatprep.subr.bf16.mxu1 %v1422_v36  ;;  %v1507_v35 = vld [vmem:[%s2079_s1 + $0x360] ss:$8 sps:$4 sm:$0xff]   ;;  %v1184_v36 = vcombine.high %v1896_v33, %v1896_v33 }
  0x25   :  { %933 = vmatprep.subr.bf16.mxu0 %v1424_v37  ;;  %v1188_v37 = vcombine.high %v1901_v34, %v1901_v34 }
  0x27   :  { %852 = vmatpush1.bf16.msra.mxu1 %v1426_v38  ;;  %v1512_v38 = vld [vmem:[%s2079_s1 + $0x174] ss:$8 sps:$4 sm:$0xff]  }
  0x28   :  { %934 = vmatpush1.bf16.msra.mxu0 %v1427_v39  ;;  %853 = vmatprep.subr.bf16.mxu1 %v1428_v40  ;;  %v1515_v39 = vld [vmem:[%s2079_s1 + $0x374] ss:$8 sps:$4 sm:$0xff]   ;;  %v1510_v40 = vld [vmem:[%s2079_s1 + $0x170] ss:$8 sps:$4 sm:$0xff]  }
  0x29   :  { %935 = vmatprep.subr.bf16.mxu0 %v1430_v41  ;;  %v1513_v41 = vld [vmem:[%s2079_s1 + $0x370] ss:$8 sps:$4 sm:$0xff]  }
  0x2b   :  { %854 = vmatpush1.bf16.msra.mxu1 %v1432_v42  ;;  %v1518_v42 = vld [vmem:[%s2079_s1 + $0x184] ss:$8 sps:$4 sm:$0xff]  }
  0x2c   :  { %936 = vmatpush1.bf16.msra.mxu0 %v1433_v43  ;;  %855 = vmatprep.subr.bf16.mxu1 %v1434_v44  ;;  %v1521_v43 = vld [vmem:[%s2079_s1 + $0x384] ss:$8 sps:$4 sm:$0xff]   ;;  %v1516_v44 = vld [vmem:[%s2079_s1 + $0x180] ss:$8 sps:$4 sm:$0xff]  }
  0x2d   :  { %937 = vmatprep.subr.bf16.mxu0 %v1436_v45  ;;  %v1519_v45 = vld [vmem:[%s2079_s1 + $0x380] ss:$8 sps:$4 sm:$0xff]  }
  0x2f   :  { %856 = vmatpush1.bf16.msra.mxu1 %v1438_v47  ;;  %v1527_v47 = vld [vmem:[%s2079_s1 + $0x394] ss:$8 sps:$4 sm:$0xff]  }
  0x30   :  { %938 = vmatpush1.bf16.msra.mxu0 %v1439_v49  ;;  %857 = vmatprep.subr.bf16.mxu1 %v1440_v51  ;;  %v1525_v49 = vld [vmem:[%s2079_s1 + $0x390] ss:$8 sps:$4 sm:$0xff]   ;;  %v1533_v51 = vld [vmem:[%s2079_s1 + $0x3a4] ss:$8 sps:$4 sm:$0xff]  }
  0x31   :  { %939 = vmatprep.subr.bf16.mxu0 %v1442_v52  ;;  %v1528_v52 = vld [vmem:[%s2079_s1 + $0x1a0] ss:$8 sps:$4 sm:$0xff]  }
  0x33   :  { %858 = vmatpush1.bf16.msra.mxu1 %v1444_v54  ;;  %v1536_v54 = vld [vmem:[%s2079_s1 + $0x1b4] ss:$8 sps:$4 sm:$0xff]  }
  0x34   :  { %940 = vmatpush1.bf16.msra.mxu0 %v1445_v55  ;;  %859 = vmatprep.subr.bf16.mxu1 %v1446_v56  ;;  %v1539_v55 = vld [vmem:[%s2079_s1 + $0x3b4] ss:$8 sps:$4 sm:$0xff]   ;;  %v1534_v56 = vld [vmem:[%s2079_s1 + $0x1b0] ss:$8 sps:$4 sm:$0xff]  }
  0x35   :  { %941 = vmatprep.subr.bf16.mxu0 %v1448_v57  ;;  %v1537_v57 = vld [vmem:[%s2079_s1 + $0x3b0] ss:$8 sps:$4 sm:$0xff]  }
  0x37   :  { %860 = vmatpush1.bf16.msra.mxu1 %v1450_v58  ;;  %v1542_v58 = vld [vmem:[%s2079_s1 + $0x1c4] ss:$8 sps:$4 sm:$0xff]  }
  0x38   :  { %942 = vmatpush1.bf16.msra.mxu0 %v1451_v59  ;;  %861 = vmatprep.subr.bf16.mxu1 %v1452_v60  ;;  %v1545_v59 = vld [vmem:[%s2079_s1 + $0x3c4] ss:$8 sps:$4 sm:$0xff]   ;;  %v1540_v60 = vld [vmem:[%s2079_s1 + $0x1c0] ss:$8 sps:$4 sm:$0xff]  }
  0x39   :  { %943 = vmatprep.subr.bf16.mxu0 %v1454_v61  ;;  %v1543_v61 = vld [vmem:[%s2079_s1 + $0x3c0] ss:$8 sps:$4 sm:$0xff]  }
  0x3b   :  { %862 = vmatpush1.bf16.msra.mxu1 %v1456_v62  ;;  %v1548_v62 = vld [vmem:[%s2079_s1 + $0x1d4] ss:$8 sps:$4 sm:$0xff]  }
  0x3c   :  { %944 = vmatpush1.bf16.msra.mxu0 %v1457_v63  ;;  %863 = vmatprep.subr.bf16.mxu1 %v1458_v0  ;;  %v1551_v63 = vld [vmem:[%s2079_s1 + $0x3d4] ss:$8 sps:$4 sm:$0xff]   ;;  %v1546_v0 = vld [vmem:[%s2079_s1 + $0x1d0] ss:$8 sps:$4 sm:$0xff]  }
  0x3d   :  { %945 = vmatprep.subr.bf16.mxu0 %v1460_v1  ;;  %v1549_v1 = vld [vmem:[%s2079_s1 + $0x3d0] ss:$8 sps:$4 sm:$0xff]  }
  0x3f   :  { %864 = vmatpush1.bf16.msra.mxu1 %v1462_v2  ;;  %v1554_v2 = vld [vmem:[%s2079_s1 + $0x1e4] ss:$8 sps:$4 sm:$0xff]  }
  0x40   :  { %946 = vmatpush1.bf16.msra.mxu0 %v1463_v3  ;;  %874 = vmatprep.subr.bf16.mxu1 %v1468_v4  ;;  %v1557_v3 = vld [vmem:[%s2079_s1 + $0x3e4] ss:$8 sps:$4 sm:$0xff]   ;;  %v1552_v4 = vld [vmem:[%s2079_s1 + $0x1e0] ss:$8 sps:$4 sm:$0xff]  }
  0x41   :  { %956 = vmatprep.subr.bf16.mxu0 %v1473_v5  ;;  %v1555_v5 = vld [vmem:[%s2079_s1 + $0x3e0] ss:$8 sps:$4 sm:$0xff]  }
  0x42   :  { %866 = vmatmul.mubr.bf16.vlgmr.msra.gmra.mrb[0].mxu1 %v1181_v6  ;;  %v1560_v6 = vld [vmem:[%s2079_s1 + $0x1f4] ss:$8 sps:$4 sm:$0xff]  }
  0x43   :  { %948 = vmatmul.mubr.bf16.vlgmr.msra.gmra.mrb[0].mxu0 %v1185_v7  ;;  %875 = vmatpush1.bf16.msra.mxu1 %v1466_v8  ;;  %v1563_v7 = vld [vmem:[%s2079_s1 + $0x3f4] ss:$8 sps:$4 sm:$0xff]   ;;  %v1558_v8 = vld [vmem:[%s2079_s1 + $0x1f0] ss:$8 sps:$4 sm:$0xff]  }
  0x44   :  { %957 = vmatpush1.bf16.msra.mxu0 %v1471_v9  ;;  %876 = vmatprep.subr.bf16.mxu1 %v1476_v10  ;;  %v1561_v9 = vld [vmem:[%s2079_s1 + $0x3f0] ss:$8 sps:$4 sm:$0xff]   ;;  %v1568_v10 = vld [vmem:[%s2081_s3 + $0x40] sm:$0xff]  }
  0x45   :  { %958 = vmatprep.subr.bf16.mxu0 %v1479_v11  ;;  %906 = vmatprep.mubr.bf16.mxu1 %v1184_v36  ;;  %v1183_v11 = vcombine.low %v1896_v33, %v1896_v33 }
  0x46   :  { %988 = vmatprep.mubr.bf16.mxu0 %v1188_v37 }
  0x47   :  { %877 = vmatpush1.bf16.msra.mxu1 %v1474_v12  ;;  %v1187_v12 = vcombine.low %v1901_v34, %v1901_v34 }
  0x48   :  { %959 = vmatpush1.bf16.msra.mxu0 %v1477_v13  ;;  %878 = vmatprep.subr.bf16.mxu1 %v1482_v14  ;;  %v1569_v13 = vld [vmem:[%s2081_s3] sm:$0xff]   ;;  %v1570_v14 = vld [vmem:[%s2081_s3 + $0x48] sm:$0xff]  }
  0x49   :  { %960 = vmatprep.subr.bf16.mxu0 %v1485_v15  ;;  %v1571_v15 = vld [vmem:[%s2081_s3 + $0x8] sm:$0xff]  }
  0x4b   :  { %879 = vmatpush1.bf16.msra.mxu1 %v1480_v16  ;;  %v1572_v16 = vld [vmem:[%s2081_s3 + $0x50] sm:$0xff]  }
  0x4c   :  { %961 = vmatpush1.bf16.msra.mxu0 %v1483_v17  ;;  %880 = vmatprep.subr.bf16.mxu1 %v1488_v18  ;;  %v1573_v17 = vld [vmem:[%s2081_s3 + $0x10] sm:$0xff]   ;;  %v1574_v18 = vld [vmem:[%s2081_s3 + $0x58] sm:$0xff]  }
  0x4d   :  { %962 = vmatprep.subr.bf16.mxu0 %v1491_v19  ;;  %v1575_v19 = vld [vmem:[%s2081_s3 + $0x18] sm:$0xff]  }
  0x4f   :  { %881 = vmatpush1.bf16.msra.mxu1 %v1486_v20  ;;  %v1576_v20 = vld [vmem:[%s2081_s3 + $0x60] sm:$0xff]  }
  0x50   :  { %963 = vmatpush1.bf16.msra.mxu0 %v1489_v21  ;;  %882 = vmatprep.subr.bf16.mxu1 %v1494_v22  ;;  %v1577_v21 = vld [vmem:[%s2081_s3 + $0x20] sm:$0xff]   ;;  %v1578_v22 = vld [vmem:[%s2081_s3 + $0x68] sm:$0xff]  }
  0x51   :  { %964 = vmatprep.subr.bf16.mxu0 %v1497_v23  ;;  %v1579_v23 = vld [vmem:[%s2081_s3 + $0x28] sm:$0xff]  }
  0x53   :  { %883 = vmatpush1.bf16.msra.mxu1 %v1492_v24  ;;  %v1580_v24 = vld [vmem:[%s2081_s3 + $0x70] sm:$0xff]  }
  0x54   :  { %965 = vmatpush1.bf16.msra.mxu0 %v1495_v25  ;;  %884 = vmatprep.subr.bf16.mxu1 %v1500_v26  ;;  %v1581_v25 = vld [vmem:[%s2081_s3 + $0x30] sm:$0xff]   ;;  %v1582_v26 = vld [vmem:[%s2081_s3 + $0x78] sm:$0xff]  }
  0x55   :  { %966 = vmatprep.subr.bf16.mxu0 %v1503_v27  ;;  %v1583_v27 = vld [vmem:[%s2081_s3 + $0x38] sm:$0xff]  }
  0x57   :  { %885 = vmatpush1.bf16.msra.mxu1 %v1498_v28  ;;  %v155_v28 = vlaneseq }
  0x58   :  { %967 = vmatpush1.bf16.msra.mxu0 %v1501_v29  ;;  %886 = vmatprep.subr.bf16.mxu1 %v1506_v30 }
  0x59   :  { %968 = vmatprep.subr.bf16.mxu0 %v1509_v31  ;;  %v156_v29 = vshrl.u32 %v155_v28, 7  ;;  %v153_v31 = vld [vmem:[%s2082_s2] sm:$0x3] }
  0x5b   :  { %887 = vmatpush1.bf16.msra.mxu1 %v1504_v32  ;;  %v157_v30 = vsub.s32 0, %v156_v29  ;;  %v161_v32 = vsub.s32 1, %v156_v29 }
  0x5c   :  { %969 = vmatpush1.bf16.msra.mxu0 %v1507_v35  ;;  %888 = vmatprep.subr.bf16.mxu1 %v1512_v38 }
  0x5d   :  { %970 = vmatprep.subr.bf16.mxu0 %v1515_v39  ;;  %v158_v33 = vrot.slane %v153_v31, %v157_v30  ;;  %v162_v34 = vrot.slane %v153_v31, %v161_v32 }
  0x5f   :  { %889 = vmatpush1.bf16.msra.mxu1 %v1510_v40 }
  0x60   :  { %971 = vmatpush1.bf16.msra.mxu0 %v1513_v41  ;;  %890 = vmatprep.subr.bf16.mxu1 %v1518_v42 }
  0x61   :  { %972 = vmatprep.subr.bf16.mxu0 %v1521_v43 }
  0x63   :  { %891 = vmatpush1.bf16.msra.mxu1 %v1516_v44 }
  0x64   :  { %973 = vmatpush1.bf16.msra.mxu0 %v1519_v45  ;;  %892 = vmatprep.subr.bf16.mxu1 %v1524_v46 }
  0x65   :  { %974 = vmatprep.subr.bf16.mxu0 %v1527_v47 }
  0x67   :  { %893 = vmatpush1.bf16.msra.mxu1 %v1522_v48 }
  0x68   :  { %975 = vmatpush1.bf16.msra.mxu0 %v1525_v49  ;;  %894 = vmatprep.subr.bf16.mxu1 %v1530_v50 }
  0x69   :  { %976 = vmatprep.subr.bf16.mxu0 %v1533_v51 }
  0x6b   :  { %895 = vmatpush1.bf16.msra.mxu1 %v1528_v52  ;;  %v1317_v52 = vld [vmem:[%s2083_s4] ss:$0 sm:$0xff] }
  0x6c   :  { %977 = vmatpush1.bf16.msra.mxu0 %v1531_v53  ;;  %896 = vmatprep.subr.bf16.mxu1 %v1536_v54 }
  0x6d   :  { %978 = vmatprep.subr.bf16.mxu0 %v1539_v55 }
  0x6f   :  { %897 = vmatpush1.bf16.msra.mxu1 %v1534_v56 }
  0x70   :  { %979 = vmatpush1.bf16.msra.mxu0 %v1537_v57  ;;  %898 = vmatprep.subr.bf16.mxu1 %v1542_v58 }
  0x71   :  { %980 = vmatprep.subr.bf16.mxu0 %v1545_v59 }
  0x73   :  { %899 = vmatpush1.bf16.msra.mxu1 %v1540_v60 }
  0x74   :  { %981 = vmatpush1.bf16.msra.mxu0 %v1543_v61  ;;  %900 = vmatprep.subr.bf16.mxu1 %v1548_v62 }
  0x75   :  { %982 = vmatprep.subr.bf16.mxu0 %v1551_v63 }
  0x77   :  { %901 = vmatpush1.bf16.msra.mxu1 %v1546_v0 }
  0x78   :  { %983 = vmatpush1.bf16.msra.mxu0 %v1549_v1  ;;  %902 = vmatprep.subr.bf16.mxu1 %v1554_v2 }
  0x79   :  { %984 = vmatprep.subr.bf16.mxu0 %v1557_v3 }
  0x7b   :  { %903 = vmatpush1.bf16.msra.mxu1 %v1552_v4 }
  0x7c   :  { %985 = vmatpush1.bf16.msra.mxu0 %v1555_v5  ;;  %904 = vmatprep.subr.bf16.mxu1 %v1560_v6 }
  0x7d   :  { %986 = vmatprep.subr.bf16.mxu0 %v1563_v7 }
  0x7f   :  { %905 = vmatpush1.bf16.msra.mxu1 %v1558_v8 }
  0x80   :  { %987 = vmatpush1.bf16.msra.mxu0 %v1561_v9  ;;  %1334 = vmatprep.subr.bf16.mxu1 %v1568_v10 }
  0x82   :  { %907 = vmatmul.mubr.bf16.vlgmr.msra.gmra.mrb[0].mxu1 %v1183_v11 }
  0x83   :  { %989 = vmatmul.mubr.bf16.vlgmr.msra.gmra.mrb[0].mxu0 %v1187_v12  ;;  %1335 = vmatpush3.bf16.msra.mxu1 %v1569_v13 }
  0x84   :  { %1336 = vmatprep.subr.bf16.mxu1 %v1570_v14 }
  0x87   :  { %1337 = vmatpush3.bf16.msra.mxu1 %v1571_v15 }
  0x88   :  { %1338 = vmatprep.subr.bf16.mxu1 %v1572_v16 }
  0x8b   :  { %1339 = vmatpush3.bf16.msra.mxu1 %v1573_v17 }
  0x8c   :  { %1340 = vmatprep.subr.bf16.mxu1 %v1574_v18 }
  0x8f   :  { %1341 = vmatpush3.bf16.msra.mxu1 %v1575_v19 }
  0x90   :  { %1342 = vmatprep.subr.bf16.mxu1 %v1576_v20 }
  0x93   :  { %1343 = vmatpush3.bf16.msra.mxu1 %v1577_v21 }
  0x94   :  { %1344 = vmatprep.subr.bf16.mxu1 %v1578_v22 }
  0x97   :  { %1345 = vmatpush3.bf16.msra.mxu1 %v1579_v23 }
  0x98   :  { %1346 = vmatprep.subr.bf16.mxu1 %v1580_v24 }
  0x9b   :  { %1347 = vmatpush3.bf16.msra.mxu1 %v1581_v25 }
  0x9c   :  { %1348 = vmatprep.subr.bf16.mxu1 %v1582_v26 }
  0x9f   :  { %1349 = vmatpush3.bf16.msra.mxu1 %v1583_v27 }
 0x155   :  { %v908_v35 = vpop.f32.mrb[0].mxu1 }
 0x156   :  { %v990_v36 = vpop.f32.mrb[0].mxu0  ;;  %v1356_v37 = vadd.f32 %v908_v35, %v158_v33  ;;  %v910_v38 = vpop.f32.mrb[1].mxu1 }
 0x157   :  { %v992_v39 = vpop.f32.mrb[1].mxu0  ;;  %v1358_v40 = vadd.f32 %v910_v38, %v162_v34  ;;  %v912_v41 = vpop.f32.mrb[2].mxu1 }
 0x158   :  { %v994_v42 = vpop.f32.mrb[2].mxu0  ;;  %v1357_v43 = vadd.f32 %v1356_v37, %v990_v36  ;;  %v913_v44 = vpop.f32.mrb[3].mxu1 }
 0x159   :  { %v995_v45 = vpop.f32.mrb[3].mxu0  ;;  %v1359_v46 = vadd.f32 %v1358_v40, %v992_v39 }
 0x15a   :  { %v997_v47 = vmax.f32 %v1357_v43, 0.0 }
 0x15b   :  { %v998_v48 = vmax.f32 %v1359_v46, 0.0 }
 0x15c   :  { %v999_v50 = vpack.c.bf16 %v997_v47, %v997_v47 }
 0x15d   :  { %v1000_v49 = vpack.c.bf16 %v998_v48, %v998_v48 }
 0x15f   :  { %1168 = vmatprep.mubr.bf16.mxu1 %v1000_v49 }
 0x160   :  { %1169 = vmatmul.mubr.bf16.vlgmr.msra.gmra.mrb[4].mxu1 %v999_v50 }
 0x233   :  { %v1350_v51 = vpop.f32.mrb[4].mxu1 }
 0x234   :  { %v1351_v53 = vpop.f32.mrb[5].mxu1 }
 0x235   :  { %v1352_v54 = vadd.f32 %v1351_v53, %v1350_v51  ;;  %v1353_v55 = vpop.f32.mrb[6].mxu1 }
 0x236   :  { %v1354_v56 = vpop.f32.mrb[7].mxu1 }
 0x237   :  { %v1171_v57 = vadd.f32 %v1352_v54, %v1317_v52 }
 0x239   :  { %1176 = vst [vmem:[%s2084_s5] sm:$0xff] %v1171_v57 }

// kernel: factor_vae2_forward.15
= control target key start
LH: loop header
LB: loop body
LE: loop exit
PB: predicated region body
PF: predicated region fallthrough
CT: control target
= control target key end

     0   :  { %v1278_v1 = vmov 0   ;;  %vm56_vm0 = vcmask 1041408   ;;  %vm52_vm1 = vcmask 162816   ;;  %s1747_s1 = inlined_call_operand.vmem [shape: bf16[20,256], index: 1, kind: input, shape index: {}]   ;;  %s1748_s3 = inlined_call_operand.vmem [shape: bf16[256,1024], index: 3, kind: input, shape index: {}]   ;;  %s1749_s0 = inlined_call_operand.vmem [shape: bf16[8,20], index: 0, kind: input, shape index: {}]   ;;  %s1750_s2 = inlined_call_operand.vmem [shape: f32[1,256], index: 2, kind: input, shape index: {}]   ;;  %s1751_s4 = inlined_call_operand.vmem [shape: f32[1,1024], index: 4, kind: input, shape index: {}]   ;;  %s1752_s5 = inlined_call_operand.vmem [shape: bf16[8,1024], index: 5, kind: output, shape index: {}]  }
   0x1   :  { %v24_v0 = vld [vmem:[%s1747_s1 + $0x10] sm:$0x33]  ;;  %95 = vmatprep.mubr.bf16.mxu0 %v1278_v1  ;;  %v1273_v2 = vld [vmem:[%s1747_s1 + $0x4] ss:$8 sps:$4 sm:$0xff]   ;;  %v1276_v4 = vld [vmem:[%s1747_s1] ss:$8 sps:$4 sm:$0xff]  }
   0x2   :  { %v1133_v3 = vcombine.high %v24_v0, %v24_v0  ;;  %v1132_v5 = vcombine.low %v24_v0, %v24_v0  ;;  %v108_v6 = vld [vmem:[%s1748_s3] sm:$0xff]  ;;  %v109_v8 = vld [vmem:[%s1748_s3 + $0x8] sm:$0xff]  ;;  %63 = vmatprep.subr.bf16.mxu0 %v1273_v2 }
   0x3   :  { %v112_v7 = vld [vmem:[%s1748_s3 + $0x20] sm:$0xff]  ;;  %v113_v10 = vld [vmem:[%s1748_s3 + $0x28] sm:$0xff]  ;;  %64 = vmatpush1.bf16.msra.mxu0 %v1276_v4 }
   0x4   :  { %v1137_v9 = vcombine.high %v108_v6, %v112_v7  ;;  %v1136_v11 = vcombine.low %v108_v6, %v112_v7  ;;  %v116_v12 = vld [vmem:[%s1748_s3 + $0x40] sm:$0xff]  ;;  %1134 = vmatprep.subr.msk.bf16.mxu0 %vm56_vm0, %v1133_v3  ;;  %v58_v16 = vsel %vm56_vm0, %v1132_v5, 0  ;;  %v1139_v17 = vcombine.high %v109_v8, %v113_v10  ;;  %v117_v19 = vld [vmem:[%s1748_s3 + $0x48] sm:$0xff] }
   0x5   :  { %v120_v13 = vld [vmem:[%s1748_s3 + $0x60] sm:$0xff]  ;;  %v121_v20 = vld [vmem:[%s1748_s3 + $0x68] sm:$0xff]  ;;  %v1138_v24 = vcombine.low %v109_v8, %v113_v10 }
   0x6   :  { %v1145_v14 = vcombine.high %v116_v12, %v120_v13  ;;  %v124_v15 = vld [vmem:[%s1748_s3 + $0x80] sm:$0xff]  ;;  %918 = vmatprep.subr.bf16.mxu1 %v1137_v9  ;;  %v1144_v21 = vcombine.low %v116_v12, %v120_v13  ;;  %v1147_v27 = vcombine.high %v117_v19, %v121_v20  ;;  %v125_v28 = vld [vmem:[%s1748_s3 + $0x88] sm:$0xff]  ;;  %v1146_v32 = vcombine.low %v117_v19, %v121_v20 }
   0x7   :  { %v128_v18 = vld [vmem:[%s1748_s3 + $0xa0] sm:$0xff]  ;;  %919 = vmatpush1.bf16.msra.mxu1 %v1136_v11  ;;  %66 = vmatpush1.bf16.msra.mxu0 %v58_v16  ;;  %v129_v29 = vld [vmem:[%s1748_s3 + $0xa8] sm:$0xff] }
   0x8   :  { %920 = vmatprep.subr.bf16.mxu1 %v1145_v14  ;;  %v1153_v22 = vcombine.high %v124_v15, %v128_v18  ;;  %v21_v23 = vld [vmem:[%s1749_s0] sm:$0xf]  ;;  %959 = vmatprep.subr.bf16.mxu0 %v1139_v17  ;;  %v1152_v30 = vcombine.low %v124_v15, %v128_v18  ;;  %v1155_v35 = vcombine.high %v125_v28, %v129_v29  ;;  %v133_v36 = vld [vmem:[%s1748_s3 + $0xc8] sm:$0xff] }
   0x9   :  { %v132_v25 = vld [vmem:[%s1748_s3 + $0xc0] sm:$0xff]  ;;  %v137_v37 = vld [vmem:[%s1748_s3 + $0xe8] sm:$0xff]  ;;  %v1154_v40 = vcombine.low %v125_v28, %v129_v29 }
   0xa   :  { %v136_v26 = vld [vmem:[%s1748_s3 + $0xe0] sm:$0xff]  ;;  %1135 = vmatmul.mubr.msk.bf16.vlgmr.msra.gmra.mrb[0].mxu0 %vm52_vm1, %v21_v23  ;;  %v1163_v43 = vcombine.high %v133_v36, %v137_v37  ;;  %v141_v44 = vld [vmem:[%s1748_s3 + $0x108] sm:$0xff]  ;;  %v1162_v48 = vcombine.low %v133_v36, %v137_v37 }
   0xb   :  { %921 = vmatpush1.bf16.msra.mxu1 %v1144_v21  ;;  %v1161_v31 = vcombine.high %v132_v25, %v136_v26  ;;  %960 = vmatpush1.bf16.msra.mxu0 %v1138_v24  ;;  %v140_v33 = vld [vmem:[%s1748_s3 + $0x100] sm:$0xff]  ;;  %v1160_v38 = vcombine.low %v132_v25, %v136_v26  ;;  %v145_v45 = vld [vmem:[%s1748_s3 + $0x128] sm:$0xff] }
   0xc   :  { %922 = vmatprep.subr.bf16.mxu1 %v1153_v22  ;;  %v144_v34 = vld [vmem:[%s1748_s3 + $0x120] sm:$0xff]  ;;  %961 = vmatprep.subr.bf16.mxu0 %v1147_v27  ;;  %v1171_v51 = vcombine.high %v141_v44, %v145_v45  ;;  %v149_v52 = vld [vmem:[%s1748_s3 + $0x148] sm:$0xff]  ;;  %v1170_v56 = vcombine.low %v141_v44, %v145_v45 }
   0xd   :  { %v1169_v39 = vcombine.high %v140_v33, %v144_v34  ;;  %v148_v41 = vld [vmem:[%s1748_s3 + $0x140] sm:$0xff]  ;;  %v1168_v46 = vcombine.low %v140_v33, %v144_v34  ;;  %v153_v53 = vld [vmem:[%s1748_s3 + $0x168] sm:$0xff] }
   0xe   :  { %v152_v42 = vld [vmem:[%s1748_s3 + $0x160] sm:$0xff]  ;;  %v1179_v59 = vcombine.high %v149_v52, %v153_v53  ;;  %v157_v60 = vld [vmem:[%s1748_s3 + $0x188] sm:$0xff]  ;;  %v1178_v0 = vcombine.low %v149_v52, %v153_v53 }
   0xf   :  { %923 = vmatpush1.bf16.msra.mxu1 %v1152_v30  ;;  %962 = vmatpush1.bf16.msra.mxu0 %v1146_v32  ;;  %v1177_v47 = vcombine.high %v148_v41, %v152_v42  ;;  %v156_v49 = vld [vmem:[%s1748_s3 + $0x180] sm:$0xff]  ;;  %v1176_v54 = vcombine.low %v148_v41, %v152_v42  ;;  %v161_v61 = vld [vmem:[%s1748_s3 + $0x1a8] sm:$0xff] }
  0x10   :  { %924 = vmatprep.subr.bf16.mxu1 %v1161_v31  ;;  %963 = vmatprep.subr.bf16.mxu0 %v1155_v35  ;;  %v160_v50 = vld [vmem:[%s1748_s3 + $0x1a0] sm:$0xff]  ;;  %v1187_v3 = vcombine.high %v157_v60, %v161_v61  ;;  %v165_v4 = vld [vmem:[%s1748_s3 + $0x1c8] sm:$0xff]  ;;  %v1186_v8 = vcombine.low %v157_v60, %v161_v61 }
  0x11   :  { %v1185_v55 = vcombine.high %v156_v49, %v160_v50  ;;  %v164_v57 = vld [vmem:[%s1748_s3 + $0x1c0] sm:$0xff]  ;;  %v1184_v62 = vcombine.low %v156_v49, %v160_v50  ;;  %v169_v5 = vld [vmem:[%s1748_s3 + $0x1e8] sm:$0xff] }
  0x12   :  { %v168_v58 = vld [vmem:[%s1748_s3 + $0x1e0] sm:$0xff]  ;;  %v1195_v11 = vcombine.high %v165_v4, %v169_v5  ;;  %v173_v12 = vld [vmem:[%s1748_s3 + $0x208] sm:$0xff]  ;;  %v1194_v16 = vcombine.low %v165_v4, %v169_v5 }
  0x13   :  { %925 = vmatpush1.bf16.msra.mxu1 %v1160_v38  ;;  %964 = vmatpush1.bf16.msra.mxu0 %v1154_v40  ;;  %v1193_v63 = vcombine.high %v164_v57, %v168_v58  ;;  %v172_v1 = vld [vmem:[%s1748_s3 + $0x200] sm:$0xff]  ;;  %v1192_v6 = vcombine.low %v164_v57, %v168_v58  ;;  %v177_v13 = vld [vmem:[%s1748_s3 + $0x228] sm:$0xff] }
  0x14   :  { %926 = vmatprep.subr.bf16.mxu1 %v1169_v39  ;;  %965 = vmatprep.subr.bf16.mxu0 %v1163_v43  ;;  %v176_v2 = vld [vmem:[%s1748_s3 + $0x220] sm:$0xff]  ;;  %v1203_v19 = vcombine.high %v173_v12, %v177_v13  ;;  %v181_v20 = vld [vmem:[%s1748_s3 + $0x248] sm:$0xff]  ;;  %v1202_v24 = vcombine.low %v173_v12, %v177_v13  ;;  %v115_v12 = vld [vmem:[%s1748_s3 + $0x38] sm:$0xff] }
  0x15   :  { %v1201_v7 = vcombine.high %v172_v1, %v176_v2  ;;  %v180_v9 = vld [vmem:[%s1748_s3 + $0x240] sm:$0xff]  ;;  %v1200_v14 = vcombine.low %v172_v1, %v176_v2  ;;  %v185_v21 = vld [vmem:[%s1748_s3 + $0x268] sm:$0xff] }
  0x16   :  { %v184_v10 = vld [vmem:[%s1748_s3 + $0x260] sm:$0xff]  ;;  %v1211_v27 = vcombine.high %v181_v20, %v185_v21  ;;  %v189_v28 = vld [vmem:[%s1748_s3 + $0x288] sm:$0xff]  ;;  %v1210_v32 = vcombine.low %v181_v20, %v185_v21 }
  0x17   :  { %927 = vmatpush1.bf16.msra.mxu1 %v1168_v46  ;;  %966 = vmatpush1.bf16.msra.mxu0 %v1162_v48  ;;  %v1209_v15 = vcombine.high %v180_v9, %v184_v10  ;;  %v188_v17 = vld [vmem:[%s1748_s3 + $0x280] sm:$0xff]  ;;  %v1208_v22 = vcombine.low %v180_v9, %v184_v10  ;;  %v193_v29 = vld [vmem:[%s1748_s3 + $0x2a8] sm:$0xff]  ;;  %v114_v9 = vld [vmem:[%s1748_s3 + $0x30] sm:$0xff] }
  0x18   :  { %928 = vmatprep.subr.bf16.mxu1 %v1177_v47  ;;  %967 = vmatprep.subr.bf16.mxu0 %v1171_v51  ;;  %v192_v18 = vld [vmem:[%s1748_s3 + $0x2a0] sm:$0xff]  ;;  %v1219_v35 = vcombine.high %v189_v28, %v193_v29  ;;  %v197_v36 = vld [vmem:[%s1748_s3 + $0x2c8] sm:$0xff]  ;;  %v1218_v40 = vcombine.low %v189_v28, %v193_v29  ;;  %v111_v10 = vld [vmem:[%s1748_s3 + $0x18] sm:$0xff] }
  0x19   :  { %v1217_v23 = vcombine.high %v188_v17, %v192_v18  ;;  %v196_v25 = vld [vmem:[%s1748_s3 + $0x2c0] sm:$0xff]  ;;  %v1216_v30 = vcombine.low %v188_v17, %v192_v18  ;;  %v201_v37 = vld [vmem:[%s1748_s3 + $0x2e8] sm:$0xff] }
  0x1a   :  { %v200_v26 = vld [vmem:[%s1748_s3 + $0x2e0] sm:$0xff]  ;;  %v1227_v43 = vcombine.high %v197_v36, %v201_v37  ;;  %v205_v44 = vld [vmem:[%s1748_s3 + $0x308] sm:$0xff]  ;;  %v1226_v48 = vcombine.low %v197_v36, %v201_v37  ;;  %v126_v37 = vld [vmem:[%s1748_s3 + $0x90] sm:$0xff] }
  0x1b   :  { %929 = vmatpush1.bf16.msra.mxu1 %v1176_v54  ;;  %968 = vmatpush1.bf16.msra.mxu0 %v1170_v56  ;;  %v1225_v31 = vcombine.high %v196_v25, %v200_v26  ;;  %v204_v33 = vld [vmem:[%s1748_s3 + $0x300] sm:$0xff]  ;;  %v1224_v38 = vcombine.low %v196_v25, %v200_v26  ;;  %v209_v45 = vld [vmem:[%s1748_s3 + $0x328] sm:$0xff] }
  0x1c   :  { %930 = vmatprep.subr.bf16.mxu1 %v1185_v55  ;;  %969 = vmatprep.subr.bf16.mxu0 %v1179_v59  ;;  %v208_v34 = vld [vmem:[%s1748_s3 + $0x320] sm:$0xff]  ;;  %v1235_v49 = vcombine.high %v205_v44, %v209_v45  ;;  %v213_v50 = vld [vmem:[%s1748_s3 + $0x348] sm:$0xff]  ;;  %v1234_v53 = vcombine.low %v205_v44, %v209_v45 }
  0x1d   :  { %v1233_v39 = vcombine.high %v204_v33, %v208_v34  ;;  %v212_v41 = vld [vmem:[%s1748_s3 + $0x340] sm:$0xff]  ;;  %v1232_v46 = vcombine.low %v204_v33, %v208_v34  ;;  %v217_v51 = vld [vmem:[%s1748_s3 + $0x368] sm:$0xff]  ;;  %v119_v33 = vld [vmem:[%s1748_s3 + $0x58] sm:$0xff] }
  0x1e   :  { %v216_v42 = vld [vmem:[%s1748_s3 + $0x360] sm:$0xff]  ;;  %v1243_v54 = vcombine.high %v213_v50, %v217_v51  ;;  %v1242_v55 = vcombine.low %v213_v50, %v217_v51  ;;  %v221_v58 = vld [vmem:[%s1748_s3 + $0x388] sm:$0xff]  ;;  %v123_v34 = vld [vmem:[%s1748_s3 + $0x78] sm:$0xff] }
  0x1f   :  { %931 = vmatpush1.bf16.msra.mxu1 %v1184_v62  ;;  %970 = vmatpush1.bf16.msra.mxu0 %v1178_v0  ;;  %v1241_v47 = vcombine.high %v212_v41, %v216_v42  ;;  %v1240_v52 = vcombine.low %v212_v41, %v216_v42  ;;  %v220_v56 = vld [vmem:[%s1748_s3 + $0x380] sm:$0xff]  ;;  %v225_v60 = vld [vmem:[%s1748_s3 + $0x3a8] sm:$0xff]  ;;  %v127_v41 = vld [vmem:[%s1748_s3 + $0x98] sm:$0xff]  ;;  %v1150_v44 = vcombine.low %v119_v33, %v123_v34 }
  0x20   :  { %932 = vmatprep.subr.bf16.mxu1 %v1193_v63  ;;  %971 = vmatprep.subr.bf16.mxu0 %v1187_v3  ;;  %v224_v57 = vld [vmem:[%s1748_s3 + $0x3a0] sm:$0xff]  ;;  %v1250_v61 = vcombine.low %v221_v58, %v225_v60  ;;  %v1251_v62 = vcombine.high %v221_v58, %v225_v60  ;;  %v229_v2 = vld [vmem:[%s1748_s3 + $0x3c8] sm:$0xff]  ;;  %v131_v42 = vld [vmem:[%s1748_s3 + $0xb8] sm:$0xff] }
  0x21   :  { %v1249_v59 = vcombine.high %v220_v56, %v224_v57  ;;  %v1248_v63 = vcombine.low %v220_v56, %v224_v57  ;;  %v228_v0 = vld [vmem:[%s1748_s3 + $0x3c0] sm:$0xff]  ;;  %v233_v4 = vld [vmem:[%s1748_s3 + $0x3e8] sm:$0xff]  ;;  %v139_v50 = vld [vmem:[%s1748_s3 + $0xf8] sm:$0xff] }
  0x22   :  { %v232_v1 = vld [vmem:[%s1748_s3 + $0x3e0] sm:$0xff]  ;;  %v1258_v5 = vcombine.low %v229_v2, %v233_v4  ;;  %v146_v56 = vld [vmem:[%s1748_s3 + $0x130] sm:$0xff]  ;;  %v143_v57 = vld [vmem:[%s1748_s3 + $0x118] sm:$0xff] }
  0x23   :  { %933 = vmatpush1.bf16.msra.mxu1 %v1192_v6  ;;  %972 = vmatpush1.bf16.msra.mxu0 %v1186_v8  ;;  %v1257_v3 = vcombine.high %v228_v0, %v232_v1  ;;  %v1259_v6 = vcombine.high %v229_v2, %v233_v4  ;;  %v110_v8 = vld [vmem:[%s1748_s3 + $0x10] sm:$0xff]  ;;  %v147_v58 = vld [vmem:[%s1748_s3 + $0x138] sm:$0xff] }
  0x24   :  { %934 = vmatprep.subr.bf16.mxu1 %v1201_v7  ;;  %973 = vmatprep.subr.bf16.mxu0 %v1195_v11  ;;  %v1256_v7 = vcombine.low %v228_v0, %v232_v1  ;;  %v1141_v11 = vcombine.high %v110_v8, %v114_v9  ;;  %v1140_v13 = vcombine.low %v110_v8, %v114_v9  ;;  %v154_v0 = vld [vmem:[%s1748_s3 + $0x170] sm:$0xff]  ;;  %v151_v1 = vld [vmem:[%s1748_s3 + $0x158] sm:$0xff] }
  0x25   :  { %v155_v2 = vld [vmem:[%s1748_s3 + $0x178] sm:$0xff]  ;;  %v1174_v4 = vcombine.low %v143_v57, %v147_v58  ;;  %v162_v8 = vld [vmem:[%s1748_s3 + $0x1b0] sm:$0xff] }
  0x26   :  { %v159_v9 = vld [vmem:[%s1748_s3 + $0x198] sm:$0xff] }
  0x27   :  { %935 = vmatpush1.bf16.msra.mxu1 %v1200_v14  ;;  %974 = vmatpush1.bf16.msra.mxu0 %v1194_v16  ;;  %v1142_v14 = vcombine.low %v111_v10, %v115_v12  ;;  %v27_v16 = vlaneseq }
  0x28   :  { %936 = vmatprep.subr.bf16.mxu1 %v1209_v15  ;;  %975 = vmatprep.subr.bf16.mxu0 %v1203_v19  ;;  %v1143_v15 = vcombine.high %v111_v10, %v115_v12  ;;  %v25_v19 = vld [vmem:[%s1750_s2] sm:$0x3]  ;;  %v163_v10 = vld [vmem:[%s1748_s3 + $0x1b8] sm:$0xff]  ;;  %v1182_v12 = vcombine.low %v151_v1, %v155_v2 }
  0x29   :  { %v1525_v17 = vshrl.u32 %v27_v16, 7  ;;  %v170_v16 = vld [vmem:[%s1748_s3 + $0x1f0] sm:$0xff] }
  0x2b   :  { %937 = vmatpush1.bf16.msra.mxu1 %v1208_v22  ;;  %976 = vmatpush1.bf16.msra.mxu0 %v1202_v24  ;;  %v29_v18 = vsub.s32 0, %v1525_v17  ;;  %v33_v20 = vsub.s32 1, %v1525_v17 }
  0x2c   :  { %938 = vmatprep.subr.bf16.mxu1 %v1217_v23  ;;  %977 = vmatprep.subr.bf16.mxu0 %v1211_v27 }
  0x2d   :  { %v30_v21 = vrot.slane %v25_v19, %v29_v18  ;;  %v34_v22 = vrot.slane %v25_v19, %v33_v20  ;;  %v167_v19 = vld [vmem:[%s1748_s3 + $0x1d8] sm:$0xff] }
  0x2f   :  { %939 = vmatpush1.bf16.msra.mxu1 %v1216_v30  ;;  %978 = vmatpush1.bf16.msra.mxu0 %v1210_v32  ;;  %v122_v32 = vld [vmem:[%s1748_s3 + $0x70] sm:$0xff] }
  0x30   :  { %940 = vmatprep.subr.bf16.mxu1 %v1225_v31  ;;  %979 = vmatprep.subr.bf16.mxu0 %v1219_v35  ;;  %v118_v31 = vld [vmem:[%s1748_s3 + $0x50] sm:$0xff] }
  0x33   :  { %941 = vmatpush1.bf16.msra.mxu1 %v1224_v38  ;;  %980 = vmatpush1.bf16.msra.mxu0 %v1218_v40  ;;  %v1149_v38 = vcombine.high %v118_v31, %v122_v32  ;;  %v130_v40 = vld [vmem:[%s1748_s3 + $0xb0] sm:$0xff] }
  0x34   :  { %942 = vmatprep.subr.bf16.mxu1 %v1233_v39  ;;  %981 = vmatprep.subr.bf16.mxu0 %v1227_v43  ;;  %v1151_v39 = vcombine.high %v119_v33, %v123_v34  ;;  %v1148_v43 = vcombine.low %v118_v31, %v122_v32  ;;  %v1157_v45 = vcombine.high %v126_v37, %v130_v40  ;;  %v182_v34 = vld [vmem:[%s1748_s3 + $0x250] sm:$0xff] }
  0x35   :  { %v1156_v51 = vcombine.low %v126_v37, %v130_v40  ;;  %v183_v37 = vld [vmem:[%s1748_s3 + $0x258] sm:$0xff] }
  0x37   :  { %943 = vmatpush1.bf16.msra.mxu1 %v1232_v46  ;;  %982 = vmatpush1.bf16.msra.mxu0 %v1226_v48  ;;  %v1159_v46 = vcombine.high %v127_v41, %v131_v42  ;;  %v138_v48 = vld [vmem:[%s1748_s3 + $0xf0] sm:$0xff] }
  0x38   :  { %944 = vmatprep.subr.bf16.mxu1 %v1241_v47  ;;  %983 = vmatprep.subr.bf16.mxu0 %v1235_v49  ;;  %v134_v47 = vld [vmem:[%s1748_s3 + $0xd0] sm:$0xff]  ;;  %v135_v49 = vld [vmem:[%s1748_s3 + $0xd8] sm:$0xff] }
  0x39   :  { %v1166_v60 = vcombine.low %v135_v49, %v139_v50 }
  0x3b   :  { %945 = vmatpush1.bf16.msra.mxu1 %v1240_v52  ;;  %984 = vmatpush1.bf16.msra.mxu0 %v1234_v53  ;;  %v1158_v52 = vcombine.low %v127_v41, %v131_v42  ;;  %v1165_v53 = vcombine.high %v134_v47, %v138_v48 }
  0x3c   :  { %985 = vmatprep.subr.bf16.mxu0 %v1243_v54  ;;  %946 = vmatprep.subr.bf16.mxu1 %v1249_v59  ;;  %v1167_v54 = vcombine.high %v135_v49, %v139_v50  ;;  %v1164_v59 = vcombine.low %v134_v47, %v138_v48 }
  0x3f   :  { %986 = vmatpush1.bf16.msra.mxu0 %v1242_v55  ;;  %947 = vmatpush1.bf16.msra.mxu1 %v1248_v63  ;;  %v142_v55 = vld [vmem:[%s1748_s3 + $0x110] sm:$0xff] }
  0x40   :  { %987 = vmatprep.subr.bf16.mxu0 %v1251_v62  ;;  %948 = vmatprep.subr.bf16.mxu1 %v1257_v3  ;;  %v1175_v62 = vcombine.high %v143_v57, %v147_v58  ;;  %v150_v63 = vld [vmem:[%s1748_s3 + $0x150] sm:$0xff]  ;;  %v1172_v3 = vcombine.low %v142_v55, %v146_v56 }
  0x43   :  { %988 = vmatpush1.bf16.msra.mxu0 %v1250_v61  ;;  %949 = vmatpush1.bf16.msra.mxu1 %v1256_v7  ;;  %v1173_v61 = vcombine.high %v142_v55, %v146_v56  ;;  %v158_v7 = vld [vmem:[%s1748_s3 + $0x190] sm:$0xff] }
  0x44   :  { %989 = vmatprep.subr.bf16.mxu0 %v1259_v6  ;;  %1000 = vmatprep.subr.bf16.mxu1 %v1141_v11  ;;  %v1183_v6 = vcombine.high %v151_v1, %v155_v2  ;;  %v1180_v11 = vcombine.low %v150_v63, %v154_v0 }
  0x47   :  { %990 = vmatpush1.bf16.msra.mxu0 %v1258_v5  ;;  %v1181_v5 = vcombine.high %v150_v63, %v154_v0 }
  0x48   :  { %1041 = vmatprep.subr.bf16.mxu0 %v1143_v15  ;;  %v166_v15 = vld [vmem:[%s1748_s3 + $0x1d0] sm:$0xff] }
  0xdd   :  { %v97_v23 = vpop.f32.mrb[0].mxu0 }
  0xde   :  { %v98_v24 = vadd.f32 %v97_v23, %v30_v21  ;;  %v99_v25 = vpop.f32.mrb[1].mxu0  ;;  %v171_v21 = vld [vmem:[%s1748_s3 + $0x1f8] sm:$0xff]  ;;  %v1190_v23 = vcombine.low %v159_v9, %v163_v10 }
  0xdf   :  { %v100_v26 = vadd.f32 %v99_v25, %v34_v22  ;;  %v101_v27 = vpop.f32.mrb[2].mxu0  ;;  %v1188_v22 = vcombine.low %v158_v7, %v162_v8  ;;  %v1199_v25 = vcombine.high %v167_v19, %v171_v21  ;;  %v1198_v31 = vcombine.low %v167_v19, %v171_v21 }
  0xe0   :  { %v104_v28 = vmax.f32 %v98_v24, 0.0  ;;  %v102_v29 = vpop.f32.mrb[3].mxu0  ;;  %v1197_v24 = vcombine.high %v166_v15, %v170_v16  ;;  %v178_v27 = vld [vmem:[%s1748_s3 + $0x230] sm:$0xff] }
  0xe1   :  { %v105_v30 = vmax.f32 %v100_v26, 0.0  ;;  %v174_v26 = vld [vmem:[%s1748_s3 + $0x210] sm:$0xff]  ;;  %v179_v29 = vld [vmem:[%s1748_s3 + $0x238] sm:$0xff] }
  0xe2   :  { %v1548_v36 = vpack.c.bf16 %v104_v28, %v104_v28  ;;  %v175_v28 = vld [vmem:[%s1748_s3 + $0x218] sm:$0xff]  ;;  %v1205_v32 = vcombine.high %v174_v26, %v178_v27 }
  0xe3   :  { %v107_v35 = vpack.c.bf16 %v105_v30, %v105_v30  ;;  %v1196_v30 = vcombine.low %v166_v15, %v170_v16  ;;  %v1207_v33 = vcombine.high %v175_v28, %v179_v29  ;;  %v1206_v40 = vcombine.low %v175_v28, %v179_v29 }
  0xe5   :  { %950 = vmatprep.mubr.bf16.mxu1 %v107_v35  ;;  %991 = vmatprep.mubr.bf16.mxu0 %v107_v35 }
  0xe6   :  { %951 = vmatmul.mubr.bf16.vlgmr.msra.gmra.mrb[0].mxu1 %v1548_v36  ;;  %992 = vmatmul.mubr.bf16.vlgmr.msra.gmra.mrb[4].mxu0 %v1548_v36 }
  0xe7   :  { %1001 = vmatpush1.bf16.msra.mxu1 %v1140_v13  ;;  %1042 = vmatpush1.bf16.msra.mxu0 %v1142_v14  ;;  %v1189_v13 = vcombine.high %v158_v7, %v162_v8  ;;  %v1191_v14 = vcombine.high %v159_v9, %v163_v10 }
  0xe8   :  { %1032 = vmatprep.mubr.bf16.mxu1 %v107_v35  ;;  %1073 = vmatprep.mubr.bf16.mxu0 %v107_v35  ;;  %v186_v35 = vld [vmem:[%s1748_s3 + $0x270] sm:$0xff] }
  0xe9   :  { %1002 = vmatprep.subr.bf16.mxu1 %v1149_v38  ;;  %1043 = vmatprep.subr.bf16.mxu0 %v1151_v39  ;;  %v187_v38 = vld [vmem:[%s1748_s3 + $0x278] sm:$0xff]  ;;  %v1204_v39 = vcombine.low %v174_v26, %v178_v27  ;;  %v1213_v41 = vcombine.high %v182_v34, %v186_v35  ;;  %v1212_v47 = vcombine.low %v182_v34, %v186_v35  ;;  %v252_v34 = vsub.s32 3, %v1525_v17 }
  0xea   :  { %v1215_v42 = vcombine.high %v183_v37, %v187_v38  ;;  %v1214_v48 = vcombine.low %v183_v37, %v187_v38 }
  0xeb   :  { %1003 = vmatpush1.bf16.msra.mxu1 %v1148_v43  ;;  %1044 = vmatpush1.bf16.msra.mxu0 %v1150_v44  ;;  %v190_v43 = vld [vmem:[%s1748_s3 + $0x290] sm:$0xff] }
  0xec   :  { %1004 = vmatprep.subr.bf16.mxu1 %v1157_v45  ;;  %1045 = vmatprep.subr.bf16.mxu0 %v1159_v46  ;;  %v194_v44 = vld [vmem:[%s1748_s3 + $0x2b0] sm:$0xff]  ;;  %v191_v45 = vld [vmem:[%s1748_s3 + $0x298] sm:$0xff] }
  0xed   :  { %v195_v46 = vld [vmem:[%s1748_s3 + $0x2b8] sm:$0xff]  ;;  %v1221_v49 = vcombine.high %v190_v43, %v194_v44  ;;  %v1220_v55 = vcombine.low %v190_v43, %v194_v44 }
  0xee   :  { %v1223_v50 = vcombine.high %v191_v45, %v195_v46  ;;  %v1222_v56 = vcombine.low %v191_v45, %v195_v46 }
  0xef   :  { %1005 = vmatpush1.bf16.msra.mxu1 %v1156_v51  ;;  %1046 = vmatpush1.bf16.msra.mxu0 %v1158_v52  ;;  %v198_v51 = vld [vmem:[%s1748_s3 + $0x2d0] sm:$0xff] }
  0xf0   :  { %1006 = vmatprep.subr.bf16.mxu1 %v1165_v53  ;;  %1047 = vmatprep.subr.bf16.mxu0 %v1167_v54  ;;  %v202_v52 = vld [vmem:[%s1748_s3 + $0x2f0] sm:$0xff]  ;;  %v199_v53 = vld [vmem:[%s1748_s3 + $0x2d8] sm:$0xff] }
  0xf1   :  { %v203_v54 = vld [vmem:[%s1748_s3 + $0x2f8] sm:$0xff]  ;;  %v1229_v57 = vcombine.high %v198_v51, %v202_v52  ;;  %v1228_v63 = vcombine.low %v198_v51, %v202_v52 }
  0xf2   :  { %v1231_v58 = vcombine.high %v199_v53, %v203_v54  ;;  %v1230_v0 = vcombine.low %v199_v53, %v203_v54 }
  0xf3   :  { %1007 = vmatpush1.bf16.msra.mxu1 %v1164_v59  ;;  %1048 = vmatpush1.bf16.msra.mxu0 %v1166_v60  ;;  %v206_v59 = vld [vmem:[%s1748_s3 + $0x310] sm:$0xff] }
  0xf4   :  { %1008 = vmatprep.subr.bf16.mxu1 %v1173_v61  ;;  %1049 = vmatprep.subr.bf16.mxu0 %v1175_v62  ;;  %v210_v60 = vld [vmem:[%s1748_s3 + $0x330] sm:$0xff]  ;;  %v207_v61 = vld [vmem:[%s1748_s3 + $0x318] sm:$0xff] }
  0xf5   :  { %v211_v62 = vld [vmem:[%s1748_s3 + $0x338] sm:$0xff]  ;;  %v1237_v1 = vcombine.high %v206_v59, %v210_v60  ;;  %v1236_v7 = vcombine.low %v206_v59, %v210_v60 }
  0xf6   :  { %v1239_v2 = vcombine.high %v207_v61, %v211_v62  ;;  %v1238_v8 = vcombine.low %v207_v61, %v211_v62 }
  0xf7   :  { %1009 = vmatpush1.bf16.msra.mxu1 %v1172_v3  ;;  %1050 = vmatpush1.bf16.msra.mxu0 %v1174_v4  ;;  %v214_v3 = vld [vmem:[%s1748_s3 + $0x350] sm:$0xff] }
  0xf8   :  { %1010 = vmatprep.subr.bf16.mxu1 %v1181_v5  ;;  %1051 = vmatprep.subr.bf16.mxu0 %v1183_v6  ;;  %v218_v4 = vld [vmem:[%s1748_s3 + $0x370] sm:$0xff]  ;;  %v215_v5 = vld [vmem:[%s1748_s3 + $0x358] sm:$0xff] }
  0xf9   :  { %v219_v6 = vld [vmem:[%s1748_s3 + $0x378] sm:$0xff]  ;;  %v1245_v9 = vcombine.high %v214_v3, %v218_v4  ;;  %v1244_v15 = vcombine.low %v214_v3, %v218_v4 }
  0xfa   :  { %v1247_v10 = vcombine.high %v215_v5, %v219_v6  ;;  %v1246_v16 = vcombine.low %v215_v5, %v219_v6 }
  0xfb   :  { %1011 = vmatpush1.bf16.msra.mxu1 %v1180_v11  ;;  %1052 = vmatpush1.bf16.msra.mxu0 %v1182_v12  ;;  %v222_v11 = vld [vmem:[%s1748_s3 + $0x390] sm:$0xff] }
  0xfc   :  { %1012 = vmatprep.subr.bf16.mxu1 %v1189_v13  ;;  %1053 = vmatprep.subr.bf16.mxu0 %v1191_v14  ;;  %v226_v12 = vld [vmem:[%s1748_s3 + $0x3b0] sm:$0xff]  ;;  %v223_v13 = vld [vmem:[%s1748_s3 + $0x398] sm:$0xff] }
  0xfd   :  { %v227_v14 = vld [vmem:[%s1748_s3 + $0x3b8] sm:$0xff]  ;;  %v1253_v19 = vcombine.high %v222_v11, %v226_v12  ;;  %v1252_v26 = vcombine.low %v222_v11, %v226_v12 }
  0xfe   :  { %v1255_v21 = vcombine.high %v223_v13, %v227_v14  ;;  %v1254_v27 = vcombine.low %v223_v13, %v227_v14 }
  0xff   :  { %1013 = vmatpush1.bf16.msra.mxu1 %v1188_v22  ;;  %1054 = vmatpush1.bf16.msra.mxu0 %v1190_v23  ;;  %v230_v22 = vld [vmem:[%s1748_s3 + $0x3d0] sm:$0xff] }
 0x100   :  { %1014 = vmatprep.subr.bf16.mxu1 %v1197_v24  ;;  %1055 = vmatprep.subr.bf16.mxu0 %v1199_v25  ;;  %v234_v23 = vld [vmem:[%s1748_s3 + $0x3f0] sm:$0xff]  ;;  %v231_v24 = vld [vmem:[%s1748_s3 + $0x3d8] sm:$0xff] }
 0x101   :  { %v235_v25 = vld [vmem:[%s1748_s3 + $0x3f8] sm:$0xff]  ;;  %v1261_v28 = vcombine.high %v230_v22, %v234_v23 }
 0x102   :  { %v1263_v29 = vcombine.high %v231_v24, %v235_v25 }
 0x103   :  { %1015 = vmatpush1.bf16.msra.mxu1 %v1196_v30  ;;  %1056 = vmatpush1.bf16.msra.mxu0 %v1198_v31  ;;  %v1260_v30 = vcombine.low %v230_v22, %v234_v23  ;;  %v1262_v31 = vcombine.low %v231_v24, %v235_v25 }
 0x104   :  { %1016 = vmatprep.subr.bf16.mxu1 %v1205_v32  ;;  %1057 = vmatprep.subr.bf16.mxu0 %v1207_v33  ;;  %v248_v32 = vsub.s32 2, %v1525_v17  ;;  %v236_v33 = vld [vmem:[%s1751_s4] sm:$0xff] }
 0x105   :  { %v241_v35 = vrot.slane %v236_v33, %v29_v18  ;;  %v245_v38 = vrot.slane %v236_v33, %v33_v20  ;;  %v256_v20 = vsub.s32 4, %v1525_v17 }
 0x106   :  { %v249_v37 = vrot.slane %v236_v33, %v248_v32 }
 0x107   :  { %1017 = vmatpush1.bf16.msra.mxu1 %v1204_v39  ;;  %1058 = vmatpush1.bf16.msra.mxu0 %v1206_v40  ;;  %v253_v39 = vrot.slane %v236_v33, %v252_v34  ;;  %v257_v59 = vrot.slane %v236_v33, %v256_v20 }
 0x108   :  { %1018 = vmatprep.subr.bf16.mxu1 %v1213_v41  ;;  %1059 = vmatprep.subr.bf16.mxu0 %v1215_v42 }
 0x10b   :  { %1019 = vmatpush1.bf16.msra.mxu1 %v1212_v47  ;;  %1060 = vmatpush1.bf16.msra.mxu0 %v1214_v48 }
 0x10c   :  { %1020 = vmatprep.subr.bf16.mxu1 %v1221_v49  ;;  %1061 = vmatprep.subr.bf16.mxu0 %v1223_v50 }
 0x10f   :  { %1021 = vmatpush1.bf16.msra.mxu1 %v1220_v55  ;;  %1062 = vmatpush1.bf16.msra.mxu0 %v1222_v56  ;;  %v264_v56 = vsub.s32 6, %v1525_v17 }
 0x110   :  { %1022 = vmatprep.subr.bf16.mxu1 %v1229_v57  ;;  %1063 = vmatprep.subr.bf16.mxu0 %v1231_v58  ;;  %v260_v57 = vsub.s32 5, %v1525_v17  ;;  %v268_v58 = vsub.s32 7, %v1525_v17 }
 0x111   :  { %v265_v60 = vrot.slane %v236_v33, %v264_v56 }
 0x112   :  { %v261_v61 = vrot.slane %v236_v33, %v260_v57  ;;  %v269_v62 = vrot.slane %v236_v33, %v268_v58 }
 0x113   :  { %1023 = vmatpush1.bf16.msra.mxu1 %v1228_v63  ;;  %1064 = vmatpush1.bf16.msra.mxu0 %v1230_v0 }
 0x114   :  { %1024 = vmatprep.subr.bf16.mxu1 %v1237_v1  ;;  %1065 = vmatprep.subr.bf16.mxu0 %v1239_v2 }
 0x117   :  { %1025 = vmatpush1.bf16.msra.mxu1 %v1236_v7  ;;  %1066 = vmatpush1.bf16.msra.mxu0 %v1238_v8 }
 0x118   :  { %1026 = vmatprep.subr.bf16.mxu1 %v1245_v9  ;;  %1067 = vmatprep.subr.bf16.mxu0 %v1247_v10 }
 0x11b   :  { %1027 = vmatpush1.bf16.msra.mxu1 %v1244_v15  ;;  %1068 = vmatpush1.bf16.msra.mxu0 %v1246_v16 }
 0x11c   :  { %1028 = vmatprep.subr.bf16.mxu1 %v1253_v19  ;;  %1069 = vmatprep.subr.bf16.mxu0 %v1255_v21 }
 0x11f   :  { %1029 = vmatpush1.bf16.msra.mxu1 %v1252_v26  ;;  %1070 = vmatpush1.bf16.msra.mxu0 %v1254_v27 }
 0x120   :  { %1030 = vmatprep.subr.bf16.mxu1 %v1261_v28  ;;  %1071 = vmatprep.subr.bf16.mxu0 %v1263_v29 }
 0x123   :  { %1031 = vmatpush1.bf16.msra.mxu1 %v1260_v30  ;;  %1072 = vmatpush1.bf16.msra.mxu0 %v1262_v31 }
 0x126   :  { %1033 = vmatmul.mubr.bf16.vlgmr.msra.gmra.mrb[4].mxu1 %v1548_v36  ;;  %1074 = vmatmul.mubr.bf16.vlgmr.msra.gmra.mrb[8].mxu0 %v1548_v36 }
 0x1b9   :  { %v952_v40 = vpop.f32.mrb[0].mxu1  ;;  %v993_v41 = vpop.f32.mrb[4].mxu0 }
 0x1ba   :  { %v953_v42 = vadd.f32 %v952_v40, %v241_v35  ;;  %v994_v36 = vadd.f32 %v993_v41, %v249_v37  ;;  %v954_v43 = vpop.f32.mrb[1].mxu1  ;;  %v995_v44 = vpop.f32.mrb[5].mxu0 }
 0x1bb   :  { %v955_v45 = vadd.f32 %v954_v43, %v245_v38  ;;  %v996_v46 = vadd.f32 %v995_v44, %v253_v39  ;;  %v956_v47 = vpop.f32.mrb[2].mxu1  ;;  %v997_v48 = vpop.f32.mrb[6].mxu0 }
 0x1bc   :  { %v1082_v49 = vmax.f32 %v953_v42, 0.0  ;;  %v1084_v50 = vmax.f32 %v994_v36, 0.0  ;;  %v957_v51 = vpop.f32.mrb[3].mxu1  ;;  %v998_v52 = vpop.f32.mrb[7].mxu0 }
 0x1bd   :  { %v1083_v18 = vmax.f32 %v955_v45, 0.0  ;;  %v1085_v53 = vmax.f32 %v996_v46, 0.0 }
 0x1bf   :  { %v1268_v54 = vpack.c.bf16 %v1083_v18, %v1082_v49  ;;  %v1269_v55 = vpack.c.bf16 %v1085_v53, %v1084_v50 }
 0x1c1   :  { %1122 = vst [vmem:[%s1752_s5] sm:$0xff] %v1268_v54  ;;  %1123 = vst [vmem:[%s1752_s5 + $0x8] sm:$0xff] %v1269_v55 }
 0x1f9   :  { %v1034_v63 = vpop.f32.mrb[4].mxu1  ;;  %v1075_v0 = vpop.f32.mrb[8].mxu0 }
 0x1fa   :  { %v1035_v1 = vadd.f32 %v1034_v63, %v257_v59  ;;  %v1076_v2 = vadd.f32 %v1075_v0, %v265_v60  ;;  %v1036_v3 = vpop.f32.mrb[5].mxu1  ;;  %v1077_v4 = vpop.f32.mrb[9].mxu0 }
 0x1fb   :  { %v1037_v5 = vadd.f32 %v1036_v3, %v261_v61  ;;  %v1078_v6 = vadd.f32 %v1077_v4, %v269_v62  ;;  %v1038_v7 = vpop.f32.mrb[6].mxu1  ;;  %v1079_v8 = vpop.f32.mrb[10].mxu0 }
 0x1fc   :  { %v1086_v9 = vmax.f32 %v1035_v1, 0.0  ;;  %v1088_v10 = vmax.f32 %v1076_v2, 0.0  ;;  %v1039_v11 = vpop.f32.mrb[7].mxu1  ;;  %v1080_v12 = vpop.f32.mrb[11].mxu0 }
 0x1fd   :  { %v1087_v13 = vmax.f32 %v1037_v5, 0.0  ;;  %v1089_v17 = vmax.f32 %v1078_v6, 0.0 }
 0x1ff   :  { %v1270_v14 = vpack.c.bf16 %v1087_v13, %v1086_v9  ;;  %v1271_v15 = vpack.c.bf16 %v1089_v17, %v1088_v10 }
 0x201   :  { %1124 = vst [vmem:[%s1752_s5 + $0x10] sm:$0xff] %v1270_v14  ;;  %1125 = vst [vmem:[%s1752_s5 + $0x18] sm:$0xff] %v1271_v15 }

// kernel: factor_vae2_forward.16
= control target key start
LH: loop header
LB: loop body
LE: loop exit
PB: predicated region body
PF: predicated region fallthrough
CT: control target
= control target key end

     0   :  { %v56_v40 = vlaneseq  ;;  %s730_s1 = inlined_call_operand.vmem [shape: bf16[256,256], index: 1, kind: input, shape index: {}]   ;;  %s731_s0 = inlined_call_operand.vmem [shape: bf16[64,256], index: 0, kind: input, shape index: {}]   ;;  %s732_s2 = inlined_call_operand.vmem [shape: f32[1,256], index: 2, kind: input, shape index: {}]   ;;  %s733_s3 = inlined_call_operand.vmem [shape: bf16[64,256], index: 3, kind: output, shape index: {}]  }
   0x1   :  { %v503_v0 = vld [vmem:[%s730_s1 + $0x4] ss:$8 sps:$4 sm:$0xff]   ;;  %v505_v1 = vld [vmem:[%s730_s1] ss:$8 sps:$4 sm:$0xff]   ;;  %v506_v2 = vld [vmem:[%s730_s1 + $0x14] ss:$8 sps:$4 sm:$0xff]  }
   0x2   :  { %266 = vmatprep.subr.bf16.mxu0 %v503_v0  ;;  %471 = vmatprep.subr.bf16.mxu1 %v503_v0  ;;  %v508_v3 = vld [vmem:[%s730_s1 + $0x10] ss:$8 sps:$4 sm:$0xff]   ;;  %v509_v4 = vld [vmem:[%s730_s1 + $0x24] ss:$8 sps:$4 sm:$0xff]   ;;  %v511_v5 = vld [vmem:[%s730_s1 + $0x20] ss:$8 sps:$4 sm:$0xff]  }
   0x3   :  { %267 = vmatpush1.bf16.msra.mxu0 %v505_v1  ;;  %487 = vmatpush1.bf16.msra.mxu1 %v505_v1  ;;  %v512_v6 = vld [vmem:[%s730_s1 + $0x34] ss:$8 sps:$4 sm:$0xff]   ;;  %v514_v7 = vld [vmem:[%s730_s1 + $0x30] ss:$8 sps:$4 sm:$0xff]   ;;  %v515_v8 = vld [vmem:[%s730_s1 + $0x44] ss:$8 sps:$4 sm:$0xff]  }
   0x4   :  { %268 = vmatprep.subr.bf16.mxu0 %v506_v2  ;;  %472 = vmatprep.subr.bf16.mxu1 %v506_v2  ;;  %v517_v9 = vld [vmem:[%s730_s1 + $0x40] ss:$8 sps:$4 sm:$0xff]   ;;  %v518_v10 = vld [vmem:[%s730_s1 + $0x54] ss:$8 sps:$4 sm:$0xff]   ;;  %v520_v11 = vld [vmem:[%s730_s1 + $0x50] ss:$8 sps:$4 sm:$0xff]  }
   0x5   :  { %v521_v12 = vld [vmem:[%s730_s1 + $0x64] ss:$8 sps:$4 sm:$0xff]   ;;  %v523_v14 = vld [vmem:[%s730_s1 + $0x60] ss:$8 sps:$4 sm:$0xff]   ;;  %v524_v16 = vld [vmem:[%s730_s1 + $0x74] ss:$8 sps:$4 sm:$0xff]  }
   0x6   :  { %v553_v13 = vld [vmem:[%s731_s0 + $0x4] ss:$8 sps:$4 sm:$0xff]   ;;  %v526_v17 = vld [vmem:[%s730_s1 + $0x70] ss:$8 sps:$4 sm:$0xff]   ;;  %v529_v19 = vld [vmem:[%s730_s1 + $0x80] ss:$8 sps:$4 sm:$0xff]  }
   0x7   :  { %269 = vmatpush1.bf16.msra.mxu0 %v508_v3  ;;  %488 = vmatpush1.bf16.msra.mxu1 %v508_v3  ;;  %v556_v15 = vld [vmem:[%s731_s0 + $0x24] ss:$8 sps:$4 sm:$0xff]   ;;  %v530_v20 = vld [vmem:[%s730_s1 + $0x94] ss:$8 sps:$4 sm:$0xff]   ;;  %v532_v21 = vld [vmem:[%s730_s1 + $0x90] ss:$8 sps:$4 sm:$0xff]  }
   0x8   :  { %270 = vmatprep.subr.bf16.mxu0 %v509_v4  ;;  %473 = vmatprep.subr.bf16.mxu1 %v509_v4  ;;  %v527_v18 = vld [vmem:[%s730_s1 + $0x84] ss:$8 sps:$4 sm:$0xff]   ;;  %v535_v23 = vld [vmem:[%s730_s1 + $0xa0] ss:$8 sps:$4 sm:$0xff]   ;;  %v536_v24 = vld [vmem:[%s730_s1 + $0xb4] ss:$8 sps:$4 sm:$0xff]  }
   0x9   :  { %298 = vmatprep.mubr.bf16.mxu0 %v553_v13  ;;  %318 = vmatprep.mubr.bf16.mxu1 %v556_v15  ;;  %v533_v22 = vld [vmem:[%s730_s1 + $0xa4] ss:$8 sps:$4 sm:$0xff]   ;;  %v538_v25 = vld [vmem:[%s730_s1 + $0xb0] ss:$8 sps:$4 sm:$0xff]   ;;  %v541_v27 = vld [vmem:[%s730_s1 + $0xc0] ss:$8 sps:$4 sm:$0xff]  }
   0xa   :  { %v539_v26 = vld [vmem:[%s730_s1 + $0xc4] ss:$8 sps:$4 sm:$0xff]   ;;  %v542_v28 = vld [vmem:[%s730_s1 + $0xd4] ss:$8 sps:$4 sm:$0xff]   ;;  %v544_v29 = vld [vmem:[%s730_s1 + $0xd0] ss:$8 sps:$4 sm:$0xff]  }
   0xb   :  { %271 = vmatpush1.bf16.msra.mxu0 %v511_v5  ;;  %489 = vmatpush1.bf16.msra.mxu1 %v511_v5  ;;  %v545_v30 = vld [vmem:[%s730_s1 + $0xe4] ss:$8 sps:$4 sm:$0xff]   ;;  %v547_v31 = vld [vmem:[%s730_s1 + $0xe0] ss:$8 sps:$4 sm:$0xff]   ;;  %v548_v32 = vld [vmem:[%s730_s1 + $0xf4] ss:$8 sps:$4 sm:$0xff]  }
   0xc   :  { %272 = vmatprep.subr.bf16.mxu0 %v512_v6  ;;  %474 = vmatprep.subr.bf16.mxu1 %v512_v6  ;;  %v550_v33 = vld [vmem:[%s730_s1 + $0xf0] ss:$8 sps:$4 sm:$0xff]   ;;  %v551_v34 = vld [vmem:[%s731_s0] ss:$8 sps:$4 sm:$0xff]   ;;  %v557_v36 = vld [vmem:[%s731_s0 + $0x14] ss:$8 sps:$4 sm:$0xff]  }
   0xd   :  { %v554_v35 = vld [vmem:[%s731_s0 + $0x20] ss:$8 sps:$4 sm:$0xff]   ;;  %v559_v37 = vld [vmem:[%s731_s0 + $0x34] ss:$8 sps:$4 sm:$0xff]   ;;  %v561_v38 = vld [vmem:[%s731_s0 + $0x10] ss:$8 sps:$4 sm:$0xff]  }
   0xe   :  { %v562_v39 = vld [vmem:[%s731_s0 + $0x30] ss:$8 sps:$4 sm:$0xff]   ;;  %v57_v41 = vshrl.u32 %v56_v40, 7  ;;  %v54_v43 = vld [vmem:[%s732_s2] sm:$0x3] }
   0xf   :  { %273 = vmatpush1.bf16.msra.mxu0 %v514_v7  ;;  %490 = vmatpush1.bf16.msra.mxu1 %v514_v7 }
  0x10   :  { %274 = vmatprep.subr.bf16.mxu0 %v515_v8  ;;  %475 = vmatprep.subr.bf16.mxu1 %v515_v8  ;;  %v58_v42 = vsub.s32 0, %v57_v41  ;;  %v62_v44 = vsub.s32 1, %v57_v41 }
  0x12   :  { %v59_v45 = vrot.slane %v54_v43, %v58_v42  ;;  %v63_v46 = vrot.slane %v54_v43, %v62_v44 }
  0x13   :  { %275 = vmatpush1.bf16.msra.mxu0 %v517_v9  ;;  %491 = vmatpush1.bf16.msra.mxu1 %v517_v9 }
  0x14   :  { %276 = vmatprep.subr.bf16.mxu0 %v518_v10  ;;  %476 = vmatprep.subr.bf16.mxu1 %v518_v10 }
  0x17   :  { %277 = vmatpush1.bf16.msra.mxu0 %v520_v11  ;;  %492 = vmatpush1.bf16.msra.mxu1 %v520_v11 }
  0x18   :  { %278 = vmatprep.subr.bf16.mxu0 %v521_v12  ;;  %477 = vmatprep.subr.bf16.mxu1 %v521_v12 }
  0x1b   :  { %279 = vmatpush1.bf16.msra.mxu0 %v523_v14  ;;  %493 = vmatpush1.bf16.msra.mxu1 %v523_v14 }
  0x1c   :  { %280 = vmatprep.subr.bf16.mxu0 %v524_v16  ;;  %478 = vmatprep.subr.bf16.mxu1 %v524_v16 }
  0x1f   :  { %281 = vmatpush1.bf16.msra.mxu0 %v526_v17  ;;  %494 = vmatpush1.bf16.msra.mxu1 %v526_v17 }
  0x20   :  { %282 = vmatprep.subr.bf16.mxu0 %v527_v18  ;;  %479 = vmatprep.subr.bf16.mxu1 %v527_v18 }
  0x23   :  { %283 = vmatpush1.bf16.msra.mxu0 %v529_v19  ;;  %495 = vmatpush1.bf16.msra.mxu1 %v529_v19 }
  0x24   :  { %284 = vmatprep.subr.bf16.mxu0 %v530_v20  ;;  %480 = vmatprep.subr.bf16.mxu1 %v530_v20 }
  0x27   :  { %285 = vmatpush1.bf16.msra.mxu0 %v532_v21  ;;  %496 = vmatpush1.bf16.msra.mxu1 %v532_v21 }
  0x28   :  { %286 = vmatprep.subr.bf16.mxu0 %v533_v22  ;;  %481 = vmatprep.subr.bf16.mxu1 %v533_v22 }
  0x2b   :  { %287 = vmatpush1.bf16.msra.mxu0 %v535_v23  ;;  %497 = vmatpush1.bf16.msra.mxu1 %v535_v23 }
  0x2c   :  { %288 = vmatprep.subr.bf16.mxu0 %v536_v24  ;;  %482 = vmatprep.subr.bf16.mxu1 %v536_v24 }
  0x2f   :  { %289 = vmatpush1.bf16.msra.mxu0 %v538_v25  ;;  %498 = vmatpush1.bf16.msra.mxu1 %v538_v25 }
  0x30   :  { %290 = vmatprep.subr.bf16.mxu0 %v539_v26  ;;  %483 = vmatprep.subr.bf16.mxu1 %v539_v26 }
  0x33   :  { %291 = vmatpush1.bf16.msra.mxu0 %v541_v27  ;;  %499 = vmatpush1.bf16.msra.mxu1 %v541_v27 }
  0x34   :  { %292 = vmatprep.subr.bf16.mxu0 %v542_v28  ;;  %484 = vmatprep.subr.bf16.mxu1 %v542_v28 }
  0x37   :  { %293 = vmatpush1.bf16.msra.mxu0 %v544_v29  ;;  %500 = vmatpush1.bf16.msra.mxu1 %v544_v29 }
  0x38   :  { %294 = vmatprep.subr.bf16.mxu0 %v545_v30  ;;  %485 = vmatprep.subr.bf16.mxu1 %v545_v30 }
  0x3b   :  { %295 = vmatpush1.bf16.msra.mxu0 %v547_v31  ;;  %501 = vmatpush1.bf16.msra.mxu1 %v547_v31 }
  0x3c   :  { %296 = vmatprep.subr.bf16.mxu0 %v548_v32  ;;  %486 = vmatprep.subr.bf16.mxu1 %v548_v32 }
  0x3f   :  { %297 = vmatpush1.bf16.msra.mxu0 %v550_v33  ;;  %502 = vmatpush1.bf16.msra.mxu1 %v550_v33 }
  0x42   :  { %299 = vmatmul.mubr.bf16.vlgmr.msra.gmra.mrb[0].mxu0 %v551_v34  ;;  %319 = vmatmul.mubr.bf16.vlgmr.msra.gmra.mrb[0].mxu1 %v554_v35 }
  0x43   :  { %308 = vmatprep.mubr.bf16.mxu0 %v557_v36  ;;  %328 = vmatprep.mubr.bf16.mxu1 %v559_v37 }
  0x4a   :  { %309 = vmatmul.mubr.bf16.gmra.mrb[4].mxu0 %v561_v38  ;;  %329 = vmatmul.mubr.bf16.gmra.mrb[4].mxu1 %v562_v39 }
 0x115   :  { %v300_v47 = vpop.f32.mrb[0].mxu0  ;;  %v320_v48 = vpop.f32.mrb[0].mxu1 }
 0x116   :  { %v301_v49 = vadd.f32 %v300_v47, %v59_v45  ;;  %v321_v50 = vadd.f32 %v320_v48, %v59_v45  ;;  %v302_v51 = vpop.f32.mrb[1].mxu0  ;;  %v322_v52 = vpop.f32.mrb[1].mxu1 }
 0x117   :  { %v303_v53 = vadd.f32 %v302_v51, %v63_v46  ;;  %v323_v54 = vadd.f32 %v322_v52, %v63_v46  ;;  %v304_v55 = vpop.f32.mrb[2].mxu0  ;;  %v324_v56 = vpop.f32.mrb[2].mxu1 }
 0x118   :  { %v339_v57 = vmax.f32 %v301_v49, 0.0  ;;  %v347_v58 = vmax.f32 %v321_v50, 0.0  ;;  %v305_v59 = vadd.f32 %v304_v55, %v59_v45  ;;  %v325_v60 = vadd.f32 %v324_v56, %v59_v45  ;;  %v306_v61 = vpop.f32.mrb[3].mxu0  ;;  %v326_v62 = vpop.f32.mrb[3].mxu1 }
 0x119   :  { %v340_v63 = vmax.f32 %v303_v53, 0.0  ;;  %v348_v0 = vmax.f32 %v323_v54, 0.0  ;;  %v307_v1 = vadd.f32 %v306_v61, %v63_v46  ;;  %v327_v2 = vadd.f32 %v326_v62, %v63_v46 }
 0x11a   :  { %v341_v3 = vmax.f32 %v305_v59, 0.0  ;;  %v349_v4 = vmax.f32 %v325_v60, 0.0 }
 0x11b   :  { %v463_v5 = vpack.c.bf16 %v340_v63, %v339_v57  ;;  %v467_v6 = vpack.c.bf16 %v348_v0, %v347_v58  ;;  %v342_v7 = vmax.f32 %v307_v1, 0.0  ;;  %v350_v8 = vmax.f32 %v327_v2, 0.0 }
 0x11d   :  { %403 = vst [vmem:[%s733_s3] sm:$0xff] %v463_v5  ;;  %407 = vst [vmem:[%s733_s3 + $0x20] sm:$0xff] %v467_v6  ;;  %v464_v9 = vpack.c.bf16 %v342_v7, %v341_v3  ;;  %v468_v10 = vpack.c.bf16 %v350_v8, %v349_v4  ;;  %v310_v11 = vpop.f32.mrb[4].mxu0  ;;  %v330_v12 = vpop.f32.mrb[4].mxu1 }
 0x11e   :  { %v311_v13 = vadd.f32 %v310_v11, %v59_v45  ;;  %v331_v14 = vadd.f32 %v330_v12, %v59_v45  ;;  %v312_v15 = vpop.f32.mrb[5].mxu0  ;;  %v332_v16 = vpop.f32.mrb[5].mxu1 }
 0x11f   :  { %404 = vst [vmem:[%s733_s3 + $0x8] sm:$0xff] %v464_v9  ;;  %408 = vst [vmem:[%s733_s3 + $0x28] sm:$0xff] %v468_v10  ;;  %v313_v17 = vadd.f32 %v312_v15, %v63_v46  ;;  %v333_v18 = vadd.f32 %v332_v16, %v63_v46  ;;  %v314_v19 = vpop.f32.mrb[6].mxu0  ;;  %v334_v20 = vpop.f32.mrb[6].mxu1 }
 0x120   :  { %v343_v21 = vmax.f32 %v311_v13, 0.0  ;;  %v351_v22 = vmax.f32 %v331_v14, 0.0  ;;  %v315_v23 = vadd.f32 %v314_v19, %v59_v45  ;;  %v335_v24 = vadd.f32 %v334_v20, %v59_v45  ;;  %v316_v25 = vpop.f32.mrb[7].mxu0  ;;  %v336_v26 = vpop.f32.mrb[7].mxu1 }
 0x121   :  { %v344_v27 = vmax.f32 %v313_v17, 0.0  ;;  %v352_v28 = vmax.f32 %v333_v18, 0.0  ;;  %v317_v29 = vadd.f32 %v316_v25, %v63_v46  ;;  %v337_v30 = vadd.f32 %v336_v26, %v63_v46 }
 0x122   :  { %v345_v31 = vmax.f32 %v315_v23, 0.0  ;;  %v353_v32 = vmax.f32 %v335_v24, 0.0 }
 0x123   :  { %v465_v33 = vpack.c.bf16 %v344_v27, %v343_v21  ;;  %v469_v34 = vpack.c.bf16 %v352_v28, %v351_v22  ;;  %v346_v35 = vmax.f32 %v317_v29, 0.0  ;;  %v354_v36 = vmax.f32 %v337_v30, 0.0 }
 0x125   :  { %405 = vst [vmem:[%s733_s3 + $0x10] sm:$0xff] %v465_v33  ;;  %409 = vst [vmem:[%s733_s3 + $0x30] sm:$0xff] %v469_v34  ;;  %v466_v37 = vpack.c.bf16 %v346_v35, %v345_v31  ;;  %v470_v38 = vpack.c.bf16 %v354_v36, %v353_v32 }
 0x127   :  { %406 = vst [vmem:[%s733_s3 + $0x18] sm:$0xff] %v466_v37  ;;  %410 = vst [vmem:[%s733_s3 + $0x38] sm:$0xff] %v470_v38 }

// kernel: factor_vae2_forward.17
= control target key start
LH: loop header
LB: loop body
LE: loop exit
PB: predicated region body
PF: predicated region fallthrough
CT: control target
= control target key end

     0   :  { %s1028_s1 = inlined_call_operand.vmem [shape: bf16[256,128], index: 1, kind: input, shape index: {}]   ;;  %s1029_s0 = inlined_call_operand.vmem [shape: bf16[176,256], index: 0, kind: input, shape index: {}]   ;;  %s1030_s2 = inlined_call_operand.vmem [shape: f32[1,128], index: 2, kind: input, shape index: {}]   ;;  %s1031_s3 = inlined_call_operand.vmem [shape: bf16[176,128], index: 3, kind: output, shape index: {}]  }
   0x1   :  { %v785_v0 = vld [vmem:[%s1028_s1 + $0x40] sm:$0xff]   ;;  %v787_v2 = vld [vmem:[%s1028_s1 + $0x48] sm:$0xff]   ;;  %v789_v4 = vld [vmem:[%s1028_s1 + $0x50] sm:$0xff]  }
   0x2   :  { %v786_v1 = vld [vmem:[%s1028_s1] sm:$0xff]   ;;  %687 = vmatprep.subr.bf16.mxu0 %v785_v0  ;;  %769 = vmatprep.subr.bf16.mxu1 %v785_v0  ;;  %v788_v3 = vld [vmem:[%s1028_s1 + $0x8] sm:$0xff]   ;;  %v790_v5 = vld [vmem:[%s1028_s1 + $0x10] sm:$0xff]  }
   0x3   :  { %688 = vmatpush3.bf16.msra.mxu0 %v786_v1  ;;  %777 = vmatpush3.bf16.msra.mxu1 %v786_v1  ;;  %v791_v6 = vld [vmem:[%s1028_s1 + $0x58] sm:$0xff]   ;;  %v793_v8 = vld [vmem:[%s1028_s1 + $0x60] sm:$0xff]   ;;  %v795_v10 = vld [vmem:[%s1028_s1 + $0x68] sm:$0xff]  }
   0x4   :  { %689 = vmatprep.subr.bf16.mxu0 %v787_v2  ;;  %770 = vmatprep.subr.bf16.mxu1 %v787_v2  ;;  %v792_v7 = vld [vmem:[%s1028_s1 + $0x18] sm:$0xff]   ;;  %v794_v9 = vld [vmem:[%s1028_s1 + $0x20] sm:$0xff]   ;;  %v796_v13 = vld [vmem:[%s1028_s1 + $0x28] sm:$0xff]  }
   0x5   :  { %v803_v11 = vld [vmem:[%s1029_s0 + $0x4] ss:$8 sps:$4 sm:$0xff]   ;;  %v797_v14 = vld [vmem:[%s1028_s1 + $0x70] sm:$0xff]   ;;  %v799_v16 = vld [vmem:[%s1028_s1 + $0x78] sm:$0xff]  }
   0x6   :  { %v806_v12 = vld [vmem:[%s1029_s0 + $0x64] ss:$8 sps:$4 sm:$0xff]   ;;  %314 = vmatprep.mubr.bf16.mxu0 %v803_v11  ;;  %v798_v15 = vld [vmem:[%s1028_s1 + $0x30] sm:$0xff]   ;;  %v800_v17 = vld [vmem:[%s1028_s1 + $0x38] sm:$0xff]  }
   0x7   :  { %690 = vmatpush3.bf16.msra.mxu0 %v788_v3  ;;  %778 = vmatpush3.bf16.msra.mxu1 %v788_v3  ;;  %v801_v18 = vld [vmem:[%s1029_s0] ss:$8 sps:$4 sm:$0xff]   ;;  %v807_v20 = vld [vmem:[%s1029_s0 + $0x14] ss:$8 sps:$4 sm:$0xff]   ;;  %v809_v22 = vld [vmem:[%s1029_s0 + $0x10] ss:$8 sps:$4 sm:$0xff]  }
   0x8   :  { %691 = vmatprep.subr.bf16.mxu0 %v789_v4  ;;  %771 = vmatprep.subr.bf16.mxu1 %v789_v4  ;;  %v804_v19 = vld [vmem:[%s1029_s0 + $0x60] ss:$8 sps:$4 sm:$0xff]   ;;  %v810_v21 = vld [vmem:[%s1029_s0 + $0x74] ss:$8 sps:$4 sm:$0xff]   ;;  %v812_v23 = vld [vmem:[%s1029_s0 + $0x70] ss:$8 sps:$4 sm:$0xff]  }
   0x9   :  { %362 = vmatprep.mubr.bf16.mxu1 %v806_v12  ;;  %v813_v24 = vld [vmem:[%s1029_s0 + $0x24] ss:$8 sps:$4 sm:$0xff]   ;;  %v815_v26 = vld [vmem:[%s1029_s0 + $0x20] ss:$8 sps:$4 sm:$0xff]   ;;  %v819_v28 = vld [vmem:[%s1029_s0 + $0x34] ss:$8 sps:$4 sm:$0xff]  }
   0xa   :  { %v816_v25 = vld [vmem:[%s1029_s0 + $0x84] ss:$8 sps:$4 sm:$0xff]   ;;  %v818_v27 = vld [vmem:[%s1029_s0 + $0x80] ss:$8 sps:$4 sm:$0xff]   ;;  %v822_v29 = vld [vmem:[%s1029_s0 + $0x94] ss:$8 sps:$4 sm:$0xff]  }
   0xb   :  { %692 = vmatpush3.bf16.msra.mxu0 %v790_v5  ;;  %779 = vmatpush3.bf16.msra.mxu1 %v790_v5  ;;  %v821_v30 = vld [vmem:[%s1029_s0 + $0x30] ss:$8 sps:$4 sm:$0xff]   ;;  %v825_v32 = vld [vmem:[%s1029_s0 + $0x44] ss:$8 sps:$4 sm:$0xff]   ;;  %v827_v34 = vld [vmem:[%s1029_s0 + $0x40] ss:$8 sps:$4 sm:$0xff]  }
   0xc   :  { %693 = vmatprep.subr.bf16.mxu0 %v791_v6  ;;  %772 = vmatprep.subr.bf16.mxu1 %v791_v6  ;;  %v824_v31 = vld [vmem:[%s1029_s0 + $0x90] ss:$8 sps:$4 sm:$0xff]   ;;  %v828_v33 = vld [vmem:[%s1029_s0 + $0xa4] ss:$8 sps:$4 sm:$0xff]   ;;  %v830_v35 = vld [vmem:[%s1029_s0 + $0xa0] ss:$8 sps:$4 sm:$0xff]  }
   0xd   :  { %v831_v36 = vld [vmem:[%s1029_s0 + $0x54] ss:$8 sps:$4 sm:$0xff]   ;;  %v833_v37 = vld [vmem:[%s1029_s0 + $0x50] ss:$8 sps:$4 sm:$0xff]   ;;  %v971_v40 = vld [vmem:[%s1030_s2] ss:$0 sm:$0xff] }
   0xf   :  { %694 = vmatpush3.bf16.msra.mxu0 %v792_v7  ;;  %780 = vmatpush3.bf16.msra.mxu1 %v792_v7 }
  0x10   :  { %695 = vmatprep.subr.bf16.mxu0 %v793_v8  ;;  %773 = vmatprep.subr.bf16.mxu1 %v793_v8 }
  0x13   :  { %696 = vmatpush3.bf16.msra.mxu0 %v794_v9  ;;  %781 = vmatpush3.bf16.msra.mxu1 %v794_v9 }
  0x14   :  { %697 = vmatprep.subr.bf16.mxu0 %v795_v10  ;;  %774 = vmatprep.subr.bf16.mxu1 %v795_v10 }
  0x17   :  { %698 = vmatpush3.bf16.msra.mxu0 %v796_v13  ;;  %782 = vmatpush3.bf16.msra.mxu1 %v796_v13 }
  0x18   :  { %699 = vmatprep.subr.bf16.mxu0 %v797_v14  ;;  %775 = vmatprep.subr.bf16.mxu1 %v797_v14 }
  0x1b   :  { %700 = vmatpush3.bf16.msra.mxu0 %v798_v15  ;;  %783 = vmatpush3.bf16.msra.mxu1 %v798_v15 }
  0x1c   :  { %701 = vmatprep.subr.bf16.mxu0 %v799_v16  ;;  %776 = vmatprep.subr.bf16.mxu1 %v799_v16 }
  0x1f   :  { %702 = vmatpush3.bf16.msra.mxu0 %v800_v17  ;;  %784 = vmatpush3.bf16.msra.mxu1 %v800_v17 }
  0x22   :  { %315 = vmatmul.mubr.bf16.vlgmr.msra.gmra.mrb[0].mxu0 %v801_v18  ;;  %363 = vmatmul.mubr.bf16.vlgmr.msra.gmra.mrb[0].mxu1 %v804_v19 }
  0x23   :  { %322 = vmatprep.mubr.bf16.mxu0 %v807_v20  ;;  %370 = vmatprep.mubr.bf16.mxu1 %v810_v21 }
  0x2a   :  { %323 = vmatmul.mubr.bf16.gmra.mrb[4].mxu0 %v809_v22  ;;  %371 = vmatmul.mubr.bf16.gmra.mrb[4].mxu1 %v812_v23 }
  0x2b   :  { %330 = vmatprep.mubr.bf16.mxu0 %v813_v24  ;;  %378 = vmatprep.mubr.bf16.mxu1 %v816_v25 }
  0x32   :  { %331 = vmatmul.mubr.bf16.gmra.mrb[8].mxu0 %v815_v26  ;;  %379 = vmatmul.mubr.bf16.gmra.mrb[8].mxu1 %v818_v27 }
  0x33   :  { %338 = vmatprep.mubr.bf16.mxu0 %v819_v28  ;;  %386 = vmatprep.mubr.bf16.mxu1 %v822_v29 }
  0x3a   :  { %339 = vmatmul.mubr.bf16.gmra.mrb[12].mxu0 %v821_v30  ;;  %387 = vmatmul.mubr.bf16.gmra.mrb[12].mxu1 %v824_v31 }
  0x3b   :  { %346 = vmatprep.mubr.bf16.mxu0 %v825_v32  ;;  %394 = vmatprep.mubr.bf16.mxu1 %v828_v33 }
  0x42   :  { %347 = vmatmul.mubr.bf16.gmra.mrb[16].mxu0 %v827_v34  ;;  %395 = vmatmul.mubr.bf16.gmra.mrb[16].mxu1 %v830_v35 }
  0x43   :  { %354 = vmatprep.mubr.bf16.mxu0 %v831_v36 }
  0x4a   :  { %355 = vmatmul.mubr.bf16.gmra.mrb[20].mxu0 %v833_v37 }
  0xf5   :  { %v703_v38 = vpop.f32.mrb[0].mxu0  ;;  %v739_v39 = vpop.f32.mrb[0].mxu1 }
  0xf6   :  { %v704_v41 = vpop.f32.mrb[1].mxu0  ;;  %v740_v42 = vpop.f32.mrb[1].mxu1 }
  0xf7   :  { %v705_v43 = vadd.f32 %v704_v41, %v703_v38  ;;  %v706_v44 = vpop.f32.mrb[2].mxu0  ;;  %v741_v45 = vadd.f32 %v740_v42, %v739_v39  ;;  %v742_v46 = vpop.f32.mrb[2].mxu1 }
  0xf8   :  { %v707_v47 = vpop.f32.mrb[3].mxu0  ;;  %v743_v48 = vpop.f32.mrb[3].mxu1 }
  0xf9   :  { %v317_v49 = vadd.f32 %v705_v43, %v971_v40  ;;  %v708_v50 = vadd.f32 %v707_v47, %v706_v44  ;;  %v365_v51 = vadd.f32 %v741_v45, %v971_v40  ;;  %v744_v52 = vadd.f32 %v743_v48, %v742_v46 }
  0xfb   :  { %v320_v53 = vadd.f32 %v708_v50, %v971_v40  ;;  %v415_v54 = vmax.f32 %v365_v51, 0.0  ;;  %v368_v55 = vadd.f32 %v744_v52, %v971_v40  ;;  %v403_v56 = vmax.f32 %v317_v49, 0.0 }
  0xfd   :  { %v404_v57 = vmax.f32 %v320_v53, 0.0  ;;  %v709_v58 = vpop.f32.mrb[4].mxu0  ;;  %v416_v59 = vmax.f32 %v368_v55, 0.0  ;;  %v745_v60 = vpop.f32.mrb[4].mxu1 }
  0xfe   :  { %v710_v61 = vpop.f32.mrb[5].mxu0  ;;  %v746_v62 = vpop.f32.mrb[5].mxu1 }
  0xff   :  { %v625_v63 = vpack.c.bf16 %v404_v57, %v403_v56  ;;  %v655_v0 = vpack.c.bf16 %v416_v59, %v415_v54  ;;  %v711_v1 = vadd.f32 %v710_v61, %v709_v58  ;;  %v712_v2 = vpop.f32.mrb[6].mxu0  ;;  %v747_v3 = vadd.f32 %v746_v62, %v745_v60  ;;  %v748_v4 = vpop.f32.mrb[6].mxu1 }
 0x100   :  { %v713_v5 = vpop.f32.mrb[7].mxu0  ;;  %v749_v6 = vpop.f32.mrb[7].mxu1 }
 0x101   :  { %626 = vst [vmem:[%s1031_s3] sm:$0xff] %v625_v63   ;;  %682 = vst [vmem:[%s1031_s3 + $0x30] sm:$0xff] %v655_v0   ;;  %v325_v7 = vadd.f32 %v711_v1, %v971_v40  ;;  %v714_v8 = vadd.f32 %v713_v5, %v712_v2  ;;  %v373_v9 = vadd.f32 %v747_v3, %v971_v40 }
 0x102   :  { %v750_v10 = vadd.f32 %v749_v6, %v748_v4 }
 0x103   :  { %v328_v11 = vadd.f32 %v714_v8, %v971_v40  ;;  %v417_v12 = vmax.f32 %v373_v9, 0.0  ;;  %v405_v14 = vmax.f32 %v325_v7, 0.0 }
 0x104   :  { %v376_v13 = vadd.f32 %v750_v10, %v971_v40 }
 0x105   :  { %v406_v15 = vmax.f32 %v328_v11, 0.0  ;;  %v715_v16 = vpop.f32.mrb[8].mxu0  ;;  %v751_v18 = vpop.f32.mrb[8].mxu1 }
 0x106   :  { %v418_v17 = vmax.f32 %v376_v13, 0.0  ;;  %v716_v19 = vpop.f32.mrb[9].mxu0  ;;  %v752_v20 = vpop.f32.mrb[9].mxu1 }
 0x107   :  { %v630_v21 = vpack.c.bf16 %v406_v15, %v405_v14  ;;  %v717_v23 = vadd.f32 %v716_v19, %v715_v16  ;;  %v718_v24 = vpop.f32.mrb[10].mxu0  ;;  %v753_v25 = vadd.f32 %v752_v20, %v751_v18  ;;  %v754_v26 = vpop.f32.mrb[10].mxu1 }
 0x108   :  { %v660_v22 = vpack.c.bf16 %v418_v17, %v417_v12  ;;  %v719_v27 = vpop.f32.mrb[11].mxu0  ;;  %v755_v28 = vpop.f32.mrb[11].mxu1 }
 0x109   :  { %677 = vst [vmem:[%s1031_s3 + $0x8] sm:$0xff] %v630_v21   ;;  %v333_v29 = vadd.f32 %v717_v23, %v971_v40  ;;  %v720_v30 = vadd.f32 %v719_v27, %v718_v24  ;;  %v381_v31 = vadd.f32 %v753_v25, %v971_v40  ;;  %v756_v32 = vadd.f32 %v755_v28, %v754_v26 }
 0x10a   :  { %683 = vst [vmem:[%s1031_s3 + $0x38] sm:$0xff] %v660_v22  }
 0x10b   :  { %v336_v33 = vadd.f32 %v720_v30, %v971_v40  ;;  %v419_v34 = vmax.f32 %v381_v31, 0.0  ;;  %v384_v35 = vadd.f32 %v756_v32, %v971_v40  ;;  %v407_v36 = vmax.f32 %v333_v29, 0.0 }
 0x10d   :  { %v408_v37 = vmax.f32 %v336_v33, 0.0  ;;  %v721_v38 = vpop.f32.mrb[12].mxu0  ;;  %v420_v39 = vmax.f32 %v384_v35, 0.0  ;;  %v757_v41 = vpop.f32.mrb[12].mxu1 }
 0x10e   :  { %v722_v42 = vpop.f32.mrb[13].mxu0  ;;  %v758_v43 = vpop.f32.mrb[13].mxu1 }
 0x10f   :  { %v635_v44 = vpack.c.bf16 %v408_v37, %v407_v36  ;;  %v665_v45 = vpack.c.bf16 %v420_v39, %v419_v34  ;;  %v723_v46 = vadd.f32 %v722_v42, %v721_v38  ;;  %v724_v47 = vpop.f32.mrb[14].mxu0  ;;  %v759_v48 = vadd.f32 %v758_v43, %v757_v41  ;;  %v760_v49 = vpop.f32.mrb[14].mxu1 }
 0x110   :  { %v725_v50 = vpop.f32.mrb[15].mxu0  ;;  %v761_v51 = vpop.f32.mrb[15].mxu1 }
 0x111   :  { %678 = vst [vmem:[%s1031_s3 + $0x10] sm:$0xff] %v635_v44   ;;  %684 = vst [vmem:[%s1031_s3 + $0x40] sm:$0xff] %v665_v45   ;;  %v341_v52 = vadd.f32 %v723_v46, %v971_v40  ;;  %v726_v53 = vadd.f32 %v725_v50, %v724_v47  ;;  %v389_v54 = vadd.f32 %v759_v48, %v971_v40 }
 0x112   :  { %v762_v55 = vadd.f32 %v761_v51, %v760_v49 }
 0x113   :  { %v344_v56 = vadd.f32 %v726_v53, %v971_v40  ;;  %v421_v57 = vmax.f32 %v389_v54, 0.0  ;;  %v409_v59 = vmax.f32 %v341_v52, 0.0 }
 0x114   :  { %v392_v58 = vadd.f32 %v762_v55, %v971_v40 }
 0x115   :  { %v410_v60 = vmax.f32 %v344_v56, 0.0  ;;  %v727_v61 = vpop.f32.mrb[16].mxu0  ;;  %v763_v63 = vpop.f32.mrb[16].mxu1 }
 0x116   :  { %v422_v62 = vmax.f32 %v392_v58, 0.0  ;;  %v728_v0 = vpop.f32.mrb[17].mxu0  ;;  %v764_v1 = vpop.f32.mrb[17].mxu1 }
 0x117   :  { %v640_v2 = vpack.c.bf16 %v410_v60, %v409_v59  ;;  %v729_v4 = vadd.f32 %v728_v0, %v727_v61  ;;  %v730_v5 = vpop.f32.mrb[18].mxu0  ;;  %v765_v6 = vadd.f32 %v764_v1, %v763_v63  ;;  %v766_v7 = vpop.f32.mrb[18].mxu1 }
 0x118   :  { %v670_v3 = vpack.c.bf16 %v422_v62, %v421_v57  ;;  %v731_v8 = vpop.f32.mrb[19].mxu0  ;;  %v767_v9 = vpop.f32.mrb[19].mxu1 }
 0x119   :  { %679 = vst [vmem:[%s1031_s3 + $0x18] sm:$0xff] %v640_v2   ;;  %v349_v10 = vadd.f32 %v729_v4, %v971_v40  ;;  %v732_v11 = vadd.f32 %v731_v8, %v730_v5  ;;  %v397_v12 = vadd.f32 %v765_v6, %v971_v40  ;;  %v768_v13 = vadd.f32 %v767_v9, %v766_v7 }
 0x11a   :  { %685 = vst [vmem:[%s1031_s3 + $0x48] sm:$0xff] %v670_v3  }
 0x11b   :  { %v352_v14 = vadd.f32 %v732_v11, %v971_v40  ;;  %v423_v15 = vmax.f32 %v397_v12, 0.0  ;;  %v400_v16 = vadd.f32 %v768_v13, %v971_v40  ;;  %v411_v17 = vmax.f32 %v349_v10, 0.0 }
 0x11d   :  { %v412_v18 = vmax.f32 %v352_v14, 0.0  ;;  %v733_v19 = vpop.f32.mrb[20].mxu0  ;;  %v424_v20 = vmax.f32 %v400_v16, 0.0 }
 0x11e   :  { %v734_v21 = vpop.f32.mrb[21].mxu0 }
 0x11f   :  { %v645_v22 = vpack.c.bf16 %v412_v18, %v411_v17  ;;  %v675_v23 = vpack.c.bf16 %v424_v20, %v423_v15  ;;  %v735_v24 = vadd.f32 %v734_v21, %v733_v19  ;;  %v736_v25 = vpop.f32.mrb[22].mxu0 }
 0x120   :  { %v737_v26 = vpop.f32.mrb[23].mxu0 }
 0x121   :  { %680 = vst [vmem:[%s1031_s3 + $0x20] sm:$0xff] %v645_v22   ;;  %686 = vst [vmem:[%s1031_s3 + $0x50] sm:$0xff] %v675_v23   ;;  %v357_v27 = vadd.f32 %v735_v24, %v971_v40  ;;  %v738_v28 = vadd.f32 %v737_v26, %v736_v25 }
 0x123   :  { %v360_v29 = vadd.f32 %v738_v28, %v971_v40  ;;  %v413_v30 = vmax.f32 %v357_v27, 0.0 }
 0x125   :  { %v414_v31 = vmax.f32 %v360_v29, 0.0 }
 0x127   :  { %v650_v32 = vpack.c.bf16 %v414_v31, %v413_v30 }
 0x129   :  { %681 = vst [vmem:[%s1031_s3 + $0x28] sm:$0xff] %v650_v32  }

// kernel: factor_vae2_forward.18
= control target key start
LH: loop header
LB: loop body
LE: loop exit
PB: predicated region body
PF: predicated region fallthrough
CT: control target
= control target key end

     0   :  { %v1846_v0 = vmov 0.0   ;;  %vm1847_vm0 = vmmov 0   ;;  %s2283_s1 = inlined_call_operand.vmem [shape: bf16[128,128], index: 1, kind: input, shape index: {}]   ;;  %s2284_s0 = inlined_call_operand.vmem [shape: bf16[592,128], index: 0, kind: input, shape index: {}]   ;;  %s2285_s2 = inlined_call_operand.vmem [shape: f32[1,128], index: 2, kind: input, shape index: {}]   ;;  %s2286_s3 = inlined_call_operand.vmem [shape: bf16[592,128], index: 3, kind: output, shape index: {}]  }
   0x1   :  { %1619 = vmatprep.subr.bf16.mxu0 %v1846_v0  ;;  %v1801_v1 = vld [vmem:[%s2283_s1] sm:$0xff]   ;;  %1783 = vmatprep.subr.bf16.mxu1 %v1846_v0  ;;  %v1802_v2 = vld [vmem:[%s2283_s1 + $0x8] sm:$0xff]   ;;  %v1803_v3 = vld [vmem:[%s2283_s1 + $0x10] sm:$0xff]  }
   0x2   :  { %1635 = vmatprep.mubr.msk.bf16.mxu0 %vm1847_vm0, %v1846_v0  ;;  %1711 = vmatprep.mubr.msk.bf16.mxu1 %vm1847_vm0, %v1846_v0  ;;  %v1804_v4 = vld [vmem:[%s2283_s1 + $0x18] sm:$0xff]   ;;  %v1805_v5 = vld [vmem:[%s2283_s1 + $0x20] sm:$0xff]   ;;  %v1806_v6 = vld [vmem:[%s2283_s1 + $0x28] sm:$0xff]  }
   0x3   :  { %1620 = vmatpush3.bf16.msra.mxu0 %v1801_v1  ;;  %1791 = vmatpush3.bf16.msra.mxu1 %v1801_v1  ;;  %v1807_v7 = vld [vmem:[%s2283_s1 + $0x30] sm:$0xff]   ;;  %v1808_v8 = vld [vmem:[%s2283_s1 + $0x38] sm:$0xff]   ;;  %v1809_v9 = vld [vmem:[%s2284_s0] sm:$0xff]  }
   0x4   :  { %1621 = vmatprep.subr.bf16.mxu0 %v1846_v0  ;;  %1784 = vmatprep.subr.bf16.mxu1 %v1846_v0  ;;  %v1810_v10 = vld [vmem:[%s2284_s0 + $0x98] sm:$0xff]   ;;  %v1811_v11 = vld [vmem:[%s2284_s0 + $0x8] sm:$0xff]   ;;  %v1812_v12 = vld [vmem:[%s2284_s0 + $0xa0] sm:$0xff]  }
   0x5   :  { %v1813_v13 = vld [vmem:[%s2284_s0 + $0x10] sm:$0xff]   ;;  %v1814_v14 = vld [vmem:[%s2284_s0 + $0xa8] sm:$0xff]   ;;  %v1815_v15 = vld [vmem:[%s2284_s0 + $0x18] sm:$0xff]  }
   0x6   :  { %v1816_v16 = vld [vmem:[%s2284_s0 + $0xb0] sm:$0xff]   ;;  %v1817_v17 = vld [vmem:[%s2284_s0 + $0x20] sm:$0xff]   ;;  %v1818_v18 = vld [vmem:[%s2284_s0 + $0xb8] sm:$0xff]  }
   0x7   :  { %1622 = vmatpush3.bf16.msra.mxu0 %v1802_v2  ;;  %1792 = vmatpush3.bf16.msra.mxu1 %v1802_v2  ;;  %v1819_v19 = vld [vmem:[%s2284_s0 + $0x28] sm:$0xff]   ;;  %v1820_v20 = vld [vmem:[%s2284_s0 + $0xc0] sm:$0xff]   ;;  %v1821_v21 = vld [vmem:[%s2284_s0 + $0x30] sm:$0xff]  }
   0x8   :  { %1623 = vmatprep.subr.bf16.mxu0 %v1846_v0  ;;  %1785 = vmatprep.subr.bf16.mxu1 %v1846_v0  ;;  %v1822_v22 = vld [vmem:[%s2284_s0 + $0xc8] sm:$0xff]   ;;  %v1823_v23 = vld [vmem:[%s2284_s0 + $0x38] sm:$0xff]   ;;  %v1824_v24 = vld [vmem:[%s2284_s0 + $0xd0] sm:$0xff]  }
   0x9   :  { %v1825_v25 = vld [vmem:[%s2284_s0 + $0x40] sm:$0xff]   ;;  %v1826_v26 = vld [vmem:[%s2284_s0 + $0xd8] sm:$0xff]   ;;  %v1827_v27 = vld [vmem:[%s2284_s0 + $0x48] sm:$0xff]  }
   0xa   :  { %v1828_v28 = vld [vmem:[%s2284_s0 + $0xe0] sm:$0xff]   ;;  %v1829_v29 = vld [vmem:[%s2284_s0 + $0x50] sm:$0xff]   ;;  %v1830_v30 = vld [vmem:[%s2284_s0 + $0xe8] sm:$0xff]  }
   0xb   :  { %1624 = vmatpush3.bf16.msra.mxu0 %v1803_v3  ;;  %1793 = vmatpush3.bf16.msra.mxu1 %v1803_v3  ;;  %v1831_v31 = vld [vmem:[%s2284_s0 + $0x58] sm:$0xff]   ;;  %v1832_v32 = vld [vmem:[%s2284_s0 + $0xf0] sm:$0xff]   ;;  %v1833_v33 = vld [vmem:[%s2284_s0 + $0x60] sm:$0xff]  }
   0xc   :  { %1625 = vmatprep.subr.bf16.mxu0 %v1846_v0  ;;  %1786 = vmatprep.subr.bf16.mxu1 %v1846_v0  ;;  %v1834_v34 = vld [vmem:[%s2284_s0 + $0xf8] sm:$0xff]   ;;  %v1835_v35 = vld [vmem:[%s2284_s0 + $0x68] sm:$0xff]   ;;  %v1836_v36 = vld [vmem:[%s2284_s0 + $0x100] sm:$0xff]  }
   0xd   :  { %v1837_v37 = vld [vmem:[%s2284_s0 + $0x70] sm:$0xff]   ;;  %v1838_v38 = vld [vmem:[%s2284_s0 + $0x108] sm:$0xff]   ;;  %v1839_v39 = vld [vmem:[%s2284_s0 + $0x78] sm:$0xff]  }
   0xe   :  { %v1840_v40 = vld [vmem:[%s2284_s0 + $0x110] sm:$0xff]   ;;  %v1841_v41 = vld [vmem:[%s2284_s0 + $0x80] sm:$0xff]   ;;  %v1842_v42 = vld [vmem:[%s2284_s0 + $0x118] sm:$0xff]  }
   0xf   :  { %1626 = vmatpush3.bf16.msra.mxu0 %v1804_v4  ;;  %1794 = vmatpush3.bf16.msra.mxu1 %v1804_v4  ;;  %v1843_v43 = vld [vmem:[%s2284_s0 + $0x88] sm:$0xff]   ;;  %v1844_v44 = vld [vmem:[%s2284_s0 + $0x120] sm:$0xff]   ;;  %v1845_v45 = vld [vmem:[%s2284_s0 + $0x90] sm:$0xff]  }
  0x10   :  { %1627 = vmatprep.subr.bf16.mxu0 %v1846_v0  ;;  %1787 = vmatprep.subr.bf16.mxu1 %v1846_v0  ;;  %v2096_v46 = vld [vmem:[%s2285_s2] ss:$0 sm:$0xff] }
  0x13   :  { %1628 = vmatpush3.bf16.msra.mxu0 %v1805_v5  ;;  %1795 = vmatpush3.bf16.msra.mxu1 %v1805_v5 }
  0x14   :  { %1629 = vmatprep.subr.bf16.mxu0 %v1846_v0  ;;  %1788 = vmatprep.subr.bf16.mxu1 %v1846_v0 }
  0x17   :  { %1630 = vmatpush3.bf16.msra.mxu0 %v1806_v6  ;;  %1796 = vmatpush3.bf16.msra.mxu1 %v1806_v6 }
  0x18   :  { %1631 = vmatprep.subr.bf16.mxu0 %v1846_v0  ;;  %1789 = vmatprep.subr.bf16.mxu1 %v1846_v0 }
  0x1b   :  { %1632 = vmatpush3.bf16.msra.mxu0 %v1807_v7  ;;  %1797 = vmatpush3.bf16.msra.mxu1 %v1807_v7 }
  0x1c   :  { %1633 = vmatprep.subr.bf16.mxu0 %v1846_v0  ;;  %1790 = vmatprep.subr.bf16.mxu1 %v1846_v0 }
  0x1f   :  { %1634 = vmatpush3.bf16.msra.mxu0 %v1808_v8  ;;  %1798 = vmatpush3.bf16.msra.mxu1 %v1808_v8 }
  0x22   :  { %1636 = vmatmul.mubr.bf16.vlgmr.msra.gmra.mrb[0].mxu0 %v1809_v9  ;;  %1712 = vmatmul.mubr.bf16.vlgmr.msra.gmra.mrb[0].mxu1 %v1810_v10 }
  0x23   :  { %1639 = vmatprep.mubr.msk.bf16.mxu0 %vm1847_vm0, %v1846_v0  ;;  %1715 = vmatprep.mubr.msk.bf16.mxu1 %vm1847_vm0, %v1846_v0 }
  0x2a   :  { %1640 = vmatmul.mubr.bf16.gmra.mrb[4].mxu0 %v1811_v11  ;;  %1716 = vmatmul.mubr.bf16.gmra.mrb[4].mxu1 %v1812_v12 }
  0x2b   :  { %1643 = vmatprep.mubr.msk.bf16.mxu0 %vm1847_vm0, %v1846_v0  ;;  %1719 = vmatprep.mubr.msk.bf16.mxu1 %vm1847_vm0, %v1846_v0 }
  0x32   :  { %1644 = vmatmul.mubr.bf16.gmra.mrb[8].mxu0 %v1813_v13  ;;  %1720 = vmatmul.mubr.bf16.gmra.mrb[8].mxu1 %v1814_v14 }
  0x33   :  { %1647 = vmatprep.mubr.msk.bf16.mxu0 %vm1847_vm0, %v1846_v0  ;;  %1723 = vmatprep.mubr.msk.bf16.mxu1 %vm1847_vm0, %v1846_v0 }
  0x3a   :  { %1648 = vmatmul.mubr.bf16.gmra.mrb[12].mxu0 %v1815_v15  ;;  %1724 = vmatmul.mubr.bf16.gmra.mrb[12].mxu1 %v1816_v16 }
  0x3b   :  { %1651 = vmatprep.mubr.msk.bf16.mxu0 %vm1847_vm0, %v1846_v0  ;;  %1727 = vmatprep.mubr.msk.bf16.mxu1 %vm1847_vm0, %v1846_v0 }
  0x42   :  { %1652 = vmatmul.mubr.bf16.gmra.mrb[16].mxu0 %v1817_v17  ;;  %1728 = vmatmul.mubr.bf16.gmra.mrb[16].mxu1 %v1818_v18 }
  0x43   :  { %1655 = vmatprep.mubr.msk.bf16.mxu0 %vm1847_vm0, %v1846_v0  ;;  %1731 = vmatprep.mubr.msk.bf16.mxu1 %vm1847_vm0, %v1846_v0 }
  0x4a   :  { %1656 = vmatmul.mubr.bf16.gmra.mrb[20].mxu0 %v1819_v19  ;;  %1732 = vmatmul.mubr.bf16.gmra.mrb[20].mxu1 %v1820_v20 }
  0x4b   :  { %1659 = vmatprep.mubr.msk.bf16.mxu0 %vm1847_vm0, %v1846_v0  ;;  %1735 = vmatprep.mubr.msk.bf16.mxu1 %vm1847_vm0, %v1846_v0 }
  0x52   :  { %1660 = vmatmul.mubr.bf16.gmra.mrb[24].mxu0 %v1821_v21  ;;  %1736 = vmatmul.mubr.bf16.gmra.mrb[24].mxu1 %v1822_v22 }
  0x53   :  { %1663 = vmatprep.mubr.msk.bf16.mxu0 %vm1847_vm0, %v1846_v0  ;;  %1739 = vmatprep.mubr.msk.bf16.mxu1 %vm1847_vm0, %v1846_v0 }
  0x5a   :  { %1664 = vmatmul.mubr.bf16.gmra.mrb[28].mxu0 %v1823_v23  ;;  %1740 = vmatmul.mubr.bf16.gmra.mrb[28].mxu1 %v1824_v24 }
  0x5b   :  { %1667 = vmatprep.mubr.msk.bf16.mxu0 %vm1847_vm0, %v1846_v0  ;;  %1743 = vmatprep.mubr.msk.bf16.mxu1 %vm1847_vm0, %v1846_v0 }
  0x62   :  { %1668 = vmatmul.mubr.bf16.gmra.mrb[32].mxu0 %v1825_v25  ;;  %1744 = vmatmul.mubr.bf16.gmra.mrb[32].mxu1 %v1826_v26 }
  0x63   :  { %1671 = vmatprep.mubr.msk.bf16.mxu0 %vm1847_vm0, %v1846_v0  ;;  %1747 = vmatprep.mubr.msk.bf16.mxu1 %vm1847_vm0, %v1846_v0 }
  0x6a   :  { %1672 = vmatmul.mubr.bf16.gmra.mrb[36].mxu0 %v1827_v27  ;;  %1748 = vmatmul.mubr.bf16.gmra.mrb[36].mxu1 %v1828_v28 }
  0x6b   :  { %1675 = vmatprep.mubr.msk.bf16.mxu0 %vm1847_vm0, %v1846_v0  ;;  %1751 = vmatprep.mubr.msk.bf16.mxu1 %vm1847_vm0, %v1846_v0 }
  0x72   :  { %1676 = vmatmul.mubr.bf16.gmra.mrb[40].mxu0 %v1829_v29  ;;  %1752 = vmatmul.mubr.bf16.gmra.mrb[40].mxu1 %v1830_v30 }
  0x73   :  { %1679 = vmatprep.mubr.msk.bf16.mxu0 %vm1847_vm0, %v1846_v0  ;;  %1755 = vmatprep.mubr.msk.bf16.mxu1 %vm1847_vm0, %v1846_v0 }
  0x7a   :  { %1680 = vmatmul.mubr.bf16.gmra.mrb[44].mxu0 %v1831_v31  ;;  %1756 = vmatmul.mubr.bf16.gmra.mrb[44].mxu1 %v1832_v32 }
  0x7b   :  { %1683 = vmatprep.mubr.msk.bf16.mxu0 %vm1847_vm0, %v1846_v0  ;;  %1759 = vmatprep.mubr.msk.bf16.mxu1 %vm1847_vm0, %v1846_v0 }
  0x82   :  { %1684 = vmatmul.mubr.bf16.gmra.mrb[48].mxu0 %v1833_v33  ;;  %1760 = vmatmul.mubr.bf16.gmra.mrb[48].mxu1 %v1834_v34 }
  0x83   :  { %1687 = vmatprep.mubr.msk.bf16.mxu0 %vm1847_vm0, %v1846_v0  ;;  %1763 = vmatprep.mubr.msk.bf16.mxu1 %vm1847_vm0, %v1846_v0 }
  0x8a   :  { %1688 = vmatmul.mubr.bf16.gmra.mrb[52].mxu0 %v1835_v35  ;;  %1764 = vmatmul.mubr.bf16.gmra.mrb[52].mxu1 %v1836_v36 }
  0x8b   :  { %1691 = vmatprep.mubr.msk.bf16.mxu0 %vm1847_vm0, %v1846_v0  ;;  %1767 = vmatprep.mubr.msk.bf16.mxu1 %vm1847_vm0, %v1846_v0 }
  0x92   :  { %1692 = vmatmul.mubr.bf16.gmra.mrb[56].mxu0 %v1837_v37  ;;  %1768 = vmatmul.mubr.bf16.gmra.mrb[56].mxu1 %v1838_v38 }
  0x93   :  { %1695 = vmatprep.mubr.msk.bf16.mxu0 %vm1847_vm0, %v1846_v0  ;;  %1771 = vmatprep.mubr.msk.bf16.mxu1 %vm1847_vm0, %v1846_v0 }
  0x9a   :  { %1696 = vmatmul.mubr.bf16.gmra.mrb[60].mxu0 %v1839_v39  ;;  %1772 = vmatmul.mubr.bf16.gmra.mrb[60].mxu1 %v1840_v40 }
  0x9b   :  { %1699 = vmatprep.mubr.msk.bf16.mxu0 %vm1847_vm0, %v1846_v0  ;;  %1775 = vmatprep.mubr.msk.bf16.mxu1 %vm1847_vm0, %v1846_v0 }
  0xa2   :  { %1700 = vmatmul.mubr.bf16.gmra.mrb[64].mxu0 %v1841_v41  ;;  %1776 = vmatmul.mubr.bf16.gmra.mrb[64].mxu1 %v1842_v42 }
  0xa3   :  { %1703 = vmatprep.mubr.msk.bf16.mxu0 %vm1847_vm0, %v1846_v0  ;;  %1779 = vmatprep.mubr.msk.bf16.mxu1 %vm1847_vm0, %v1846_v0 }
  0xaa   :  { %1704 = vmatmul.mubr.bf16.gmra.mrb[68].mxu0 %v1843_v43  ;;  %1780 = vmatmul.mubr.bf16.gmra.mrb[68].mxu1 %v1844_v44 }
  0xab   :  { %1707 = vmatprep.mubr.msk.bf16.mxu0 %vm1847_vm0, %v1846_v0 }
  0xb2   :  { %1708 = vmatmul.mubr.bf16.gmra.mrb[72].mxu0 %v1845_v45 }
  0xf5   :  { %v416_v47 = vpop.f32.mrb[0].mxu0  ;;  %v568_v48 = vpop.f32.mrb[0].mxu1 }
  0xf6   :  { %v417_v49 = vadd.f32 %v2096_v46, %v416_v47  ;;  %v1637_v50 = vpop.f32.mrb[1].mxu0  ;;  %v569_v51 = vadd.f32 %v2096_v46, %v568_v48  ;;  %v1713_v52 = vpop.f32.mrb[1].mxu1 }
  0xf7   :  { %v419_v53 = vpop.f32.mrb[2].mxu0  ;;  %v571_v54 = vpop.f32.mrb[2].mxu1 }
  0xf8   :  { %v420_v55 = vadd.f32 %v2096_v46, %v419_v53  ;;  %v1638_v56 = vpop.f32.mrb[3].mxu0  ;;  %v749_v57 = vmax.f32 %v569_v51, 0.0  ;;  %v572_v58 = vadd.f32 %v2096_v46, %v571_v54  ;;  %v1714_v59 = vpop.f32.mrb[3].mxu1  ;;  %v711_v60 = vmax.f32 %v417_v49, 0.0 }
  0xfa   :  { %v712_v61 = vmax.f32 %v420_v55, 0.0  ;;  %v750_v62 = vmax.f32 %v572_v58, 0.0 }
  0xfc   :  { %v1356_v63 = vpack.c.bf16 %v712_v61, %v711_v60  ;;  %v1451_v0 = vpack.c.bf16 %v750_v62, %v749_v57 }
  0xfd   :  { %v424_v1 = vpop.f32.mrb[4].mxu0  ;;  %v576_v2 = vpop.f32.mrb[4].mxu1 }
  0xfe   :  { %1357 = vst [vmem:[%s2286_s3] sm:$0xff] %v1356_v63   ;;  %1556 = vst [vmem:[%s2286_s3 + $0x98] sm:$0xff] %v1451_v0   ;;  %v425_v3 = vadd.f32 %v2096_v46, %v424_v1  ;;  %v1641_v4 = vpop.f32.mrb[5].mxu0  ;;  %v577_v5 = vadd.f32 %v2096_v46, %v576_v2  ;;  %v1717_v6 = vpop.f32.mrb[5].mxu1 }
  0xff   :  { %v427_v7 = vpop.f32.mrb[6].mxu0  ;;  %v579_v8 = vpop.f32.mrb[6].mxu1 }
 0x100   :  { %v428_v9 = vadd.f32 %v2096_v46, %v427_v7  ;;  %v1642_v10 = vpop.f32.mrb[7].mxu0  ;;  %v751_v11 = vmax.f32 %v577_v5, 0.0  ;;  %v580_v12 = vadd.f32 %v2096_v46, %v579_v8  ;;  %v1718_v13 = vpop.f32.mrb[7].mxu1  ;;  %v713_v14 = vmax.f32 %v425_v3, 0.0 }
 0x102   :  { %v714_v15 = vmax.f32 %v428_v9, 0.0  ;;  %v752_v16 = vmax.f32 %v580_v12, 0.0 }
 0x104   :  { %v1361_v17 = vpack.c.bf16 %v714_v15, %v713_v14  ;;  %v1456_v18 = vpack.c.bf16 %v752_v16, %v751_v11 }
 0x105   :  { %v432_v19 = vpop.f32.mrb[8].mxu0  ;;  %v584_v20 = vpop.f32.mrb[8].mxu1 }
 0x106   :  { %1538 = vst [vmem:[%s2286_s3 + $0x8] sm:$0xff] %v1361_v17   ;;  %1557 = vst [vmem:[%s2286_s3 + $0xa0] sm:$0xff] %v1456_v18   ;;  %v433_v21 = vadd.f32 %v2096_v46, %v432_v19  ;;  %v1645_v22 = vpop.f32.mrb[9].mxu0  ;;  %v585_v23 = vadd.f32 %v2096_v46, %v584_v20  ;;  %v1721_v24 = vpop.f32.mrb[9].mxu1 }
 0x107   :  { %v435_v25 = vpop.f32.mrb[10].mxu0  ;;  %v587_v26 = vpop.f32.mrb[10].mxu1 }
 0x108   :  { %v436_v27 = vadd.f32 %v2096_v46, %v435_v25  ;;  %v1646_v28 = vpop.f32.mrb[11].mxu0  ;;  %v753_v29 = vmax.f32 %v585_v23, 0.0  ;;  %v588_v30 = vadd.f32 %v2096_v46, %v587_v26  ;;  %v1722_v31 = vpop.f32.mrb[11].mxu1  ;;  %v715_v32 = vmax.f32 %v433_v21, 0.0 }
 0x10a   :  { %v716_v33 = vmax.f32 %v436_v27, 0.0  ;;  %v754_v34 = vmax.f32 %v588_v30, 0.0 }
 0x10c   :  { %v1366_v35 = vpack.c.bf16 %v716_v33, %v715_v32  ;;  %v1461_v36 = vpack.c.bf16 %v754_v34, %v753_v29 }
 0x10d   :  { %v440_v37 = vpop.f32.mrb[12].mxu0  ;;  %v592_v38 = vpop.f32.mrb[12].mxu1 }
 0x10e   :  { %1539 = vst [vmem:[%s2286_s3 + $0x10] sm:$0xff] %v1366_v35   ;;  %1558 = vst [vmem:[%s2286_s3 + $0xa8] sm:$0xff] %v1461_v36   ;;  %v441_v39 = vadd.f32 %v2096_v46, %v440_v37  ;;  %v1649_v40 = vpop.f32.mrb[13].mxu0  ;;  %v593_v41 = vadd.f32 %v2096_v46, %v592_v38  ;;  %v1725_v42 = vpop.f32.mrb[13].mxu1 }
 0x10f   :  { %v443_v43 = vpop.f32.mrb[14].mxu0  ;;  %v595_v44 = vpop.f32.mrb[14].mxu1 }
 0x110   :  { %v444_v45 = vadd.f32 %v2096_v46, %v443_v43  ;;  %v1650_v47 = vpop.f32.mrb[15].mxu0  ;;  %v755_v48 = vmax.f32 %v593_v41, 0.0  ;;  %v596_v49 = vadd.f32 %v2096_v46, %v595_v44  ;;  %v1726_v50 = vpop.f32.mrb[15].mxu1  ;;  %v717_v51 = vmax.f32 %v441_v39, 0.0 }
 0x112   :  { %v718_v52 = vmax.f32 %v444_v45, 0.0  ;;  %v756_v53 = vmax.f32 %v596_v49, 0.0 }
 0x114   :  { %v1371_v54 = vpack.c.bf16 %v718_v52, %v717_v51  ;;  %v1466_v55 = vpack.c.bf16 %v756_v53, %v755_v48 }
 0x115   :  { %v448_v56 = vpop.f32.mrb[16].mxu0  ;;  %v600_v57 = vpop.f32.mrb[16].mxu1 }
 0x116   :  { %1540 = vst [vmem:[%s2286_s3 + $0x18] sm:$0xff] %v1371_v54   ;;  %1559 = vst [vmem:[%s2286_s3 + $0xb0] sm:$0xff] %v1466_v55   ;;  %v449_v58 = vadd.f32 %v2096_v46, %v448_v56  ;;  %v1653_v59 = vpop.f32.mrb[17].mxu0  ;;  %v601_v60 = vadd.f32 %v2096_v46, %v600_v57  ;;  %v1729_v61 = vpop.f32.mrb[17].mxu1 }
 0x117   :  { %v451_v62 = vpop.f32.mrb[18].mxu0  ;;  %v603_v63 = vpop.f32.mrb[18].mxu1 }
 0x118   :  { %v452_v0 = vadd.f32 %v2096_v46, %v451_v62  ;;  %v1654_v1 = vpop.f32.mrb[19].mxu0  ;;  %v757_v2 = vmax.f32 %v601_v60, 0.0  ;;  %v604_v3 = vadd.f32 %v2096_v46, %v603_v63  ;;  %v1730_v4 = vpop.f32.mrb[19].mxu1  ;;  %v719_v5 = vmax.f32 %v449_v58, 0.0 }
 0x11a   :  { %v720_v6 = vmax.f32 %v452_v0, 0.0  ;;  %v758_v7 = vmax.f32 %v604_v3, 0.0 }
 0x11c   :  { %v1376_v8 = vpack.c.bf16 %v720_v6, %v719_v5  ;;  %v1471_v9 = vpack.c.bf16 %v758_v7, %v757_v2 }
 0x11d   :  { %v456_v10 = vpop.f32.mrb[20].mxu0  ;;  %v608_v11 = vpop.f32.mrb[20].mxu1 }
 0x11e   :  { %1541 = vst [vmem:[%s2286_s3 + $0x20] sm:$0xff] %v1376_v8   ;;  %1560 = vst [vmem:[%s2286_s3 + $0xb8] sm:$0xff] %v1471_v9   ;;  %v457_v12 = vadd.f32 %v2096_v46, %v456_v10  ;;  %v1657_v13 = vpop.f32.mrb[21].mxu0  ;;  %v609_v14 = vadd.f32 %v2096_v46, %v608_v11  ;;  %v1733_v15 = vpop.f32.mrb[21].mxu1 }
 0x11f   :  { %v459_v16 = vpop.f32.mrb[22].mxu0  ;;  %v611_v17 = vpop.f32.mrb[22].mxu1 }
 0x120   :  { %v460_v18 = vadd.f32 %v2096_v46, %v459_v16  ;;  %v1658_v19 = vpop.f32.mrb[23].mxu0  ;;  %v759_v20 = vmax.f32 %v609_v14, 0.0  ;;  %v612_v21 = vadd.f32 %v2096_v46, %v611_v17  ;;  %v1734_v22 = vpop.f32.mrb[23].mxu1  ;;  %v721_v23 = vmax.f32 %v457_v12, 0.0 }
 0x122   :  { %v722_v24 = vmax.f32 %v460_v18, 0.0  ;;  %v760_v25 = vmax.f32 %v612_v21, 0.0 }
 0x124   :  { %v1381_v26 = vpack.c.bf16 %v722_v24, %v721_v23  ;;  %v1476_v27 = vpack.c.bf16 %v760_v25, %v759_v20 }
 0x125   :  { %v464_v28 = vpop.f32.mrb[24].mxu0  ;;  %v616_v29 = vpop.f32.mrb[24].mxu1 }
 0x126   :  { %1542 = vst [vmem:[%s2286_s3 + $0x28] sm:$0xff] %v1381_v26   ;;  %1561 = vst [vmem:[%s2286_s3 + $0xc0] sm:$0xff] %v1476_v27   ;;  %v465_v30 = vadd.f32 %v2096_v46, %v464_v28  ;;  %v1661_v31 = vpop.f32.mrb[25].mxu0  ;;  %v617_v32 = vadd.f32 %v2096_v46, %v616_v29  ;;  %v1737_v33 = vpop.f32.mrb[25].mxu1 }
 0x127   :  { %v467_v34 = vpop.f32.mrb[26].mxu0  ;;  %v619_v35 = vpop.f32.mrb[26].mxu1 }
 0x128   :  { %v468_v36 = vadd.f32 %v2096_v46, %v467_v34  ;;  %v1662_v37 = vpop.f32.mrb[27].mxu0  ;;  %v761_v38 = vmax.f32 %v617_v32, 0.0  ;;  %v620_v39 = vadd.f32 %v2096_v46, %v619_v35  ;;  %v1738_v40 = vpop.f32.mrb[27].mxu1  ;;  %v723_v41 = vmax.f32 %v465_v30, 0.0 }
 0x12a   :  { %v724_v42 = vmax.f32 %v468_v36, 0.0  ;;  %v762_v43 = vmax.f32 %v620_v39, 0.0 }
 0x12c   :  { %v1386_v44 = vpack.c.bf16 %v724_v42, %v723_v41  ;;  %v1481_v45 = vpack.c.bf16 %v762_v43, %v761_v38 }
 0x12d   :  { %v472_v47 = vpop.f32.mrb[28].mxu0  ;;  %v624_v48 = vpop.f32.mrb[28].mxu1 }
 0x12e   :  { %1543 = vst [vmem:[%s2286_s3 + $0x30] sm:$0xff] %v1386_v44   ;;  %1562 = vst [vmem:[%s2286_s3 + $0xc8] sm:$0xff] %v1481_v45   ;;  %v473_v49 = vadd.f32 %v2096_v46, %v472_v47  ;;  %v1665_v50 = vpop.f32.mrb[29].mxu0  ;;  %v625_v51 = vadd.f32 %v2096_v46, %v624_v48  ;;  %v1741_v52 = vpop.f32.mrb[29].mxu1 }
 0x12f   :  { %v475_v53 = vpop.f32.mrb[30].mxu0  ;;  %v627_v54 = vpop.f32.mrb[30].mxu1 }
 0x130   :  { %v476_v55 = vadd.f32 %v2096_v46, %v475_v53  ;;  %v1666_v56 = vpop.f32.mrb[31].mxu0  ;;  %v763_v57 = vmax.f32 %v625_v51, 0.0  ;;  %v628_v58 = vadd.f32 %v2096_v46, %v627_v54  ;;  %v1742_v59 = vpop.f32.mrb[31].mxu1  ;;  %v725_v60 = vmax.f32 %v473_v49, 0.0 }
 0x132   :  { %v726_v61 = vmax.f32 %v476_v55, 0.0  ;;  %v764_v62 = vmax.f32 %v628_v58, 0.0 }
 0x134   :  { %v1391_v63 = vpack.c.bf16 %v726_v61, %v725_v60  ;;  %v1486_v0 = vpack.c.bf16 %v764_v62, %v763_v57 }
 0x135   :  { %v480_v1 = vpop.f32.mrb[32].mxu0  ;;  %v632_v2 = vpop.f32.mrb[32].mxu1 }
 0x136   :  { %1544 = vst [vmem:[%s2286_s3 + $0x38] sm:$0xff] %v1391_v63   ;;  %1563 = vst [vmem:[%s2286_s3 + $0xd0] sm:$0xff] %v1486_v0   ;;  %v481_v3 = vadd.f32 %v2096_v46, %v480_v1  ;;  %v1669_v4 = vpop.f32.mrb[33].mxu0  ;;  %v633_v5 = vadd.f32 %v2096_v46, %v632_v2  ;;  %v1745_v6 = vpop.f32.mrb[33].mxu1 }
 0x137   :  { %v483_v7 = vpop.f32.mrb[34].mxu0  ;;  %v635_v8 = vpop.f32.mrb[34].mxu1 }
 0x138   :  { %v484_v9 = vadd.f32 %v2096_v46, %v483_v7  ;;  %v1670_v10 = vpop.f32.mrb[35].mxu0  ;;  %v765_v11 = vmax.f32 %v633_v5, 0.0  ;;  %v636_v12 = vadd.f32 %v2096_v46, %v635_v8  ;;  %v1746_v13 = vpop.f32.mrb[35].mxu1  ;;  %v727_v14 = vmax.f32 %v481_v3, 0.0 }
 0x13a   :  { %v728_v15 = vmax.f32 %v484_v9, 0.0  ;;  %v766_v16 = vmax.f32 %v636_v12, 0.0 }
 0x13c   :  { %v1396_v17 = vpack.c.bf16 %v728_v15, %v727_v14  ;;  %v1491_v18 = vpack.c.bf16 %v766_v16, %v765_v11 }
 0x13d   :  { %v488_v19 = vpop.f32.mrb[36].mxu0  ;;  %v640_v20 = vpop.f32.mrb[36].mxu1 }
 0x13e   :  { %1545 = vst [vmem:[%s2286_s3 + $0x40] sm:$0xff] %v1396_v17   ;;  %1564 = vst [vmem:[%s2286_s3 + $0xd8] sm:$0xff] %v1491_v18   ;;  %v489_v21 = vadd.f32 %v2096_v46, %v488_v19  ;;  %v1673_v22 = vpop.f32.mrb[37].mxu0  ;;  %v641_v23 = vadd.f32 %v2096_v46, %v640_v20  ;;  %v1749_v24 = vpop.f32.mrb[37].mxu1 }
 0x13f   :  { %v491_v25 = vpop.f32.mrb[38].mxu0  ;;  %v643_v26 = vpop.f32.mrb[38].mxu1 }
 0x140   :  { %v492_v27 = vadd.f32 %v2096_v46, %v491_v25  ;;  %v1674_v28 = vpop.f32.mrb[39].mxu0  ;;  %v767_v29 = vmax.f32 %v641_v23, 0.0  ;;  %v644_v30 = vadd.f32 %v2096_v46, %v643_v26  ;;  %v1750_v31 = vpop.f32.mrb[39].mxu1  ;;  %v729_v32 = vmax.f32 %v489_v21, 0.0 }
 0x142   :  { %v730_v33 = vmax.f32 %v492_v27, 0.0  ;;  %v768_v34 = vmax.f32 %v644_v30, 0.0 }
 0x144   :  { %v1401_v35 = vpack.c.bf16 %v730_v33, %v729_v32  ;;  %v1496_v36 = vpack.c.bf16 %v768_v34, %v767_v29 }
 0x145   :  { %v496_v37 = vpop.f32.mrb[40].mxu0  ;;  %v648_v38 = vpop.f32.mrb[40].mxu1 }
 0x146   :  { %1546 = vst [vmem:[%s2286_s3 + $0x48] sm:$0xff] %v1401_v35   ;;  %1565 = vst [vmem:[%s2286_s3 + $0xe0] sm:$0xff] %v1496_v36   ;;  %v497_v39 = vadd.f32 %v2096_v46, %v496_v37  ;;  %v1677_v40 = vpop.f32.mrb[41].mxu0  ;;  %v649_v41 = vadd.f32 %v2096_v46, %v648_v38  ;;  %v1753_v42 = vpop.f32.mrb[41].mxu1 }
 0x147   :  { %v499_v43 = vpop.f32.mrb[42].mxu0  ;;  %v651_v44 = vpop.f32.mrb[42].mxu1 }
 0x148   :  { %v500_v45 = vadd.f32 %v2096_v46, %v499_v43  ;;  %v1678_v47 = vpop.f32.mrb[43].mxu0  ;;  %v769_v48 = vmax.f32 %v649_v41, 0.0  ;;  %v652_v49 = vadd.f32 %v2096_v46, %v651_v44  ;;  %v1754_v50 = vpop.f32.mrb[43].mxu1  ;;  %v731_v51 = vmax.f32 %v497_v39, 0.0 }
 0x14a   :  { %v732_v52 = vmax.f32 %v500_v45, 0.0  ;;  %v770_v53 = vmax.f32 %v652_v49, 0.0 }
 0x14c   :  { %v1406_v54 = vpack.c.bf16 %v732_v52, %v731_v51  ;;  %v1501_v55 = vpack.c.bf16 %v770_v53, %v769_v48 }
 0x14d   :  { %v504_v56 = vpop.f32.mrb[44].mxu0  ;;  %v656_v57 = vpop.f32.mrb[44].mxu1 }
 0x14e   :  { %1547 = vst [vmem:[%s2286_s3 + $0x50] sm:$0xff] %v1406_v54   ;;  %1566 = vst [vmem:[%s2286_s3 + $0xe8] sm:$0xff] %v1501_v55   ;;  %v505_v58 = vadd.f32 %v2096_v46, %v504_v56  ;;  %v1681_v59 = vpop.f32.mrb[45].mxu0  ;;  %v657_v60 = vadd.f32 %v2096_v46, %v656_v57  ;;  %v1757_v61 = vpop.f32.mrb[45].mxu1 }
 0x14f   :  { %v507_v62 = vpop.f32.mrb[46].mxu0  ;;  %v659_v63 = vpop.f32.mrb[46].mxu1 }
 0x150   :  { %v508_v0 = vadd.f32 %v2096_v46, %v507_v62  ;;  %v1682_v1 = vpop.f32.mrb[47].mxu0  ;;  %v771_v2 = vmax.f32 %v657_v60, 0.0  ;;  %v660_v3 = vadd.f32 %v2096_v46, %v659_v63  ;;  %v1758_v4 = vpop.f32.mrb[47].mxu1  ;;  %v733_v5 = vmax.f32 %v505_v58, 0.0 }
 0x152   :  { %v734_v6 = vmax.f32 %v508_v0, 0.0  ;;  %v772_v7 = vmax.f32 %v660_v3, 0.0 }
 0x154   :  { %v1411_v8 = vpack.c.bf16 %v734_v6, %v733_v5  ;;  %v1506_v9 = vpack.c.bf16 %v772_v7, %v771_v2 }
 0x155   :  { %v512_v10 = vpop.f32.mrb[48].mxu0  ;;  %v664_v11 = vpop.f32.mrb[48].mxu1 }
 0x156   :  { %1548 = vst [vmem:[%s2286_s3 + $0x58] sm:$0xff] %v1411_v8   ;;  %1567 = vst [vmem:[%s2286_s3 + $0xf0] sm:$0xff] %v1506_v9   ;;  %v513_v12 = vadd.f32 %v2096_v46, %v512_v10  ;;  %v1685_v13 = vpop.f32.mrb[49].mxu0  ;;  %v665_v14 = vadd.f32 %v2096_v46, %v664_v11  ;;  %v1761_v15 = vpop.f32.mrb[49].mxu1 }
 0x157   :  { %v515_v16 = vpop.f32.mrb[50].mxu0  ;;  %v667_v17 = vpop.f32.mrb[50].mxu1 }
 0x158   :  { %v516_v18 = vadd.f32 %v2096_v46, %v515_v16  ;;  %v1686_v19 = vpop.f32.mrb[51].mxu0  ;;  %v773_v20 = vmax.f32 %v665_v14, 0.0  ;;  %v668_v21 = vadd.f32 %v2096_v46, %v667_v17  ;;  %v1762_v22 = vpop.f32.mrb[51].mxu1  ;;  %v735_v23 = vmax.f32 %v513_v12, 0.0 }
 0x15a   :  { %v736_v24 = vmax.f32 %v516_v18, 0.0  ;;  %v774_v25 = vmax.f32 %v668_v21, 0.0 }
 0x15c   :  { %v1416_v26 = vpack.c.bf16 %v736_v24, %v735_v23  ;;  %v1511_v27 = vpack.c.bf16 %v774_v25, %v773_v20 }
 0x15d   :  { %v520_v28 = vpop.f32.mrb[52].mxu0  ;;  %v672_v29 = vpop.f32.mrb[52].mxu1 }
 0x15e   :  { %1549 = vst [vmem:[%s2286_s3 + $0x60] sm:$0xff] %v1416_v26   ;;  %1568 = vst [vmem:[%s2286_s3 + $0xf8] sm:$0xff] %v1511_v27   ;;  %v521_v30 = vadd.f32 %v2096_v46, %v520_v28  ;;  %v1689_v31 = vpop.f32.mrb[53].mxu0  ;;  %v673_v32 = vadd.f32 %v2096_v46, %v672_v29  ;;  %v1765_v33 = vpop.f32.mrb[53].mxu1 }
 0x15f   :  { %v523_v34 = vpop.f32.mrb[54].mxu0  ;;  %v675_v35 = vpop.f32.mrb[54].mxu1 }
 0x160   :  { %v524_v36 = vadd.f32 %v2096_v46, %v523_v34  ;;  %v1690_v37 = vpop.f32.mrb[55].mxu0  ;;  %v775_v38 = vmax.f32 %v673_v32, 0.0  ;;  %v676_v39 = vadd.f32 %v2096_v46, %v675_v35  ;;  %v1766_v40 = vpop.f32.mrb[55].mxu1  ;;  %v737_v41 = vmax.f32 %v521_v30, 0.0 }
 0x162   :  { %v738_v42 = vmax.f32 %v524_v36, 0.0  ;;  %v776_v43 = vmax.f32 %v676_v39, 0.0 }
 0x164   :  { %v1421_v44 = vpack.c.bf16 %v738_v42, %v737_v41  ;;  %v1516_v45 = vpack.c.bf16 %v776_v43, %v775_v38 }
 0x165   :  { %v528_v47 = vpop.f32.mrb[56].mxu0  ;;  %v680_v48 = vpop.f32.mrb[56].mxu1 }
 0x166   :  { %1550 = vst [vmem:[%s2286_s3 + $0x68] sm:$0xff] %v1421_v44   ;;  %1569 = vst [vmem:[%s2286_s3 + $0x100] sm:$0xff] %v1516_v45   ;;  %v529_v49 = vadd.f32 %v2096_v46, %v528_v47  ;;  %v1693_v50 = vpop.f32.mrb[57].mxu0  ;;  %v681_v51 = vadd.f32 %v2096_v46, %v680_v48  ;;  %v1769_v52 = vpop.f32.mrb[57].mxu1 }
 0x167   :  { %v531_v53 = vpop.f32.mrb[58].mxu0  ;;  %v683_v54 = vpop.f32.mrb[58].mxu1 }
 0x168   :  { %v532_v55 = vadd.f32 %v2096_v46, %v531_v53  ;;  %v1694_v56 = vpop.f32.mrb[59].mxu0  ;;  %v777_v57 = vmax.f32 %v681_v51, 0.0  ;;  %v684_v58 = vadd.f32 %v2096_v46, %v683_v54  ;;  %v1770_v59 = vpop.f32.mrb[59].mxu1  ;;  %v739_v60 = vmax.f32 %v529_v49, 0.0 }
 0x16a   :  { %v740_v61 = vmax.f32 %v532_v55, 0.0  ;;  %v778_v62 = vmax.f32 %v684_v58, 0.0 }
 0x16c   :  { %v1426_v63 = vpack.c.bf16 %v740_v61, %v739_v60  ;;  %v1521_v0 = vpack.c.bf16 %v778_v62, %v777_v57 }
 0x16d   :  { %v536_v1 = vpop.f32.mrb[60].mxu0  ;;  %v688_v2 = vpop.f32.mrb[60].mxu1 }
 0x16e   :  { %1551 = vst [vmem:[%s2286_s3 + $0x70] sm:$0xff] %v1426_v63   ;;  %1570 = vst [vmem:[%s2286_s3 + $0x108] sm:$0xff] %v1521_v0   ;;  %v537_v3 = vadd.f32 %v2096_v46, %v536_v1  ;;  %v1697_v4 = vpop.f32.mrb[61].mxu0  ;;  %v689_v5 = vadd.f32 %v2096_v46, %v688_v2  ;;  %v1773_v6 = vpop.f32.mrb[61].mxu1 }
 0x16f   :  { %v539_v7 = vpop.f32.mrb[62].mxu0  ;;  %v691_v8 = vpop.f32.mrb[62].mxu1 }
 0x170   :  { %v540_v9 = vadd.f32 %v2096_v46, %v539_v7  ;;  %v1698_v10 = vpop.f32.mrb[63].mxu0  ;;  %v779_v11 = vmax.f32 %v689_v5, 0.0  ;;  %v692_v12 = vadd.f32 %v2096_v46, %v691_v8  ;;  %v1774_v13 = vpop.f32.mrb[63].mxu1  ;;  %v741_v14 = vmax.f32 %v537_v3, 0.0 }
 0x172   :  { %v742_v15 = vmax.f32 %v540_v9, 0.0  ;;  %v780_v16 = vmax.f32 %v692_v12, 0.0 }
 0x174   :  { %v1431_v17 = vpack.c.bf16 %v742_v15, %v741_v14  ;;  %v1526_v18 = vpack.c.bf16 %v780_v16, %v779_v11 }
 0x175   :  { %v544_v19 = vpop.f32.mrb[64].mxu0  ;;  %v696_v20 = vpop.f32.mrb[64].mxu1 }
 0x176   :  { %1552 = vst [vmem:[%s2286_s3 + $0x78] sm:$0xff] %v1431_v17   ;;  %1571 = vst [vmem:[%s2286_s3 + $0x110] sm:$0xff] %v1526_v18   ;;  %v545_v21 = vadd.f32 %v2096_v46, %v544_v19  ;;  %v1701_v22 = vpop.f32.mrb[65].mxu0  ;;  %v697_v23 = vadd.f32 %v2096_v46, %v696_v20  ;;  %v1777_v24 = vpop.f32.mrb[65].mxu1 }
 0x177   :  { %v547_v25 = vpop.f32.mrb[66].mxu0  ;;  %v699_v26 = vpop.f32.mrb[66].mxu1 }
 0x178   :  { %v548_v27 = vadd.f32 %v2096_v46, %v547_v25  ;;  %v1702_v28 = vpop.f32.mrb[67].mxu0  ;;  %v781_v29 = vmax.f32 %v697_v23, 0.0  ;;  %v700_v30 = vadd.f32 %v2096_v46, %v699_v26  ;;  %v1778_v31 = vpop.f32.mrb[67].mxu1  ;;  %v743_v32 = vmax.f32 %v545_v21, 0.0 }
 0x17a   :  { %v744_v33 = vmax.f32 %v548_v27, 0.0  ;;  %v782_v34 = vmax.f32 %v700_v30, 0.0 }
 0x17c   :  { %v1436_v35 = vpack.c.bf16 %v744_v33, %v743_v32  ;;  %v1531_v36 = vpack.c.bf16 %v782_v34, %v781_v29 }
 0x17d   :  { %v552_v37 = vpop.f32.mrb[68].mxu0  ;;  %v704_v38 = vpop.f32.mrb[68].mxu1 }
 0x17e   :  { %1553 = vst [vmem:[%s2286_s3 + $0x80] sm:$0xff] %v1436_v35   ;;  %1572 = vst [vmem:[%s2286_s3 + $0x118] sm:$0xff] %v1531_v36   ;;  %v553_v39 = vadd.f32 %v2096_v46, %v552_v37  ;;  %v1705_v40 = vpop.f32.mrb[69].mxu0  ;;  %v705_v41 = vadd.f32 %v2096_v46, %v704_v38  ;;  %v1781_v42 = vpop.f32.mrb[69].mxu1 }
 0x17f   :  { %v555_v43 = vpop.f32.mrb[70].mxu0  ;;  %v707_v44 = vpop.f32.mrb[70].mxu1 }
 0x180   :  { %v556_v45 = vadd.f32 %v2096_v46, %v555_v43  ;;  %v1706_v47 = vpop.f32.mrb[71].mxu0  ;;  %v783_v48 = vmax.f32 %v705_v41, 0.0  ;;  %v708_v49 = vadd.f32 %v2096_v46, %v707_v44  ;;  %v1782_v50 = vpop.f32.mrb[71].mxu1  ;;  %v745_v51 = vmax.f32 %v553_v39, 0.0 }
 0x182   :  { %v746_v52 = vmax.f32 %v556_v45, 0.0  ;;  %v784_v53 = vmax.f32 %v708_v49, 0.0 }
 0x184   :  { %v1441_v54 = vpack.c.bf16 %v746_v52, %v745_v51  ;;  %v1536_v55 = vpack.c.bf16 %v784_v53, %v783_v48 }
 0x185   :  { %v560_v56 = vpop.f32.mrb[72].mxu0 }
 0x186   :  { %1554 = vst [vmem:[%s2286_s3 + $0x88] sm:$0xff] %v1441_v54   ;;  %1573 = vst [vmem:[%s2286_s3 + $0x120] sm:$0xff] %v1536_v55   ;;  %v561_v57 = vadd.f32 %v2096_v46, %v560_v56  ;;  %v1709_v58 = vpop.f32.mrb[73].mxu0 }
 0x187   :  { %v563_v59 = vpop.f32.mrb[74].mxu0 }
 0x188   :  { %v564_v60 = vadd.f32 %v2096_v46, %v563_v59  ;;  %v1710_v61 = vpop.f32.mrb[75].mxu0  ;;  %v747_v62 = vmax.f32 %v561_v57, 0.0 }
 0x18a   :  { %v748_v63 = vmax.f32 %v564_v60, 0.0 }
 0x18c   :  { %v1446_v0 = vpack.c.bf16 %v748_v63, %v747_v62 }
 0x18e   :  { %1555 = vst [vmem:[%s2286_s3 + $0x90] sm:$0xff] %v1446_v0  }

// kernel: factor_vae2_forward.19
= control target key start
LH: loop header
LB: loop body
LE: loop exit
PB: predicated region body
PF: predicated region fallthrough
CT: control target
= control target key end

     0   :  { %s3408_s12 = smov 0   ;;  %s3900_s0 = inlined_call_operand.vmem [shape: bf16[2208,128], index: 0, kind: input, shape index: {}]   ;;  %s3901_s1 = inlined_call_operand.vmem [shape: bf16[128,128], index: 1, kind: input, shape index: {}]   ;;  %s3902_s2 = inlined_call_operand.vmem [shape: f32[1,128], index: 2, kind: input, shape index: {}]   ;;  %s3903_s3 = inlined_call_operand.vmem [shape: bf16[2208,128], index: 3, kind: output, shape index: {}]  }
   0x1 LB: > { %s2129_s13 = sadd.s32 4294967295, %s3384_s12   ;;  %p2133_p0 = scmp.ge.s32.totalorder %s3384_s12, 1  ;;  %s3384_s12 = sphi %s3408_s12, %s13_s12  }
   0x2   : > { %p138_p1 = scmp.lt.s32.totalorder %s3384_s12, 3 }
   0x4   : > { %p139_p2 = pnand %p2133_p0, %p138_p1 }
   0x5   : > { %v3300_v0 = vld [vmem:[%s3901_s1] sm:$0xff] (!%p139_p2)   ;;  %v3386_v1 = vmov (!%p139_p2), 0.0   ;;  %v3301_v2 = vld [vmem:[%s3901_s1 + $0x8] sm:$0xff] (!%p139_p2)   ;;  %s162_s18 = smul.u32 (!%p139_p2), 138, %s2129_s13  ;;  %vm3387_vm0 = vmmov (!%p139_p2), 0   ;;  %v3302_v3 = vld [vmem:[%s3901_s1 + $0x10] sm:$0xff] (!%p139_p2)  }
   0x6   : > { %142 = sbr.rel (%p139_p2) target bundleno = 529 (0x211), region = 32  ;;  %2982 = vmatprep.subr.bf16.mxu0 (!%p139_p2), %v3386_v1  ;;  %3274 = vmatprep.subr.bf16.mxu1 (!%p139_p2), %v3386_v1  ;;  %v3303_v4 = vld [vmem:[%s3901_s1 + $0x18] sm:$0xff] (!%p139_p2)   ;;  %v3304_v5 = vld [vmem:[%s3901_s1 + $0x20] sm:$0xff] (!%p139_p2)   ;;  %v3305_v6 = vld [vmem:[%s3901_s1 + $0x28] sm:$0xff] (!%p139_p2)  }
   0x7   : > { %2983 = vmatpush3.bf16.msra.mxu0 (!%p139_p2), %v3300_v0  ;;  %3282 = vmatpush3.bf16.msra.mxu1 (!%p139_p2), %v3300_v0  ;;  %p163_p3 = scmp.lt.s32.totalorder (!%p139_p2), %s162_s18, 275  ;;  %v3306_v7 = vld [vmem:[%s3901_s1 + $0x30] sm:$0xff] (!%p139_p2)   ;;  %v3307_v8 = vld [vmem:[%s3901_s1 + $0x38] sm:$0xff] (!%p139_p2)   ;;  %v3635_v63 = vld [vmem:[%s3902_s2] ss:$0 sm:$0xff] (!%p139_p2) }
   0x8   : > { %2984 = vmatprep.subr.bf16.mxu0 (!%p139_p2), %v3386_v1  ;;  %3275 = vmatprep.subr.bf16.mxu1 (!%p139_p2), %v3386_v1 }
   0x9   : > { %2998 = vmatprep.mubr.msk.bf16.mxu0 (!%p139_p2), %vm3387_vm0, %v3386_v1  ;;  %3138 = vmatprep.mubr.msk.bf16.mxu1 (!%p139_p2), %vm3387_vm0, %v3386_v1 }
   0xb   : > { %2985 = vmatpush3.bf16.msra.mxu0 (!%p139_p2), %v3301_v2  ;;  %3283 = vmatpush3.bf16.msra.mxu1 (!%p139_p2), %v3301_v2 }
   0xc   : > { %2986 = vmatprep.subr.bf16.mxu0 (!%p139_p2), %v3386_v1  ;;  %3276 = vmatprep.subr.bf16.mxu1 (!%p139_p2), %v3386_v1 }
   0xd   : > { %s3905_s18 = smov (!%p163_p3, %s162_s18), 275 }
   0xe   : > { %s2134_s21 = sshll.u32 %s3905_s18, 2 }
   0xf   : > { %s3443_s24 = scalar_lea.vmem %s3900_s0, %s2134_s21  ;;  %2987 = vmatpush3.bf16.msra.mxu0 %v3302_v3  ;;  %3284 = vmatpush3.bf16.msra.mxu1 %v3302_v3  ;;  %s3648_s13 = scalar_lea.vmem %s3903_s3, %s2134_s21 }
  0x10   : > { %2988 = vmatprep.subr.bf16.mxu0 %v3386_v1  ;;  %3277 = vmatprep.subr.bf16.mxu1 %v3386_v1  ;;  %v3308_v9 = vld [vmem:[%s3443_s24] sm:$0xff]   ;;  %v3309_v10 = vld [vmem:[%s3443_s24 + $0x118] sm:$0xff]   ;;  %v3310_v11 = vld [vmem:[%s3443_s24 + $0x8] sm:$0xff]  }
  0x11   : > { %v3311_v12 = vld [vmem:[%s3443_s24 + $0x120] sm:$0xff]   ;;  %v3312_v13 = vld [vmem:[%s3443_s24 + $0x10] sm:$0xff]   ;;  %v3313_v14 = vld [vmem:[%s3443_s24 + $0x128] sm:$0xff]  }
  0x12   : > { %v3314_v15 = vld [vmem:[%s3443_s24 + $0x18] sm:$0xff]   ;;  %v3315_v16 = vld [vmem:[%s3443_s24 + $0x130] sm:$0xff]   ;;  %v3316_v17 = vld [vmem:[%s3443_s24 + $0x20] sm:$0xff]  }
  0x13   : > { %2989 = vmatpush3.bf16.msra.mxu0 %v3303_v4  ;;  %3285 = vmatpush3.bf16.msra.mxu1 %v3303_v4  ;;  %v3317_v18 = vld [vmem:[%s3443_s24 + $0x138] sm:$0xff]   ;;  %v3318_v19 = vld [vmem:[%s3443_s24 + $0x28] sm:$0xff]   ;;  %v3319_v20 = vld [vmem:[%s3443_s24 + $0x140] sm:$0xff]  }
  0x14   : > { %2990 = vmatprep.subr.bf16.mxu0 %v3386_v1  ;;  %3278 = vmatprep.subr.bf16.mxu1 %v3386_v1  ;;  %v3320_v21 = vld [vmem:[%s3443_s24 + $0x30] sm:$0xff]   ;;  %v3321_v22 = vld [vmem:[%s3443_s24 + $0x148] sm:$0xff]   ;;  %v3322_v23 = vld [vmem:[%s3443_s24 + $0x38] sm:$0xff]  }
  0x15   : > { %v3323_v24 = vld [vmem:[%s3443_s24 + $0x150] sm:$0xff]   ;;  %v3324_v25 = vld [vmem:[%s3443_s24 + $0x40] sm:$0xff]   ;;  %v3325_v26 = vld [vmem:[%s3443_s24 + $0x158] sm:$0xff]  }
  0x16   : > { %v3326_v27 = vld [vmem:[%s3443_s24 + $0x48] sm:$0xff]   ;;  %v3327_v28 = vld [vmem:[%s3443_s24 + $0x160] sm:$0xff]   ;;  %v3328_v29 = vld [vmem:[%s3443_s24 + $0x50] sm:$0xff]  }
  0x17   : > { %2991 = vmatpush3.bf16.msra.mxu0 %v3304_v5  ;;  %3286 = vmatpush3.bf16.msra.mxu1 %v3304_v5  ;;  %v3329_v30 = vld [vmem:[%s3443_s24 + $0x168] sm:$0xff]   ;;  %v3330_v31 = vld [vmem:[%s3443_s24 + $0x58] sm:$0xff]   ;;  %v3331_v32 = vld [vmem:[%s3443_s24 + $0x170] sm:$0xff]  }
  0x18   : > { %2992 = vmatprep.subr.bf16.mxu0 %v3386_v1  ;;  %3279 = vmatprep.subr.bf16.mxu1 %v3386_v1  ;;  %v3332_v33 = vld [vmem:[%s3443_s24 + $0x60] sm:$0xff]   ;;  %v3333_v34 = vld [vmem:[%s3443_s24 + $0x178] sm:$0xff]   ;;  %v3334_v35 = vld [vmem:[%s3443_s24 + $0x68] sm:$0xff]  }
  0x19   : > { %v3335_v36 = vld [vmem:[%s3443_s24 + $0x180] sm:$0xff]   ;;  %v3336_v37 = vld [vmem:[%s3443_s24 + $0x70] sm:$0xff]   ;;  %v3337_v38 = vld [vmem:[%s3443_s24 + $0x188] sm:$0xff]  }
  0x1a   : > { %v3338_v39 = vld [vmem:[%s3443_s24 + $0x78] sm:$0xff]   ;;  %v3339_v40 = vld [vmem:[%s3443_s24 + $0x190] sm:$0xff]   ;;  %v3340_v41 = vld [vmem:[%s3443_s24 + $0x80] sm:$0xff]  }
  0x1b   : > { %2993 = vmatpush3.bf16.msra.mxu0 %v3305_v6  ;;  %3287 = vmatpush3.bf16.msra.mxu1 %v3305_v6  ;;  %v3341_v42 = vld [vmem:[%s3443_s24 + $0x198] sm:$0xff]   ;;  %v3342_v43 = vld [vmem:[%s3443_s24 + $0x88] sm:$0xff]   ;;  %v3343_v44 = vld [vmem:[%s3443_s24 + $0x1a0] sm:$0xff]  }
  0x1c   : > { %2994 = vmatprep.subr.bf16.mxu0 %v3386_v1  ;;  %3280 = vmatprep.subr.bf16.mxu1 %v3386_v1  ;;  %v3344_v45 = vld [vmem:[%s3443_s24 + $0x90] sm:$0xff]   ;;  %v3345_v46 = vld [vmem:[%s3443_s24 + $0x1a8] sm:$0xff]   ;;  %v3346_v47 = vld [vmem:[%s3443_s24 + $0x98] sm:$0xff]  }
  0x1d   : > { %v3347_v48 = vld [vmem:[%s3443_s24 + $0x1b0] sm:$0xff]   ;;  %v3348_v49 = vld [vmem:[%s3443_s24 + $0xa0] sm:$0xff]   ;;  %v3349_v50 = vld [vmem:[%s3443_s24 + $0x1b8] sm:$0xff]  }
  0x1e   : > { %v3350_v51 = vld [vmem:[%s3443_s24 + $0xa8] sm:$0xff]   ;;  %v3351_v52 = vld [vmem:[%s3443_s24 + $0x1c0] sm:$0xff]   ;;  %v3352_v53 = vld [vmem:[%s3443_s24 + $0xb0] sm:$0xff]  }
  0x1f   : > { %2995 = vmatpush3.bf16.msra.mxu0 %v3306_v7  ;;  %3288 = vmatpush3.bf16.msra.mxu1 %v3306_v7  ;;  %v3353_v54 = vld [vmem:[%s3443_s24 + $0x1c8] sm:$0xff]   ;;  %v3354_v55 = vld [vmem:[%s3443_s24 + $0xb8] sm:$0xff]   ;;  %v3355_v56 = vld [vmem:[%s3443_s24 + $0x1d0] sm:$0xff]  }
  0x20   : > { %2996 = vmatprep.subr.bf16.mxu0 %v3386_v1  ;;  %3281 = vmatprep.subr.bf16.mxu1 %v3386_v1  ;;  %v3356_v57 = vld [vmem:[%s3443_s24 + $0xc0] sm:$0xff]   ;;  %v3357_v58 = vld [vmem:[%s3443_s24 + $0x1d8] sm:$0xff]   ;;  %v3358_v59 = vld [vmem:[%s3443_s24 + $0xc8] sm:$0xff]  }
  0x21   : > { %v3359_v60 = vld [vmem:[%s3443_s24 + $0x1e0] sm:$0xff]   ;;  %v3360_v61 = vld [vmem:[%s3443_s24 + $0xd0] sm:$0xff]   ;;  %v3361_v62 = vld [vmem:[%s3443_s24 + $0x1e8] sm:$0xff]  }
  0x22   : > { %v3362_v4 = vld [vmem:[%s3443_s24 + $0xd8] sm:$0xff]   ;;  %v3363_v7 = vld [vmem:[%s3443_s24 + $0x1f0] sm:$0xff]  }
  0x23   : > { %2997 = vmatpush3.bf16.msra.mxu0 %v3307_v8  ;;  %3289 = vmatpush3.bf16.msra.mxu1 %v3307_v8 }
  0x26   : > { %2999 = vmatmul.mubr.bf16.vlgmr.msra.gmra.mrb[0].mxu0 %v3308_v9  ;;  %3139 = vmatmul.mubr.bf16.vlgmr.msra.gmra.mrb[0].mxu1 %v3309_v10 }
  0x27   : > { %3002 = vmatprep.mubr.msk.bf16.mxu0 %vm3387_vm0, %v3386_v1  ;;  %3142 = vmatprep.mubr.msk.bf16.mxu1 %vm3387_vm0, %v3386_v1 }
  0x2e   : > { %3003 = vmatmul.mubr.bf16.gmra.mrb[4].mxu0 %v3310_v11  ;;  %3143 = vmatmul.mubr.bf16.gmra.mrb[4].mxu1 %v3311_v12 }
  0x2f   : > { %3006 = vmatprep.mubr.msk.bf16.mxu0 %vm3387_vm0, %v3386_v1  ;;  %3146 = vmatprep.mubr.msk.bf16.mxu1 %vm3387_vm0, %v3386_v1 }
  0x36   : > { %3007 = vmatmul.mubr.bf16.gmra.mrb[8].mxu0 %v3312_v13  ;;  %3147 = vmatmul.mubr.bf16.gmra.mrb[8].mxu1 %v3313_v14 }
  0x37   : > { %3010 = vmatprep.mubr.msk.bf16.mxu0 %vm3387_vm0, %v3386_v1  ;;  %3150 = vmatprep.mubr.msk.bf16.mxu1 %vm3387_vm0, %v3386_v1 }
  0x3e   : > { %3011 = vmatmul.mubr.bf16.gmra.mrb[12].mxu0 %v3314_v15  ;;  %3151 = vmatmul.mubr.bf16.gmra.mrb[12].mxu1 %v3315_v16 }
  0x3f   : > { %3014 = vmatprep.mubr.msk.bf16.mxu0 %vm3387_vm0, %v3386_v1  ;;  %3154 = vmatprep.mubr.msk.bf16.mxu1 %vm3387_vm0, %v3386_v1 }
  0x46   : > { %3015 = vmatmul.mubr.bf16.gmra.mrb[16].mxu0 %v3316_v17  ;;  %3155 = vmatmul.mubr.bf16.gmra.mrb[16].mxu1 %v3317_v18 }
  0x47   : > { %3018 = vmatprep.mubr.msk.bf16.mxu0 %vm3387_vm0, %v3386_v1  ;;  %3158 = vmatprep.mubr.msk.bf16.mxu1 %vm3387_vm0, %v3386_v1 }
  0x4e   : > { %3019 = vmatmul.mubr.bf16.gmra.mrb[20].mxu0 %v3318_v19  ;;  %3159 = vmatmul.mubr.bf16.gmra.mrb[20].mxu1 %v3319_v20  ;;  %v3364_v20 = vld [vmem:[%s3443_s24 + $0xe0] sm:$0xff]  }
  0x4f   : > { %3022 = vmatprep.mubr.msk.bf16.mxu0 %vm3387_vm0, %v3386_v1  ;;  %3162 = vmatprep.mubr.msk.bf16.mxu1 %vm3387_vm0, %v3386_v1 }
  0x56   : > { %3023 = vmatmul.mubr.bf16.gmra.mrb[24].mxu0 %v3320_v21  ;;  %3163 = vmatmul.mubr.bf16.gmra.mrb[24].mxu1 %v3321_v22 }
  0x57   : > { %3026 = vmatprep.mubr.msk.bf16.mxu0 %vm3387_vm0, %v3386_v1  ;;  %3166 = vmatprep.mubr.msk.bf16.mxu1 %vm3387_vm0, %v3386_v1 }
  0x5e   : > { %3027 = vmatmul.mubr.bf16.gmra.mrb[28].mxu0 %v3322_v23  ;;  %3167 = vmatmul.mubr.bf16.gmra.mrb[28].mxu1 %v3323_v24  ;;  %v3365_v23 = vld [vmem:[%s3443_s24 + $0x1f8] sm:$0xff]  }
  0x5f   : > { %3030 = vmatprep.mubr.msk.bf16.mxu0 %vm3387_vm0, %v3386_v1  ;;  %3170 = vmatprep.mubr.msk.bf16.mxu1 %vm3387_vm0, %v3386_v1 }
  0x66   : > { %3031 = vmatmul.mubr.bf16.gmra.mrb[32].mxu0 %v3324_v25  ;;  %3171 = vmatmul.mubr.bf16.gmra.mrb[32].mxu1 %v3325_v26 }
  0x67   : > { %3034 = vmatprep.mubr.msk.bf16.mxu0 %vm3387_vm0, %v3386_v1  ;;  %3174 = vmatprep.mubr.msk.bf16.mxu1 %vm3387_vm0, %v3386_v1 }
  0x6e   : > { %3035 = vmatmul.mubr.bf16.gmra.mrb[36].mxu0 %v3326_v27  ;;  %3175 = vmatmul.mubr.bf16.gmra.mrb[36].mxu1 %v3327_v28 }
  0x6f   : > { %3038 = vmatprep.mubr.msk.bf16.mxu0 %vm3387_vm0, %v3386_v1  ;;  %3178 = vmatprep.mubr.msk.bf16.mxu1 %vm3387_vm0, %v3386_v1 }
  0x76   : > { %3039 = vmatmul.mubr.bf16.gmra.mrb[40].mxu0 %v3328_v29  ;;  %3179 = vmatmul.mubr.bf16.gmra.mrb[40].mxu1 %v3329_v30 }
  0x77   : > { %3042 = vmatprep.mubr.msk.bf16.mxu0 %vm3387_vm0, %v3386_v1  ;;  %3182 = vmatprep.mubr.msk.bf16.mxu1 %vm3387_vm0, %v3386_v1 }
  0x7e   : > { %3043 = vmatmul.mubr.bf16.gmra.mrb[44].mxu0 %v3330_v31  ;;  %3183 = vmatmul.mubr.bf16.gmra.mrb[44].mxu1 %v3331_v32 }
  0x7f   : > { %3046 = vmatprep.mubr.msk.bf16.mxu0 %vm3387_vm0, %v3386_v1  ;;  %3186 = vmatprep.mubr.msk.bf16.mxu1 %vm3387_vm0, %v3386_v1 }
  0x86   : > { %3047 = vmatmul.mubr.bf16.gmra.mrb[48].mxu0 %v3332_v33  ;;  %3187 = vmatmul.mubr.bf16.gmra.mrb[48].mxu1 %v3333_v34 }
  0x87   : > { %3050 = vmatprep.mubr.msk.bf16.mxu0 %vm3387_vm0, %v3386_v1  ;;  %3190 = vmatprep.mubr.msk.bf16.mxu1 %vm3387_vm0, %v3386_v1 }
  0x8e   : > { %3051 = vmatmul.mubr.bf16.gmra.mrb[52].mxu0 %v3334_v35  ;;  %3191 = vmatmul.mubr.bf16.gmra.mrb[52].mxu1 %v3335_v36  ;;  %v3366_v36 = vld [vmem:[%s3443_s24 + $0xe8] sm:$0xff]  }
  0x8f   : > { %3054 = vmatprep.mubr.msk.bf16.mxu0 %vm3387_vm0, %v3386_v1  ;;  %3194 = vmatprep.mubr.msk.bf16.mxu1 %vm3387_vm0, %v3386_v1 }
  0x96   : > { %3055 = vmatmul.mubr.bf16.gmra.mrb[56].mxu0 %v3336_v37  ;;  %3195 = vmatmul.mubr.bf16.gmra.mrb[56].mxu1 %v3337_v38 }
  0x97   : > { %3058 = vmatprep.mubr.msk.bf16.mxu0 %vm3387_vm0, %v3386_v1  ;;  %3198 = vmatprep.mubr.msk.bf16.mxu1 %vm3387_vm0, %v3386_v1 }
  0x9e   : > { %3059 = vmatmul.mubr.bf16.gmra.mrb[60].mxu0 %v3338_v39  ;;  %3199 = vmatmul.mubr.bf16.gmra.mrb[60].mxu1 %v3339_v40  ;;  %v3367_v39 = vld [vmem:[%s3443_s24 + $0x200] sm:$0xff]  }
  0x9f   : > { %3062 = vmatprep.mubr.msk.bf16.mxu0 %vm3387_vm0, %v3386_v1  ;;  %3202 = vmatprep.mubr.msk.bf16.mxu1 %vm3387_vm0, %v3386_v1 }
  0xa6   : > { %3063 = vmatmul.mubr.bf16.gmra.mrb[64].mxu0 %v3340_v41  ;;  %3203 = vmatmul.mubr.bf16.gmra.mrb[64].mxu1 %v3341_v42 }
  0xa7   : > { %3066 = vmatprep.mubr.msk.bf16.mxu0 %vm3387_vm0, %v3386_v1  ;;  %3206 = vmatprep.mubr.msk.bf16.mxu1 %vm3387_vm0, %v3386_v1 }
  0xae   : > { %3067 = vmatmul.mubr.bf16.gmra.mrb[68].mxu0 %v3342_v43  ;;  %3207 = vmatmul.mubr.bf16.gmra.mrb[68].mxu1 %v3343_v44 }
  0xaf   : > { %3070 = vmatprep.mubr.msk.bf16.mxu0 %vm3387_vm0, %v3386_v1  ;;  %3210 = vmatprep.mubr.msk.bf16.mxu1 %vm3387_vm0, %v3386_v1 }
  0xb6   : > { %3071 = vmatmul.mubr.bf16.gmra.mrb[72].mxu0 %v3344_v45  ;;  %3211 = vmatmul.mubr.bf16.gmra.mrb[72].mxu1 %v3345_v46 }
  0xb7   : > { %3074 = vmatprep.mubr.msk.bf16.mxu0 %vm3387_vm0, %v3386_v1  ;;  %3214 = vmatprep.mubr.msk.bf16.mxu1 %vm3387_vm0, %v3386_v1 }
  0xbe   : > { %3075 = vmatmul.mubr.bf16.gmra.mrb[76].mxu0 %v3346_v47  ;;  %3215 = vmatmul.mubr.bf16.gmra.mrb[76].mxu1 %v3347_v48 }
  0xbf   : > { %3078 = vmatprep.mubr.msk.bf16.mxu0 %vm3387_vm0, %v3386_v1  ;;  %3218 = vmatprep.mubr.msk.bf16.mxu1 %vm3387_vm0, %v3386_v1 }
  0xc6   : > { %3079 = vmatmul.mubr.bf16.gmra.mrb[80].mxu0 %v3348_v49  ;;  %3219 = vmatmul.mubr.bf16.gmra.mrb[80].mxu1 %v3349_v50 }
  0xc7   : > { %3082 = vmatprep.mubr.msk.bf16.mxu0 %vm3387_vm0, %v3386_v1  ;;  %3222 = vmatprep.mubr.msk.bf16.mxu1 %vm3387_vm0, %v3386_v1 }
  0xce   : > { %3083 = vmatmul.mubr.bf16.gmra.mrb[84].mxu0 %v3350_v51  ;;  %3223 = vmatmul.mubr.bf16.gmra.mrb[84].mxu1 %v3351_v52  ;;  %v3368_v52 = vld [vmem:[%s3443_s24 + $0xf0] sm:$0xff]  }
  0xcf   : > { %3086 = vmatprep.mubr.msk.bf16.mxu0 %vm3387_vm0, %v3386_v1  ;;  %3226 = vmatprep.mubr.msk.bf16.mxu1 %vm3387_vm0, %v3386_v1 }
  0xd6   : > { %3087 = vmatmul.mubr.bf16.gmra.mrb[88].mxu0 %v3352_v53  ;;  %3227 = vmatmul.mubr.bf16.gmra.mrb[88].mxu1 %v3353_v54 }
  0xd7   : > { %3090 = vmatprep.mubr.msk.bf16.mxu0 %vm3387_vm0, %v3386_v1  ;;  %3230 = vmatprep.mubr.msk.bf16.mxu1 %vm3387_vm0, %v3386_v1 }
  0xde   : > { %3091 = vmatmul.mubr.bf16.gmra.mrb[92].mxu0 %v3354_v55  ;;  %3231 = vmatmul.mubr.bf16.gmra.mrb[92].mxu1 %v3355_v56  ;;  %v3369_v55 = vld [vmem:[%s3443_s24 + $0x208] sm:$0xff]  }
  0xdf   : > { %3094 = vmatprep.mubr.msk.bf16.mxu0 %vm3387_vm0, %v3386_v1  ;;  %3234 = vmatprep.mubr.msk.bf16.mxu1 %vm3387_vm0, %v3386_v1 }
  0xe6   : > { %3095 = vmatmul.mubr.bf16.gmra.mrb[96].mxu0 %v3356_v57  ;;  %3235 = vmatmul.mubr.bf16.gmra.mrb[96].mxu1 %v3357_v58 }
  0xe7   : > { %3098 = vmatprep.mubr.msk.bf16.mxu0 %vm3387_vm0, %v3386_v1  ;;  %3238 = vmatprep.mubr.msk.bf16.mxu1 %vm3387_vm0, %v3386_v1 }
  0xee   : > { %3099 = vmatmul.mubr.bf16.gmra.mrb[100].mxu0 %v3358_v59  ;;  %3239 = vmatmul.mubr.bf16.gmra.mrb[100].mxu1 %v3359_v60 }
  0xef   : > { %3102 = vmatprep.mubr.msk.bf16.mxu0 %vm3387_vm0, %v3386_v1  ;;  %3242 = vmatprep.mubr.msk.bf16.mxu1 %vm3387_vm0, %v3386_v1 }
  0xf6   : > { %3103 = vmatmul.mubr.bf16.gmra.mrb[104].mxu0 %v3360_v61  ;;  %3243 = vmatmul.mubr.bf16.gmra.mrb[104].mxu1 %v3361_v62 }
  0xf7   : > { %3106 = vmatprep.mubr.msk.bf16.mxu0 %vm3387_vm0, %v3386_v1  ;;  %3246 = vmatprep.mubr.msk.bf16.mxu1 %vm3387_vm0, %v3386_v1 }
  0xf9   : > { %v832_v0 = vpop.f32.mrb[0].mxu0  ;;  %v1112_v2 = vpop.f32.mrb[0].mxu1 }
  0xfa   : > { %v3000_v3 = vpop.f32.mrb[1].mxu0  ;;  %v1113_v5 = vadd.f32 %v3635_v63, %v1112_v2  ;;  %v3140_v6 = vpop.f32.mrb[1].mxu1  ;;  %v833_v10 = vadd.f32 %v3635_v63, %v832_v0 }
  0xfb   : > { %v835_v8 = vpop.f32.mrb[2].mxu0  ;;  %v1115_v9 = vpop.f32.mrb[2].mxu1  ;;  %v3370_v6 = vld [vmem:[%s3443_s24 + $0xf8] sm:$0xff]  }
  0xfc   : > { %v836_v11 = vadd.f32 %v3635_v63, %v835_v8  ;;  %v3001_v12 = vpop.f32.mrb[3].mxu0  ;;  %v1116_v13 = vadd.f32 %v3635_v63, %v1115_v9  ;;  %v3141_v14 = vpop.f32.mrb[3].mxu1  ;;  %v3371_v9 = vld [vmem:[%s3443_s24 + $0x210] sm:$0xff]  }
  0xfe   : > { %v2495_v15 = vpack.c.bf16 %v836_v11, %v833_v10  ;;  %3107 = vmatmul.mubr.bf16.gmra.mrb[108].mxu0 %v3362_v4  ;;  %v2670_v16 = vpack.c.bf16 %v1116_v13, %v1113_v5  ;;  %3247 = vmatmul.mubr.bf16.gmra.mrb[108].mxu1 %v3363_v7 }
  0xff   : > { %3110 = vmatprep.mubr.msk.bf16.mxu0 %vm3387_vm0, %v3386_v1  ;;  %3250 = vmatprep.mubr.msk.bf16.mxu1 %vm3387_vm0, %v3386_v1 }
 0x100   : > { %2496 = vst [vmem:[%s3648_s13] sm:$0xff] %v2495_v15   ;;  %2871 = vst [vmem:[%s3648_s13 + $0x118] sm:$0xff] %v2670_v16  }
 0x101   : > { %v840_v17 = vpop.f32.mrb[4].mxu0  ;;  %v1120_v18 = vpop.f32.mrb[4].mxu1 }
 0x102   : > { %v3004_v19 = vpop.f32.mrb[5].mxu0  ;;  %v1121_v21 = vadd.f32 %v3635_v63, %v1120_v18  ;;  %v3144_v22 = vpop.f32.mrb[5].mxu1  ;;  %v841_v26 = vadd.f32 %v3635_v63, %v840_v17 }
 0x103   : > { %v843_v24 = vpop.f32.mrb[6].mxu0  ;;  %v1123_v25 = vpop.f32.mrb[6].mxu1  ;;  %v3372_v22 = vld [vmem:[%s3443_s24 + $0x100] sm:$0xff]  }
 0x104   : > { %v844_v27 = vadd.f32 %v3635_v63, %v843_v24  ;;  %v3005_v28 = vpop.f32.mrb[7].mxu0  ;;  %v1124_v29 = vadd.f32 %v3635_v63, %v1123_v25  ;;  %v3145_v30 = vpop.f32.mrb[7].mxu1  ;;  %v3373_v25 = vld [vmem:[%s3443_s24 + $0x218] sm:$0xff]  }
 0x106   : > { %v2500_v31 = vpack.c.bf16 %v844_v27, %v841_v26  ;;  %3111 = vmatmul.mubr.bf16.gmra.mrb[112].mxu0 %v3364_v20  ;;  %v2675_v32 = vpack.c.bf16 %v1124_v29, %v1121_v21  ;;  %3251 = vmatmul.mubr.bf16.gmra.mrb[112].mxu1 %v3365_v23 }
 0x107   : > { %3114 = vmatprep.mubr.msk.bf16.mxu0 %vm3387_vm0, %v3386_v1  ;;  %3254 = vmatprep.mubr.msk.bf16.mxu1 %vm3387_vm0, %v3386_v1 }
 0x108   : > { %2837 = vst [vmem:[%s3648_s13 + $0x8] sm:$0xff] %v2500_v31   ;;  %2872 = vst [vmem:[%s3648_s13 + $0x120] sm:$0xff] %v2675_v32  }
 0x109   : > { %v848_v33 = vpop.f32.mrb[8].mxu0  ;;  %v1128_v34 = vpop.f32.mrb[8].mxu1 }
 0x10a   : > { %v3008_v35 = vpop.f32.mrb[9].mxu0  ;;  %v1129_v37 = vadd.f32 %v3635_v63, %v1128_v34  ;;  %v3148_v38 = vpop.f32.mrb[9].mxu1  ;;  %v849_v42 = vadd.f32 %v3635_v63, %v848_v33 }
 0x10b   : > { %v851_v40 = vpop.f32.mrb[10].mxu0  ;;  %v1131_v41 = vpop.f32.mrb[10].mxu1  ;;  %v3374_v38 = vld [vmem:[%s3443_s24 + $0x108] sm:$0xff]  }
 0x10c   : > { %v852_v43 = vadd.f32 %v3635_v63, %v851_v40  ;;  %v3009_v44 = vpop.f32.mrb[11].mxu0  ;;  %v1132_v45 = vadd.f32 %v3635_v63, %v1131_v41  ;;  %v3149_v46 = vpop.f32.mrb[11].mxu1  ;;  %v3375_v41 = vld [vmem:[%s3443_s24 + $0x220] sm:$0xff]  }
 0x10e   : > { %v2505_v47 = vpack.c.bf16 %v852_v43, %v849_v42  ;;  %3115 = vmatmul.mubr.bf16.gmra.mrb[116].mxu0 %v3366_v36  ;;  %v2680_v48 = vpack.c.bf16 %v1132_v45, %v1129_v37  ;;  %3255 = vmatmul.mubr.bf16.gmra.mrb[116].mxu1 %v3367_v39 }
 0x10f   : > { %3118 = vmatprep.mubr.msk.bf16.mxu0 %vm3387_vm0, %v3386_v1  ;;  %3258 = vmatprep.mubr.msk.bf16.mxu1 %vm3387_vm0, %v3386_v1 }
 0x110   : > { %2838 = vst [vmem:[%s3648_s13 + $0x10] sm:$0xff] %v2505_v47   ;;  %2873 = vst [vmem:[%s3648_s13 + $0x128] sm:$0xff] %v2680_v48  }
 0x111   : > { %v856_v49 = vpop.f32.mrb[12].mxu0  ;;  %v1136_v50 = vpop.f32.mrb[12].mxu1 }
 0x112   : > { %v3012_v51 = vpop.f32.mrb[13].mxu0  ;;  %v1137_v53 = vadd.f32 %v3635_v63, %v1136_v50  ;;  %v3152_v54 = vpop.f32.mrb[13].mxu1  ;;  %v857_v58 = vadd.f32 %v3635_v63, %v856_v49 }
 0x113   : > { %v859_v56 = vpop.f32.mrb[14].mxu0  ;;  %v1139_v57 = vpop.f32.mrb[14].mxu1  ;;  %v3376_v54 = vld [vmem:[%s3443_s24 + $0x110] sm:$0xff]  }
 0x114   : > { %v860_v59 = vadd.f32 %v3635_v63, %v859_v56  ;;  %v3013_v60 = vpop.f32.mrb[15].mxu0  ;;  %v1140_v61 = vadd.f32 %v3635_v63, %v1139_v57  ;;  %v3153_v62 = vpop.f32.mrb[15].mxu1 }
 0x116   : > { %v2510_v0 = vpack.c.bf16 %v860_v59, %v857_v58  ;;  %3119 = vmatmul.mubr.bf16.gmra.mrb[120].mxu0 %v3368_v52  ;;  %v2685_v2 = vpack.c.bf16 %v1140_v61, %v1137_v53  ;;  %3259 = vmatmul.mubr.bf16.gmra.mrb[120].mxu1 %v3369_v55 }
 0x117   : > { %3122 = vmatprep.mubr.msk.bf16.mxu0 %vm3387_vm0, %v3386_v1  ;;  %3262 = vmatprep.mubr.msk.bf16.mxu1 %vm3387_vm0, %v3386_v1 }
 0x118   : > { %2839 = vst [vmem:[%s3648_s13 + $0x18] sm:$0xff] %v2510_v0   ;;  %2874 = vst [vmem:[%s3648_s13 + $0x130] sm:$0xff] %v2685_v2  }
 0x119   : > { %v864_v3 = vpop.f32.mrb[16].mxu0  ;;  %v1144_v4 = vpop.f32.mrb[16].mxu1 }
 0x11a   : > { %v3016_v5 = vpop.f32.mrb[17].mxu0  ;;  %v1145_v7 = vadd.f32 %v3635_v63, %v1144_v4  ;;  %v3156_v8 = vpop.f32.mrb[17].mxu1  ;;  %v865_v12 = vadd.f32 %v3635_v63, %v864_v3 }
 0x11b   : > { %v867_v10 = vpop.f32.mrb[18].mxu0  ;;  %v1147_v11 = vpop.f32.mrb[18].mxu1 }
 0x11c   : > { %v868_v13 = vadd.f32 %v3635_v63, %v867_v10  ;;  %v3017_v14 = vpop.f32.mrb[19].mxu0  ;;  %v1148_v15 = vadd.f32 %v3635_v63, %v1147_v11  ;;  %v3157_v16 = vpop.f32.mrb[19].mxu1 }
 0x11e   : > { %v2515_v17 = vpack.c.bf16 %v868_v13, %v865_v12  ;;  %3123 = vmatmul.mubr.bf16.gmra.mrb[124].mxu0 %v3370_v6  ;;  %v2690_v18 = vpack.c.bf16 %v1148_v15, %v1145_v7  ;;  %3263 = vmatmul.mubr.bf16.gmra.mrb[124].mxu1 %v3371_v9 }
 0x11f   : > { %3126 = vmatprep.mubr.msk.bf16.mxu0 %vm3387_vm0, %v3386_v1  ;;  %3266 = vmatprep.mubr.msk.bf16.mxu1 %vm3387_vm0, %v3386_v1 }
 0x120   : > { %2840 = vst [vmem:[%s3648_s13 + $0x20] sm:$0xff] %v2515_v17   ;;  %2875 = vst [vmem:[%s3648_s13 + $0x138] sm:$0xff] %v2690_v18  }
 0x121   : > { %v872_v19 = vpop.f32.mrb[20].mxu0  ;;  %v1152_v20 = vpop.f32.mrb[20].mxu1 }
 0x122   : > { %v3020_v21 = vpop.f32.mrb[21].mxu0  ;;  %v1153_v23 = vadd.f32 %v3635_v63, %v1152_v20  ;;  %v3160_v24 = vpop.f32.mrb[21].mxu1  ;;  %v873_v28 = vadd.f32 %v3635_v63, %v872_v19 }
 0x123   : > { %v875_v26 = vpop.f32.mrb[22].mxu0  ;;  %v1155_v27 = vpop.f32.mrb[22].mxu1 }
 0x124   : > { %v876_v29 = vadd.f32 %v3635_v63, %v875_v26  ;;  %v3021_v30 = vpop.f32.mrb[23].mxu0  ;;  %v1156_v31 = vadd.f32 %v3635_v63, %v1155_v27  ;;  %v3161_v32 = vpop.f32.mrb[23].mxu1 }
 0x126   : > { %v2520_v33 = vpack.c.bf16 %v876_v29, %v873_v28  ;;  %3127 = vmatmul.mubr.bf16.gmra.mrb[128].mxu0 %v3372_v22  ;;  %v2695_v34 = vpack.c.bf16 %v1156_v31, %v1153_v23  ;;  %3267 = vmatmul.mubr.bf16.gmra.mrb[128].mxu1 %v3373_v25 }
 0x127   : > { %3130 = vmatprep.mubr.msk.bf16.mxu0 %vm3387_vm0, %v3386_v1  ;;  %3270 = vmatprep.mubr.msk.bf16.mxu1 %vm3387_vm0, %v3386_v1 }
 0x128   : > { %2841 = vst [vmem:[%s3648_s13 + $0x28] sm:$0xff] %v2520_v33   ;;  %2876 = vst [vmem:[%s3648_s13 + $0x140] sm:$0xff] %v2695_v34  }
 0x129   : > { %v880_v35 = vpop.f32.mrb[24].mxu0  ;;  %v1160_v36 = vpop.f32.mrb[24].mxu1 }
 0x12a   : > { %v3024_v37 = vpop.f32.mrb[25].mxu0  ;;  %v1161_v39 = vadd.f32 %v3635_v63, %v1160_v36  ;;  %v3164_v40 = vpop.f32.mrb[25].mxu1  ;;  %v881_v44 = vadd.f32 %v3635_v63, %v880_v35 }
 0x12b   : > { %v883_v42 = vpop.f32.mrb[26].mxu0  ;;  %v1163_v43 = vpop.f32.mrb[26].mxu1 }
 0x12c   : > { %v884_v45 = vadd.f32 %v3635_v63, %v883_v42  ;;  %v3025_v46 = vpop.f32.mrb[27].mxu0  ;;  %v1164_v47 = vadd.f32 %v3635_v63, %v1163_v43  ;;  %v3165_v48 = vpop.f32.mrb[27].mxu1 }
 0x12e   : > { %v2525_v49 = vpack.c.bf16 %v884_v45, %v881_v44  ;;  %3131 = vmatmul.mubr.bf16.gmra.mrb[132].mxu0 %v3374_v38  ;;  %v2700_v50 = vpack.c.bf16 %v1164_v47, %v1161_v39  ;;  %3271 = vmatmul.mubr.bf16.gmra.mrb[132].mxu1 %v3375_v41 }
 0x12f   : > { %3134 = vmatprep.mubr.msk.bf16.mxu0 %vm3387_vm0, %v3386_v1 }
 0x130   : > { %2842 = vst [vmem:[%s3648_s13 + $0x30] sm:$0xff] %v2525_v49   ;;  %2877 = vst [vmem:[%s3648_s13 + $0x148] sm:$0xff] %v2700_v50  }
 0x131   : > { %v888_v51 = vpop.f32.mrb[28].mxu0  ;;  %v1168_v52 = vpop.f32.mrb[28].mxu1 }
 0x132   : > { %v3028_v53 = vpop.f32.mrb[29].mxu0  ;;  %v1169_v55 = vadd.f32 %v3635_v63, %v1168_v52  ;;  %v3168_v56 = vpop.f32.mrb[29].mxu1  ;;  %v889_v59 = vadd.f32 %v3635_v63, %v888_v51 }
 0x133   : > { %v891_v57 = vpop.f32.mrb[30].mxu0  ;;  %v1171_v58 = vpop.f32.mrb[30].mxu1 }
 0x134   : > { %v892_v60 = vadd.f32 %v3635_v63, %v891_v57  ;;  %v3029_v61 = vpop.f32.mrb[31].mxu0  ;;  %v1172_v1 = vadd.f32 %v3635_v63, %v1171_v58  ;;  %v3169_v62 = vpop.f32.mrb[31].mxu1 }
 0x136   : > { %v2530_v0 = vpack.c.bf16 %v892_v60, %v889_v59  ;;  %3135 = vmatmul.mubr.bf16.gmra.mrb[136].mxu0 %v3376_v54  ;;  %v2705_v2 = vpack.c.bf16 %v1172_v1, %v1169_v55 }
 0x138   : > { %2843 = vst [vmem:[%s3648_s13 + $0x38] sm:$0xff] %v2530_v0   ;;  %2878 = vst [vmem:[%s3648_s13 + $0x150] sm:$0xff] %v2705_v2  }
 0x139   : > { %v896_v3 = vpop.f32.mrb[32].mxu0  ;;  %v1176_v4 = vpop.f32.mrb[32].mxu1 }
 0x13a   : > { %v3032_v5 = vpop.f32.mrb[33].mxu0  ;;  %v1177_v6 = vadd.f32 %v3635_v63, %v1176_v4  ;;  %v3172_v7 = vpop.f32.mrb[33].mxu1  ;;  %v897_v10 = vadd.f32 %v3635_v63, %v896_v3 }
 0x13b   : > { %v899_v8 = vpop.f32.mrb[34].mxu0  ;;  %v1179_v9 = vpop.f32.mrb[34].mxu1 }
 0x13c   : > { %v900_v11 = vadd.f32 %v3635_v63, %v899_v8  ;;  %v3033_v12 = vpop.f32.mrb[35].mxu0  ;;  %v1180_v13 = vadd.f32 %v3635_v63, %v1179_v9  ;;  %v3173_v14 = vpop.f32.mrb[35].mxu1 }
 0x13e   : > { %v2535_v15 = vpack.c.bf16 %v900_v11, %v897_v10  ;;  %v2710_v16 = vpack.c.bf16 %v1180_v13, %v1177_v6 }
 0x140   : > { %2844 = vst [vmem:[%s3648_s13 + $0x40] sm:$0xff] %v2535_v15   ;;  %2879 = vst [vmem:[%s3648_s13 + $0x158] sm:$0xff] %v2710_v16  }
 0x141   : > { %v904_v17 = vpop.f32.mrb[36].mxu0  ;;  %v1184_v18 = vpop.f32.mrb[36].mxu1 }
 0x142   : > { %v3036_v19 = vpop.f32.mrb[37].mxu0  ;;  %v1185_v20 = vadd.f32 %v3635_v63, %v1184_v18  ;;  %v3176_v21 = vpop.f32.mrb[37].mxu1  ;;  %v905_v24 = vadd.f32 %v3635_v63, %v904_v17 }
 0x143   : > { %v907_v22 = vpop.f32.mrb[38].mxu0  ;;  %v1187_v23 = vpop.f32.mrb[38].mxu1 }
 0x144   : > { %v908_v25 = vadd.f32 %v3635_v63, %v907_v22  ;;  %v3037_v26 = vpop.f32.mrb[39].mxu0  ;;  %v1188_v27 = vadd.f32 %v3635_v63, %v1187_v23  ;;  %v3177_v28 = vpop.f32.mrb[39].mxu1 }
 0x146   : > { %v2540_v29 = vpack.c.bf16 %v908_v25, %v905_v24  ;;  %v2715_v30 = vpack.c.bf16 %v1188_v27, %v1185_v20 }
 0x148   : > { %2845 = vst [vmem:[%s3648_s13 + $0x48] sm:$0xff] %v2540_v29   ;;  %2880 = vst [vmem:[%s3648_s13 + $0x160] sm:$0xff] %v2715_v30  }
 0x149   : > { %v912_v31 = vpop.f32.mrb[40].mxu0  ;;  %v1192_v32 = vpop.f32.mrb[40].mxu1 }
 0x14a   : > { %v3040_v33 = vpop.f32.mrb[41].mxu0  ;;  %v1193_v34 = vadd.f32 %v3635_v63, %v1192_v32  ;;  %v3180_v35 = vpop.f32.mrb[41].mxu1  ;;  %v913_v38 = vadd.f32 %v3635_v63, %v912_v31 }
 0x14b   : > { %v915_v36 = vpop.f32.mrb[42].mxu0  ;;  %v1195_v37 = vpop.f32.mrb[42].mxu1 }
 0x14c   : > { %v916_v39 = vadd.f32 %v3635_v63, %v915_v36  ;;  %v3041_v40 = vpop.f32.mrb[43].mxu0  ;;  %v1196_v41 = vadd.f32 %v3635_v63, %v1195_v37  ;;  %v3181_v42 = vpop.f32.mrb[43].mxu1 }
 0x14e   : > { %v2545_v43 = vpack.c.bf16 %v916_v39, %v913_v38  ;;  %v2720_v44 = vpack.c.bf16 %v1196_v41, %v1193_v34 }
 0x150   : > { %2846 = vst [vmem:[%s3648_s13 + $0x50] sm:$0xff] %v2545_v43   ;;  %2881 = vst [vmem:[%s3648_s13 + $0x168] sm:$0xff] %v2720_v44  }
 0x151   : > { %v920_v45 = vpop.f32.mrb[44].mxu0  ;;  %v1200_v46 = vpop.f32.mrb[44].mxu1 }
 0x152   : > { %v3044_v47 = vpop.f32.mrb[45].mxu0  ;;  %v1201_v48 = vadd.f32 %v3635_v63, %v1200_v46  ;;  %v3184_v49 = vpop.f32.mrb[45].mxu1  ;;  %v921_v52 = vadd.f32 %v3635_v63, %v920_v45 }
 0x153   : > { %v923_v50 = vpop.f32.mrb[46].mxu0  ;;  %v1203_v51 = vpop.f32.mrb[46].mxu1 }
 0x154   : > { %v924_v53 = vadd.f32 %v3635_v63, %v923_v50  ;;  %v3045_v54 = vpop.f32.mrb[47].mxu0  ;;  %v1204_v55 = vadd.f32 %v3635_v63, %v1203_v51  ;;  %v3185_v56 = vpop.f32.mrb[47].mxu1 }
 0x156   : > { %v2550_v57 = vpack.c.bf16 %v924_v53, %v921_v52  ;;  %v2725_v58 = vpack.c.bf16 %v1204_v55, %v1201_v48 }
 0x158   : > { %2847 = vst [vmem:[%s3648_s13 + $0x58] sm:$0xff] %v2550_v57   ;;  %2882 = vst [vmem:[%s3648_s13 + $0x170] sm:$0xff] %v2725_v58  }
 0x159   : > { %v928_v59 = vpop.f32.mrb[48].mxu0  ;;  %v1208_v60 = vpop.f32.mrb[48].mxu1 }
 0x15a   : > { %v3048_v61 = vpop.f32.mrb[49].mxu0  ;;  %v1209_v1 = vadd.f32 %v3635_v63, %v1208_v60  ;;  %v3188_v62 = vpop.f32.mrb[49].mxu1  ;;  %v929_v3 = vadd.f32 %v3635_v63, %v928_v59 }
 0x15b   : > { %v931_v0 = vpop.f32.mrb[50].mxu0  ;;  %v1211_v2 = vpop.f32.mrb[50].mxu1 }
 0x15c   : > { %v932_v4 = vadd.f32 %v3635_v63, %v931_v0  ;;  %v3049_v5 = vpop.f32.mrb[51].mxu0  ;;  %v1212_v6 = vadd.f32 %v3635_v63, %v1211_v2  ;;  %v3189_v7 = vpop.f32.mrb[51].mxu1 }
 0x15e   : > { %v2555_v8 = vpack.c.bf16 %v932_v4, %v929_v3  ;;  %v2730_v9 = vpack.c.bf16 %v1212_v6, %v1209_v1 }
 0x160   : > { %2848 = vst [vmem:[%s3648_s13 + $0x60] sm:$0xff] %v2555_v8   ;;  %2883 = vst [vmem:[%s3648_s13 + $0x178] sm:$0xff] %v2730_v9  }
 0x161   : > { %v936_v10 = vpop.f32.mrb[52].mxu0  ;;  %v1216_v11 = vpop.f32.mrb[52].mxu1 }
 0x162   : > { %v3052_v12 = vpop.f32.mrb[53].mxu0  ;;  %v1217_v13 = vadd.f32 %v3635_v63, %v1216_v11  ;;  %v3192_v14 = vpop.f32.mrb[53].mxu1  ;;  %v937_v17 = vadd.f32 %v3635_v63, %v936_v10 }
 0x163   : > { %v939_v15 = vpop.f32.mrb[54].mxu0  ;;  %v1219_v16 = vpop.f32.mrb[54].mxu1 }
 0x164   : > { %v940_v18 = vadd.f32 %v3635_v63, %v939_v15  ;;  %v3053_v19 = vpop.f32.mrb[55].mxu0  ;;  %v1220_v20 = vadd.f32 %v3635_v63, %v1219_v16  ;;  %v3193_v21 = vpop.f32.mrb[55].mxu1 }
 0x166   : > { %v2560_v22 = vpack.c.bf16 %v940_v18, %v937_v17  ;;  %v2735_v23 = vpack.c.bf16 %v1220_v20, %v1217_v13 }
 0x168   : > { %2849 = vst [vmem:[%s3648_s13 + $0x68] sm:$0xff] %v2560_v22   ;;  %2884 = vst [vmem:[%s3648_s13 + $0x180] sm:$0xff] %v2735_v23  }
 0x169   : > { %v944_v24 = vpop.f32.mrb[56].mxu0  ;;  %v1224_v25 = vpop.f32.mrb[56].mxu1 }
 0x16a   : > { %v3056_v26 = vpop.f32.mrb[57].mxu0  ;;  %v1225_v27 = vadd.f32 %v3635_v63, %v1224_v25  ;;  %v3196_v28 = vpop.f32.mrb[57].mxu1  ;;  %v945_v31 = vadd.f32 %v3635_v63, %v944_v24 }
 0x16b   : > { %v947_v29 = vpop.f32.mrb[58].mxu0  ;;  %v1227_v30 = vpop.f32.mrb[58].mxu1 }
 0x16c   : > { %v948_v32 = vadd.f32 %v3635_v63, %v947_v29  ;;  %v3057_v33 = vpop.f32.mrb[59].mxu0  ;;  %v1228_v34 = vadd.f32 %v3635_v63, %v1227_v30  ;;  %v3197_v35 = vpop.f32.mrb[59].mxu1 }
 0x16e   : > { %v2565_v36 = vpack.c.bf16 %v948_v32, %v945_v31  ;;  %v2740_v37 = vpack.c.bf16 %v1228_v34, %v1225_v27 }
 0x170   : > { %2850 = vst [vmem:[%s3648_s13 + $0x70] sm:$0xff] %v2565_v36   ;;  %2885 = vst [vmem:[%s3648_s13 + $0x188] sm:$0xff] %v2740_v37  }
 0x171   : > { %v952_v38 = vpop.f32.mrb[60].mxu0  ;;  %v1232_v39 = vpop.f32.mrb[60].mxu1 }
 0x172   : > { %v3060_v40 = vpop.f32.mrb[61].mxu0  ;;  %v1233_v41 = vadd.f32 %v3635_v63, %v1232_v39  ;;  %v3200_v42 = vpop.f32.mrb[61].mxu1  ;;  %v953_v45 = vadd.f32 %v3635_v63, %v952_v38 }
 0x173   : > { %v955_v43 = vpop.f32.mrb[62].mxu0  ;;  %v1235_v44 = vpop.f32.mrb[62].mxu1 }
 0x174   : > { %v956_v46 = vadd.f32 %v3635_v63, %v955_v43  ;;  %v3061_v47 = vpop.f32.mrb[63].mxu0  ;;  %v1236_v48 = vadd.f32 %v3635_v63, %v1235_v44  ;;  %v3201_v49 = vpop.f32.mrb[63].mxu1 }
 0x176   : > { %v2570_v50 = vpack.c.bf16 %v956_v46, %v953_v45  ;;  %v2745_v51 = vpack.c.bf16 %v1236_v48, %v1233_v41 }
 0x178   : > { %2851 = vst [vmem:[%s3648_s13 + $0x78] sm:$0xff] %v2570_v50   ;;  %2886 = vst [vmem:[%s3648_s13 + $0x190] sm:$0xff] %v2745_v51  }
 0x179   : > { %v960_v52 = vpop.f32.mrb[64].mxu0  ;;  %v1240_v53 = vpop.f32.mrb[64].mxu1 }
 0x17a   : > { %v3064_v54 = vpop.f32.mrb[65].mxu0  ;;  %v1241_v55 = vadd.f32 %v3635_v63, %v1240_v53  ;;  %v3204_v56 = vpop.f32.mrb[65].mxu1  ;;  %v961_v59 = vadd.f32 %v3635_v63, %v960_v52 }
 0x17b   : > { %v963_v57 = vpop.f32.mrb[66].mxu0  ;;  %v1243_v58 = vpop.f32.mrb[66].mxu1 }
 0x17c   : > { %v964_v60 = vadd.f32 %v3635_v63, %v963_v57  ;;  %v3065_v61 = vpop.f32.mrb[67].mxu0  ;;  %v1244_v1 = vadd.f32 %v3635_v63, %v1243_v58  ;;  %v3205_v62 = vpop.f32.mrb[67].mxu1 }
 0x17e   : > { %v2575_v0 = vpack.c.bf16 %v964_v60, %v961_v59  ;;  %v2750_v2 = vpack.c.bf16 %v1244_v1, %v1241_v55 }
 0x180   : > { %2852 = vst [vmem:[%s3648_s13 + $0x80] sm:$0xff] %v2575_v0   ;;  %2887 = vst [vmem:[%s3648_s13 + $0x198] sm:$0xff] %v2750_v2  }
 0x181   : > { %v968_v3 = vpop.f32.mrb[68].mxu0  ;;  %v1248_v4 = vpop.f32.mrb[68].mxu1 }
 0x182   : > { %v3068_v5 = vpop.f32.mrb[69].mxu0  ;;  %v1249_v6 = vadd.f32 %v3635_v63, %v1248_v4  ;;  %v3208_v7 = vpop.f32.mrb[69].mxu1  ;;  %v969_v10 = vadd.f32 %v3635_v63, %v968_v3 }
 0x183   : > { %v971_v8 = vpop.f32.mrb[70].mxu0  ;;  %v1251_v9 = vpop.f32.mrb[70].mxu1 }
 0x184   : > { %v972_v11 = vadd.f32 %v3635_v63, %v971_v8  ;;  %v3069_v12 = vpop.f32.mrb[71].mxu0  ;;  %v1252_v13 = vadd.f32 %v3635_v63, %v1251_v9  ;;  %v3209_v14 = vpop.f32.mrb[71].mxu1 }
 0x186   : > { %v2580_v15 = vpack.c.bf16 %v972_v11, %v969_v10  ;;  %v2755_v16 = vpack.c.bf16 %v1252_v13, %v1249_v6 }
 0x188   : > { %2853 = vst [vmem:[%s3648_s13 + $0x88] sm:$0xff] %v2580_v15   ;;  %2888 = vst [vmem:[%s3648_s13 + $0x1a0] sm:$0xff] %v2755_v16  }
 0x189   : > { %v976_v17 = vpop.f32.mrb[72].mxu0  ;;  %v1256_v18 = vpop.f32.mrb[72].mxu1 }
 0x18a   : > { %v3072_v19 = vpop.f32.mrb[73].mxu0  ;;  %v1257_v20 = vadd.f32 %v3635_v63, %v1256_v18  ;;  %v3212_v21 = vpop.f32.mrb[73].mxu1  ;;  %v977_v24 = vadd.f32 %v3635_v63, %v976_v17 }
 0x18b   : > { %v979_v22 = vpop.f32.mrb[74].mxu0  ;;  %v1259_v23 = vpop.f32.mrb[74].mxu1 }
 0x18c   : > { %v980_v25 = vadd.f32 %v3635_v63, %v979_v22  ;;  %v3073_v26 = vpop.f32.mrb[75].mxu0  ;;  %v1260_v27 = vadd.f32 %v3635_v63, %v1259_v23  ;;  %v3213_v28 = vpop.f32.mrb[75].mxu1 }
 0x18e   : > { %v2585_v29 = vpack.c.bf16 %v980_v25, %v977_v24  ;;  %v2760_v30 = vpack.c.bf16 %v1260_v27, %v1257_v20 }
 0x190   : > { %2854 = vst [vmem:[%s3648_s13 + $0x90] sm:$0xff] %v2585_v29   ;;  %2889 = vst [vmem:[%s3648_s13 + $0x1a8] sm:$0xff] %v2760_v30  }
 0x191   : > { %v984_v31 = vpop.f32.mrb[76].mxu0  ;;  %v1264_v32 = vpop.f32.mrb[76].mxu1 }
 0x192   : > { %v3076_v33 = vpop.f32.mrb[77].mxu0  ;;  %v1265_v34 = vadd.f32 %v3635_v63, %v1264_v32  ;;  %v3216_v35 = vpop.f32.mrb[77].mxu1  ;;  %v985_v38 = vadd.f32 %v3635_v63, %v984_v31 }
 0x193   : > { %v987_v36 = vpop.f32.mrb[78].mxu0  ;;  %v1267_v37 = vpop.f32.mrb[78].mxu1 }
 0x194   : > { %v988_v39 = vadd.f32 %v3635_v63, %v987_v36  ;;  %v3077_v40 = vpop.f32.mrb[79].mxu0  ;;  %v1268_v41 = vadd.f32 %v3635_v63, %v1267_v37  ;;  %v3217_v42 = vpop.f32.mrb[79].mxu1 }
 0x196   : > { %v2590_v43 = vpack.c.bf16 %v988_v39, %v985_v38  ;;  %v2765_v44 = vpack.c.bf16 %v1268_v41, %v1265_v34 }
 0x198   : > { %2855 = vst [vmem:[%s3648_s13 + $0x98] sm:$0xff] %v2590_v43   ;;  %2890 = vst [vmem:[%s3648_s13 + $0x1b0] sm:$0xff] %v2765_v44  }
 0x199   : > { %v992_v45 = vpop.f32.mrb[80].mxu0  ;;  %v1272_v46 = vpop.f32.mrb[80].mxu1 }
 0x19a   : > { %v3080_v47 = vpop.f32.mrb[81].mxu0  ;;  %v1273_v48 = vadd.f32 %v3635_v63, %v1272_v46  ;;  %v3220_v49 = vpop.f32.mrb[81].mxu1  ;;  %v993_v52 = vadd.f32 %v3635_v63, %v992_v45 }
 0x19b   : > { %v995_v50 = vpop.f32.mrb[82].mxu0  ;;  %v1275_v51 = vpop.f32.mrb[82].mxu1 }
 0x19c   : > { %v996_v53 = vadd.f32 %v3635_v63, %v995_v50  ;;  %v3081_v54 = vpop.f32.mrb[83].mxu0  ;;  %v1276_v55 = vadd.f32 %v3635_v63, %v1275_v51  ;;  %v3221_v56 = vpop.f32.mrb[83].mxu1 }
 0x19e   : > { %v2595_v57 = vpack.c.bf16 %v996_v53, %v993_v52  ;;  %v2770_v58 = vpack.c.bf16 %v1276_v55, %v1273_v48 }
 0x1a0   : > { %2856 = vst [vmem:[%s3648_s13 + $0xa0] sm:$0xff] %v2595_v57   ;;  %2891 = vst [vmem:[%s3648_s13 + $0x1b8] sm:$0xff] %v2770_v58  }
 0x1a1   : > { %v1000_v59 = vpop.f32.mrb[84].mxu0  ;;  %v1280_v60 = vpop.f32.mrb[84].mxu1 }
 0x1a2   : > { %v3084_v61 = vpop.f32.mrb[85].mxu0  ;;  %v1281_v1 = vadd.f32 %v3635_v63, %v1280_v60  ;;  %v3224_v62 = vpop.f32.mrb[85].mxu1  ;;  %v1001_v3 = vadd.f32 %v3635_v63, %v1000_v59 }
 0x1a3   : > { %v1003_v0 = vpop.f32.mrb[86].mxu0  ;;  %v1283_v2 = vpop.f32.mrb[86].mxu1 }
 0x1a4   : > { %v1004_v4 = vadd.f32 %v3635_v63, %v1003_v0  ;;  %v3085_v5 = vpop.f32.mrb[87].mxu0  ;;  %v1284_v6 = vadd.f32 %v3635_v63, %v1283_v2  ;;  %v3225_v7 = vpop.f32.mrb[87].mxu1 }
 0x1a6   : > { %v2600_v8 = vpack.c.bf16 %v1004_v4, %v1001_v3  ;;  %v2775_v9 = vpack.c.bf16 %v1284_v6, %v1281_v1 }
 0x1a8   : > { %2857 = vst [vmem:[%s3648_s13 + $0xa8] sm:$0xff] %v2600_v8   ;;  %2892 = vst [vmem:[%s3648_s13 + $0x1c0] sm:$0xff] %v2775_v9  }
 0x1a9   : > { %v1008_v10 = vpop.f32.mrb[88].mxu0  ;;  %v1288_v11 = vpop.f32.mrb[88].mxu1 }
 0x1aa   : > { %v3088_v12 = vpop.f32.mrb[89].mxu0  ;;  %v1289_v13 = vadd.f32 %v3635_v63, %v1288_v11  ;;  %v3228_v14 = vpop.f32.mrb[89].mxu1  ;;  %v1009_v17 = vadd.f32 %v3635_v63, %v1008_v10 }
 0x1ab   : > { %v1011_v15 = vpop.f32.mrb[90].mxu0  ;;  %v1291_v16 = vpop.f32.mrb[90].mxu1 }
 0x1ac   : > { %v1012_v18 = vadd.f32 %v3635_v63, %v1011_v15  ;;  %v3089_v19 = vpop.f32.mrb[91].mxu0  ;;  %v1292_v20 = vadd.f32 %v3635_v63, %v1291_v16  ;;  %v3229_v21 = vpop.f32.mrb[91].mxu1 }
 0x1ae   : > { %v2605_v22 = vpack.c.bf16 %v1012_v18, %v1009_v17  ;;  %v2780_v23 = vpack.c.bf16 %v1292_v20, %v1289_v13 }
 0x1b0   : > { %2858 = vst [vmem:[%s3648_s13 + $0xb0] sm:$0xff] %v2605_v22   ;;  %2893 = vst [vmem:[%s3648_s13 + $0x1c8] sm:$0xff] %v2780_v23  }
 0x1b1   : > { %v1016_v24 = vpop.f32.mrb[92].mxu0  ;;  %v1296_v25 = vpop.f32.mrb[92].mxu1 }
 0x1b2   : > { %v3092_v26 = vpop.f32.mrb[93].mxu0  ;;  %v1297_v27 = vadd.f32 %v3635_v63, %v1296_v25  ;;  %v3232_v28 = vpop.f32.mrb[93].mxu1  ;;  %v1017_v31 = vadd.f32 %v3635_v63, %v1016_v24 }
 0x1b3   : > { %v1019_v29 = vpop.f32.mrb[94].mxu0  ;;  %v1299_v30 = vpop.f32.mrb[94].mxu1 }
 0x1b4   : > { %v1020_v32 = vadd.f32 %v3635_v63, %v1019_v29  ;;  %v3093_v33 = vpop.f32.mrb[95].mxu0  ;;  %v1300_v34 = vadd.f32 %v3635_v63, %v1299_v30  ;;  %v3233_v35 = vpop.f32.mrb[95].mxu1 }
 0x1b6   : > { %v2610_v36 = vpack.c.bf16 %v1020_v32, %v1017_v31  ;;  %v2785_v37 = vpack.c.bf16 %v1300_v34, %v1297_v27 }
 0x1b8   : > { %2859 = vst [vmem:[%s3648_s13 + $0xb8] sm:$0xff] %v2610_v36   ;;  %2894 = vst [vmem:[%s3648_s13 + $0x1d0] sm:$0xff] %v2785_v37  }
 0x1b9   : > { %v1024_v38 = vpop.f32.mrb[96].mxu0  ;;  %v1304_v39 = vpop.f32.mrb[96].mxu1 }
 0x1ba   : > { %v3096_v40 = vpop.f32.mrb[97].mxu0  ;;  %v1305_v41 = vadd.f32 %v3635_v63, %v1304_v39  ;;  %v3236_v42 = vpop.f32.mrb[97].mxu1  ;;  %v1025_v45 = vadd.f32 %v3635_v63, %v1024_v38 }
 0x1bb   : > { %v1027_v43 = vpop.f32.mrb[98].mxu0  ;;  %v1307_v44 = vpop.f32.mrb[98].mxu1 }
 0x1bc   : > { %v1028_v46 = vadd.f32 %v3635_v63, %v1027_v43  ;;  %v3097_v47 = vpop.f32.mrb[99].mxu0  ;;  %v1308_v48 = vadd.f32 %v3635_v63, %v1307_v44  ;;  %v3237_v49 = vpop.f32.mrb[99].mxu1 }
 0x1be   : > { %v2615_v50 = vpack.c.bf16 %v1028_v46, %v1025_v45  ;;  %v2790_v51 = vpack.c.bf16 %v1308_v48, %v1305_v41  ;;  %v3862_v48 = vld [vmem:[%s3902_s2] ss:$0 sm:$0xff] }
 0x1c0   : > { %2860 = vst [vmem:[%s3648_s13 + $0xc0] sm:$0xff] %v2615_v50   ;;  %2895 = vst [vmem:[%s3648_s13 + $0x1d8] sm:$0xff] %v2790_v51  }
 0x1c1   : > { %v1032_v52 = vpop.f32.mrb[100].mxu0  ;;  %v1312_v53 = vpop.f32.mrb[100].mxu1 }
 0x1c2   : > { %v3100_v54 = vpop.f32.mrb[101].mxu0  ;;  %v1313_v55 = vadd.f32 %v3635_v63, %v1312_v53  ;;  %v3240_v56 = vpop.f32.mrb[101].mxu1  ;;  %v1033_v59 = vadd.f32 %v3635_v63, %v1032_v52 }
 0x1c3   : > { %v1035_v57 = vpop.f32.mrb[102].mxu0  ;;  %v1315_v58 = vpop.f32.mrb[102].mxu1 }
 0x1c4   : > { %v1036_v60 = vadd.f32 %v3635_v63, %v1035_v57  ;;  %v3101_v61 = vpop.f32.mrb[103].mxu0  ;;  %v1316_v1 = vadd.f32 %v3635_v63, %v1315_v58  ;;  %v3241_v62 = vpop.f32.mrb[103].mxu1 }
 0x1c6   : > { %v2620_v0 = vpack.c.bf16 %v1036_v60, %v1033_v59  ;;  %v2795_v2 = vpack.c.bf16 %v1316_v1, %v1313_v55 }
 0x1c8   : > { %2861 = vst [vmem:[%s3648_s13 + $0xc8] sm:$0xff] %v2620_v0   ;;  %2896 = vst [vmem:[%s3648_s13 + $0x1e0] sm:$0xff] %v2795_v2  }
 0x1c9   : > { %v1040_v3 = vpop.f32.mrb[104].mxu0  ;;  %v1320_v4 = vpop.f32.mrb[104].mxu1 }
 0x1ca   : > { %v3104_v5 = vpop.f32.mrb[105].mxu0  ;;  %v1321_v6 = vadd.f32 %v3635_v63, %v1320_v4  ;;  %v3244_v7 = vpop.f32.mrb[105].mxu1  ;;  %v1041_v10 = vadd.f32 %v3635_v63, %v1040_v3 }
 0x1cb   : > { %v1043_v8 = vpop.f32.mrb[106].mxu0  ;;  %v1323_v9 = vpop.f32.mrb[106].mxu1 }
 0x1cc   : > { %v1044_v11 = vadd.f32 %v3635_v63, %v1043_v8  ;;  %v3105_v12 = vpop.f32.mrb[107].mxu0  ;;  %v1324_v13 = vadd.f32 %v3635_v63, %v1323_v9  ;;  %v3245_v14 = vpop.f32.mrb[107].mxu1 }
 0x1ce   : > { %v2625_v15 = vpack.c.bf16 %v1044_v11, %v1041_v10  ;;  %v2800_v16 = vpack.c.bf16 %v1324_v13, %v1321_v6 }
 0x1d0   : > { %2862 = vst [vmem:[%s3648_s13 + $0xd0] sm:$0xff] %v2625_v15   ;;  %2897 = vst [vmem:[%s3648_s13 + $0x1e8] sm:$0xff] %v2800_v16  }
 0x1d1   : > { %v1048_v17 = vpop.f32.mrb[108].mxu0  ;;  %v1328_v18 = vpop.f32.mrb[108].mxu1 }
 0x1d2   : > { %v3108_v19 = vpop.f32.mrb[109].mxu0  ;;  %v1329_v20 = vadd.f32 %v3635_v63, %v1328_v18  ;;  %v3248_v21 = vpop.f32.mrb[109].mxu1  ;;  %v1049_v24 = vadd.f32 %v3635_v63, %v1048_v17 }
 0x1d3   : > { %v1051_v22 = vpop.f32.mrb[110].mxu0  ;;  %v1331_v23 = vpop.f32.mrb[110].mxu1 }
 0x1d4   : > { %v1052_v25 = vadd.f32 %v3635_v63, %v1051_v22  ;;  %v3109_v26 = vpop.f32.mrb[111].mxu0  ;;  %v1332_v27 = vadd.f32 %v3635_v63, %v1331_v23  ;;  %v3249_v28 = vpop.f32.mrb[111].mxu1 }
 0x1d6   : > { %v2630_v29 = vpack.c.bf16 %v1052_v25, %v1049_v24  ;;  %v2805_v30 = vpack.c.bf16 %v1332_v27, %v1329_v20 }
 0x1d8   : > { %2863 = vst [vmem:[%s3648_s13 + $0xd8] sm:$0xff] %v2630_v29   ;;  %2898 = vst [vmem:[%s3648_s13 + $0x1f0] sm:$0xff] %v2805_v30  }
 0x1d9   : > { %v1056_v31 = vpop.f32.mrb[112].mxu0  ;;  %v1336_v32 = vpop.f32.mrb[112].mxu1 }
 0x1da   : > { %v3112_v33 = vpop.f32.mrb[113].mxu0  ;;  %v1337_v34 = vadd.f32 %v3635_v63, %v1336_v32  ;;  %v3252_v35 = vpop.f32.mrb[113].mxu1  ;;  %v1057_v38 = vadd.f32 %v3635_v63, %v1056_v31 }
 0x1db   : > { %v1059_v36 = vpop.f32.mrb[114].mxu0  ;;  %v1339_v37 = vpop.f32.mrb[114].mxu1 }
 0x1dc   : > { %v1060_v39 = vadd.f32 %v3635_v63, %v1059_v36  ;;  %v3113_v40 = vpop.f32.mrb[115].mxu0  ;;  %v1340_v41 = vadd.f32 %v3635_v63, %v1339_v37  ;;  %v3253_v42 = vpop.f32.mrb[115].mxu1 }
 0x1de   : > { %v2635_v43 = vpack.c.bf16 %v1060_v39, %v1057_v38  ;;  %v2810_v44 = vpack.c.bf16 %v1340_v41, %v1337_v34 }
 0x1e0   : > { %2864 = vst [vmem:[%s3648_s13 + $0xe0] sm:$0xff] %v2635_v43   ;;  %2899 = vst [vmem:[%s3648_s13 + $0x1f8] sm:$0xff] %v2810_v44  }
 0x1e1   : > { %v1064_v45 = vpop.f32.mrb[116].mxu0  ;;  %v1344_v46 = vpop.f32.mrb[116].mxu1 }
 0x1e2   : > { %v3116_v47 = vpop.f32.mrb[117].mxu0  ;;  %v1345_v49 = vadd.f32 %v3862_v48, %v1344_v46  ;;  %v3256_v50 = vpop.f32.mrb[117].mxu1  ;;  %v1065_v52 = vadd.f32 %v3862_v48, %v1064_v45 }
 0x1e3   : > { %v1067_v51 = vpop.f32.mrb[118].mxu0  ;;  %v1347_v63 = vpop.f32.mrb[118].mxu1 }
 0x1e4   : > { %v1068_v53 = vadd.f32 %v3862_v48, %v1067_v51  ;;  %v3117_v54 = vpop.f32.mrb[119].mxu0  ;;  %v1348_v55 = vadd.f32 %v3862_v48, %v1347_v63  ;;  %v3257_v56 = vpop.f32.mrb[119].mxu1 }
 0x1e6   : > { %v2640_v57 = vpack.c.bf16 %v1068_v53, %v1065_v52  ;;  %v2815_v58 = vpack.c.bf16 %v1348_v55, %v1345_v49 }
 0x1e8   : > { %2865 = vst [vmem:[%s3648_s13 + $0xe8] sm:$0xff] %v2640_v57   ;;  %2900 = vst [vmem:[%s3648_s13 + $0x200] sm:$0xff] %v2815_v58  }
 0x1e9   : > { %v1072_v59 = vpop.f32.mrb[120].mxu0  ;;  %v1352_v60 = vpop.f32.mrb[120].mxu1 }
 0x1ea   : > { %v3120_v61 = vpop.f32.mrb[121].mxu0  ;;  %v1353_v1 = vadd.f32 %v3862_v48, %v1352_v60  ;;  %v3260_v62 = vpop.f32.mrb[121].mxu1  ;;  %v1073_v3 = vadd.f32 %v3862_v48, %v1072_v59 }
 0x1eb   : > { %v1075_v0 = vpop.f32.mrb[122].mxu0  ;;  %v1355_v2 = vpop.f32.mrb[122].mxu1 }
 0x1ec   : > { %v1076_v4 = vadd.f32 %v3862_v48, %v1075_v0  ;;  %v3121_v5 = vpop.f32.mrb[123].mxu0  ;;  %v1356_v6 = vadd.f32 %v3862_v48, %v1355_v2  ;;  %v3261_v7 = vpop.f32.mrb[123].mxu1 }
 0x1ee   : > { %v2645_v8 = vpack.c.bf16 %v1076_v4, %v1073_v3  ;;  %v2820_v9 = vpack.c.bf16 %v1356_v6, %v1353_v1 }
 0x1f0   : > { %2866 = vst [vmem:[%s3648_s13 + $0xf0] sm:$0xff] %v2645_v8   ;;  %2901 = vst [vmem:[%s3648_s13 + $0x208] sm:$0xff] %v2820_v9  }
 0x1f1   : > { %v1080_v10 = vpop.f32.mrb[124].mxu0  ;;  %v1360_v11 = vpop.f32.mrb[124].mxu1 }
 0x1f2   : > { %v3124_v12 = vpop.f32.mrb[125].mxu0  ;;  %v1361_v13 = vadd.f32 %v3862_v48, %v1360_v11  ;;  %v3264_v14 = vpop.f32.mrb[125].mxu1  ;;  %v1081_v17 = vadd.f32 %v3862_v48, %v1080_v10 }
 0x1f3   : > { %v1083_v15 = vpop.f32.mrb[126].mxu0  ;;  %v1363_v16 = vpop.f32.mrb[126].mxu1 }
 0x1f4   : > { %v1084_v18 = vadd.f32 %v3862_v48, %v1083_v15  ;;  %v3125_v19 = vpop.f32.mrb[127].mxu0  ;;  %v1364_v20 = vadd.f32 %v3862_v48, %v1363_v16  ;;  %v3265_v21 = vpop.f32.mrb[127].mxu1 }
 0x1f6   : > { %v2650_v22 = vpack.c.bf16 %v1084_v18, %v1081_v17  ;;  %v2825_v23 = vpack.c.bf16 %v1364_v20, %v1361_v13 }
 0x1f8   : > { %2867 = vst [vmem:[%s3648_s13 + $0xf8] sm:$0xff] %v2650_v22   ;;  %2902 = vst [vmem:[%s3648_s13 + $0x210] sm:$0xff] %v2825_v23  }
 0x1f9   : > { %v1088_v24 = vpop.f32.mrb[128].mxu0  ;;  %v1368_v25 = vpop.f32.mrb[128].mxu1 }
 0x1fa   : > { %v3128_v26 = vpop.f32.mrb[129].mxu0  ;;  %v1369_v27 = vadd.f32 %v3862_v48, %v1368_v25  ;;  %v3268_v28 = vpop.f32.mrb[129].mxu1  ;;  %v1089_v31 = vadd.f32 %v3862_v48, %v1088_v24 }
 0x1fb   : > { %v1091_v29 = vpop.f32.mrb[130].mxu0  ;;  %v1371_v30 = vpop.f32.mrb[130].mxu1 }
 0x1fc   : > { %v1092_v32 = vadd.f32 %v3862_v48, %v1091_v29  ;;  %v3129_v33 = vpop.f32.mrb[131].mxu0  ;;  %v1372_v34 = vadd.f32 %v3862_v48, %v1371_v30  ;;  %v3269_v35 = vpop.f32.mrb[131].mxu1 }
 0x1fe   : > { %v2655_v36 = vpack.c.bf16 %v1092_v32, %v1089_v31  ;;  %v2830_v37 = vpack.c.bf16 %v1372_v34, %v1369_v27 }
 0x200   : > { %2868 = vst [vmem:[%s3648_s13 + $0x100] sm:$0xff] %v2655_v36   ;;  %2903 = vst [vmem:[%s3648_s13 + $0x218] sm:$0xff] %v2830_v37  }
 0x201   : > { %v1096_v38 = vpop.f32.mrb[132].mxu0  ;;  %v1376_v39 = vpop.f32.mrb[132].mxu1 }
 0x202   : > { %v3132_v40 = vpop.f32.mrb[133].mxu0  ;;  %v1377_v41 = vadd.f32 %v3862_v48, %v1376_v39  ;;  %v3272_v42 = vpop.f32.mrb[133].mxu1  ;;  %v1097_v45 = vadd.f32 %v3862_v48, %v1096_v38 }
 0x203   : > { %v1099_v43 = vpop.f32.mrb[134].mxu0  ;;  %v1379_v44 = vpop.f32.mrb[134].mxu1 }
 0x204   : > { %v1100_v46 = vadd.f32 %v3862_v48, %v1099_v43  ;;  %v3133_v47 = vpop.f32.mrb[135].mxu0  ;;  %v1380_v49 = vadd.f32 %v3862_v48, %v1379_v44  ;;  %v3273_v50 = vpop.f32.mrb[135].mxu1 }
 0x206   : > { %v2660_v51 = vpack.c.bf16 %v1100_v46, %v1097_v45  ;;  %v2835_v63 = vpack.c.bf16 %v1380_v49, %v1377_v41 }
 0x208   : > { %2869 = vst [vmem:[%s3648_s13 + $0x108] sm:$0xff] %v2660_v51   ;;  %2904 = vst [vmem:[%s3648_s13 + $0x220] sm:$0xff] %v2835_v63  }
 0x209   : > { %v1104_v52 = vpop.f32.mrb[136].mxu0 }
 0x20a   : > { %v3136_v53 = vpop.f32.mrb[137].mxu0  ;;  %v1105_v55 = vadd.f32 %v3862_v48, %v1104_v52 }
 0x20b   : > { %v1107_v54 = vpop.f32.mrb[138].mxu0 }
 0x20c   : > { %v1108_v56 = vadd.f32 %v3862_v48, %v1107_v54  ;;  %v3137_v57 = vpop.f32.mrb[139].mxu0 }
 0x20e   : > { %v2665_v58 = vpack.c.bf16 %v1108_v56, %v1105_v55 }
 0x210   : > { %2870 = vst [vmem:[%s3648_s13 + $0x110] sm:$0xff] %v2665_v58  }
 0x211 PF: > { %s13_s12 = sadd.s32 1, %s3384_s12  }
 0x212   : > { %p10_p4 = scmp.ge.s32.totalorder %s13_s12, 4  }
 0x214   :  { %12 = sbr.rel (!%p10_p4) target bundleno = 1 (0x1), region = 62 }

</bundles_post_ra>
